<compile_context>
chip_gen: v6e
topology: v6e:2x2x1
jax: 0.10.0
libtpu: 0.0.40
codegen_flags: <defaults>
</compile_context>

<pallas_src>
import functools
import math

import jax
import jax.numpy as jnp
from jax.experimental import pallas as pl
from jax.experimental.pallas import tpu as pltpu

SQRT_HALF = float(math.sqrt(0.5))   # np.sqrt(0.5) gain used by ResBlock
LANE = 128                          # TPU lane width


def _round_up(n, m):
    return ((n + m - 1) // m) * m


# ----------------------------- Pallas kernel ------------------------------- #

def _resblock_kernel(x_ref, w0_ref, b0_ref, w1_ref, ws_ref, bo_ref,
                     out_ref, h0_ref, *, img_w, row_tile, n_row_tiles):
    """Fused ResBlock forward for one (batch, row-tile) grid step.

    x_ref  : (1, row_tile+4, img_w+4, Cin_p)  bf16 input tile incl. 2px halo
    w0_ref : (9*Cin_p,  Cout_p) bf16   conv0 taps, (dx, dy, cin) flattened
    w1_ref : (9*Cout_p, Cout_p) bf16   conv1 taps, (dx, dy, cin), sqrt(.5) folded
    ws_ref : (Cin_p,    Cout_p) bf16   1x1 skip, sqrt(.5) folded
    b0_ref : (1, Cout_p) f32           conv0 bias
    bo_ref : (1, Cout_p) f32           (b1 + bs) * sqrt(.5)
    out_ref: (1, row_tile, img_w, Cout_p) bf16
    h0_ref : (row_tile+2, img_w+2, Cout_p) bf16 VMEM scratch (conv0 result)
    """
    th, iw = row_tile, img_w
    he, we = th + 2, iw + 2                       # conv0 extent needed by conv1
    cpi = x_ref.shape[-1]
    cpo = out_ref.shape[-1]
    k0, k1 = 3 * cpi, 3 * cpo

    x = x_ref[0]                                  # bf16, no f32 upcast

    # ---- conv0: 3 accumulated MXU dots, K = 3*Cin_p ----------------------- #
    acc0 = jnp.zeros((he * we, cpo), jnp.float32)
    for dx in range(3):
        taps = jnp.concatenate(
            [x[dy:dy + he, dx:dx + we, :] for dy in range(3)], axis=-1)
        acc0 = acc0 + jnp.dot(taps.reshape(he * we, k0),
                              w0_ref[dx * k0:(dx + 1) * k0, :],
                              preferred_element_type=jnp.float32)
    h0_ref[...] = (acc0 + b0_ref[...]).reshape(he, we, cpo).astype(h0_ref.dtype)

    # ---- zero h0 positions outside the image (conv1 SAME zero padding) ---- #
    # Only a 1-element border is ever invalid: the top/bottom halo row on the
    # first/last row tile, and the first/last column always.
    zrow = jnp.zeros((1, we, cpo), h0_ref.dtype)
    zcol = jnp.zeros((he, 1, cpo), h0_ref.dtype)
    tile = pl.program_id(0) % n_row_tiles

    @pl.when(tile == 0)
    def _():
        h0_ref[0:1, :, :] = zrow                  # global row -1

    @pl.when(tile == n_row_tiles - 1)
    def _():
        h0_ref[he - 1:he, :, :] = zrow            # global row img_h

    h0_ref[:, 0:1, :] = zcol                      # global col -1
    h0_ref[:, we - 1:we, :] = zcol                # global col img_w

    h0 = h0_ref[...]                              # bf16 (he, we, cpo)

    # ---- conv1 (gain folded into w1): 3 accumulated dots, K = 3*Cout_p ---- #
    acc1 = jnp.zeros((th * iw, cpo), jnp.float32)
    for dx in range(3):
        taps = jnp.concatenate(
            [h0[dy:dy + th, dx:dx + iw, :] for dy in range(3)], axis=-1)
        acc1 = acc1 + jnp.dot(taps.reshape(th * iw, k1),
                              w1_ref[dx * k1:(dx + 1) * k1, :],
                              preferred_element_type=jnp.float32)

    # ---- 1x1 skip (gain folded into ws) + residual add --------------------- #
    xv = x[2:2 + th, 2:2 + iw, :].reshape(th * iw, cpi)
    acc1 = acc1 + jnp.dot(xv, ws_ref[...], preferred_element_type=jnp.float32)

    out = acc1 + bo_ref[...]
    out_ref[...] = out.reshape(out_ref.shape).astype(out_ref.dtype)


# ------------------------------- parameters -------------------------------- #

def init_params(key, in_channels, out_channels):
    """Deterministic synthetic parameters (torch-style shapes, re-laid-out)."""
    ks = jax.random.split(key, 6)
    w0_t = jax.random.normal(ks[0], (out_channels, in_channels, 3, 3), jnp.float32)
    w1_t = jax.random.normal(ks[1], (out_channels, out_channels, 3, 3), jnp.float32)
    ws_t = jax.random.normal(ks[2], (out_channels, in_channels, 1, 1), jnp.float32)
    b0 = 0.1 * jax.random.normal(ks[3], (1, out_channels), jnp.float32)
    b1 = 0.1 * jax.random.normal(ks[4], (1, out_channels), jnp.float32)
    bs = 0.1 * jax.random.normal(ks[5], (1, out_channels), jnp.float32)
    # layout: (kh*kw, Cin, Cout) tap index = dy*3+dx, equalized-lr 1/sqrt(fan_in) folded.
    w0 = (jnp.transpose(w0_t, (2, 3, 1, 0)).reshape(9, in_channels, out_channels)
          / math.sqrt(in_channels * 9))
    w1 = (jnp.transpose(w1_t, (2, 3, 1, 0)).reshape(9, out_channels, out_channels)
          / math.sqrt(out_channels * 9))
    ws = (jnp.transpose(ws_t, (2, 3, 1, 0)).reshape(in_channels, out_channels)
          / math.sqrt(in_channels))
    return (w0, b0, w1, b1, ws, bs)


def pack_params(params):
    """One-time transform: fold sqrt(0.5) gains and the two output biases,
    zero-pad channels to the 128-lane width, re-group taps as (dx, dy, cin)
    so the kernel's per-dx weight chunk is one contiguous static slice, bf16."""
    w0, b0, w1, b1, ws, bs = params
    cin, cout = w0.shape[1], w0.shape[2]
    cpi, cpo = _round_up(cin, LANE), _round_up(cout, LANE)

    def pack_3x3(w9, ci, co, cip, cop, gain):
        w = (w9 * gain).reshape(3, 3, ci, co)            # (dy, dx, ci, co)
        w = jnp.transpose(w, (1, 0, 2, 3))               # (dx, dy, ci, co)
        w = jnp.pad(w, ((0, 0), (0, 0), (0, cip - ci), (0, cop - co)))
        return w.reshape(9 * cip, cop).astype(jnp.bfloat16)

    def pack_bias(b, co, cop, gain):
        return jnp.pad(b * gain, ((0, 0), (0, cop - co))).astype(jnp.float32)

    w_skip = jnp.pad(ws * SQRT_HALF,
                     ((0, cpi - cin), (0, cpo - cout))).astype(jnp.bfloat16)

    return dict(
        w0=pack_3x3(w0, cin, cout, cpi, cpo, 1.0),
        b0=pack_bias(b0, cout, cpo, 1.0),
        w1=pack_3x3(w1, cout, cout, cpo, cpo, SQRT_HALF),
        ws=w_skip,
        b_out=pack_bias(b1 + bs, cout, cpo, SQRT_HALF),
        cin=cin, cout=cout, cpi=cpi, cpo=cpo,
    )


# --------------------------- VMEM budget / tiling --------------------------- #

def _vmem_bytes_estimate(th, w, cpi, cpo):
    he, we = th + 2, w + 2
    in_blk = 2 * (th + 4) * (w + 4) * cpi * 2            # bf16, double-buffered
    out_blk = 2 * th * w * cpo * 2                        # bf16, double-buffered
    weights = 2 * (9 * cpi * cpo + 9 * cpo * cpo + cpi * cpo) * 2
    h0 = he * we * cpo * 2
    staging = (he * we * 3 * cpi * 2 + he * we * cpo * 4   # conv0 taps + f32 acc
               + th * w * 3 * cpo * 2 + th * w * cpo * 4)  # conv1 taps + f32 acc
    return int(1.4 * (in_blk + out_blk + weights + h0 + staging))


def _pick_row_tile(h, w, cpi, cpo, budget_bytes):
    # Largest divisor of h whose working set fits the budget (th=h -> no halo
    # recompute, no wrapper-side halo stack).
    for th in sorted((d for d in range(1, h + 1) if h % d == 0), reverse=True):
        if _vmem_bytes_estimate(th, w, cpi, cpo) <= budget_bytes:
            return th
    return 1


# ------------------------------- forward ----------------------------------- #

def resblock_forward(x_nchw, packed, *, row_tile=None,
                     vmem_limit_bytes=48 * 1024 * 1024):
    """ResBlock.forward: skip(x)*sqrt(.5) + conv1(conv0(x))*sqrt(.5).  NCHW in/out.

    vmem_limit_bytes is a per-generation knob: keep <=48MiB for v7x (64MiB VMEM);
    it can be raised toward ~96MiB on v5e/v6e for larger row tiles.
    """
    cin, cout = packed["cin"], packed["cout"]
    cpi, cpo = packed["cpi"], packed["cpo"]
    n, cx, h, w = x_nchw.shape
    assert cx == cin

    if row_tile is None:
        row_tile = _pick_row_tile(h, w, cpi, cpo, (3 * vmem_limit_bytes) // 4)
    th = row_tile
    # TODO(synk): remainder row tiles are not handled; pick a divisor of H (or pad H).
    assert h % th == 0
    n_tiles = h // th

    # NCHW -> NHWC, bf16, pad channels to lane width, zero-pad spatial by 2
    # (= conv0 pad + conv1 halo).
    # TODO(synk): accept NHWC input / fuse transpose+pad into the kernel DMA.
    x = jnp.transpose(x_nchw, (0, 2, 3, 1)).astype(jnp.bfloat16)
    x = jnp.pad(x, ((0, 0), (2, 2), (2, 2), (0, cpi - cin)))

    if n_tiles == 1:
        xt = x                                    # no halo duplication needed
    else:
        # TODO(synk): replace this overlapping-window stack (extra HBM pass) with
        # pl.Element row offsets or manual make_async_copy when row tiling is needed.
        xt = jnp.stack([x[:, t * th:t * th + th + 4] for t in range(n_tiles)], axis=1)
        xt = xt.reshape(n * n_tiles, th + 4, w + 4, cpi)

    kernel = functools.partial(_resblock_kernel, img_w=w,
                               row_tile=th, n_row_tiles=n_tiles)

    out = pl.pallas_call(
        kernel,
        out_shape=jax.ShapeDtypeStruct((n * n_tiles, th, w, cpo), jnp.bfloat16),
        grid=(n * n_tiles,),
        in_specs=[
            pl.BlockSpec((1, th + 4, w + 4, cpi), lambda i: (i, 0, 0, 0)),
            pl.BlockSpec((9 * cpi, cpo), lambda i: (0, 0)),
            pl.BlockSpec((1, cpo), lambda i: (0, 0)),
            pl.BlockSpec((9 * cpo, cpo), lambda i: (0, 0)),
            pl.BlockSpec((cpi, cpo), lambda i: (0, 0)),
            pl.BlockSpec((1, cpo), lambda i: (0, 0)),
        ],
        out_specs=pl.BlockSpec((1, th, w, cpo), lambda i: (i, 0, 0, 0)),
        scratch_shapes=[pltpu.VMEM((th + 2, w + 2, cpo), jnp.bfloat16)],
        compiler_params=pltpu.CompilerParams(
            dimension_semantics=("parallel",),     # >=2 steps keeps both v7x TCs busy
            vmem_limit_bytes=vmem_limit_bytes),
    )(xt, packed["w0"], packed["b0"], packed["w1"], packed["ws"], packed["b_out"])

    out = out.reshape(n, h, w, cpo)[..., :cout].astype(jnp.float32)
    return jnp.transpose(out, (0, 3, 1, 2))            # NHWC -> NCHW


# ----------------------------- pure-JAX reference --------------------------- #

def reference_forward(x_nchw, params):
    w0, b0, w1, b1, ws, bs = params
    x = jnp.transpose(x_nchw, (0, 2, 3, 1)).astype(jnp.float32)
    dn = ("NHWC", "HWIO", "NHWC")

    def conv(inp, w_taps, b, gain):
        k = int(round(math.sqrt(w_taps.shape[0])))
        w_hwio = w_taps.reshape(k, k, w_taps.shape[1], w_taps.shape[2])
        y = jax.lax.conv_general_dilated(inp, w_hwio, (1, 1), "SAME",
                                         dimension_numbers=dn,
                                         precision=jax.lax.Precision.HIGHEST)
        return (y + b.reshape(1, 1, 1, -1)) * gain

    h0 = conv(x, w0, b0, 1.0)
    branch = conv(h0, w1, b1, SQRT_HALF)
    skip = conv(x, ws[None], bs, SQRT_HALF)
    return jnp.transpose(skip + branch, (0, 3, 1, 2))


# ---------------------------------- main ------------------------------------ #

if __name__ == "__main__":
    key = jax.random.PRNGKey(0)
    n, cin, cout, h, w = 2, 4, 8, 16, 16
    kx, kp = jax.random.split(key)
    x = jax.random.normal(kx, (n, cin, h, w), jnp.float32)
    params = init_params(kp, cin, cout)
    packed = pack_params(params)

    ref = jax.block_until_ready(reference_forward(x, params))

    # row_tile=None -> auto (whole image per grid step, no halo stack);
    # row_tile=8    -> 2 row tiles per image, exercising the halo + border masking.
    for rt in (None, 8):
        out = jax.block_until_ready(resblock_forward(x, packed, row_tile=rt))
        assert out.shape == (n, cout, h, w), out.shape
        max_err = float(jnp.max(jnp.abs(out - ref)))
        # bf16 activations/weights/output with f32 accumulation vs f32 reference.
        assert jnp.allclose(out, ref, rtol=5e-2, atol=5e-2), \
            f"row_tile={rt} max_err={max_err}"
    print("KERNEL_OK")
</pallas_src>

<mosaic_0001>
module attributes {stable_mosaic.version = 11 : i64} {
  func.func @_resblock_kernel(%arg0: i32, %arg1: memref<1x20x20x128xbf16, #tpu.memory_space<vmem>>, %arg2: memref<1152x128xbf16, #tpu.memory_space<vmem>>, %arg3: memref<1x128xf32, #tpu.memory_space<vmem>>, %arg4: memref<1152x128xbf16, #tpu.memory_space<vmem>>, %arg5: memref<128x128xbf16, #tpu.memory_space<vmem>>, %arg6: memref<1x128xf32, #tpu.memory_space<vmem>>, %arg7: memref<1x16x16x128xbf16, #tpu.memory_space<vmem>>, %arg8: memref<18x18x128xbf16, #tpu.memory_space<vmem>>) attributes {dimension_semantics = [#tpu.dimension_semantics<parallel>], iteration_bounds = array<i64: 2>, scalar_prefetch = 0 : i64, scratch_operands = 1 : i64, tpu.core_type = #tpu.core_type<tc>, window_params = [{transform_indices = @transform_0, window_bounds = array<i64: 1, 20, 20, 128>}, {pipeline_mode = #tpu.pipeline_mode<synchronous>, transform_indices = @transform_1, window_bounds = array<i64: 1152, 128>}, {pipeline_mode = #tpu.pipeline_mode<synchronous>, transform_indices = @transform_2, window_bounds = array<i64: 1, 128>}, {pipeline_mode = #tpu.pipeline_mode<synchronous>, transform_indices = @transform_3, window_bounds = array<i64: 1152, 128>}, {pipeline_mode = #tpu.pipeline_mode<synchronous>, transform_indices = @transform_4, window_bounds = array<i64: 128, 128>}, {pipeline_mode = #tpu.pipeline_mode<synchronous>, transform_indices = @transform_5, window_bounds = array<i64: 1, 128>}, {transform_indices = @transform_6, window_bounds = array<i64: 1, 16, 16, 128>}]} {
    %c0 = arith.constant 0 : index
    %c0_0 = arith.constant 0 : index
    %c0_1 = arith.constant 0 : index
    %c0_2 = arith.constant 0 : index
    %0 = vector.load %arg1[%c0, %c0_0, %c0_1, %c0_2] : memref<1x20x20x128xbf16, #tpu.memory_space<vmem>>, vector<1x20x20x128xbf16>
    %1 = vector.shape_cast %0 : vector<1x20x20x128xbf16> to vector<20x20x128xbf16>
    %cst = arith.constant 0.000000e+00 : f32
    %2 = vector.broadcast %cst : f32 to vector<324x128xf32>
    %3 = vector.extract_strided_slice %1 {offsets = [0, 0, 0], sizes = [18, 18, 128], strides = [1, 1, 1]} : vector<20x20x128xbf16> to vector<18x18x128xbf16>
    %4 = vector.extract_strided_slice %1 {offsets = [1, 0, 0], sizes = [18, 18, 128], strides = [1, 1, 1]} : vector<20x20x128xbf16> to vector<18x18x128xbf16>
    %5 = vector.extract_strided_slice %1 {offsets = [2, 0, 0], sizes = [18, 18, 128], strides = [1, 1, 1]} : vector<20x20x128xbf16> to vector<18x18x128xbf16>
    %6 = tpu.concatenate %3, %4, %5 in 2 : vector<18x18x128xbf16>, vector<18x18x128xbf16>, vector<18x18x128xbf16> -> vector<18x18x384xbf16>
    %7 = vector.shape_cast %6 : vector<18x18x384xbf16> to vector<324x384xbf16>
    %c0_3 = arith.constant 0 : index
    %c0_4 = arith.constant 0 : index
    %8 = vector.load %arg2[%c0_3, %c0_4] : memref<1152x128xbf16, #tpu.memory_space<vmem>>, vector<384x128xbf16>
    %cst_5 = arith.constant dense<0.000000e+00> : vector<324x128xf32>
    %9 = tpu.matmul %7, %8, %cst_5 {dimension_numbers = #tpu.dot_dimension_numbers<[1], [0], [0], [1], [0, 0, 1, 1], [], []>} : vector<324x384xbf16>, vector<384x128xbf16>, vector<324x128xf32> -> vector<324x128xf32>
    %10 = arith.addf %2, %9 : vector<324x128xf32>
    %11 = vector.extract_strided_slice %1 {offsets = [0, 1, 0], sizes = [18, 18, 128], strides = [1, 1, 1]} : vector<20x20x128xbf16> to vector<18x18x128xbf16>
    %12 = vector.extract_strided_slice %1 {offsets = [1, 1, 0], sizes = [18, 18, 128], strides = [1, 1, 1]} : vector<20x20x128xbf16> to vector<18x18x128xbf16>
    %13 = vector.extract_strided_slice %1 {offsets = [2, 1, 0], sizes = [18, 18, 128], strides = [1, 1, 1]} : vector<20x20x128xbf16> to vector<18x18x128xbf16>
    %14 = tpu.concatenate %11, %12, %13 in 2 : vector<18x18x128xbf16>, vector<18x18x128xbf16>, vector<18x18x128xbf16> -> vector<18x18x384xbf16>
    %15 = vector.shape_cast %14 : vector<18x18x384xbf16> to vector<324x384xbf16>
    %c384 = arith.constant 384 : index
    %c0_6 = arith.constant 0 : index
    %16 = vector.load %arg2[%c384, %c0_6] : memref<1152x128xbf16, #tpu.memory_space<vmem>>, vector<384x128xbf16>
    %cst_7 = arith.constant dense<0.000000e+00> : vector<324x128xf32>
    %17 = tpu.matmul %15, %16, %cst_7 {dimension_numbers = #tpu.dot_dimension_numbers<[1], [0], [0], [1], [0, 0, 1, 1], [], []>} : vector<324x384xbf16>, vector<384x128xbf16>, vector<324x128xf32> -> vector<324x128xf32>
    %18 = arith.addf %10, %17 : vector<324x128xf32>
    %19 = vector.extract_strided_slice %1 {offsets = [0, 2, 0], sizes = [18, 18, 128], strides = [1, 1, 1]} : vector<20x20x128xbf16> to vector<18x18x128xbf16>
    %20 = vector.extract_strided_slice %1 {offsets = [1, 2, 0], sizes = [18, 18, 128], strides = [1, 1, 1]} : vector<20x20x128xbf16> to vector<18x18x128xbf16>
    %21 = vector.extract_strided_slice %1 {offsets = [2, 2, 0], sizes = [18, 18, 128], strides = [1, 1, 1]} : vector<20x20x128xbf16> to vector<18x18x128xbf16>
    %22 = tpu.concatenate %19, %20, %21 in 2 : vector<18x18x128xbf16>, vector<18x18x128xbf16>, vector<18x18x128xbf16> -> vector<18x18x384xbf16>
    %23 = vector.shape_cast %22 : vector<18x18x384xbf16> to vector<324x384xbf16>
    %c768 = arith.constant 768 : index
    %c0_8 = arith.constant 0 : index
    %24 = vector.load %arg2[%c768, %c0_8] : memref<1152x128xbf16, #tpu.memory_space<vmem>>, vector<384x128xbf16>
    %cst_9 = arith.constant dense<0.000000e+00> : vector<324x128xf32>
    %25 = tpu.matmul %23, %24, %cst_9 {dimension_numbers = #tpu.dot_dimension_numbers<[1], [0], [0], [1], [0, 0, 1, 1], [], []>} : vector<324x384xbf16>, vector<384x128xbf16>, vector<324x128xf32> -> vector<324x128xf32>
    %26 = arith.addf %18, %25 : vector<324x128xf32>
    %c0_10 = arith.constant 0 : index
    %c0_11 = arith.constant 0 : index
    %27 = vector.load %arg3[%c0_10, %c0_11] : memref<1x128xf32, #tpu.memory_space<vmem>>, vector<1x128xf32>
    %28 = vector.broadcast %27 : vector<1x128xf32> to vector<324x128xf32>
    %29 = arith.addf %26, %28 : vector<324x128xf32>
    %30 = vector.shape_cast %29 : vector<324x128xf32> to vector<18x18x128xf32>
    %31 = arith.truncf %30 : vector<18x18x128xf32> to vector<18x18x128xbf16>
    %c0_12 = arith.constant 0 : index
    %c0_13 = arith.constant 0 : index
    %c0_14 = arith.constant 0 : index
    %32 = vector.load %arg8[%c0_12, %c0_13, %c0_14] : memref<18x18x128xbf16, #tpu.memory_space<vmem>>, vector<18x18x128xbf16>
    tpu.vector_store %arg8[%c0_12, %c0_13, %c0_14], %31 {strides = array<i32>} : memref<18x18x128xbf16, #tpu.memory_space<vmem>>, vector<18x18x128xbf16>,
    %cst_15 = arith.constant 0.000000e+00 : bf16
    %33 = vector.broadcast %cst_15 : bf16 to vector<1x18x128xbf16>
    %cst_16 = arith.constant 0.000000e+00 : bf16
    %34 = vector.broadcast %cst_16 : bf16 to vector<18x1x128xbf16>
    %c1_i32 = arith.constant 1 : i32
    %c0_i32 = arith.constant 0 : i32
    %35 = arith.cmpi eq, %c1_i32, %c0_i32 : i32
    %c1_i32_17 = arith.constant 1 : i32
    %36 = arith.select %35, %c1_i32_17, %c1_i32 : i32
    %37 = arith.remsi %arg0, %36 : i32
    %c0_i32_18 = arith.constant 0 : i32
    %38 = arith.cmpi ne, %37, %c0_i32_18 : i32
    %c0_i32_19 = arith.constant 0 : i32
    %39 = arith.cmpi slt, %37, %c0_i32_19 : i32
    %c0_i32_20 = arith.constant 0 : i32
    %40 = arith.cmpi slt, %36, %c0_i32_20 : i32
    %41 = arith.xori %39, %40 : i1
    %42 = arith.andi %41, %38 : i1
    %43 = arith.addi %37, %36 : i32
    %44 = arith.select %42, %43, %37 : i32
    %c0_i32_21 = arith.constant 0 : i32
    %45 = arith.cmpi eq, %44, %c0_i32_21 : i32
    %46 = arith.extui %45 : i1 to i32
    %c0_i32_22 = arith.constant 0 : i32
    %47 = arith.cmpi ne, %46, %c0_i32_22 : i32
    scf.if %47 {
      %c0_52 = arith.constant 0 : index
      %c0_53 = arith.constant 0 : index
      %c0_54 = arith.constant 0 : index
      %90 = vector.load %arg8[%c0_52, %c0_53, %c0_54] : memref<18x18x128xbf16, #tpu.memory_space<vmem>>, vector<1x18x128xbf16>
      tpu.vector_store %arg8[%c0_52, %c0_53, %c0_54], %33 {strides = array<i32>} : memref<18x18x128xbf16, #tpu.memory_space<vmem>>, vector<1x18x128xbf16>,
    } else {
    }
    %c0_i32_23 = arith.constant 0 : i32
    %48 = arith.cmpi eq, %44, %c0_i32_23 : i32
    %49 = arith.extui %48 : i1 to i32
    %c0_i32_24 = arith.constant 0 : i32
    %50 = arith.cmpi ne, %49, %c0_i32_24 : i32
    scf.if %50 {
      %c17_52 = arith.constant 17 : index
      %c0_53 = arith.constant 0 : index
      %c0_54 = arith.constant 0 : index
      %90 = vector.load %arg8[%c17_52, %c0_53, %c0_54] : memref<18x18x128xbf16, #tpu.memory_space<vmem>>, vector<1x18x128xbf16>
      tpu.vector_store %arg8[%c17_52, %c0_53, %c0_54], %33 {strides = array<i32>} : memref<18x18x128xbf16, #tpu.memory_space<vmem>>, vector<1x18x128xbf16>,
    } else {
    }
    %c0_25 = arith.constant 0 : index
    %c0_26 = arith.constant 0 : index
    %c0_27 = arith.constant 0 : index
    %51 = vector.load %arg8[%c0_25, %c0_26, %c0_27] : memref<18x18x128xbf16, #tpu.memory_space<vmem>>, vector<18x1x128xbf16>
    tpu.vector_store %arg8[%c0_25, %c0_26, %c0_27], %34 {strides = array<i32>} : memref<18x18x128xbf16, #tpu.memory_space<vmem>>, vector<18x1x128xbf16>,
    %c0_28 = arith.constant 0 : index
    %c17 = arith.constant 17 : index
    %c0_29 = arith.constant 0 : index
    %52 = vector.load %arg8[%c0_28, %c17, %c0_29] : memref<18x18x128xbf16, #tpu.memory_space<vmem>>, vector<18x1x128xbf16>
    tpu.vector_store %arg8[%c0_28, %c17, %c0_29], %34 {strides = array<i32>} : memref<18x18x128xbf16, #tpu.memory_space<vmem>>, vector<18x1x128xbf16>,
    %c0_30 = arith.constant 0 : index
    %c0_31 = arith.constant 0 : index
    %c0_32 = arith.constant 0 : index
    %53 = vector.load %arg8[%c0_30, %c0_31, %c0_32] : memref<18x18x128xbf16, #tpu.memory_space<vmem>>, vector<18x18x128xbf16>
    %cst_33 = arith.constant 0.000000e+00 : f32
    %54 = vector.broadcast %cst_33 : f32 to vector<256x128xf32>
    %55 = vector.extract_strided_slice %53 {offsets = [0, 0, 0], sizes = [16, 16, 128], strides = [1, 1, 1]} : vector<18x18x128xbf16> to vector<16x16x128xbf16>
    %56 = vector.extract_strided_slice %53 {offsets = [1, 0, 0], sizes = [16, 16, 128], strides = [1, 1, 1]} : vector<18x18x128xbf16> to vector<16x16x128xbf16>
    %57 = vector.extract_strided_slice %53 {offsets = [2, 0, 0], sizes = [16, 16, 128], strides = [1, 1, 1]} : vector<18x18x128xbf16> to vector<16x16x128xbf16>
    %58 = tpu.concatenate %55, %56, %57 in 2 : vector<16x16x128xbf16>, vector<16x16x128xbf16>, vector<16x16x128xbf16> -> vector<16x16x384xbf16>
    %59 = vector.shape_cast %58 : vector<16x16x384xbf16> to vector<256x384xbf16>
    %c0_34 = arith.constant 0 : index
    %c0_35 = arith.constant 0 : index
    %60 = vector.load %arg4[%c0_34, %c0_35] : memref<1152x128xbf16, #tpu.memory_space<vmem>>, vector<384x128xbf16>
    %cst_36 = arith.constant dense<0.000000e+00> : vector<256x128xf32>
    %61 = tpu.matmul %59, %60, %cst_36 {dimension_numbers = #tpu.dot_dimension_numbers<[1], [0], [0], [1], [0, 0, 1, 1], [], []>} : vector<256x384xbf16>, vector<384x128xbf16>, vector<256x128xf32> -> vector<256x128xf32>
    %62 = arith.addf %54, %61 : vector<256x128xf32>
    %63 = vector.extract_strided_slice %53 {offsets = [0, 1, 0], sizes = [16, 16, 128], strides = [1, 1, 1]} : vector<18x18x128xbf16> to vector<16x16x128xbf16>
    %64 = vector.extract_strided_slice %53 {offsets = [1, 1, 0], sizes = [16, 16, 128], strides = [1, 1, 1]} : vector<18x18x128xbf16> to vector<16x16x128xbf16>
    %65 = vector.extract_strided_slice %53 {offsets = [2, 1, 0], sizes = [16, 16, 128], strides = [1, 1, 1]} : vector<18x18x128xbf16> to vector<16x16x128xbf16>
    %66 = tpu.concatenate %63, %64, %65 in 2 : vector<16x16x128xbf16>, vector<16x16x128xbf16>, vector<16x16x128xbf16> -> vector<16x16x384xbf16>
    %67 = vector.shape_cast %66 : vector<16x16x384xbf16> to vector<256x384xbf16>
    %c384_37 = arith.constant 384 : index
    %c0_38 = arith.constant 0 : index
    %68 = vector.load %arg4[%c384_37, %c0_38] : memref<1152x128xbf16, #tpu.memory_space<vmem>>, vector<384x128xbf16>
    %cst_39 = arith.constant dense<0.000000e+00> : vector<256x128xf32>
    %69 = tpu.matmul %67, %68, %cst_39 {dimension_numbers = #tpu.dot_dimension_numbers<[1], [0], [0], [1], [0, 0, 1, 1], [], []>} : vector<256x384xbf16>, vector<384x128xbf16>, vector<256x128xf32> -> vector<256x128xf32>
    %70 = arith.addf %62, %69 : vector<256x128xf32>
    %71 = vector.extract_strided_slice %53 {offsets = [0, 2, 0], sizes = [16, 16, 128], strides = [1, 1, 1]} : vector<18x18x128xbf16> to vector<16x16x128xbf16>
    %72 = vector.extract_strided_slice %53 {offsets = [1, 2, 0], sizes = [16, 16, 128], strides = [1, 1, 1]} : vector<18x18x128xbf16> to vector<16x16x128xbf16>
    %73 = vector.extract_strided_slice %53 {offsets = [2, 2, 0], sizes = [16, 16, 128], strides = [1, 1, 1]} : vector<18x18x128xbf16> to vector<16x16x128xbf16>
    %74 = tpu.concatenate %71, %72, %73 in 2 : vector<16x16x128xbf16>, vector<16x16x128xbf16>, vector<16x16x128xbf16> -> vector<16x16x384xbf16>
    %75 = vector.shape_cast %74 : vector<16x16x384xbf16> to vector<256x384xbf16>
    %c768_40 = arith.constant 768 : index
    %c0_41 = arith.constant 0 : index
    %76 = vector.load %arg4[%c768_40, %c0_41] : memref<1152x128xbf16, #tpu.memory_space<vmem>>, vector<384x128xbf16>
    %cst_42 = arith.constant dense<0.000000e+00> : vector<256x128xf32>
    %77 = tpu.matmul %75, %76, %cst_42 {dimension_numbers = #tpu.dot_dimension_numbers<[1], [0], [0], [1], [0, 0, 1, 1], [], []>} : vector<256x384xbf16>, vector<384x128xbf16>, vector<256x128xf32> -> vector<256x128xf32>
    %78 = arith.addf %70, %77 : vector<256x128xf32>
    %79 = vector.extract_strided_slice %1 {offsets = [2, 2, 0], sizes = [16, 16, 128], strides = [1, 1, 1]} : vector<20x20x128xbf16> to vector<16x16x128xbf16>
    %80 = vector.shape_cast %79 : vector<16x16x128xbf16> to vector<256x128xbf16>
    %c0_43 = arith.constant 0 : index
    %c0_44 = arith.constant 0 : index
    %81 = vector.load %arg5[%c0_43, %c0_44] : memref<128x128xbf16, #tpu.memory_space<vmem>>, vector<128x128xbf16>
    %cst_45 = arith.constant dense<0.000000e+00> : vector<256x128xf32>
    %82 = tpu.matmul %80, %81, %cst_45 {dimension_numbers = #tpu.dot_dimension_numbers<[1], [0], [0], [1], [0, 0, 1, 1], [], []>} : vector<256x128xbf16>, vector<128x128xbf16>, vector<256x128xf32> -> vector<256x128xf32>
    %83 = arith.addf %78, %82 : vector<256x128xf32>
    %c0_46 = arith.constant 0 : index
    %c0_47 = arith.constant 0 : index
    %84 = vector.load %arg6[%c0_46, %c0_47] : memref<1x128xf32, #tpu.memory_space<vmem>>, vector<1x128xf32>
    %85 = vector.broadcast %84 : vector<1x128xf32> to vector<256x128xf32>
    %86 = arith.addf %83, %85 : vector<256x128xf32>
    %87 = vector.shape_cast %86 : vector<256x128xf32> to vector<1x16x16x128xf32>
    %88 = arith.truncf %87 : vector<1x16x16x128xf32> to vector<1x16x16x128xbf16>
    %c0_48 = arith.constant 0 : index
    %c0_49 = arith.constant 0 : index
    %c0_50 = arith.constant 0 : index
    %c0_51 = arith.constant 0 : index
    %89 = vector.load %arg7[%c0_48, %c0_49, %c0_50, %c0_51] : memref<1x16x16x128xbf16, #tpu.memory_space<vmem>>, vector<1x16x16x128xbf16>
    tpu.vector_store %arg7[%c0_48, %c0_49, %c0_50, %c0_51], %88 {strides = array<i32>} : memref<1x16x16x128xbf16, #tpu.memory_space<vmem>>, vector<1x16x16x128xbf16>,
    return
  }
  func.func @transform_0(%arg0: i32) -> (i32, i32, i32, i32) {
    %c0_i32 = arith.constant 0 : i32
    %c0_i32_0 = arith.constant 0 : i32
    %c0_i32_1 = arith.constant 0 : i32
    %c0_i32_2 = arith.constant 0 : i32
    return %arg0, %c0_i32, %c0_i32_0, %c0_i32_1 : i32, i32, i32, i32
  }
  func.func @transform_1(%arg0: i32) -> (i32, i32) {
    %c0_i32 = arith.constant 0 : i32
    %c0_i32_0 = arith.constant 0 : i32
    %c0_i32_1 = arith.constant 0 : i32
    return %c0_i32, %c0_i32_0 : i32, i32
  }
  func.func @transform_2(%arg0: i32) -> (i32, i32) {
    %c0_i32 = arith.constant 0 : i32
    %c0_i32_0 = arith.constant 0 : i32
    %c0_i32_1 = arith.constant 0 : i32
    return %c0_i32, %c0_i32_0 : i32, i32
  }
  func.func @transform_3(%arg0: i32) -> (i32, i32) {
    %c0_i32 = arith.constant 0 : i32
    %c0_i32_0 = arith.constant 0 : i32
    %c0_i32_1 = arith.constant 0 : i32
    return %c0_i32, %c0_i32_0 : i32, i32
  }
  func.func @transform_4(%arg0: i32) -> (i32, i32) {
    %c0_i32 = arith.constant 0 : i32
    %c0_i32_0 = arith.constant 0 : i32
    %c0_i32_1 = arith.constant 0 : i32
    return %c0_i32, %c0_i32_0 : i32, i32
  }
  func.func @transform_5(%arg0: i32) -> (i32, i32) {
    %c0_i32 = arith.constant 0 : i32
    %c0_i32_0 = arith.constant 0 : i32
    %c0_i32_1 = arith.constant 0 : i32
    return %c0_i32, %c0_i32_0 : i32, i32
  }
  func.func @transform_6(%arg0: i32) -> (i32, i32, i32, i32) {
    %c0_i32 = arith.constant 0 : i32
    %c0_i32_0 = arith.constant 0 : i32
    %c0_i32_1 = arith.constant 0 : i32
    %c0_i32_2 = arith.constant 0 : i32
    return %arg0, %c0_i32, %c0_i32_0, %c0_i32_1 : i32, i32, i32, i32
  }
}

</mosaic_0001>

<bundles_post_ra>
// kernel: tpu_custom_call.1
= control target key start
LH: loop header
LB: loop body
LE: loop exit
PB: predicated region body
PF: predicated region fallthrough
CT: control target
= control target key end

     0   :  { %11 = vsyncpa [#allocation4], 0  ;;  %s23284_s0 = inlined_call_operand.vmem [shape: bf16[2,20,20,128], index: 0, kind: input, shape index: {}]   ;;  %s23285_s1 = inlined_call_operand.vmem [shape: bf16[1152,128], index: 1, kind: input, shape index: {}]   ;;  %s23286_s2 = inlined_call_operand.vmem [shape: f32[1,128], index: 2, kind: input, shape index: {}]   ;;  %s23287_s3 = inlined_call_operand.hbm [shape: bf16[1152,128], index: 3, kind: input, shape index: {}]   ;;  %s23288_s4 = inlined_call_operand.vmem [shape: bf16[128,128], index: 4, kind: input, shape index: {}]   ;;  %s23289_s5 = inlined_call_operand.vmem [shape: f32[1,128], index: 5, kind: input, shape index: {}]   ;;  %s23290_s6 = inlined_call_operand.hbm [shape: bf16[2,16,16,128], index: 6, kind: output, shape index: {}]  }
   0x1   :  { %12 = vsyncpa [#allocation5], 0 }
   0x2   :  { %14 = vsyncpa [#allocation5 + $0x1], 0  ;;  %s16933_s21 = smov 0   ;;  %s16935_s22 = smov 0  }
   0x3   :  { %s16937_s23 = smov 0   ;;  %s16939_s24 = smov 0  }
   0x4 LB: > { %s16954_s25 = sadd.s32 4294967295, %s16885_s24   ;;  %s14474_s26 = sadd.s32 4294967294, %s16885_s24   ;;  %s16885_s24 = sphi %s16939_s24, %s24178_s24   ;;  %s16881_s23 = sphi %s16937_s23, %s24177_s23   ;;  %s16877_s22 = sphi %s16935_s22, %s24176_s22   ;;  %s16873_s21 = sphi %s16933_s21, %s24175_s21  }
   0x5   : > { %s16958_s27 = sadd.s32 1, %s16885_s24   ;;  %s158_s28 = sadd.s32 1, %s16881_s23 }
   0x6   : > { %s155_s29 = ssub.s32 %s16885_s24, %s16958_s27  ;;  %p168_p0 = scmp.ne.s32.totalorder %s16881_s23, %s16877_s22 }
   0x7   : > { %p156_p1 = scmp.eq.s32.totalorder %s155_s29, 0  ;;  %p169_p2 = scmp.eq.s32.totalorder %s16954_s25, 1 }
   0x8   : > { %p174_p3 = scmp.ne.s32.totalorder %s16877_s22, %s16873_s21  ;;  %p175_p4 = scmp.eq.s32.totalorder %s14474_s26, 1 }
   0x9   : > { %s16969_s30 = scalar_select %p156_p1, %s16881_s23, %s158_s28  }
   0xa   : > { %p16971_p5 = por %p169_p2, %p168_p0  ;;  %p16975_p6 = por %p175_p4, %p174_p3 }
   0xb   : > { %p14475_p7 = scmp.ge.s32.totalorder %s16885_s24, 1  ;;  %p182_p8 = scmp.lt.s32.totalorder %s16885_s24, 3 }
   0xc   : > { %s23550_s8 = scalar_select %p16975_p6, 1, 0 }
   0xd   : > { %p16382_p9 = scmp.eq.s32.totalorder %s16954_s25, 0  ;;  %p16982_p10 = pnand %p14475_p7, %p182_p8 }
   0xe   : > { %s16887_s10 = smov [#allocation3]  }
   0xf   : > { %s200_s11 = sshll.u32 %s16887_s10, 4  ;;  %p16374_p11 = pneg %p16982_p10  ;;  %s201_s11 = int_to_ptr.vmem [resolvable:$true] %s200_s11 }
  0x10   : > { %s16806_s12 = scalar_lea.vmem %s201_s11, 9216  ;;  %p16814_p3 = scmp.lt.s32.totalorder %s201_s11, %s201_s11 }
  0x11   : > { %p16375_p12 = pnand %p16382_p9, %p16374_p11  ;;  %p16807_p0 = scmp.ne.s32.totalorder %s201_s11, %s16806_s12 }
  0x12   : > { %p16815_p4 = scmp.lt.s32.totalorder %s16806_s12, %s16806_s12 }
  0x13   : > { %p16797_p13 = pneg %p16375_p12 }
  0x14   : > { %p16816_p6 = por %p16815_p4, %p16814_p3 }
  0x15   : > { %p16809_p1 = pnand %p16807_p0, %p16797_p13 }
  0x17   : > { %p16810_p2 = pneg %p16809_p1 }
  0x19   : > { %p16817_p7 = pnand %p16816_p6, %p16810_p2 }
  0x1b   : > { %16820 = shalt.err (!%p16817_p7)
}
  0x1c   : > { %s16888_s13 = smov 64   ;;  %s16889_s14 = smov 4  }
  0x1d   : > { %16377 = dma.hbm_to_vmem [thread:$0]  (!%p16375_p12), %s23287_s3, 9216, %s201_s11, [#allocation4], %s16888_s13, %s16888_s13, %s16889_s14  }
  0x1e   : > { %230 = sbr.rel (%p16982_p10) target bundleno = 1463 (0x5b7), region = 44 }
  0x23   : > { %16864 = dma.done.wait (%p16382_p9), [#allocation4], 9216  }
  0x24   : > { %16866 = vsyncadd (%p16382_p9), [#allocation4], 4294958080  ;;  %v23294_v0 = vmov 0   ;;  %v23291_v1 = vmov 0.0   ;;  %vm16892_vm0 = vmmov 0   ;;  %v16427_v2 = vld [vmem:[%s23285_s1 + $0xf8] sm:$0xff]   ;;  %v492_v8 = vlaneseq }
  0x25   : > { %5246 = vmatprep.subr.bf16.mxu0 %v23294_v0  ;;  %15859 = vmatprep.subr.bf16.mxu1 %v23291_v1  ;;  %vm2298_vm1 = vsmask.f32 256  ;;  %vm2299_vm2 = vsmask.f32 1284  ;;  %vm2301_vm4 = vsmask.f32 2312 }
  0x26   : > { %15875 = vmatprep.mubr.msk.bf16.mxu1 %vm16892_vm0, %v23291_v1  ;;  %vm2300_vm3 = vmor %vm2298_vm1, %vm2299_vm2  ;;  %p260_p6 = scmp.lt.s32.totalorder %s16954_s25, 1  ;;  %v16428_v3 = vld [vmem:[%s23285_s1 + $0x178] sm:$0xff]   ;;  %5247 = vmatpush1.bf16.msra.mxu0 %v16427_v2  ;;  %v16429_v4 = vld [vmem:[%s23285_s1 + $0xf0] sm:$0xff]   ;;  %vm2303_vm6 = vsmask.f32 3340  ;;  %v17035_v13 = vshrl.u32 %v492_v8, 7 }
  0x27   : > { %15860 = vmatpush3.bf16.msra.mxu1 %v16428_v3  ;;  %5248 = vmatprep.subr.bf16.mxu0 %v23294_v0  ;;  %v16430_v5 = vld [vmem:[%s23285_s1 + $0x170] sm:$0xff]   ;;  %vm2302_vm5 = vmor %vm2300_vm3, %vm2301_vm4  ;;  %v16431_v6 = vld [vmem:[%s23285_s1 + $0xe8] sm:$0xff]   ;;  %v16893_v9 = vmov 1966171168   ;;  %vm2305_vm7 = vsmask.f32 4368 }
  0x28   : > { %15861 = vmatprep.subr.bf16.mxu1 %v23291_v1  ;;  %s261_s10 = scalar_select %p260_p6, %s16954_s25, 1  ;;  %v16432_v7 = vld [vmem:[%s23285_s1 + $0x168] sm:$0xff]   ;;  %v490_v10 = vunpack.c.l.s4 %v16893_v9  ;;  %vm2304_vm8 = vmor %vm2302_vm5, %vm2303_vm6  ;;  %v16433_v11 = vld [vmem:[%s23285_s1 + $0xe0] sm:$0xff]   ;;  %23552 = vst [vmem:[#allocation9_spill] sm:$0xff] %v17035_v13  ;;  %vm2307_vm9 = vsmask.f32 5396 }
  0x29   : > { %v16434_v12 = vld [vmem:[%s23285_s1 + $0x160] sm:$0xff]   ;;  %vm17043_vm10 = vmor %vm2304_vm8, %vm2305_vm7  ;;  %vm2309_vm11 = vsmask.f32 6424  ;;  %v16435_v16 = vld [vmem:[%s23285_s1 + $0xd8] sm:$0xff]   ;;  %vm2311_vm12 = vsmask.f32 7452 }
  0x2a   : > { %5249 = vmatpush1.bf16.msra.mxu0 %v16429_v4  ;;  %s16367_s15 = smul.u32 240, %s261_s10  ;;  %v491_v14 = vunpack.c.0.s8 %v490_v10  ;;  %v16436_v17 = vld [vmem:[%s23285_s1 + $0x158] sm:$0xff]   ;;  %v16437_v18 = vld [vmem:[%s23285_s1 + $0xd0] sm:$0xff]   ;;  %vm17098_vm13 = vmor %vm17043_vm10, %vm2307_vm9  ;;  %vm11597_vm2 = vsmask.f32 7938  ;;  %vm13132_vm5 = vcmask 1046528  }
  0x2b   : > { %15862 = vmatpush3.bf16.msra.mxu1 %v16430_v5  ;;  %5250 = vmatprep.subr.bf16.mxu0 %v23294_v0  ;;  %v16438_v32 = vld [vmem:[%s23285_s1 + $0x150] sm:$0xff]   ;;  %v16439_v41 = vld [vmem:[%s23285_s1 + $0xc8] sm:$0xff]   ;;  %vm17135_vm14 = vmor %vm17098_vm13, %vm2309_vm11  ;;  %vm13751_vm6 = vcmask 1042432   ;;  %vm13752_vm7 = vcmask 1046532   ;;  %s15191_s29 = sshll.u32 %s16954_s25, 11  ;;  %s16895_s14 = smov [#allocation6]  }
  0x2c   : > { %15863 = vmatprep.subr.bf16.mxu1 %v23291_v1  ;;  %s17041_s28 = scalar_lea.vmem %s23284_s0, %s16367_s15  ;;  %v17062_v22 = vsub.s32 %v491_v14, %v17035_v13  ;;  %v16440_v51 = vld [vmem:[%s23285_s1 + $0x148] sm:$0xff]   ;;  %v16441_v2 = vld [vmem:[%s23285_s1 + $0xc0] sm:$0xff]   ;;  %vm17185_vm15 = vmor %vm17135_vm14, %vm2311_vm12  ;;  %s23236_s12 = scalar_lea.hbm %s23290_s6, %s15191_s29 }
  0x2d   : > { %v266_v19 = vld [vmem:[%s17041_s28] sm:$0xf]  ;;  %v267_v20 = vld [vmem:[%s17041_s28 + $0x4] sm:$0xf]  ;;  %v268_v21 = vld [vmem:[%s17041_s28 + $0x8] sm:$0x3] }
  0x2e   : > { %5251 = vmatpush1.bf16.msra.mxu0 %v16431_v6  ;;  %v269_v23 = vld [vmem:[%s17041_s28 + $0xc] sm:$0xf]  ;;  %v270_v24 = vld [vmem:[%s17041_s28 + $0x10] sm:$0xf]  ;;  %v17067_v25 = vld [vmem:[%s17041_s28 + $0x14] sm:$0x3] }
  0x2f   : > { %15864 = vmatpush3.bf16.msra.mxu1 %v16432_v7  ;;  %5252 = vmatprep.subr.bf16.mxu0 %v23294_v0  ;;  %v17070_v26 = vld [vmem:[%s17041_s28 + $0x18] sm:$0xf]  ;;  %v17073_v27 = vld [vmem:[%s17041_s28 + $0x1c] sm:$0xf]  ;;  %v17076_v28 = vld [vmem:[%s17041_s28 + $0x20] sm:$0x3]  ;;  %v14522_v29 = vcombine.low %v266_v19, %v269_v23  ;;  %v14523_v30 = vcombine.low %v267_v20, %v270_v24  ;;  %v14525_v31 = vcombine.low %v268_v21, %v17067_v25 }
  0x30   : > { %15865 = vmatprep.subr.bf16.mxu1 %v23291_v1  ;;  %v14486_v33 = vcombine.low %v17070_v26, %v17073_v27  ;;  %v14487_v34 = vcombine.low %v17076_v28, %v17076_v28  ;;  %v14524_v35 = vcombine.low %v17073_v27, %v17073_v27  ;;  %v14526_v40 = vcombine.low %v269_v23, %v17070_v26  ;;  %v17112_v45 = vld [vmem:[%s17041_s28 + $0x24] sm:$0xf]  ;;  %v17116_v47 = vld [vmem:[%s17041_s28 + $0x28] sm:$0xf]  ;;  %vm22558_vm8 = vmor %vm13751_vm6, %vm13752_vm7  ;;  %s16825_s15 = sshll.u32 %s16895_s14, 4  ;;  %s16826_s15 = int_to_ptr.vmem [resolvable:$false] %s16825_s15 }
  0x31   : > { %v495_v36 = vrot.slane %v14522_v29, %v17062_v22  ;;  %v502_v37 = vrot.slane %v14523_v30, %v17062_v22  ;;  %v17093_v38 = vrot.slane %v14525_v31, %v17062_v22  ;;  %v14527_v46 = vcombine.low %v270_v24, %v17073_v27  ;;  %v16442_v7 = vld [vmem:[%s23285_s1 + $0x140] sm:$0xff]   ;;  %v16449_v31 = vld [vmem:[%s23285_s1 + $0x138] sm:$0xff]   ;;  %s16827_s16 = scalar_lea.vmem %s16826_s15, 4096 }
  0x32   : > { %5253 = vmatpush1.bf16.msra.mxu0 %v16433_v11  ;;  %v509_v42 = vrot.slane %v14486_v33, %v17062_v22  ;;  %v516_v43 = vrot.slane %v14524_v35, %v17062_v22  ;;  %v17109_v44 = vrot.slane %v14487_v34, %v17062_v22  ;;  %v17119_v48 = vrot.slane %v14526_v40, %v17062_v22 }
  0x33   : > { %15866 = vmatpush3.bf16.msra.mxu1 %v16434_v12  ;;  %5254 = vmatprep.subr.bf16.mxu0 %v23294_v0  ;;  %v14529_v49 = vcombine.low %v17067_v25, %v17076_v28  ;;  %v14530_v50 = vcombine.low %v17070_v26, %v17112_v45  ;;  %v14488_v58 = vcombine.low %v17112_v45, %v17116_v47  ;;  %v16471_v26 = vld [vmem:[%s23285_s1 + $0x108] sm:$0xff]  }
  0x34   : > { %15867 = vmatprep.subr.bf16.mxu1 %v23291_v1  ;;  %v517_v52 = vcombine.low %v495_v36, %v509_v42  ;;  %v518_v53 = vcombine.high %v495_v36, %v509_v42  ;;  %v519_v54 = vcombine.low %v502_v37, %v516_v43  ;;  %v520_v55 = vcombine.high %v502_v37, %v516_v43 }
  0x35   : > { %v568_v56 = vcombine.low %v17093_v38, %v17109_v44  ;;  %v14528_v59 = vcombine.low %v17116_v47, %v17116_v47  ;;  %v17153_v63 = vrot.slane %v14527_v46, %v17062_v22  ;;  %v599_v5 = vrot.slane %v14488_v58, %v17062_v22 }
  0x36   : > { %5255 = vmatpush1.bf16.msra.mxu0 %v16435_v16  ;;  %v17144_v60 = vrot.slane %v517_v52, %v17062_v22  ;;  %v17147_v61 = vrot.slane %v519_v54, %v17062_v22  ;;  %v17150_v62 = vrot.slane %v518_v53, %v17062_v22  ;;  %v17159_v3 = vrot.slane %v520_v55, %v17062_v22 }
  0x37   : > { %15868 = vmatpush3.bf16.msra.mxu1 %v16436_v17  ;;  %5256 = vmatprep.subr.bf16.mxu0 %v23294_v0  ;;  %v17162_v4 = vrot.slane %v568_v56, %v17062_v22  ;;  %v606_v6 = vrot.slane %v14528_v59, %v17062_v22  ;;  %v607_v54 = vcombine.low %v17119_v48, %v599_v5 }
  0x38   : > { %15869 = vmatprep.subr.bf16.mxu1 %v23291_v1  ;;  %v17172_v8 = vcombine.high %v17144_v60, %v17144_v60  ;;  %v17176_v9 = vcombine.high %v17147_v61, %v17147_v61  ;;  %v17180_v10 = vcombine.high %v17150_v62, %v17150_v62  ;;  %v2314_v12 = vshrl.u32 %v17144_v60, 16 }
  0x39   : > { %v17193_v14 = vcombine.high %v17159_v3, %v17159_v3  ;;  %v2319_v15 = vshll.u32 %v17150_v62, 16  ;;  %v2322_v16 = vshrl.u32 %v17150_v62, 16  ;;  %v2343_v17 = vshll.u32 %v17147_v61, 16 }
  0x3a   : > { %5257 = vmatpush1.bf16.msra.mxu0 %v16437_v18  ;;  %23559 = vst [vmem:[#allocation10_spill] sm:$0xff] %v17172_v8  ;;  %23560 = vst [vmem:[#allocation11_spill] sm:$0xff] %v17176_v9  ;;  %v2327_v18 = vshll.u32 %v17172_v8, 16  ;;  %v2330_v19 = vshrl.u32 %v17172_v8, 16  ;;  %v2335_v20 = vshll.u32 %v17180_v10, 16  ;;  %v2338_v21 = vshrl.u32 %v17180_v10, 16 }
  0x3b   : > { %15870 = vmatpush3.bf16.msra.mxu1 %v16438_v32  ;;  %5258 = vmatprep.subr.bf16.mxu0 %v23294_v0  ;;  %23561 = vst [vmem:[#allocation12_spill] sm:$0xff] %v17180_v10  ;;  %23564 = vst [vmem:[#allocation13_spill] sm:$0xff] %v17193_v14  ;;  %v2321_v23 = vsel %vm17185_vm15, %v2314_v12, %v2319_v15  ;;  %v2346_v24 = vshrl.u32 %v17147_v61, 16  ;;  %v2351_v29 = vshll.u32 %v17159_v3, 16  ;;  %v2354_v30 = vshrl.u32 %v17159_v3, 16 }
  0x3c   : > { %15871 = vmatprep.subr.bf16.mxu1 %v23291_v1  ;;  %v2329_v32 = vsel %vm17185_vm15, %v2322_v16, %v2327_v18  ;;  %v2337_v33 = vsel %vm17185_vm15, %v2330_v19, %v2335_v20  ;;  %v2345_v34 = vsel %vm17185_vm15, %v2338_v21, %v2343_v17  ;;  %v2359_v35 = vshll.u32 %v17176_v9, 16  ;;  %v16455_v20 = vld [vmem:[%s23285_s1 + $0x128] sm:$0xff]  }
  0x3d   : > { %v2353_v36 = vsel %vm17185_vm15, %v2346_v24, %v2351_v29  ;;  %v2362_v37 = vshrl.u32 %v17176_v9, 16  ;;  %v2367_v39 = vshll.u32 %v17193_v14, 16  ;;  %v2370_v40 = vshrl.u32 %v17193_v14, 16 }
  0x3e   : > { %5259 = vmatpush1.bf16.msra.mxu0 %v16439_v41  ;;  %v2361_v41 = vsel %vm17185_vm15, %v2354_v30, %v2359_v35  ;;  %v2375_v42 = vshll.u32 %v17162_v4, 16  ;;  %v3675_v43 = vcombine.low %v2321_v23, %v2329_v32  ;;  %v3676_v46 = vcombine.low %v2337_v33, %v2345_v34 }
  0x3f   : > { %15872 = vmatpush3.bf16.msra.mxu1 %v16440_v51  ;;  %5260 = vmatprep.subr.bf16.mxu0 %v23294_v0  ;;  %v16450_v51 = vld [vmem:[%s23285_s1 + $0x130] sm:$0xff]   ;;  %v2369_v52 = vsel %vm17185_vm15, %v2362_v37, %v2367_v39  ;;  %v3677_v53 = vcombine.low %v2353_v36, %v2361_v41  ;;  %v608_v55 = vcombine.high %v17119_v48, %v599_v5  ;;  %v2378_v19 = vshrl.u32 %v17162_v4, 16  ;;  %v16456_v41 = vld [vmem:[%s23285_s1 + $0x120] sm:$0xff]  }
  0x40   : > { %15873 = vmatprep.subr.bf16.mxu1 %v23291_v1  ;;  %v2377_v56 = vsel %vm17185_vm15, %v2370_v40, %v2375_v42  ;;  %v17237_v57 = vrot.slane %v3675_v43, %v17062_v22  ;;  %v17240_v58 = vrot.slane %v3676_v46, %v17062_v22  ;;  %v609_v59 = vcombine.low %v17153_v63, %v606_v6 }
  0x41   : > { %v610_v12 = vcombine.high %v17153_v63, %v606_v6  ;;  %v17249_v48 = vrot.slane %v607_v54, %v17062_v22  ;;  %v17257_v16 = vrot.slane %v608_v55, %v17062_v22  ;;  %v2154_v17 = vcombine.high %v17093_v38, %v17109_v44 }
  0x42   : > { %5261 = vmatpush1.bf16.msra.mxu0 %v16441_v2  ;;  %v3678_v2 = vcombine.low %v2369_v52, %v2377_v56  ;;  %v3707_v5 = vcombine.low %v17237_v57, %v17240_v58  ;;  %v17254_v15 = vrot.slane %v609_v59, %v17062_v22  ;;  %v17320_v52 = vld [vmem:[%s17041_s28 + $0x2c] sm:$0x3]  ;;  %v17329_v59 = vld [vmem:[%s17041_s28 + $0x30] sm:$0xf] }
  0x43   : > { %15874 = vmatpush3.bf16.msra.mxu1 %v16442_v7  ;;  %5262 = vmatprep.subr.bf16.mxu0 %v23294_v0  ;;  %v17245_v7 = vrot.slane %v3677_v53, %v17062_v22  ;;  %v17265_v63 = vrot.slane %v610_v12, %v17062_v22  ;;  %v17269_v6 = vcombine.high %v17249_v48, %v17249_v48  ;;  %v2387_v30 = vshrl.u32 %v17249_v48, 16  ;;  %v16479_v12 = vld [vmem:[%s23285_s1 + $0x38] sm:$0xff]  }
  0x44   : > { %7217 = vmatprep.subr.bf16.mxu1 %v23294_v0  ;;  %v17262_v18 = vrot.slane %v3678_v2, %v17062_v22  ;;  %v17276_v21 = vrot.slane %v3707_v5, %v17062_v22  ;;  %v17281_v38 = vcombine.high %v17254_v15, %v17254_v15  ;;  %v17285_v44 = vcombine.high %v17257_v16, %v17257_v16  ;;  %v17332_v2 = vld [vmem:[%s17041_s28 + $0x34] sm:$0xf] }
  0x45   : > { %23565 = vst [vmem:[#allocation14_spill] sm:$0xff] %v17265_v63  ;;  %v17288_v23 = vrot.slane %v2154_v17, %v17062_v22  ;;  %v17294_v29 = vcombine.high %v17265_v63, %v17265_v63  ;;  %v2395_v33 = vshrl.u32 %v17257_v16, 16  ;;  %v2400_v34 = vshll.u32 %v17269_v6, 16 }
  0x46   : > { %5263 = vmatpush2.bf16.msra.mxu0 %v16449_v31  ;;  %v3709_v24 = vcombine.low %v17245_v7, %v17262_v18  ;;  %v2392_v31 = vshll.u32 %v17257_v16, 16  ;;  %v2403_v35 = vshrl.u32 %v17269_v6, 16  ;;  %v2408_v39 = vshll.u32 %v17285_v44, 16 }
  0x47   : > { %5264 = vmatprep.subr.bf16.mxu0 %v23294_v0  ;;  %23566 = vst [vmem:[#allocation15_spill] sm:$0xff] %v17288_v23  ;;  %23567 = vst [vmem:[#allocation16_spill] sm:$0xff] %v17294_v29  ;;  %v2383_v32 = vshll.u32 %v17288_v23, 16  ;;  %v2411_v40 = vshrl.u32 %v17285_v44, 16  ;;  %v2402_v43 = vsel %vm17185_vm15, %v2395_v33, %v2400_v34  ;;  %v2416_v46 = vshll.u32 %v17254_v15, 16 }
  0x48   : > { %v17303_v36 = vrot.slane %v3709_v24, %v17062_v22  ;;  %v2394_v37 = vsel %vm17185_vm15, %v2387_v30, %v2392_v31  ;;  %v2410_v54 = vsel %vm17185_vm15, %v2403_v35, %v2408_v39  ;;  %v2424_v55 = vshll.u32 %v17265_v63, 16  ;;  %v16463_v24 = vld [vmem:[%s23285_s1 + $0x118] sm:$0xff]  }
  0x49   : > { %v2385_v42 = vsel %vm17185_vm15, %v2378_v19, %v2383_v32  ;;  %v2427_v56 = vshrl.u32 %v17265_v63, 16  ;;  %v2418_v5 = vsel %vm17185_vm15, %v2411_v40, %v2416_v46  ;;  %v2432_v17 = vshll.u32 %v17281_v38, 16  ;;  %v17348_v33 = vld [vmem:[%s17041_s28 + $0x38] sm:$0x3]  ;;  %v16485_v40 = vld [vmem:[%s23285_s1 + $0x30] sm:$0xff]  }
  0x4a   : > { %5265 = vmatpush2.bf16.msra.mxu0 %v16450_v51  ;;  %v2419_v51 = vshrl.u32 %v17254_v15, 16  ;;  %v3740_v53 = vcombine.high %v17276_v21, %v17303_v36  ;;  %v2435_v19 = vshrl.u32 %v17281_v38, 16  ;;  %v3742_v31 = vcombine.low %v2385_v42, %v2394_v37 }
  0x4b   : > { %5266 = vmatprep.subr.bf16.mxu0 %v23294_v0  ;;  %v3743_v32 = vcombine.low %v2402_v43, %v2410_v54  ;;  %v2434_v34 = vsel %vm17185_vm15, %v2427_v56, %v2432_v17  ;;  %v2443_v37 = vshrl.u32 %v17294_v29, 16  ;;  %v14489_v46 = vcombine.low %v17320_v52, %v17320_v52  ;;  %v17387_v17 = vld [vmem:[%s17041_s28 + $0x40] sm:$0xf] }
  0x4c   : > { %15876 = vmatmul.mubr.bf16.vlgmr.msra.gmra.mxu1 %v3740_v53  ;;  %v2426_v30 = vsel %vm17185_vm15, %v2419_v51, %v2424_v55  ;;  %v17362_v42 = vrot.slane %v3742_v31, %v17062_v22  ;;  %v16464_v51 = vld [vmem:[%s23285_s1 + $0x110] sm:$0xff]   ;;  %v14490_v54 = vcombine.low %v17329_v59, %v17332_v2  ;;  %v650_v55 = vrot.slane %v14529_v49, %v17062_v22 }
  0x4d   : > { %15879 = vmatprep.mubr.msk.bf16.mxu1 %vm16892_vm0, %v23291_v1  ;;  %v3744_v39 = vcombine.low %v2418_v5, %v2426_v30  ;;  %v17365_v43 = vrot.slane %v3743_v32, %v17062_v22  ;;  %7218 = vmatpush1.bf16.msra.mxu1 %v16479_v12  ;;  %v14531_v56 = vcombine.low %v17073_v27, %v17116_v47  ;;  %v17384_v5 = vld [vmem:[%s17041_s28 + $0x3c] sm:$0xf]  ;;  %v16492_v27 = vld [vmem:[%s23285_s1 + $0x28] sm:$0xff]   ;;  %v23578_v23 = vmov 0  }
  0x4e   : > { %5267 = vmatpush2.bf16.msra.mxu0 %v16455_v20  ;;  %v2440_v20 = vshll.u32 %v17294_v29, 16  ;;  %7219 = vmatprep.subr.bf16.mxu1 %v23294_v0  ;;  %v14532_v25 = vcombine.low %v17332_v2, %v17332_v2  ;;  %v675_v49 = vrot.slane %v14530_v50, %v17062_v22  ;;  %v689_v31 = vrot.slane %v14490_v54, %v17062_v22 }
  0x4f   : > { %5268 = vmatprep.subr.bf16.mxu0 %v23294_v0  ;;  %v17373_v53 = vrot.slane %v3744_v39, %v17062_v22  ;;  %v682_v30 = vrot.slane %v14531_v56, %v17062_v22  ;;  %v23577_v54 = vmov 0.0   ;;  %v3708_v63 = vcombine.high %v17237_v57, %v17240_v58 }
  0x50   : > { %v2442_v35 = vsel %vm17185_vm15, %v2435_v19, %v2440_v20  ;;  %v3774_v19 = vcombine.low %v17362_v42, %v17365_v43  ;;  %v657_v20 = vrot.slane %v14489_v46, %v17062_v22  ;;  %v696_v39 = vrot.slane %v14532_v25, %v17062_v22 }
  0x51   : > { %7220 = vmatpush1.bf16.msra.mxu1 %v16485_v40  ;;  %v697_v50 = vcombine.low %v675_v49, %v689_v31 }
  0x52   : > { %5269 = vmatpush2.bf16.msra.mxu0 %v16456_v41  ;;  %v3745_v41 = vcombine.low %v2434_v34, %v2442_v35  ;;  %v17413_v34 = vrot.slane %v3774_v19, %v17062_v22  ;;  %v658_v35 = vcombine.low %v650_v55, %v657_v20  ;;  %v2162_v46 = vcombine.high %v650_v55, %v657_v20 }
  0x53   : > { %5270 = vmatprep.subr.bf16.mxu0 %v23294_v0  ;;  %7221 = vmatprep.subr.bf16.mxu1 %v23294_v0  ;;  %v699_v25 = vcombine.low %v682_v30, %v696_v39  ;;  %v700_v32 = vcombine.high %v682_v30, %v696_v39  ;;  %v17429_v1 = vrot.slane %v697_v50, %v17062_v22 }
  0x54   : > { %v17391_v12 = vrot.slane %v3745_v41, %v17062_v22  ;;  %v698_v41 = vcombine.high %v675_v49, %v689_v31  ;;  %v17426_v19 = vrot.slane %v658_v35, %v17062_v22  ;;  %v17435_v55 = vrot.slane %v2162_v46, %v17062_v22 }
  0x55   : > { %23569 = vst [vmem:[#allocation18_spill] sm:$0xff] %v17429_v1  ;;  %v14533_v20 = vcombine.low %v17076_v28, %v17320_v52  ;;  %v17443_v30 = vrot.slane %v699_v25, %v17062_v22  ;;  %7222 = vmatpush1.bf16.msra.mxu1 %v16492_v27  ;;  %v16504_v28 = vld [vmem:[%s23285_s1 + $0x20] sm:$0xff]   ;;  %v17457_v35 = vcombine.high %v17429_v1, %v17429_v1  ;;  %v2460_v46 = vshrl.u32 %v17429_v1, 16 }
  0x56   : > { %5271 = vmatpush2.bf16.msra.mxu0 %v16463_v24  ;;  %v3776_v24 = vcombine.low %v17373_v53, %v17391_v12  ;;  %23568 = vst [vmem:[#allocation17_spill] sm:$0xff] %v17426_v19  ;;  %v17432_v40 = vrot.slane %v698_v41, %v17062_v22  ;;  %23571 = vst [vmem:[#allocation20_spill] sm:$0xff] %v17435_v55  ;;  %v2448_v31 = vshll.u32 %v17426_v19, 16  ;;  %v2456_v50 = vshll.u32 %v17435_v55, 16 }
  0x57   : > { %5272 = vmatprep.subr.bf16.mxu0 %v23294_v0  ;;  %23572 = vst [vmem:[#allocation21_spill] sm:$0xff] %v17443_v30  ;;  %23574 = vst [vmem:[#allocation23_spill] sm:$0xff] %v17457_v35  ;;  %7223 = vmatprep.subr.bf16.mxu1 %v23294_v0  ;;  %v17468_v27 = vcombine.high %v17443_v30, %v17443_v30  ;;  %v2476_v55 = vshrl.u32 %v17457_v35, 16  ;;  %v2489_v14 = vshll.u32 %v17443_v30, 16 }
  0x58   : > { %v17423_v56 = vrot.slane %v3776_v24, %v17062_v22  ;;  %23570 = vst [vmem:[#allocation19_spill] sm:$0xff] %v17432_v40  ;;  %v16472_v24 = vld [vmem:[%s23285_s1 + $0x100] sm:$0xff]   ;;  %v17461_v39 = vcombine.high %v17432_v40, %v17432_v40  ;;  %v2450_v41 = vsel %vm17185_vm15, %v2443_v37, %v2448_v31  ;;  %v2465_v25 = vshll.u32 %v17432_v40, 16 }
  0x59   : > { %23576 = vst [vmem:[#allocation25_spill] sm:$0xff] %v17468_v27  ;;  %7224 = vmatpush1.bf16.msra.mxu1 %v16504_v28 }
  0x5a   : > { %5273 = vmatpush2.bf16.msra.mxu0 %v16464_v51  ;;  %v3807_v49 = vcombine.high %v17413_v34, %v17423_v56  ;;  %v17446_v51 = vrot.slane %v700_v32, %v17062_v22  ;;  %23575 = vst [vmem:[#allocation24_spill] sm:$0xff] %v17461_v39  ;;  %v2451_v32 = vshrl.u32 %v17426_v19, 16  ;;  %v2467_v37 = vsel %vm17185_vm15, %v2460_v46, %v2465_v25 }
  0x5b   : > { %5274 = vmatprep.subr.bf16.mxu0 %v23294_v0  ;;  %v2473_v0 = vshll.u32 %v17457_v35, 16  ;;  %v2481_v31 = vshll.u32 %v17461_v39, 16  ;;  %7225 = vmatprep.subr.bf16.mxu1 %v23578_v23 }
  0x5c   : > { %23573 = vst [vmem:[#allocation22_spill] sm:$0xff] %v17446_v51  ;;  %15880 = vmatmul.mubr.bf16.gmra.mxu1 %v3807_v49  ;;  %v2458_v13 = vsel %vm17185_vm15, %v2451_v32, %v2456_v50  ;;  %v2468_v49 = vshrl.u32 %v17432_v40, 16  ;;  %v2492_v50 = vshrl.u32 %v17443_v30, 16  ;;  %v2497_v9 = vshll.u32 %v17446_v51, 16 }
  0x5d   : > { %15883 = vmatprep.mubr.msk.bf16.mxu1 %vm16892_vm0, %v23577_v54  ;;  %v2500_v35 = vshrl.u32 %v17446_v51, 16  ;;  %v2483_v46 = vsel %vm17185_vm15, %v2476_v55, %v2481_v31  ;;  %v3809_v28 = vcombine.low %v2450_v41, %v2458_v13  ;;  %v17502_v8 = vcombine.high %v17446_v51, %v17446_v51 }
  0x5e   : > { %5275 = vmatpush2.bf16.msra.mxu0 %v16471_v26  ;;  %v2484_v26 = vshrl.u32 %v17461_v39, 16  ;;  %v2475_v32 = vsel %vm17185_vm15, %v2468_v49, %v2473_v0  ;;  %v2505_v39 = vshll.u32 %v17468_v27, 16  ;;  %v2499_v0 = vsel %vm17185_vm15, %v2492_v50, %v2497_v9 }
  0x5f   : > { %5276 = vmatprep.subr.bf16.mxu0 %v23578_v23  ;;  %v3810_v49 = vcombine.low %v2467_v37, %v2475_v32  ;;  %23579 = vst [vmem:[#allocation26_spill] sm:$0xff] %v17502_v8  ;;  %v740_v13 = vrot.slane %v14533_v20, %v17062_v22  ;;  %v23580_v9 = vcombine.low %v17348_v33, %v17348_v33 }
  0x60   : > { %v2491_v25 = vsel %vm17185_vm15, %v2484_v26, %v2489_v14  ;;  %v2507_v55 = vsel %vm17185_vm15, %v2500_v35, %v2505_v39  ;;  %v17508_v14 = vrot.slane %v3809_v28, %v17062_v22  ;;  %v14534_v35 = vcombine.low %v17112_v45, %v17329_v59  ;;  %v16511_v39 = vld [vmem:[%s23285_s1 + $0x18] sm:$0xff]  }
  0x61   : > { %v3811_v10 = vcombine.low %v2483_v46, %v2491_v25  ;;  %v3812_v41 = vcombine.low %v2499_v0, %v2507_v55  ;;  %v17516_v37 = vrot.slane %v3810_v49, %v17062_v22  ;;  %v14535_v26 = vcombine.low %v17116_v47, %v17332_v2  ;;  %7226 = vmatpush1.bf16.msra.mxu1 %v16511_v39 }
  0x62   : > { %5277 = vmatpush2.bf16.msra.mxu0 %v16472_v24  ;;  %v747_v24 = vrot.slane %v23580_v9, %v17062_v22  ;;  %v14536_v32 = vcombine.low %v17387_v17, %v17387_v17  ;;  %v23581_v50 = vcombine.low %v17384_v5, %v17387_v17  ;;  %v765_v25 = vrot.slane %v14534_v35, %v17062_v22 }
  0x63   : > { %15959 = vmatprep.subr.bf16.mxu0 %v23577_v54  ;;  %v17519_v31 = vrot.slane %v3811_v10, %v17062_v22  ;;  %v17535_v46 = vrot.slane %v3812_v41, %v17062_v22  ;;  %v3841_v45 = vcombine.low %v17508_v14, %v17516_v37  ;;  %v772_v0 = vrot.slane %v14535_v26, %v17062_v22 }
  0x64   : > { %v748_v20 = vcombine.low %v740_v13, %v747_v24  ;;  %v779_v10 = vrot.slane %v23581_v50, %v17062_v22  ;;  %v2170_v28 = vcombine.high %v740_v13, %v747_v24  ;;  %v786_v49 = vrot.slane %v14536_v32, %v17062_v22  ;;  %7227 = vmatprep.subr.bf16.mxu1 %v23578_v23 }
  0x65   : > { %v2508_v55 = vshrl.u32 %v17468_v27, 16  ;;  %v3843_v9 = vcombine.low %v17519_v31, %v17535_v46  ;;  %v17550_v41 = vrot.slane %v3841_v45, %v17062_v22  ;;  %v2513_v26 = vshll.u32 %v17502_v8, 16 }
  0x66   : > { %v17541_v47 = vrot.slane %v748_v20, %v17062_v22  ;;  %v787_v35 = vcombine.low %v765_v25, %v779_v10  ;;  %v788_v13 = vcombine.high %v765_v25, %v779_v10  ;;  %v789_v24 = vcombine.low %v772_v0, %v786_v49 }
  0x67   : > { %v790_v39 = vcombine.high %v772_v0, %v786_v49  ;;  %v17553_v20 = vrot.slane %v2170_v28, %v17062_v22  ;;  %v17557_v32 = vrot.slane %v3843_v9, %v17062_v22  ;;  %v2516_v45 = vshrl.u32 %v17502_v8, 16 }
  0x68   : > { %23582 = vst [vmem:[#allocation27_spill] sm:$0xff] %v17541_v47  ;;  %v17560_v50 = vrot.slane %v787_v35, %v17062_v22  ;;  %v17563_v27 = vrot.slane %v788_v13, %v17062_v22  ;;  %v17567_v10 = vrot.slane %v789_v24, %v17062_v22  ;;  %v2515_v28 = vsel %vm17185_vm15, %v2508_v55, %v2513_v26 }
  0x69   : > { %23583 = vst [vmem:[#allocation28_spill] sm:$0xff] %v17553_v20  ;;  %v17570_v25 = vrot.slane %v790_v39, %v17062_v22  ;;  %v2521_v0 = vshll.u32 %v17541_v47, 16  ;;  %v3874_v49 = vcombine.high %v17550_v41, %v17557_v32  ;;  %v2524_v13 = vshrl.u32 %v17541_v47, 16 }
  0x6a   : > { %23584 = vst [vmem:[#allocation29_spill] sm:$0xff] %v17560_v50  ;;  %23585 = vst [vmem:[#allocation30_spill] sm:$0xff] %v17563_v27  ;;  %v17579_v9 = vcombine.high %v17560_v50, %v17560_v50  ;;  %v17583_v35 = vcombine.high %v17563_v27, %v17563_v27  ;;  %v2529_v24 = vshll.u32 %v17553_v20, 16  ;;  %v2533_v39 = vshrl.u32 %v17560_v50, 16  ;;  %v17607_v50 = vld [vmem:[%s17041_s28 + $0x48] sm:$0xf] }
  0x6b   : > { %23586 = vst [vmem:[#allocation31_spill] sm:$0xff] %v17567_v10  ;;  %23587 = vst [vmem:[#allocation32_spill] sm:$0xff] %v17570_v25  ;;  %v2523_v55 = vsel %vm17185_vm15, %v2516_v45, %v2521_v0  ;;  %v2538_v26 = vshll.u32 %v17563_v27, 16  ;;  %15884 = vmatmul.mubr.bf16.gmra.mxu1 %v3874_v49  ;;  %v2541_v8 = vshrl.u32 %v17563_v27, 16  ;;  %v2562_v49 = vshll.u32 %v17567_v10, 16 }
  0x6c   : > { %23588 = vst [vmem:[#allocation33_spill] sm:$0xff] %v17579_v9  ;;  %23589 = vst [vmem:[#allocation34_spill] sm:$0xff] %v17583_v35  ;;  %v2546_v30 = vshll.u32 %v17579_v9, 16  ;;  %v2549_v51 = vshrl.u32 %v17579_v9, 16  ;;  %v2554_v47 = vshll.u32 %v17583_v35, 16  ;;  %15887 = vmatprep.mubr.msk.bf16.mxu1 %vm16892_vm0, %v23577_v54  ;;  %v2531_v45 = vsel %vm17185_vm15, %v2524_v13, %v2529_v24 }
  0x6d   : > { %v2540_v0 = vsel %vm17185_vm15, %v2533_v39, %v2538_v26  ;;  %v2557_v20 = vshrl.u32 %v17583_v35, 16  ;;  %v17604_v27 = vld [vmem:[%s17041_s28 + $0x44] sm:$0x3]  ;;  %v17610_v9 = vld [vmem:[%s17041_s28 + $0x4c] sm:$0xf]  ;;  %v2565_v13 = vshrl.u32 %v17567_v10, 16  ;;  %v3876_v26 = vcombine.low %v2515_v28, %v2523_v55 }
  0x6e   : > { %v2548_v1 = vsel %vm17185_vm15, %v2541_v8, %v2546_v30  ;;  %v2556_v40 = vsel %vm17185_vm15, %v2549_v51, %v2554_v47  ;;  %v2570_v24 = vshll.u32 %v17570_v25, 16  ;;  %v3877_v35 = vcombine.low %v2531_v45, %v2540_v0 }
  0x6f   : > { %v2564_v39 = vsel %vm17185_vm15, %v2557_v20, %v2562_v49  ;;  %v3878_v29 = vcombine.low %v2548_v1, %v2556_v40  ;;  %v3710_v8 = vcombine.high %v17245_v7, %v17262_v18  ;;  %v3739_v30 = vcombine.low %v17276_v21, %v17303_v36  ;;  %v16517_v18 = vld [vmem:[%s23285_s1 + $0x10] sm:$0xff]  }
  0x70   : > { %v2572_v19 = vsel %vm17185_vm15, %v2565_v13, %v2570_v24  ;;  %v17629_v47 = vrot.slane %v3876_v26, %v17062_v22  ;;  %v17632_v20 = vrot.slane %v3877_v35, %v17062_v22  ;;  %v3724_v40 = vrot.slane %v3708_v63, %v17062_v22  ;;  %7228 = vmatpush1.bf16.msra.mxu1 %v16517_v18 }
  0x71   : > { %v3879_v51 = vcombine.low %v2564_v39, %v2572_v19  ;;  %v17635_v1 = vrot.slane %v3878_v29, %v17062_v22  ;;  %v3738_v57 = vrot.slane %v3710_v8, %v17062_v22  ;;  %v14493_v58 = vcombine.low %v17604_v27, %v17604_v27  ;;  %v16480_v19 = vld [vmem:[%s23285_s1 + $0xb8] sm:$0xff]   ;;  %7229 = vmatprep.subr.bf16.mxu1 %v23578_v23 }
  0x72   : > { %v14494_v7 = vcombine.low %v17607_v50, %v17610_v9  ;;  %v3908_v29 = vcombine.low %v17629_v47, %v17632_v20  ;;  %v17653_v63 = vcombine.high %v17567_v10, %v17567_v10  ;;  %v17657_v36 = vcombine.high %v17570_v25, %v17570_v25 }
  0x73   : > { %v17647_v21 = vrot.slane %v3879_v51, %v17062_v22  ;;  %v3741_v28 = vcombine.low %v3724_v40, %v3738_v57  ;;  %v14537_v35 = vcombine.low %v17320_v52, %v17348_v33  ;;  %v837_v55 = vrot.slane %v14493_v58, %v17062_v22  ;;  %v16493_v57 = vld [vmem:[%s23285_s1 + $0xb0] sm:$0xff]  }
  0x74   : > { %23590 = vst [vmem:[#allocation35_spill] sm:$0xff] %v17653_v63  ;;  %23591 = vst [vmem:[#allocation36_spill] sm:$0xff] %v17657_v36  ;;  %v14538_v45 = vcombine.low %v17329_v59, %v17384_v5  ;;  %v17670_v49 = vrot.slane %v3908_v29, %v17062_v22  ;;  %v14539_v13 = vcombine.low %v17332_v2, %v17387_v17  ;;  %v2573_v26 = vshrl.u32 %v17570_v25, 16  ;;  %v17748_v25 = vld [vmem:[%s17041_s28 + $0x50] sm:$0x3] }
  0x75   : > { %v3910_v0 = vcombine.low %v17635_v1, %v17647_v21  ;;  %v14540_v24 = vcombine.low %v17610_v9, %v17610_v9  ;;  %5278 = vmatprep.mubr.bf16.mxu0 %v3741_v28  ;;  %v830_v52 = vrot.slane %v14537_v35, %v17062_v22  ;;  %v869_v39 = vrot.slane %v14494_v7, %v17062_v22 }
  0x76   : > { %v855_v59 = vrot.slane %v14538_v45, %v17062_v22  ;;  %5279 = vmatmul.mubr.bf16.vlgmr.msra.gmra.mxu0 %v3739_v30  ;;  %v17685_v2 = vrot.slane %v14539_v13, %v17062_v22  ;;  %v2578_v40 = vshll.u32 %v17653_v63, 16  ;;  %v2581_v45 = vshrl.u32 %v17653_v63, 16  ;;  %v17757_v63 = vld [vmem:[%s17041_s28 + $0x54] sm:$0xf] }
  0x77   : > { %v17682_v8 = vrot.slane %v3910_v0, %v17062_v22  ;;  %v17688_v51 = vrot.slane %v14540_v24, %v17062_v22  ;;  %v838_v58 = vcombine.low %v830_v52, %v837_v55  ;;  %v2178_v29 = vcombine.high %v830_v52, %v837_v55  ;;  %15960 = vmatpush3.bf16.msra.mxu0 %v16480_v19  ;;  %v16512_v24 = vld [vmem:[%s23285_s1 + $0xa8] sm:$0xff]  }
  0x78   : > { %v877_v7 = vcombine.low %v855_v59, %v869_v39  ;;  %v878_v18 = vcombine.high %v855_v59, %v869_v39  ;;  %v2580_v35 = vsel %vm17185_vm15, %v2573_v26, %v2578_v40  ;;  %15961 = vmatprep.subr.bf16.mxu0 %v23577_v54  ;;  %v2586_v59 = vshll.u32 %v17657_v36, 16 }
  0x79   : > { %v3941_v30 = vcombine.high %v17670_v49, %v17682_v8  ;;  %v879_v28 = vcombine.low %v17685_v2, %v17688_v51  ;;  %v17703_v0 = vrot.slane %v838_v58, %v17062_v22  ;;  %v17712_v55 = vrot.slane %v2178_v29, %v17062_v22 }
  0x7a   : > { %v17706_v13 = vrot.slane %v877_v7, %v17062_v22  ;;  %v17709_v19 = vrot.slane %v878_v18, %v17062_v22  ;;  %v2589_v39 = vshrl.u32 %v17657_v36, 16  ;;  %v3775_v26 = vcombine.high %v17362_v42, %v17365_v43 }
  0x7b   : > { %23592 = vst [vmem:[#allocation37_spill] sm:$0xff] %v17703_v0  ;;  %23595 = vst [vmem:[#allocation40_spill] sm:$0xff] %v17712_v55  ;;  %15888 = vmatmul.mubr.bf16.gmra.mxu1 %v3941_v30  ;;  %v17718_v52 = vrot.slane %v879_v28, %v17062_v22  ;;  %v2594_v7 = vshll.u32 %v17703_v0, 16  ;;  %v2597_v18 = vshrl.u32 %v17703_v0, 16  ;;  %15962 = vmatpush3.bf16.msra.mxu0 %v16493_v57  ;;  %v2602_v43 = vshll.u32 %v17712_v55, 16 }
  0x7c   : > { %23593 = vst [vmem:[#allocation38_spill] sm:$0xff] %v17706_v13  ;;  %23594 = vst [vmem:[#allocation39_spill] sm:$0xff] %v17709_v19  ;;  %15891 = vmatprep.mubr.msk.bf16.mxu1 %vm16892_vm0, %v23577_v54  ;;  %v17728_v40 = vcombine.high %v17706_v13, %v17706_v13  ;;  %v17732_v58 = vcombine.high %v17709_v19, %v17709_v19  ;;  %v2588_v42 = vsel %vm17185_vm15, %v2581_v45, %v2586_v59 }
  0x7d   : > { %23596 = vst [vmem:[#allocation41_spill] sm:$0xff] %v17718_v52  ;;  %v2606_v29 = vshrl.u32 %v17706_v13, 16  ;;  %v2611_v30 = vshll.u32 %v17709_v19, 16  ;;  %15963 = vmatprep.subr.bf16.mxu0 %v23577_v54  ;;  %v2596_v28 = vsel %vm17185_vm15, %v2589_v39, %v2594_v7  ;;  %v2614_v36 = vshrl.u32 %v17709_v19, 16  ;;  %v17760_v39 = vld [vmem:[%s17041_s28 + $0x58] sm:$0xf] }
  0x7e   : > { %23597 = vst [vmem:[#allocation42_spill] sm:$0xff] %v17728_v40  ;;  %23598 = vst [vmem:[#allocation43_spill] sm:$0xff] %v17732_v58  ;;  %v2619_v0 = vshll.u32 %v17728_v40, 16  ;;  %v2622_v57 = vshrl.u32 %v17728_v40, 16  ;;  %v2604_v45 = vsel %vm17185_vm15, %v2597_v18, %v2602_v43  ;;  %v2627_v55 = vshll.u32 %v17732_v58, 16 }
  0x7f   : > { %v2613_v59 = vsel %vm17185_vm15, %v2606_v29, %v2611_v30  ;;  %v2630_v13 = vshrl.u32 %v17732_v58, 16  ;;  %v2635_v40 = vshll.u32 %v17718_v52, 16  ;;  %v3943_v19 = vcombine.low %v2580_v35, %v2588_v42  ;;  %15964 = vmatpush3.bf16.msra.mxu0 %v16512_v24 }
  0x80   : > { %v2621_v7 = vsel %vm17185_vm15, %v2614_v36, %v2619_v0  ;;  %v3944_v10 = vcombine.low %v2596_v28, %v2604_v45  ;;  %v2629_v18 = vsel %vm17185_vm15, %v2622_v57, %v2627_v55  ;;  %v3777_v29 = vcombine.high %v17373_v53, %v17391_v12  ;;  %15965 = vmatprep.subr.bf16.mxu0 %v23577_v54 }
  0x81   : > { %v3945_v43 = vcombine.low %v2613_v59, %v2621_v7  ;;  %v3791_v30 = vrot.slane %v3775_v26, %v17062_v22  ;;  %v2637_v58 = vsel %vm17185_vm15, %v2630_v13, %v2635_v40  ;;  %v17774_v36 = vrot.slane %v3943_v19, %v17062_v22 }
  0x82   : > { %v17777_v35 = vrot.slane %v3944_v10, %v17062_v22  ;;  %v3806_v0 = vcombine.low %v17413_v34, %v17423_v56  ;;  %v3946_v55 = vcombine.low %v2629_v18, %v2637_v58  ;;  %v3805_v53 = vrot.slane %v3777_v29, %v17062_v22 }
  0x83   : > { %v17782_v24 = vrot.slane %v3945_v43, %v17062_v22  ;;  %v14495_v12 = vcombine.low %v17748_v25, %v17748_v25  ;;  %v14496_v19 = vcombine.low %v17757_v63, %v17760_v39  ;;  %v880_v10 = vcombine.high %v17685_v2, %v17688_v51 }
  0x84   : > { %v3975_v13 = vcombine.low %v17774_v36, %v17777_v35  ;;  %v17795_v34 = vcombine.high %v17718_v52, %v17718_v52  ;;  %v17798_v56 = vrot.slane %v3946_v55, %v17062_v22  ;;  %v3808_v26 = vcombine.low %v3791_v30, %v3805_v53 }
  0x85   : > { %v14541_v40 = vcombine.low %v17348_v33, %v17604_v27  ;;  %v927_v58 = vrot.slane %v14495_v12, %v17062_v22  ;;  %v17807_v28 = vrot.slane %v880_v10, %v17062_v22  ;;  %v14542_v2 = vcombine.low %v17384_v5, %v17607_v50 }
  0x86   : > { %23599 = vst [vmem:[#allocation44_spill] sm:$0xff] %v17795_v34  ;;  %v17804_v42 = vrot.slane %v3975_v13, %v17062_v22  ;;  %v959_v51 = vrot.slane %v14496_v19, %v17062_v22  ;;  %v3977_v57 = vcombine.low %v17782_v24, %v17798_v56  ;;  %5286 = vmatprep.mubr.bf16.mxu0 %v3808_v26  ;;  %v2638_v33 = vshrl.u32 %v17718_v52, 16 }
  0x87   : > { %23600 = vst [vmem:[#allocation45_spill] sm:$0xff] %v17807_v28  ;;  %v920_v45 = vrot.slane %v14541_v40, %v17062_v22  ;;  %v2651_v59 = vshll.u32 %v17795_v34, 16  ;;  %5287 = vmatmul.mubr.bf16.gmra.mxu0 %v3806_v0  ;;  %v17819_v7 = vcombine.high %v17807_v28, %v17807_v28  ;;  %v945_v18 = vrot.slane %v14542_v2, %v17062_v22 }
  0x88   : > { %v2643_v5 = vshll.u32 %v17807_v28, 16  ;;  %v2646_v43 = vshrl.u32 %v17807_v28, 16  ;;  %v17825_v29 = vrot.slane %v3977_v57, %v17062_v22  ;;  %v2654_v53 = vshrl.u32 %v17795_v34, 16  ;;  %v18916_v28 = vld [vmem:[%s17041_s28 + $0xb4] sm:$0xf] }
  0x89   : > { %23601 = vst [vmem:[#allocation46_spill] sm:$0xff] %v17819_v7  ;;  %v928_v30 = vcombine.low %v920_v45, %v927_v58  ;;  %v2186_v55 = vcombine.high %v920_v45, %v927_v58  ;;  %v967_v12 = vcombine.low %v945_v18, %v959_v51  ;;  %v968_v13 = vcombine.high %v945_v18, %v959_v51 }
  0x8a   : > { %v2645_v0 = vsel %vm17185_vm15, %v2638_v33, %v2643_v5  ;;  %v2653_v19 = vsel %vm17185_vm15, %v2646_v43, %v2651_v59  ;;  %v4008_v10 = vcombine.high %v17804_v42, %v17825_v29  ;;  %v2659_v58 = vshll.u32 %v17819_v7, 16  ;;  %v17854_v43 = vld [vmem:[%s17041_s28 + $0x5c] sm:$0x3] }
  0x8b   : > { %v17835_v26 = vrot.slane %v928_v30, %v17062_v22  ;;  %v17838_v40 = vrot.slane %v2186_v55, %v17062_v22  ;;  %v17842_v2 = vrot.slane %v967_v12, %v17062_v22  ;;  %v17845_v51 = vrot.slane %v968_v13, %v17062_v22 }
  0x8c   : > { %v2662_v57 = vshrl.u32 %v17819_v7, 16  ;;  %v4010_v45 = vcombine.low %v2645_v0, %v2653_v19  ;;  %15892 = vmatmul.mubr.bf16.gmra.mxu1 %v4008_v10  ;;  %v2661_v33 = vsel %vm17185_vm15, %v2654_v53, %v2659_v58  ;;  %v17877_v58 = vld [vmem:[%s17041_s28 + $0x60] sm:$0xf] }
  0x8d   : > { %23602 = vst [vmem:[#allocation47_spill] sm:$0xff] %v17835_v26  ;;  %23603 = vst [vmem:[#allocation48_spill] sm:$0xff] %v17838_v40  ;;  %v2667_v59 = vshll.u32 %v17835_v26, 16  ;;  %v2670_v18 = vshrl.u32 %v17835_v26, 16  ;;  %v2675_v5 = vshll.u32 %v17838_v40, 16  ;;  %15895 = vmatprep.mubr.msk.bf16.mxu1 %vm16892_vm0, %v23577_v54  ;;  %v17860_v30 = vcombine.high %v17842_v2, %v17842_v2 }
  0x8e   : > { %23604 = vst [vmem:[#allocation49_spill] sm:$0xff] %v17842_v2  ;;  %23605 = vst [vmem:[#allocation50_spill] sm:$0xff] %v17845_v51  ;;  %v17864_v55 = vcombine.high %v17845_v51, %v17845_v51  ;;  %v2679_v53 = vshrl.u32 %v17842_v2, 16  ;;  %v2684_v12 = vshll.u32 %v17845_v51, 16  ;;  %v2687_v19 = vshrl.u32 %v17845_v51, 16 }
  0x8f   : > { %23606 = vst [vmem:[#allocation51_spill] sm:$0xff] %v17860_v30  ;;  %v2669_v13 = vsel %vm17185_vm15, %v2662_v57, %v2667_v59  ;;  %v2677_v0 = vsel %vm17185_vm15, %v2670_v18, %v2675_v5  ;;  %v17874_v10 = vrot.slane %v4010_v45, %v17062_v22  ;;  %v17880_v40 = vld [vmem:[%s17041_s28 + $0x64] sm:$0xf]  ;;  %v2692_v34 = vshll.u32 %v17860_v30, 16 }
  0x90   : > { %23607 = vst [vmem:[#allocation52_spill] sm:$0xff] %v17864_v55  ;;  %v2686_v7 = vsel %vm17185_vm15, %v2679_v53, %v2684_v12  ;;  %v2695_v26 = vshrl.u32 %v17860_v30, 16  ;;  %v2700_v57 = vshll.u32 %v17864_v55, 16  ;;  %v4011_v59 = vcombine.low %v2661_v33, %v2669_v13 }
  0x91   : > { %v4012_v18 = vcombine.low %v2677_v0, %v2686_v7  ;;  %v3842_v5 = vcombine.high %v17508_v14, %v17516_v37  ;;  %v3844_v45 = vcombine.high %v17519_v31, %v17535_v46  ;;  %v2694_v51 = vsel %vm17185_vm15, %v2687_v19, %v2692_v34  ;;  %v16530_v34 = vld [vmem:[%s23285_s1 + $0x8] sm:$0xff]  }
  0x92   : > { %v2702_v53 = vsel %vm17185_vm15, %v2695_v26, %v2700_v57  ;;  %v3873_v12 = vcombine.low %v17550_v41, %v17557_v32  ;;  %v14497_v30 = vcombine.low %v17854_v43, %v17854_v43  ;;  %v17900_v7 = vrot.slane %v4011_v59, %v17062_v22  ;;  %v16531_v26 = vld [vmem:[%s23285_s1 + $0xa0] sm:$0xff]   ;;  %7230 = vmatpush1.bf16.msra.mxu1 %v16530_v34 }
  0x93   : > { %v4013_v33 = vcombine.low %v2694_v51, %v2702_v53  ;;  %v17903_v14 = vrot.slane %v4012_v18, %v17062_v22  ;;  %v3858_v37 = vrot.slane %v3842_v5, %v17062_v22  ;;  %v3872_v31 = vrot.slane %v3844_v45, %v17062_v22  ;;  %15966 = vmatpush3.bf16.msra.mxu0 %v16531_v26 }
  0x94   : > { %v14498_v46 = vcombine.low %v17877_v58, %v17880_v40  ;;  %v14543_v41 = vcombine.low %v17387_v17, %v17610_v9  ;;  %v14544_v32 = vcombine.low %v17760_v39, %v17760_v39  ;;  %v4042_v13 = vcombine.low %v17874_v10, %v17900_v7  ;;  %7231 = vmatprep.subr.bf16.mxu1 %v23578_v23 }
  0x95   : > { %v17920_v51 = vrot.slane %v4013_v33, %v17062_v22  ;;  %v14545_v17 = vcombine.low %v17604_v27, %v17748_v25  ;;  %v1017_v0 = vrot.slane %v14497_v30, %v17062_v22  ;;  %v3875_v19 = vcombine.low %v3858_v37, %v3872_v31  ;;  %15967 = vmatprep.subr.bf16.mxu0 %v23577_v54 }
  0x96   : > { %v952_v57 = vrot.slane %v14543_v41, %v17062_v22  ;;  %v966_v59 = vrot.slane %v14544_v32, %v17062_v22  ;;  %v14546_v18 = vcombine.low %v17607_v50, %v17757_v63  ;;  %v17934_v45 = vrot.slane %v4042_v13, %v17062_v22 }
  0x97   : > { %v4044_v5 = vcombine.low %v17903_v14, %v17920_v51  ;;  %v1010_v53 = vrot.slane %v14545_v17, %v17062_v22  ;;  %v1049_v27 = vrot.slane %v14498_v46, %v17062_v22  ;;  %5294 = vmatprep.mubr.bf16.mxu0 %v3875_v19  ;;  %v2703_v31 = vshrl.u32 %v17864_v55, 16 }
  0x98   : > { %v969_v30 = vcombine.low %v952_v57, %v966_v59  ;;  %v970_v33 = vcombine.high %v952_v57, %v966_v59  ;;  %v1035_v37 = vrot.slane %v14546_v18, %v17062_v22  ;;  %5295 = vmatmul.mubr.bf16.gmra.mxu0 %v3873_v12  ;;  %v3909_v34 = vcombine.high %v17629_v47, %v17632_v20 }
  0x99   : > { %v17942_v50 = vrot.slane %v4044_v5, %v17062_v22  ;;  %v1018_v41 = vcombine.low %v1010_v53, %v1017_v0  ;;  %v2194_v32 = vcombine.high %v1010_v53, %v1017_v0  ;;  %v3911_v47 = vcombine.high %v17635_v1, %v17647_v21 }
  0x9a   : > { %v17947_v46 = vrot.slane %v969_v30, %v17062_v22  ;;  %v17950_v26 = vrot.slane %v970_v33, %v17062_v22  ;;  %v1057_v13 = vcombine.low %v1035_v37, %v1049_v27  ;;  %v1058_v17 = vcombine.high %v1035_v37, %v1049_v27 }
  0x9b   : > { %v4075_v19 = vcombine.high %v17934_v45, %v17942_v50  ;;  %v17956_v12 = vrot.slane %v1018_v41, %v17062_v22  ;;  %v17959_v0 = vrot.slane %v2194_v32, %v17062_v22 }
  0x9c   : > { %23608 = vst [vmem:[#allocation53_spill] sm:$0xff] %v17947_v46  ;;  %23609 = vst [vmem:[#allocation54_spill] sm:$0xff] %v17950_v26  ;;  %v17965_v20 = vcombine.high %v17947_v46, %v17947_v46  ;;  %v17969_v57 = vcombine.high %v17950_v26, %v17950_v26  ;;  %v17972_v59 = vrot.slane %v1057_v13, %v17062_v22  ;;  %v2708_v5 = vshll.u32 %v17947_v46, 16 }
  0x9d   : > { %23610 = vst [vmem:[#allocation55_spill] sm:$0xff] %v17956_v12  ;;  %23611 = vst [vmem:[#allocation56_spill] sm:$0xff] %v17959_v0  ;;  %v17975_v18 = vrot.slane %v1058_v17, %v17062_v22  ;;  %15896 = vmatmul.mubr.bf16.gmra.mxu1 %v4075_v19  ;;  %v2711_v53 = vshrl.u32 %v17947_v46, 16  ;;  %v2716_v1 = vshll.u32 %v17950_v26, 16  ;;  %v2719_v21 = vshrl.u32 %v17950_v26, 16 }
  0x9e   : > { %23612 = vst [vmem:[#allocation57_spill] sm:$0xff] %v17965_v20  ;;  %23613 = vst [vmem:[#allocation58_spill] sm:$0xff] %v17969_v57  ;;  %15899 = vmatprep.mubr.msk.bf16.mxu1 %vm16892_vm0, %v23577_v54  ;;  %v17985_v27 = vcombine.high %v17972_v59, %v17972_v59  ;;  %v2724_v30 = vshll.u32 %v17965_v20, 16  ;;  %v2727_v33 = vshrl.u32 %v17965_v20, 16  ;;  %v2732_v37 = vshll.u32 %v17969_v57, 16 }
  0x9f   : > { %23614 = vst [vmem:[#allocation59_spill] sm:$0xff] %v17972_v59  ;;  %23615 = vst [vmem:[#allocation60_spill] sm:$0xff] %v17975_v18  ;;  %v2710_v41 = vsel %vm17185_vm15, %v2703_v31, %v2708_v5  ;;  %v2718_v32 = vsel %vm17185_vm15, %v2711_v53, %v2716_v1  ;;  %v2735_v13 = vshrl.u32 %v17969_v57, 16  ;;  %v2740_v17 = vshll.u32 %v17956_v12, 16  ;;  %v18003_v46 = vld [vmem:[%s17041_s28 + $0x68] sm:$0x3] }
  0xa0   : > { %23616 = vst [vmem:[#allocation61_spill] sm:$0xff] %v17985_v27  ;;  %v2726_v19 = vsel %vm17185_vm15, %v2719_v21, %v2724_v30  ;;  %v2734_v26 = vsel %vm17185_vm15, %v2727_v33, %v2732_v37  ;;  %v2743_v20 = vshrl.u32 %v17956_v12, 16  ;;  %v2748_v55 = vshll.u32 %v17959_v0, 16  ;;  %v18011_v57 = vld [vmem:[%s17041_s28 + $0x6c] sm:$0xf] }
  0xa1   : > { %v2742_v31 = vsel %vm17185_vm15, %v2735_v13, %v2740_v17  ;;  %v2752_v5 = vshrl.u32 %v17972_v59, 16  ;;  %v2757_v53 = vshll.u32 %v17975_v18, 16  ;;  %v2760_v1 = vshrl.u32 %v17975_v18, 16  ;;  %v18014_v21 = vld [vmem:[%s17041_s28 + $0x70] sm:$0xf] }
  0xa2   : > { %v2750_v30 = vsel %vm17185_vm15, %v2743_v20, %v2748_v55  ;;  %v2765_v33 = vshll.u32 %v17985_v27, 16  ;;  %v4077_v37 = vcombine.low %v2710_v41, %v2718_v32  ;;  %v4078_v0 = vcombine.low %v2726_v19, %v2734_v26 }
  0xa3   : > { %v2759_v13 = vsel %vm17185_vm15, %v2752_v5, %v2757_v53  ;;  %v4079_v17 = vcombine.low %v2742_v31, %v2750_v30  ;;  %v3925_v59 = vrot.slane %v3909_v34, %v17062_v22  ;;  %v3939_v12 = vrot.slane %v3911_v47, %v17062_v22  ;;  %v16538_v47 = vld [vmem:[%s23285_s1] sm:$0xff]  }
  0xa4   : > { %v2767_v2 = vsel %vm17185_vm15, %v2760_v1, %v2765_v33  ;;  %v18026_v52 = vrot.slane %v4077_v37, %v17062_v22  ;;  %v18029_v55 = vrot.slane %v4078_v0, %v17062_v22  ;;  %v3940_v26 = vcombine.low %v17670_v49, %v17682_v8  ;;  %7232 = vmatpush1.bf16.msra.mxu1 %v16538_v47 }
  0xa5   : > { %v4080_v20 = vcombine.low %v2759_v13, %v2767_v2  ;;  %v18034_v41 = vrot.slane %v4079_v17, %v17062_v22  ;;  %v3942_v32 = vcombine.low %v3925_v59, %v3939_v12  ;;  %v14499_v34 = vcombine.low %v18003_v46, %v18003_v46  ;;  %7233 = vmatprep.subr.bf16.mxu1 %v23578_v23 }
  0xa6   : > { %v4109_v19 = vcombine.low %v18026_v52, %v18029_v55  ;;  %v14500_v0 = vcombine.low %v18011_v57, %v18014_v21  ;;  %v14547_v49 = vcombine.low %v17610_v9, %v17760_v39  ;;  %v14548_v8 = vcombine.low %v17880_v40, %v17880_v40 }
  0xa7   : > { %v18050_v2 = vrot.slane %v4080_v20, %v17062_v22  ;;  %5302 = vmatprep.mubr.bf16.mxu0 %v3942_v32  ;;  %v18054_v12 = vcombine.high %v17975_v18, %v17975_v18  ;;  %v14549_v59 = vcombine.low %v17748_v25, %v17854_v43  ;;  %v1107_v31 = vrot.slane %v14499_v34, %v17062_v22  ;;  %v18131_v18 = vld [vmem:[%s17041_s28 + $0x74] sm:$0x3] }
  0xa8   : > { %v18060_v5 = vrot.slane %v4109_v19, %v17062_v22  ;;  %5303 = vmatmul.mubr.bf16.gmra.mxu0 %v3940_v26  ;;  %v1042_v9 = vrot.slane %v14547_v49, %v17062_v22  ;;  %v1056_v53 = vrot.slane %v14548_v8, %v17062_v22  ;;  %v14550_v1 = vcombine.low %v17757_v63, %v17877_v58 }
  0xa9   : > { %23617 = vst [vmem:[#allocation62_spill] sm:$0xff] %v18054_v12  ;;  %v4111_v30 = vcombine.low %v18034_v41, %v18050_v2  ;;  %v1100_v33 = vrot.slane %v14549_v59, %v17062_v22  ;;  %v1139_v25 = vrot.slane %v14500_v0, %v17062_v22  ;;  %v2768_v37 = vshrl.u32 %v17985_v27, 16 }
  0xaa   : > { %v1059_v13 = vcombine.low %v1042_v9, %v1056_v53  ;;  %v1060_v17 = vcombine.high %v1042_v9, %v1056_v53  ;;  %v1125_v26 = vrot.slane %v14550_v1, %v17062_v22  ;;  %v2773_v20 = vshll.u32 %v18054_v12, 16 }
  0xab   : > { %v18075_v63 = vrot.slane %v4111_v30, %v17062_v22  ;;  %v1108_v32 = vcombine.low %v1100_v33, %v1107_v31  ;;  %v2202_v34 = vcombine.high %v1100_v33, %v1107_v31  ;;  %v2776_v19 = vshrl.u32 %v18054_v12, 16 }
  0xac   : > { %v18079_v0 = vrot.slane %v1059_v13, %v17062_v22  ;;  %v18082_v47 = vrot.slane %v1060_v17, %v17062_v22  ;;  %v1147_v49 = vcombine.low %v1125_v26, %v1139_v25  ;;  %v1148_v8 = vcombine.high %v1125_v26, %v1139_v25 }
  0xad   : > { %v4142_v59 = vcombine.high %v18060_v5, %v18075_v63  ;;  %v18087_v9 = vrot.slane %v1108_v32, %v17062_v22  ;;  %v18090_v53 = vrot.slane %v2202_v34, %v17062_v22  ;;  %v2775_v31 = vsel %vm17185_vm15, %v2768_v37, %v2773_v20 }
  0xae   : > { %23618 = vst [vmem:[#allocation63_spill] sm:$0xff] %v18079_v0  ;;  %23619 = vst [vmem:[#allocation64_spill] sm:$0xff] %v18082_v47  ;;  %v18096_v1 = vcombine.high %v18079_v0, %v18079_v0  ;;  %v18100_v30 = vcombine.high %v18082_v47, %v18082_v47  ;;  %v18103_v33 = vrot.slane %v1147_v49, %v17062_v22  ;;  %v2781_v13 = vshll.u32 %v18079_v0, 16 }
  0xaf   : > { %23620 = vst [vmem:[#allocation65_spill] sm:$0xff] %v18087_v9  ;;  %23621 = vst [vmem:[#allocation66_spill] sm:$0xff] %v18090_v53  ;;  %v18106_v25 = vrot.slane %v1148_v8, %v17062_v22  ;;  %15900 = vmatmul.mubr.bf16.gmra.mxu1 %v4142_v59  ;;  %v2784_v17 = vshrl.u32 %v18079_v0, 16  ;;  %v2789_v37 = vshll.u32 %v18082_v47, 16  ;;  %v2792_v26 = vshrl.u32 %v18082_v47, 16 }
  0xb0   : > { %23622 = vst [vmem:[#allocation67_spill] sm:$0xff] %v18096_v1  ;;  %23623 = vst [vmem:[#allocation68_spill] sm:$0xff] %v18100_v30  ;;  %15903 = vmatprep.mubr.msk.bf16.mxu1 %vm16892_vm0, %v23577_v54  ;;  %v2797_v20 = vshll.u32 %v18096_v1, 16  ;;  %v2800_v32 = vshrl.u32 %v18096_v1, 16  ;;  %v2805_v34 = vshll.u32 %v18100_v30, 16  ;;  %v2808_v49 = vshrl.u32 %v18100_v30, 16 }
  0xb1   : > { %23624 = vst [vmem:[#allocation69_spill] sm:$0xff] %v18103_v33  ;;  %23625 = vst [vmem:[#allocation70_spill] sm:$0xff] %v18106_v25  ;;  %v2783_v8 = vsel %vm17185_vm15, %v2776_v19, %v2781_v13  ;;  %v2791_v59 = vsel %vm17185_vm15, %v2784_v17, %v2789_v37  ;;  %v2813_v12 = vshll.u32 %v18087_v9, 16  ;;  %v2816_v27 = vshrl.u32 %v18087_v9, 16 }
  0xb2   : > { %v2799_v0 = vsel %vm17185_vm15, %v2792_v26, %v2797_v20  ;;  %v2807_v1 = vsel %vm17185_vm15, %v2800_v32, %v2805_v34  ;;  %v2821_v47 = vshll.u32 %v18090_v53, 16  ;;  %v2825_v30 = vshrl.u32 %v18103_v33, 16 }
  0xb3   : > { %v2815_v19 = vsel %vm17185_vm15, %v2808_v49, %v2813_v12  ;;  %v2830_v13 = vshll.u32 %v18106_v25, 16  ;;  %v4144_v17 = vcombine.low %v2775_v31, %v2783_v8  ;;  %v4145_v37 = vcombine.low %v2791_v59, %v2799_v0 }
  0xb4   : > { %v2823_v9 = vsel %vm17185_vm15, %v2816_v27, %v2821_v47  ;;  %v4146_v26 = vcombine.low %v2807_v1, %v2815_v19  ;;  %v3976_v20 = vcombine.high %v17774_v36, %v17777_v35  ;;  %v3978_v32 = vcombine.high %v17782_v24, %v17798_v56  ;;  %v16543_v24 = vld [vmem:[%s23285_s1 + $0x78] sm:$0xff]  }
  0xb5   : > { %v2832_v34 = vsel %vm17185_vm15, %v2825_v30, %v2830_v13  ;;  %v18145_v53 = vrot.slane %v4144_v17, %v17062_v22  ;;  %v18148_v12 = vrot.slane %v4145_v37, %v17062_v22  ;;  %v4007_v0 = vcombine.low %v17804_v42, %v17825_v29  ;;  %v16544_v56 = vld [vmem:[%s23285_s1 + $0x98] sm:$0xff]   ;;  %7234 = vmatpush2.bf16.msra.mxu1 %v16543_v24 }
  0xb6   : > { %v4147_v27 = vcombine.low %v2823_v9, %v2832_v34  ;;  %v18153_v47 = vrot.slane %v4146_v26, %v17062_v22  ;;  %v3992_v36 = vrot.slane %v3976_v20, %v17062_v22  ;;  %v4006_v35 = vrot.slane %v3978_v32, %v17062_v22  ;;  %15968 = vmatpush3.bf16.msra.mxu0 %v16544_v56 }
  0xb7   : > { %v4176_v31 = vcombine.low %v18145_v53, %v18148_v12  ;;  %v14501_v42 = vcombine.low %v18131_v18, %v18131_v18  ;;  %v14551_v29 = vcombine.low %v17760_v39, %v17880_v40  ;;  %v14552_v9 = vcombine.low %v18014_v21, %v18014_v21  ;;  %7235 = vmatprep.subr.bf16.mxu1 %v23578_v23 }
  0xb8   : > { %v18172_v1 = vrot.slane %v4147_v27, %v17062_v22  ;;  %v4009_v30 = vcombine.low %v3992_v36, %v4006_v35  ;;  %v18176_v49 = vcombine.high %v18103_v33, %v18103_v33  ;;  %v18180_v8 = vcombine.high %v18106_v25, %v18106_v25  ;;  %15969 = vmatprep.subr.bf16.mxu0 %v23577_v54  ;;  %v18770_v33 = vld [vmem:[%s17041_s28 + $0xac] sm:$0xf] }
  0xb9   : > { %v18183_v59 = vrot.slane %v4176_v31, %v17062_v22  ;;  %v1132_v39 = vrot.slane %v14551_v29, %v17062_v22  ;;  %v1146_v19 = vrot.slane %v14552_v9, %v17062_v22  ;;  %v14553_v13 = vcombine.low %v17854_v43, %v18003_v46 }
  0xba   : > { %23626 = vst [vmem:[#allocation71_spill] sm:$0xff] %v18176_v49  ;;  %23627 = vst [vmem:[#allocation72_spill] sm:$0xff] %v18180_v8  ;;  %v4178_v17 = vcombine.low %v18153_v47, %v18172_v1  ;;  %5310 = vmatprep.mubr.bf16.mxu0 %v4009_v30  ;;  %v1197_v37 = vrot.slane %v14501_v42, %v17062_v22  ;;  %v2833_v26 = vshrl.u32 %v18106_v25, 16  ;;  %v2838_v20 = vshll.u32 %v18176_v49, 16 }
  0xbb   : > { %5311 = vmatmul.mubr.bf16.gmra.mxu0 %v4007_v0  ;;  %v1149_v32 = vcombine.low %v1132_v39, %v1146_v19  ;;  %v1150_v34 = vcombine.high %v1132_v39, %v1146_v19  ;;  %v1190_v27 = vrot.slane %v14553_v13, %v17062_v22  ;;  %v2841_v43 = vshrl.u32 %v18176_v49, 16  ;;  %v18767_v49 = vld [vmem:[%s17041_s28 + $0xa8] sm:$0xf] }
  0xbc   : > { %v18199_v36 = vrot.slane %v4178_v17, %v17062_v22  ;;  %v2840_v35 = vsel %vm17185_vm15, %v2833_v26, %v2838_v20  ;;  %v2846_v24 = vshll.u32 %v18180_v8, 16  ;;  %v2849_v56 = vshrl.u32 %v18180_v8, 16 }
  0xbd   : > { %v18206_v0 = vrot.slane %v1149_v32, %v17062_v22  ;;  %v18209_v31 = vrot.slane %v1150_v34, %v17062_v22  ;;  %v1198_v42 = vcombine.low %v1190_v27, %v1197_v37  ;;  %v2210_v29 = vcombine.high %v1190_v27, %v1197_v37 }
  0xbe   : > { %v4209_v9 = vcombine.high %v18183_v59, %v18199_v36  ;;  %v2848_v30 = vsel %vm17185_vm15, %v2841_v43, %v2846_v24  ;;  %v4043_v39 = vcombine.high %v17874_v10, %v17900_v7  ;;  %v4045_v19 = vcombine.high %v17903_v14, %v17920_v51 }
  0xbf   : > { %23628 = vst [vmem:[#allocation73_spill] sm:$0xff] %v18206_v0  ;;  %23629 = vst [vmem:[#allocation74_spill] sm:$0xff] %v18209_v31  ;;  %v18221_v13 = vcombine.high %v18206_v0, %v18206_v0  ;;  %v18225_v17 = vcombine.high %v18209_v31, %v18209_v31  ;;  %v18228_v37 = vrot.slane %v1198_v42, %v17062_v22  ;;  %v2854_v10 = vshll.u32 %v18206_v0, 16 }
  0xc0   : > { %v18231_v26 = vrot.slane %v2210_v29, %v17062_v22  ;;  %15904 = vmatmul.mubr.bf16.gmra.mxu1 %v4209_v9  ;;  %v2857_v7 = vshrl.u32 %v18206_v0, 16  ;;  %v2862_v14 = vshll.u32 %v18209_v31, 16  ;;  %v2865_v51 = vshrl.u32 %v18209_v31, 16  ;;  %v18258_v0 = vld [vmem:[%s17041_s28 + $0x7c] sm:$0xf] }
  0xc1   : > { %23630 = vst [vmem:[#allocation75_spill] sm:$0xff] %v18221_v13  ;;  %23631 = vst [vmem:[#allocation76_spill] sm:$0xff] %v18225_v17  ;;  %15907 = vmatprep.mubr.msk.bf16.mxu1 %vm16892_vm0, %v23577_v54  ;;  %v2870_v20 = vshll.u32 %v18221_v13, 16  ;;  %v2873_v32 = vshrl.u32 %v18221_v13, 16  ;;  %v2878_v34 = vshll.u32 %v18225_v17, 16  ;;  %v2881_v27 = vshrl.u32 %v18225_v17, 16 }
  0xc2   : > { %23632 = vst [vmem:[#allocation77_spill] sm:$0xff] %v18228_v37  ;;  %23633 = vst [vmem:[#allocation78_spill] sm:$0xff] %v18231_v26  ;;  %v2856_v43 = vsel %vm17185_vm15, %v2849_v56, %v2854_v10  ;;  %v2864_v24 = vsel %vm17185_vm15, %v2857_v7, %v2862_v14  ;;  %v2886_v42 = vshll.u32 %v18228_v37, 16  ;;  %v2889_v29 = vshrl.u32 %v18228_v37, 16  ;;  %v18255_v17 = vld [vmem:[%s17041_s28 + $0x78] sm:$0xf] }
  0xc3   : > { %v2872_v9 = vsel %vm17185_vm15, %v2865_v51, %v2870_v20  ;;  %v2880_v31 = vsel %vm17185_vm15, %v2873_v32, %v2878_v34  ;;  %v2894_v13 = vshll.u32 %v18231_v26, 16  ;;  %v4211_v8 = vcombine.low %v2840_v35, %v2848_v30  ;;  %v18264_v37 = vld [vmem:[%s17041_s28 + $0x80] sm:$0x3] }
  0xc4   : > { %v2888_v56 = vsel %vm17185_vm15, %v2881_v27, %v2886_v42  ;;  %v4212_v10 = vcombine.low %v2856_v43, %v2864_v24  ;;  %v4213_v7 = vcombine.low %v2872_v9, %v2880_v31  ;;  %v4059_v14 = vrot.slane %v4043_v39, %v17062_v22 }
  0xc5   : > { %v2896_v51 = vsel %vm17185_vm15, %v2889_v29, %v2894_v13  ;;  %v18269_v20 = vrot.slane %v4211_v8, %v17062_v22  ;;  %v4073_v35 = vrot.slane %v4045_v19, %v17062_v22  ;;  %v4074_v30 = vcombine.low %v17934_v45, %v17942_v50 }
  0xc6   : > { %v4214_v32 = vcombine.low %v2888_v56, %v2896_v51  ;;  %v18275_v34 = vrot.slane %v4212_v10, %v17062_v22  ;;  %v18278_v31 = vrot.slane %v4213_v7, %v17062_v22  ;;  %v14502_v39 = vcombine.low %v18255_v17, %v18258_v0 }
  0xc7   : > { %v4076_v27 = vcombine.low %v4059_v14, %v4073_v35  ;;  %v14503_v8 = vcombine.low %v18264_v37, %v18264_v37  ;;  %v14554_v19 = vcombine.low %v17877_v58, %v18011_v57  ;;  %v14555_v45 = vcombine.low %v17880_v40, %v18014_v21 }
  0xc8   : > { %v18289_v50 = vrot.slane %v4214_v32, %v17062_v22  ;;  %v4243_v13 = vcombine.low %v18269_v20, %v18275_v34  ;;  %v14556_v43 = vcombine.low %v18258_v0, %v18258_v0  ;;  %v1229_v24 = vrot.slane %v14502_v39, %v17062_v22 }
  0xc9   : > { %5318 = vmatprep.mubr.bf16.mxu0 %v4076_v27  ;;  %v1215_v42 = vrot.slane %v14554_v19, %v17062_v22  ;;  %v1222_v29 = vrot.slane %v14555_v45, %v17062_v22  ;;  %v14557_v58 = vcombine.low %v18003_v46, %v18131_v18  ;;  %v18301_v40 = vrot.slane %v14503_v8, %v17062_v22 }
  0xca   : > { %v4245_v9 = vcombine.low %v18278_v31, %v18289_v50  ;;  %v18306_v56 = vrot.slane %v4243_v13, %v17062_v22  ;;  %5319 = vmatmul.mubr.bf16.gmra.mxu0 %v4074_v30  ;;  %v1236_v10 = vrot.slane %v14556_v43, %v17062_v22  ;;  %v4110_v7 = vcombine.high %v18026_v52, %v18029_v55 }
  0xcb   : > { %v1237_v14 = vcombine.low %v1215_v42, %v1229_v24  ;;  %v1238_v51 = vcombine.high %v1215_v42, %v1229_v24  ;;  %v18312_v35 = vrot.slane %v14557_v58, %v17062_v22  ;;  %v4112_v46 = vcombine.high %v18034_v41, %v18050_v2 }
  0xcc   : > { %v18317_v32 = vrot.slane %v4245_v9, %v17062_v22  ;;  %v1239_v39 = vcombine.low %v1222_v29, %v1236_v10  ;;  %v1240_v27 = vcombine.high %v1222_v29, %v1236_v10  ;;  %v4126_v30 = vrot.slane %v4110_v7, %v17062_v22 }
  0xcd   : > { %v18321_v8 = vrot.slane %v1237_v14, %v17062_v22  ;;  %v18324_v52 = vrot.slane %v1238_v51, %v17062_v22  ;;  %v1288_v55 = vcombine.low %v18312_v35, %v18301_v40  ;;  %v4140_v19 = vrot.slane %v4112_v46, %v17062_v22 }
  0xce   : > { %v4276_v41 = vcombine.high %v18306_v56, %v18317_v32  ;;  %v18332_v2 = vrot.slane %v1239_v39, %v17062_v22  ;;  %v18335_v45 = vrot.slane %v1240_v27, %v17062_v22  ;;  %v4141_v13 = vcombine.low %v18060_v5, %v18075_v63 }
  0xcf   : > { %23634 = vst [vmem:[#allocation79_spill] sm:$0xff] %v18321_v8  ;;  %23635 = vst [vmem:[#allocation80_spill] sm:$0xff] %v18324_v52  ;;  %v18341_v43 = vcombine.high %v18321_v8, %v18321_v8  ;;  %v18345_v24 = vcombine.high %v18324_v52, %v18324_v52  ;;  %v18348_v42 = vrot.slane %v1288_v55, %v17062_v22  ;;  %v2898_v29 = vshrl.u32 %v18321_v8, 16 }
  0xd0   : > { %23636 = vst [vmem:[#allocation81_spill] sm:$0xff] %v18332_v2  ;;  %23637 = vst [vmem:[#allocation82_spill] sm:$0xff] %v18335_v45  ;;  %15908 = vmatmul.mubr.bf16.gmra.mxu1 %v4276_v41  ;;  %v18353_v58 = vcombine.high %v18332_v2, %v18332_v2  ;;  %v18357_v5 = vcombine.high %v18335_v45, %v18335_v45  ;;  %v2903_v63 = vshll.u32 %v18324_v52, 16  ;;  %v2906_v9 = vshrl.u32 %v18324_v52, 16  ;;  %v18385_v52 = vld [vmem:[%s17041_s28 + $0x84] sm:$0xf] }
  0xd1   : > { %23638 = vst [vmem:[#allocation83_spill] sm:$0xff] %v18341_v43  ;;  %23639 = vst [vmem:[#allocation84_spill] sm:$0xff] %v18345_v24  ;;  %15911 = vmatprep.mubr.msk.bf16.mxu1 %vm16892_vm0, %v23577_v54  ;;  %v2911_v10 = vshll.u32 %v18341_v43, 16  ;;  %v2914_v7 = vshrl.u32 %v18341_v43, 16  ;;  %v2919_v14 = vshll.u32 %v18345_v24, 16  ;;  %v2922_v51 = vshrl.u32 %v18345_v24, 16 }
  0xd2   : > { %23640 = vst [vmem:[#allocation85_spill] sm:$0xff] %v18348_v42  ;;  %23641 = vst [vmem:[#allocation86_spill] sm:$0xff] %v18353_v58  ;;  %v2905_v46 = vsel %vm17185_vm15, %v2898_v29, %v2903_v63  ;;  %v2927_v39 = vshll.u32 %v18332_v2, 16  ;;  %v2930_v27 = vshrl.u32 %v18332_v2, 16  ;;  %v2935_v55 = vshll.u32 %v18335_v45, 16 }
  0xd3   : > { %23642 = vst [vmem:[#allocation87_spill] sm:$0xff] %v18357_v5  ;;  %v2913_v41 = vsel %vm17185_vm15, %v2906_v9, %v2911_v10  ;;  %v2921_v43 = vsel %vm17185_vm15, %v2914_v7, %v2919_v14  ;;  %v2938_v26 = vshrl.u32 %v18335_v45, 16  ;;  %v2943_v8 = vshll.u32 %v18353_v58, 16  ;;  %v18388_v9 = vld [vmem:[%s17041_s28 + $0x88] sm:$0xf] }
  0xd4   : > { %v2929_v24 = vsel %vm17185_vm15, %v2922_v51, %v2927_v39  ;;  %v2937_v29 = vsel %vm17185_vm15, %v2930_v27, %v2935_v55  ;;  %v2946_v63 = vshrl.u32 %v18353_v58, 16  ;;  %v2951_v2 = vshll.u32 %v18357_v5, 16 }
  0xd5   : > { %v2945_v10 = vsel %vm17185_vm15, %v2938_v26, %v2943_v8  ;;  %v2954_v7 = vshrl.u32 %v18357_v5, 16  ;;  %v2959_v14 = vshll.u32 %v18348_v42, 16  ;;  %v4278_v45 = vcombine.low %v2905_v46, %v2913_v41 }
  0xd6   : > { %v2953_v51 = vsel %vm17185_vm15, %v2946_v63, %v2951_v2  ;;  %v4279_v39 = vcombine.low %v2921_v43, %v2929_v24  ;;  %v4280_v27 = vcombine.low %v2937_v29, %v2945_v10  ;;  %v4143_v55 = vcombine.low %v4126_v30, %v4140_v19  ;;  %v16557_v19 = vld [vmem:[%s23285_s1 + $0x70] sm:$0xff]  }
  0xd7   : > { %v2961_v58 = vsel %vm17185_vm15, %v2954_v7, %v2959_v14  ;;  %v18399_v25 = vrot.slane %v4278_v45, %v17062_v22  ;;  %v14504_v26 = vcombine.low %v18385_v52, %v18388_v9  ;;  %v14558_v8 = vcombine.low %v18011_v57, %v18255_v17  ;;  %7236 = vmatpush2.bf16.msra.mxu1 %v16557_v19 }
  0xd8   : > { %v4281_v5 = vcombine.low %v2953_v51, %v2961_v58  ;;  %v18406_v46 = vrot.slane %v4279_v39, %v17062_v22  ;;  %v18409_v2 = vrot.slane %v4280_v27, %v17062_v22  ;;  %5326 = vmatprep.mubr.bf16.mxu0 %v4143_v55  ;;  %v14559_v30 = vcombine.low %v18014_v21, %v18258_v0 }
  0xd9   : > { %5327 = vmatmul.mubr.bf16.gmra.mxu0 %v4141_v13  ;;  %v14560_v45 = vcombine.low %v18388_v9, %v18388_v9  ;;  %v1305_v57 = vrot.slane %v14558_v8, %v17062_v22  ;;  %v1319_v43 = vrot.slane %v14504_v26, %v17062_v22  ;;  %v2218_v24 = vcombine.high %v18312_v35, %v18301_v40 }
  0xda   : > { %v18423_v58 = vrot.slane %v4281_v5, %v17062_v22  ;;  %v4310_v21 = vcombine.low %v18399_v25, %v18406_v46  ;;  %v1312_v41 = vrot.slane %v14559_v30, %v17062_v22  ;;  %v2962_v13 = vshrl.u32 %v18348_v42, 16  ;;  %7237 = vmatprep.subr.bf16.mxu1 %v23578_v23 }
  0xdb   : > { %v1326_v29 = vrot.slane %v14560_v45, %v17062_v22  ;;  %v1327_v63 = vcombine.low %v1305_v57, %v1319_v43  ;;  %v1328_v10 = vcombine.high %v1305_v57, %v1319_v43  ;;  %v18431_v7 = vrot.slane %v2218_v24, %v17062_v22 }
  0xdc   : > { %v4312_v40 = vcombine.low %v18409_v2, %v18423_v58  ;;  %v18437_v35 = vrot.slane %v4310_v21, %v17062_v22  ;;  %v4177_v5 = vcombine.high %v18145_v53, %v18148_v12  ;;  %v4179_v14 = vcombine.high %v18153_v47, %v18172_v1 }
  0xdd   : > { %23643 = vst [vmem:[#allocation88_spill] sm:$0xff] %v18431_v7  ;;  %v1329_v51 = vcombine.low %v1312_v41, %v1326_v29  ;;  %v1330_v39 = vcombine.high %v1312_v41, %v1326_v29  ;;  %v18444_v27 = vrot.slane %v1327_v63, %v17062_v22  ;;  %v18447_v55 = vrot.slane %v1328_v10, %v17062_v22 }
  0xde   : > { %v18450_v26 = vrot.slane %v4312_v40, %v17062_v22  ;;  %v2967_v8 = vshll.u32 %v18431_v7, 16  ;;  %v4193_v30 = vrot.slane %v4177_v5, %v17062_v22  ;;  %v4207_v53 = vrot.slane %v4179_v14, %v17062_v22 }
  0xdf   : > { %23644 = vst [vmem:[#allocation89_spill] sm:$0xff] %v18444_v27  ;;  %23645 = vst [vmem:[#allocation90_spill] sm:$0xff] %v18447_v55  ;;  %v18456_v12 = vrot.slane %v1329_v51, %v17062_v22  ;;  %v18459_v47 = vrot.slane %v1330_v39, %v17062_v22  ;;  %v18463_v1 = vcombine.high %v18444_v27, %v18444_v27  ;;  %v2971_v43 = vshrl.u32 %v18444_v27, 16 }
  0xe0   : > { %v18467_v19 = vcombine.high %v18447_v55, %v18447_v55  ;;  %v4343_v45 = vcombine.high %v18437_v35, %v18450_v26  ;;  %v2969_v57 = vsel %vm17185_vm15, %v2962_v13, %v2967_v8  ;;  %v2976_v24 = vshll.u32 %v18447_v55, 16 }
  0xe1   : > { %23646 = vst [vmem:[#allocation91_spill] sm:$0xff] %v18456_v12  ;;  %23647 = vst [vmem:[#allocation92_spill] sm:$0xff] %v18459_v47  ;;  %v18477_v21 = vcombine.high %v18456_v12, %v18456_v12  ;;  %v18481_v41 = vcombine.high %v18459_v47, %v18459_v47  ;;  %v2979_v29 = vshrl.u32 %v18447_v55, 16  ;;  %v2984_v63 = vshll.u32 %v18463_v1, 16 }
  0xe2   : > { %23648 = vst [vmem:[#allocation93_spill] sm:$0xff] %v18463_v1  ;;  %23649 = vst [vmem:[#allocation94_spill] sm:$0xff] %v18467_v19  ;;  %15912 = vmatmul.mubr.bf16.gmra.mxu1 %v4343_v45  ;;  %v2978_v13 = vsel %vm17185_vm15, %v2971_v43, %v2976_v24  ;;  %v2987_v10 = vshrl.u32 %v18463_v1, 16  ;;  %v2992_v40 = vshll.u32 %v18467_v19, 16  ;;  %v2995_v5 = vshrl.u32 %v18467_v19, 16 }
  0xe3   : > { %23650 = vst [vmem:[#allocation95_spill] sm:$0xff] %v18477_v21  ;;  %23651 = vst [vmem:[#allocation96_spill] sm:$0xff] %v18481_v41  ;;  %15915 = vmatprep.mubr.msk.bf16.mxu1 %vm16892_vm0, %v23577_v54  ;;  %v2986_v14 = vsel %vm17185_vm15, %v2979_v29, %v2984_v63  ;;  %v3000_v51 = vshll.u32 %v18456_v12, 16  ;;  %v3003_v39 = vshrl.u32 %v18456_v12, 16  ;;  %v3008_v8 = vshll.u32 %v18459_v47, 16 }
  0xe4   : > { %v2994_v45 = vsel %vm17185_vm15, %v2987_v10, %v2992_v40  ;;  %v3011_v43 = vshrl.u32 %v18459_v47, 16  ;;  %v3016_v24 = vshll.u32 %v18477_v21, 16  ;;  %v3019_v7 = vshrl.u32 %v18477_v21, 16  ;;  %v18503_v19 = vld [vmem:[%s17041_s28 + $0x8c] sm:$0x3] }
  0xe5   : > { %v3002_v29 = vsel %vm17185_vm15, %v2995_v5, %v3000_v51  ;;  %v3010_v63 = vsel %vm17185_vm15, %v3003_v39, %v3008_v8  ;;  %v3024_v12 = vshll.u32 %v18481_v41, 16  ;;  %v4345_v55 = vcombine.low %v2969_v57, %v2978_v13  ;;  %v18511_v1 = vld [vmem:[%s17041_s28 + $0x90] sm:$0xf]  ;;  %v18514_v10 = vld [vmem:[%s17041_s28 + $0x94] sm:$0xf] }
  0xe6   : > { %v3018_v40 = vsel %vm17185_vm15, %v3011_v43, %v3016_v24  ;;  %v4346_v47 = vcombine.low %v2986_v14, %v2994_v45  ;;  %v4347_v21 = vcombine.low %v3002_v29, %v3010_v63  ;;  %v4210_v42 = vcombine.low %v4193_v30, %v4207_v53 }
  0xe7   : > { %v3026_v27 = vsel %vm17185_vm15, %v3019_v7, %v3024_v12  ;;  %v18521_v5 = vrot.slane %v4345_v55, %v17062_v22  ;;  %v4208_v51 = vcombine.low %v18183_v59, %v18199_v36  ;;  %v14505_v57 = vcombine.low %v18503_v19, %v18503_v19  ;;  %v16562_v55 = vld [vmem:[%s23285_s1 + $0x68] sm:$0xff]   ;;  %v16563_v59 = vld [vmem:[%s23285_s1 + $0x90] sm:$0xff]  }
  0xe8   : > { %v4348_v13 = vcombine.low %v3018_v40, %v3026_v27  ;;  %v18528_v39 = vrot.slane %v4346_v47, %v17062_v22  ;;  %v18531_v14 = vrot.slane %v4347_v21, %v17062_v22  ;;  %5334 = vmatprep.mubr.bf16.mxu0 %v4210_v42  ;;  %v14506_v7 = vcombine.low %v18511_v1, %v18514_v10 }
  0xe9   : > { %5335 = vmatmul.mubr.bf16.gmra.mxu0 %v4208_v51  ;;  %v14561_v36 = vcombine.low %v18131_v18, %v18264_v37  ;;  %v1377_v27 = vrot.slane %v14505_v57, %v17062_v22  ;;  %v14562_v42 = vcombine.low %v18255_v17, %v18385_v52  ;;  %v14563_v30 = vcombine.low %v18258_v0, %v18388_v9 }
  0xea   : > { %v18549_v53 = vrot.slane %v4348_v13, %v17062_v22  ;;  %v4377_v12 = vcombine.low %v18521_v5, %v18528_v39  ;;  %v14564_v47 = vcombine.low %v18514_v10, %v18514_v10  ;;  %v1409_v21 = vrot.slane %v14506_v7, %v17062_v22  ;;  %7238 = vmatpush2.bf16.msra.mxu1 %v16562_v55 }
  0xeb   : > { %v1370_v18 = vrot.slane %v14561_v36, %v17062_v22  ;;  %v1395_v8 = vrot.slane %v14562_v42, %v17062_v22  ;;  %v1402_v17 = vrot.slane %v14563_v30, %v17062_v22  ;;  %v3027_v0 = vshrl.u32 %v18481_v41, 16  ;;  %15970 = vmatpush3.bf16.msra.mxu0 %v16563_v59  ;;  %7239 = vmatprep.subr.bf16.mxu1 %v23578_v23  ;;  %v18647_v41 = vld [vmem:[%s17041_s28 + $0xa0] sm:$0xf] }
  0xec   : > { %v4379_v45 = vcombine.low %v18531_v14, %v18549_v53  ;;  %v18564_v43 = vrot.slane %v4377_v12, %v17062_v22  ;;  %v1416_v24 = vrot.slane %v14564_v47, %v17062_v22  ;;  %v4244_v29 = vcombine.high %v18269_v20, %v18275_v34  ;;  %15971 = vmatprep.subr.bf16.mxu0 %v23577_v54 }
  0xed   : > { %v1378_v63 = vcombine.low %v1370_v18, %v1377_v27  ;;  %v1417_v40 = vcombine.low %v1395_v8, %v1409_v21  ;;  %v1418_v51 = vcombine.high %v1395_v8, %v1409_v21  ;;  %v2226_v57 = vcombine.high %v1370_v18, %v1377_v27 }
  0xee   : > { %v18571_v13 = vrot.slane %v4379_v45, %v17062_v22  ;;  %v1419_v7 = vcombine.low %v1402_v17, %v1416_v24  ;;  %v1420_v55 = vcombine.high %v1402_v17, %v1416_v24  ;;  %v4246_v59 = vcombine.high %v18278_v31, %v18289_v50 }
  0xef   : > { %v18576_v36 = vrot.slane %v1378_v63, %v17062_v22  ;;  %v18579_v42 = vrot.slane %v1417_v40, %v17062_v22  ;;  %v18582_v20 = vrot.slane %v1418_v51, %v17062_v22  ;;  %v18585_v34 = vrot.slane %v2226_v57, %v17062_v22 }
  0xf0   : > { %v4410_v27 = vcombine.high %v18564_v43, %v18571_v13  ;;  %v18590_v30 = vrot.slane %v1419_v7, %v17062_v22  ;;  %v18593_v31 = vrot.slane %v1420_v55, %v17062_v22  ;;  %v4260_v50 = vrot.slane %v4244_v29, %v17062_v22 }
  0xf1   : > { %23652 = vst [vmem:[#allocation97_spill] sm:$0xff] %v18576_v36  ;;  %23653 = vst [vmem:[#allocation98_spill] sm:$0xff] %v18579_v42  ;;  %v18598_v12 = vcombine.high %v18579_v42, %v18579_v42  ;;  %v18602_v47 = vcombine.high %v18582_v20, %v18582_v20  ;;  %v3032_v21 = vshll.u32 %v18576_v36, 16  ;;  %v3035_v18 = vshrl.u32 %v18576_v36, 16 }
  0xf2   : > { %23654 = vst [vmem:[#allocation99_spill] sm:$0xff] %v18582_v20  ;;  %23655 = vst [vmem:[#allocation100_spill] sm:$0xff] %v18585_v34  ;;  %15916 = vmatmul.mubr.bf16.gmra.mxu1 %v4410_v27  ;;  %v18608_v8 = vcombine.high %v18590_v30, %v18590_v30  ;;  %v3040_v17 = vshll.u32 %v18585_v34, 16  ;;  %v3044_v45 = vshrl.u32 %v18579_v42, 16  ;;  %v3049_v24 = vshll.u32 %v18582_v20, 16 }
  0xf3   : > { %23656 = vst [vmem:[#allocation101_spill] sm:$0xff] %v18590_v30  ;;  %23657 = vst [vmem:[#allocation102_spill] sm:$0xff] %v18593_v31  ;;  %15919 = vmatprep.mubr.msk.bf16.mxu1 %vm16892_vm0, %v23577_v54  ;;  %v3034_v29 = vsel %vm17185_vm15, %v3027_v0, %v3032_v21  ;;  %v3052_v63 = vshrl.u32 %v18582_v20, 16  ;;  %v3057_v40 = vshll.u32 %v18598_v12, 16  ;;  %v3060_v51 = vshrl.u32 %v18598_v12, 16 }
  0xf4   : > { %23658 = vst [vmem:[#allocation103_spill] sm:$0xff] %v18598_v12  ;;  %23659 = vst [vmem:[#allocation104_spill] sm:$0xff] %v18602_v47  ;;  %v3042_v57 = vsel %vm17185_vm15, %v3035_v18, %v3040_v17  ;;  %v3051_v7 = vsel %vm17185_vm15, %v3044_v45, %v3049_v24  ;;  %v3065_v55 = vshll.u32 %v18602_v47, 16  ;;  %v3068_v27 = vshrl.u32 %v18602_v47, 16  ;;  %v18636_v42 = vld [vmem:[%s17041_s28 + $0x98] sm:$0x3] }
  0xf5   : > { %23660 = vst [vmem:[#allocation105_spill] sm:$0xff] %v18608_v8  ;;  %v3059_v0 = vsel %vm17185_vm15, %v3052_v63, %v3057_v40  ;;  %v3073_v21 = vshll.u32 %v18590_v30, 16  ;;  %v3076_v34 = vshrl.u32 %v18590_v30, 16  ;;  %v3081_v12 = vshll.u32 %v18593_v31, 16  ;;  %v18644_v20 = vld [vmem:[%s17041_s28 + $0x9c] sm:$0xf] }
  0xf6   : > { %v3067_v18 = vsel %vm17185_vm15, %v3060_v51, %v3065_v55  ;;  %v3084_v17 = vshrl.u32 %v18593_v31, 16  ;;  %v3089_v45 = vshll.u32 %v18608_v8, 16  ;;  %v4412_v24 = vcombine.low %v3034_v29, %v3042_v57 }
  0xf7   : > { %v3075_v47 = vsel %vm17185_vm15, %v3068_v27, %v3073_v21  ;;  %v3083_v63 = vsel %vm17185_vm15, %v3076_v34, %v3081_v12  ;;  %v4413_v40 = vcombine.low %v3051_v7, %v3059_v0  ;;  %v4274_v30 = vrot.slane %v4246_v59, %v17062_v22 }
  0xf8   : > { %v3091_v51 = vsel %vm17185_vm15, %v3084_v17, %v3089_v45  ;;  %v4414_v55 = vcombine.low %v3067_v18, %v3075_v47  ;;  %v18652_v29 = vrot.slane %v4412_v24, %v17062_v22  ;;  %v4275_v57 = vcombine.low %v18306_v56, %v18317_v32  ;;  %v16571_v18 = vld [vmem:[%s23285_s1 + $0x60] sm:$0xff]  }
  0xf9   : > { %v4415_v27 = vcombine.low %v3083_v63, %v3091_v51  ;;  %v18657_v34 = vrot.slane %v4413_v40, %v17062_v22  ;;  %v4277_v12 = vcombine.low %v4260_v50, %v4274_v30  ;;  %v14507_v59 = vcombine.low %v18636_v42, %v18636_v42  ;;  %7240 = vmatpush2.bf16.msra.mxu1 %v16571_v18 }
  0xfa   : > { %v18662_v7 = vrot.slane %v4414_v55, %v17062_v22  ;;  %v14508_v47 = vcombine.low %v18644_v20, %v18647_v41  ;;  %v18668_v0 = vcombine.high %v18593_v31, %v18593_v31  ;;  %v14565_v56 = vcombine.low %v18264_v37, %v18503_v19  ;;  %7241 = vmatprep.subr.bf16.mxu1 %v23578_v23 }
  0xfb   : > { %v18673_v32 = vrot.slane %v4415_v27, %v17062_v22  ;;  %v4444_v30 = vcombine.low %v18652_v29, %v18657_v34  ;;  %5342 = vmatprep.mubr.bf16.mxu0 %v4277_v12  ;;  %v1467_v50 = vrot.slane %v14507_v59, %v17062_v22  ;;  %v14566_v21 = vcombine.low %v18385_v52, %v18511_v1 }
  0xfc   : > { %23661 = vst [vmem:[#allocation106_spill] sm:$0xff] %v18668_v0  ;;  %5343 = vmatmul.mubr.bf16.gmra.mxu0 %v4275_v57  ;;  %v1460_v17 = vrot.slane %v14565_v56, %v17062_v22  ;;  %v14567_v37 = vcombine.low %v18388_v9, %v18514_v10  ;;  %v14568_v45 = vcombine.low %v18647_v41, %v18647_v41  ;;  %v3092_v51 = vshrl.u32 %v18608_v8, 16 }
  0xfd   : > { %v1499_v24 = vrot.slane %v14508_v47, %v17062_v22  ;;  %v4446_v63 = vcombine.low %v18662_v7, %v18673_v32  ;;  %v18692_v52 = vrot.slane %v4444_v30, %v17062_v22  ;;  %v1485_v40 = vrot.slane %v14566_v21, %v17062_v22 }
  0xfe   : > { %v1468_v55 = vcombine.low %v1460_v17, %v1467_v50  ;;  %v1492_v57 = vrot.slane %v14567_v37, %v17062_v22  ;;  %v1506_v9 = vrot.slane %v14568_v45, %v17062_v22  ;;  %v2234_v27 = vcombine.high %v1460_v17, %v1467_v50 }
  0xff   : > { %v18700_v12 = vrot.slane %v4446_v63, %v17062_v22  ;;  %v1507_v59 = vcombine.low %v1485_v40, %v1499_v24  ;;  %v1508_v47 = vcombine.high %v1485_v40, %v1499_v24  ;;  %v3097_v56 = vshll.u32 %v18668_v0, 16 }
 0x100   : > { %v18704_v30 = vrot.slane %v1468_v55, %v17062_v22  ;;  %v1509_v21 = vcombine.low %v1492_v57, %v1506_v9  ;;  %v1510_v18 = vcombine.high %v1492_v57, %v1506_v9  ;;  %v18707_v8 = vrot.slane %v2234_v27, %v17062_v22 }
 0x101   : > { %v4477_v50 = vcombine.high %v18692_v52, %v18700_v12  ;;  %v18712_v17 = vrot.slane %v1507_v59, %v17062_v22  ;;  %v18715_v37 = vrot.slane %v1508_v47, %v17062_v22  ;;  %v3099_v45 = vsel %vm17185_vm15, %v3092_v51, %v3097_v56 }
 0x102   : > { %23662 = vst [vmem:[#allocation107_spill] sm:$0xff] %v18704_v30  ;;  %23663 = vst [vmem:[#allocation108_spill] sm:$0xff] %v18707_v8  ;;  %v18720_v24 = vrot.slane %v1509_v21, %v17062_v22  ;;  %v18723_v63 = vrot.slane %v1510_v18, %v17062_v22  ;;  %v3100_v40 = vshrl.u32 %v18668_v0, 16  ;;  %v3105_v55 = vshll.u32 %v18704_v30, 16 }
 0x103   : > { %23664 = vst [vmem:[#allocation109_spill] sm:$0xff] %v18712_v17  ;;  %23665 = vst [vmem:[#allocation110_spill] sm:$0xff] %v18715_v37  ;;  %15920 = vmatmul.mubr.bf16.gmra.mxu1 %v4477_v50  ;;  %v18729_v57 = vcombine.high %v18712_v17, %v18712_v17  ;;  %v18733_v9 = vcombine.high %v18715_v37, %v18715_v37  ;;  %v3108_v51 = vshrl.u32 %v18704_v30, 16  ;;  %v3113_v27 = vshll.u32 %v18707_v8, 16 }
 0x104   : > { %23666 = vst [vmem:[#allocation111_spill] sm:$0xff] %v18720_v24  ;;  %23667 = vst [vmem:[#allocation112_spill] sm:$0xff] %v18723_v63  ;;  %15923 = vmatprep.mubr.msk.bf16.mxu1 %vm16892_vm0, %v23577_v54  ;;  %v3107_v59 = vsel %vm17185_vm15, %v3100_v40, %v3105_v55  ;;  %v3117_v47 = vshrl.u32 %v18712_v17, 16  ;;  %v3122_v56 = vshll.u32 %v18715_v37, 16  ;;  %v3125_v21 = vshrl.u32 %v18715_v37, 16 }
 0x105   : > { %23668 = vst [vmem:[#allocation113_spill] sm:$0xff] %v18729_v57  ;;  %23669 = vst [vmem:[#allocation114_spill] sm:$0xff] %v18733_v9  ;;  %v3115_v18 = vsel %vm17185_vm15, %v3108_v51, %v3113_v27  ;;  %v3130_v50 = vshll.u32 %v18729_v57, 16  ;;  %v3133_v8 = vshrl.u32 %v18729_v57, 16  ;;  %v3138_v0 = vshll.u32 %v18733_v9, 16 }
 0x106   : > { %v3124_v40 = vsel %vm17185_vm15, %v3117_v47, %v3122_v56  ;;  %v3141_v55 = vshrl.u32 %v18733_v9, 16  ;;  %v3146_v30 = vshll.u32 %v18720_v24, 16  ;;  %v3149_v37 = vshrl.u32 %v18720_v24, 16  ;;  %v18764_v9 = vld [vmem:[%s17041_s28 + $0xa4] sm:$0x3] }
 0x107   : > { %v3132_v51 = vsel %vm17185_vm15, %v3125_v21, %v3130_v50  ;;  %v3140_v27 = vsel %vm17185_vm15, %v3133_v8, %v3138_v0  ;;  %v3154_v57 = vshll.u32 %v18723_v63, 16  ;;  %v4479_v17 = vcombine.low %v3099_v45, %v3107_v59 }
 0x108   : > { %v3148_v31 = vsel %vm17185_vm15, %v3141_v55, %v3146_v30  ;;  %v4480_v36 = vcombine.low %v3115_v18, %v3124_v40  ;;  %v4481_v47 = vcombine.low %v3132_v51, %v3140_v27  ;;  %v4311_v56 = vcombine.high %v18399_v25, %v18406_v46  ;;  %v16577_v18 = vld [vmem:[%s23285_s1 + $0x88] sm:$0xff]  }
 0x109   : > { %v3156_v8 = vsel %vm17185_vm15, %v3149_v37, %v3154_v57  ;;  %v18775_v0 = vrot.slane %v4479_v17, %v17062_v22  ;;  %v4313_v30 = vcombine.high %v18409_v2, %v18423_v58  ;;  %v4342_v45 = vcombine.low %v18437_v35, %v18450_v26  ;;  %v16575_v17 = vld [vmem:[%s23285_s1 + $0x58] sm:$0xff]   ;;  %15972 = vmatpush3.bf16.msra.mxu0 %v16577_v18 }
 0x10a   : > { %v4482_v59 = vcombine.low %v3148_v31, %v3156_v8  ;;  %v18782_v25 = vrot.slane %v4480_v36, %v17062_v22  ;;  %v18785_v46 = vrot.slane %v4481_v47, %v17062_v22  ;;  %v4327_v21 = vrot.slane %v4311_v56, %v17062_v22  ;;  %7242 = vmatpush2.bf16.msra.mxu1 %v16575_v17 }
 0x10b   : > { %v4341_v37 = vrot.slane %v4313_v30, %v17062_v22  ;;  %v14509_v2 = vcombine.low %v18764_v9, %v18764_v9  ;;  %v14510_v58 = vcombine.low %v18767_v49, %v18770_v33  ;;  %v18798_v35 = vcombine.high %v18720_v24, %v18720_v24  ;;  %7243 = vmatprep.subr.bf16.mxu1 %v23578_v23  ;;  %v18913_v24 = vld [vmem:[%s17041_s28 + $0xb0] sm:$0x3] }
 0x10c   : > { %v18801_v26 = vrot.slane %v4482_v59, %v17062_v22  ;;  %v4511_v36 = vcombine.low %v18775_v0, %v18782_v25  ;;  %v18807_v31 = vcombine.high %v18723_v63, %v18723_v63  ;;  %v14569_v57 = vcombine.low %v18503_v19, %v18636_v42  ;;  %v16576_v19 = vld [vmem:[%s23285_s1 + $0x50] sm:$0xff]   ;;  %15973 = vmatprep.subr.bf16.mxu0 %v23577_v54 }
 0x10d   : > { %23670 = vst [vmem:[#allocation115_spill] sm:$0xff] %v18798_v35  ;;  %v4344_v50 = vcombine.low %v4327_v21, %v4341_v37  ;;  %v1557_v40 = vrot.slane %v14509_v2, %v17062_v22  ;;  %v14570_v55 = vcombine.low %v18511_v1, %v18644_v20  ;;  %v14571_v51 = vcombine.low %v18514_v10, %v18647_v41 }
 0x10e   : > { %23671 = vst [vmem:[#allocation116_spill] sm:$0xff] %v18807_v31  ;;  %v4513_v27 = vcombine.low %v18785_v46, %v18801_v26  ;;  %v18826_v47 = vrot.slane %v4511_v36, %v17062_v22  ;;  %v1550_v56 = vrot.slane %v14569_v57, %v17062_v22  ;;  %v14572_v1 = vcombine.low %v18770_v33, %v18770_v33 }
 0x10f   : > { %5350 = vmatprep.mubr.bf16.mxu0 %v4344_v50  ;;  %v1575_v10 = vrot.slane %v14570_v55, %v17062_v22  ;;  %v18833_v8 = vrot.slane %v14571_v51, %v17062_v22  ;;  %v1589_v30 = vrot.slane %v14510_v58, %v17062_v22  ;;  %v3157_v59 = vshrl.u32 %v18723_v63, 16  ;;  %7244 = vmatpush2.bf16.msra.mxu1 %v16576_v19 }
 0x110   : > { %v18839_v21 = vrot.slane %v4513_v27, %v17062_v22  ;;  %5351 = vmatmul.mubr.bf16.gmra.mxu0 %v4342_v45  ;;  %v1558_v17 = vcombine.low %v1550_v56, %v1557_v40  ;;  %v18842_v37 = vrot.slane %v14572_v1, %v17062_v22  ;;  %v2242_v2 = vcombine.high %v1550_v56, %v1557_v40  ;;  %v16580_v40 = vld [vmem:[%s23285_s1 + $0x48] sm:$0xff]  }
 0x111   : > { %v1597_v36 = vcombine.low %v1575_v10, %v1589_v30  ;;  %v1598_v57 = vcombine.high %v1575_v10, %v1589_v30  ;;  %v3162_v18 = vshll.u32 %v18798_v35, 16  ;;  %v3165_v50 = vshrl.u32 %v18798_v35, 16  ;;  %7245 = vmatprep.subr.bf16.mxu1 %v23578_v23 }
 0x112   : > { %v4544_v58 = vcombine.high %v18826_v47, %v18839_v21  ;;  %v18849_v55 = vrot.slane %v1558_v17, %v17062_v22  ;;  %v1599_v45 = vcombine.low %v18833_v8, %v18842_v37  ;;  %v18854_v51 = vrot.slane %v2242_v2, %v17062_v22 }
 0x113   : > { %v18861_v19 = vrot.slane %v1597_v36, %v17062_v22  ;;  %v18864_v27 = vrot.slane %v1598_v57, %v17062_v22  ;;  %v3164_v56 = vsel %vm17185_vm15, %v3157_v59, %v3162_v18  ;;  %v3170_v1 = vshll.u32 %v18807_v31, 16  ;;  %7246 = vmatpush2.bf16.msra.mxu1 %v16580_v40 }
 0x114   : > { %23672 = vst [vmem:[#allocation117_spill] sm:$0xff] %v18849_v55  ;;  %23673 = vst [vmem:[#allocation118_spill] sm:$0xff] %v18854_v51  ;;  %15924 = vmatmul.mubr.bf16.gmra.mxu1 %v4544_v58  ;;  %v18870_v10 = vrot.slane %v1599_v45, %v17062_v22  ;;  %v3173_v30 = vshrl.u32 %v18807_v31, 16  ;;  %v3178_v17 = vshll.u32 %v18849_v55, 16  ;;  %v3181_v2 = vshrl.u32 %v18849_v55, 16  ;;  %v16581_v58 = vld [vmem:[%s23285_s1 + $0x40] sm:$0xff]   ;;  %7247 = vmatprep.subr.bf16.mxu1 %v23578_v23 }
 0x115   : > { %23674 = vst [vmem:[#allocation119_spill] sm:$0xff] %v18861_v19  ;;  %23675 = vst [vmem:[#allocation120_spill] sm:$0xff] %v18864_v27  ;;  %15927 = vmatprep.mubr.msk.bf16.mxu1 %vm16892_vm0, %v23577_v54  ;;  %v18879_v36 = vcombine.high %v18861_v19, %v18861_v19  ;;  %v18883_v59 = vcombine.high %v18864_v27, %v18864_v27  ;;  %v3172_v57 = vsel %vm17185_vm15, %v3165_v50, %v3170_v1 }
 0x116   : > { %23676 = vst [vmem:[#allocation121_spill] sm:$0xff] %v18870_v10  ;;  %v3186_v18 = vshll.u32 %v18854_v51, 16  ;;  %v3180_v45 = vsel %vm17185_vm15, %v3173_v30, %v3178_v17  ;;  %v3190_v31 = vshrl.u32 %v18861_v19, 16  ;;  %v3195_v55 = vshll.u32 %v18864_v27, 16 }
 0x117   : > { %23677 = vst [vmem:[#allocation122_spill] sm:$0xff] %v18879_v36  ;;  %23678 = vst [vmem:[#allocation123_spill] sm:$0xff] %v18883_v59  ;;  %v3198_v63 = vshrl.u32 %v18864_v27, 16  ;;  %v3203_v40 = vshll.u32 %v18879_v36, 16  ;;  %v3206_v1 = vshrl.u32 %v18879_v36, 16  ;;  %v3211_v30 = vshll.u32 %v18883_v59, 16  ;;  %7248 = vmatpush2.bf16.msra.mxu1 %v16581_v58 }
 0x118   : > { %v3188_v50 = vsel %vm17185_vm15, %v3181_v2, %v3186_v18  ;;  %v3197_v17 = vsel %vm17185_vm15, %v3190_v31, %v3195_v55  ;;  %v3214_v51 = vshrl.u32 %v18883_v59, 16  ;;  %v3219_v19 = vshll.u32 %v18870_v10, 16  ;;  %v18919_v31 = vld [vmem:[%s17041_s28 + $0xb8] sm:$0xf]  ;;  %9236 = vmatprep.subr.bf16.mxu1 %v23578_v23 }
 0x119   : > { %v4546_v27 = vcombine.low %v3164_v56, %v3172_v57  ;;  %v3205_v35 = vsel %vm17185_vm15, %v3198_v63, %v3203_v40  ;;  %v3213_v2 = vsel %vm17185_vm15, %v3206_v1, %v3211_v30  ;;  %v4547_v18 = vcombine.low %v3180_v45, %v3188_v50 }
 0x11a   : > { %v4378_v36 = vcombine.high %v18521_v5, %v18528_v39  ;;  %v3221_v55 = vsel %vm17185_vm15, %v3214_v51, %v3219_v19  ;;  %v4548_v56 = vcombine.low %v3197_v17, %v3205_v35  ;;  %v4380_v57 = vcombine.high %v18531_v14, %v18549_v53 }
 0x11b   : > { %v18924_v63 = vrot.slane %v4546_v27, %v17062_v22  ;;  %v4549_v5 = vcombine.low %v3213_v2, %v3221_v55  ;;  %v18930_v39 = vrot.slane %v4547_v18, %v17062_v22  ;;  %v4409_v58 = vcombine.low %v18564_v43, %v18571_v13 }
 0x11c   : > { %v4394_v45 = vrot.slane %v4378_v36, %v17062_v22  ;;  %v18936_v51 = vrot.slane %v4548_v56, %v17062_v22  ;;  %v4408_v35 = vrot.slane %v4380_v57, %v17062_v22  ;;  %v14511_v19 = vcombine.low %v18913_v24, %v18913_v24 }
 0x11d   : > { %v14512_v14 = vcombine.low %v18916_v28, %v18919_v31  ;;  %v18944_v53 = vrot.slane %v4549_v5, %v17062_v22  ;;  %v4578_v27 = vcombine.low %v18924_v63, %v18930_v39  ;;  %v1600_v43 = vcombine.high %v18833_v8, %v18842_v37 }
 0x11e   : > { %v18952_v13 = vcombine.high %v18870_v10, %v18870_v10  ;;  %v4411_v36 = vcombine.low %v4394_v45, %v4408_v35  ;;  %v14573_v50 = vcombine.low %v18636_v42, %v18764_v9  ;;  %v1647_v40 = vrot.slane %v14511_v19, %v17062_v22 }
 0x11f   : > { %v14574_v1 = vcombine.low %v18644_v20, %v18767_v49  ;;  %v4580_v30 = vcombine.low %v18936_v51, %v18944_v53  ;;  %v18962_v17 = vrot.slane %v4578_v27, %v17062_v22  ;;  %v18965_v8 = vrot.slane %v1600_v43, %v17062_v22 }
 0x120   : > { %23679 = vst [vmem:[#allocation124_spill] sm:$0xff] %v18952_v13  ;;  %v1679_v37 = vrot.slane %v14512_v14, %v17062_v22  ;;  %5358 = vmatprep.mubr.bf16.mxu0 %v4411_v36  ;;  %v1640_v2 = vrot.slane %v14573_v50, %v17062_v22  ;;  %v3222_v18 = vshrl.u32 %v18870_v10, 16  ;;  %v3235_v20 = vshll.u32 %v18952_v13, 16  ;;  %v16582_v50 = vld [vmem:[%s23285_s1 + $0x80] sm:$0xff]  }
 0x121   : > { %23680 = vst [vmem:[#allocation125_spill] sm:$0xff] %v18965_v8  ;;  %v1665_v42 = vrot.slane %v14574_v1, %v17062_v22  ;;  %v18973_v55 = vrot.slane %v4580_v30, %v17062_v22  ;;  %5359 = vmatmul.mubr.bf16.gmra.mxu0 %v4409_v58  ;;  %v18977_v56 = vcombine.high %v18965_v8, %v18965_v8  ;;  %v3227_v57 = vshll.u32 %v18965_v8, 16 }
 0x122   : > { %v3230_v5 = vshrl.u32 %v18965_v8, 16  ;;  %v1648_v45 = vcombine.low %v1640_v2, %v1647_v40  ;;  %v2250_v14 = vcombine.high %v1640_v2, %v1647_v40  ;;  %v3238_v36 = vshrl.u32 %v18952_v13, 16  ;;  %15974 = vmatpush3.bf16.msra.mxu0 %v16582_v50  ;;  %v19036_v13 = vld [vmem:[%s17041_s28 + $0xbc] sm:$0x3] }
 0x123   : > { %23681 = vst [vmem:[#allocation126_spill] sm:$0xff] %v18977_v56  ;;  %v1687_v35 = vcombine.low %v1665_v42, %v1679_v37  ;;  %v1688_v19 = vcombine.high %v1665_v42, %v1679_v37  ;;  %v4611_v27 = vcombine.high %v18962_v17, %v18973_v55  ;;  %v3229_v43 = vsel %vm17185_vm15, %v3222_v18, %v3227_v57 }
 0x124   : > { %v3237_v58 = vsel %vm17185_vm15, %v3230_v5, %v3235_v20  ;;  %v18992_v1 = vrot.slane %v1648_v45, %v17062_v22  ;;  %v19001_v37 = vrot.slane %v2250_v14, %v17062_v22  ;;  %v3243_v2 = vshll.u32 %v18977_v56, 16  ;;  %16059 = vmatprep.subr.bf16.mxu0 %v23577_v54 }
 0x125   : > { %v18995_v40 = vrot.slane %v1687_v35, %v17062_v22  ;;  %v18998_v30 = vrot.slane %v1688_v19, %v17062_v22  ;;  %15928 = vmatmul.mubr.bf16.gmra.mxu1 %v4611_v27  ;;  %v3246_v42 = vshrl.u32 %v18977_v56, 16  ;;  %v4613_v18 = vcombine.low %v3229_v43, %v3237_v58 }
 0x126   : > { %23682 = vst [vmem:[#allocation127_spill] sm:$0xff] %v18992_v1  ;;  %23685 = vst [vmem:[#allocation130_spill] sm:$0xff] %v19001_v37  ;;  %v4445_v20 = vcombine.high %v18652_v29, %v18657_v34  ;;  %15931 = vmatprep.mubr.msk.bf16.mxu1 %vm16892_vm0, %v23577_v54  ;;  %v3251_v45 = vshll.u32 %v18992_v1, 16  ;;  %v3254_v35 = vshrl.u32 %v18992_v1, 16  ;;  %v3245_v29 = vsel %vm17185_vm15, %v3238_v36, %v3243_v2  ;;  %v19165_v1 = vld [vmem:[%s17041_s28 + $0xc8] sm:$0x3] }
 0x127   : > { %23683 = vst [vmem:[#allocation128_spill] sm:$0xff] %v18995_v40  ;;  %23684 = vst [vmem:[#allocation129_spill] sm:$0xff] %v18998_v30  ;;  %v19011_v57 = vcombine.high %v18995_v40, %v18995_v40  ;;  %v19015_v5 = vcombine.high %v18998_v30, %v18998_v30  ;;  %v3259_v34 = vshll.u32 %v19001_v37, 16  ;;  %v3263_v19 = vshrl.u32 %v18995_v40, 16 }
 0x128   : > { %v3268_v14 = vshll.u32 %v18998_v30, 16  ;;  %v3253_v27 = vsel %vm17185_vm15, %v3246_v42, %v3251_v45  ;;  %v3271_v43 = vshrl.u32 %v18998_v30, 16  ;;  %v19041_v59 = vrot.slane %v4613_v18, %v17062_v22 }
 0x129   : > { %23686 = vst [vmem:[#allocation131_spill] sm:$0xff] %v19011_v57  ;;  %23687 = vst [vmem:[#allocation132_spill] sm:$0xff] %v19015_v5  ;;  %v3276_v58 = vshll.u32 %v19011_v57, 16  ;;  %v3279_v50 = vshrl.u32 %v19011_v57, 16  ;;  %v3261_v36 = vsel %vm17185_vm15, %v3254_v35, %v3259_v34  ;;  %v3284_v37 = vshll.u32 %v19015_v5, 16 }
 0x12a   : > { %v3270_v2 = vsel %vm17185_vm15, %v3263_v19, %v3268_v14  ;;  %v4614_v56 = vcombine.low %v3245_v29, %v3253_v27  ;;  %v4447_v30 = vcombine.high %v18662_v7, %v18673_v32  ;;  %v19046_v57 = vld [vmem:[%s17041_s28 + $0xc0] sm:$0xf]  ;;  %v19049_v35 = vld [vmem:[%s17041_s28 + $0xc4] sm:$0xf]  ;;  %v4461_v19 = vrot.slane %v4445_v20, %v17062_v22 }
 0x12b   : > { %v3278_v42 = vsel %vm17185_vm15, %v3271_v43, %v3276_v58  ;;  %v4615_v45 = vcombine.low %v3261_v36, %v3270_v2  ;;  %v3286_v34 = vsel %vm17185_vm15, %v3279_v50, %v3284_v37  ;;  %v4476_v14 = vcombine.low %v18692_v52, %v18700_v12  ;;  %v19065_v43 = vpop.f32.mrf.mxu1 }
 0x12c   : > { %v19054_v29 = vrot.slane %v4614_v56, %v17062_v22  ;;  %v4616_v18 = vcombine.low %v3278_v42, %v3286_v34  ;;  %v4475_v7 = vrot.slane %v4447_v30, %v17062_v22  ;;  %v14513_v32 = vcombine.low %v19036_v13, %v19036_v13  ;;  %23688 = vst [vmem:[#allocation133_spill] sm:$0xff] %v19065_v43 }
 0x12d   : > { %v19060_v27 = vrot.slane %v4615_v45, %v17062_v22  ;;  %v14514_v37 = vcombine.low %v19046_v57, %v19049_v35  ;;  %v14575_v52 = vcombine.low %v18647_v41, %v18770_v33  ;;  %v14576_v12 = vcombine.low %v18919_v31, %v18919_v31  ;;  %v15877_v36 = vpop.f32.mrf.mxu1 }
 0x12e   : > { %v4645_v56 = vcombine.low %v19041_v59, %v19054_v29  ;;  %v19076_v20 = vrot.slane %v4616_v18, %v17062_v22  ;;  %v4478_v30 = vcombine.low %v4461_v19, %v4475_v7  ;;  %v14577_v58 = vcombine.low %v18764_v9, %v18913_v24 }
 0x12f   : > { %v1737_v50 = vrot.slane %v14513_v32, %v17062_v22  ;;  %v1672_v42 = vrot.slane %v14575_v52, %v17062_v22  ;;  %v1686_v41 = vrot.slane %v14576_v12, %v17062_v22  ;;  %v14578_v45 = vcombine.low %v18767_v49, %v18916_v28 }
 0x130   : > { %v19082_v2 = vrot.slane %v4645_v56, %v17062_v22  ;;  %v4647_v34 = vcombine.low %v19060_v27, %v19076_v20  ;;  %5366 = vmatprep.mubr.bf16.mxu0 %v4478_v30  ;;  %v1730_v19 = vrot.slane %v14577_v58, %v17062_v22  ;;  %v1769_v9 = vrot.slane %v14514_v37, %v17062_v22 }
 0x131   : > { %v3287_v18 = vshrl.u32 %v19015_v5, 16  ;;  %5367 = vmatmul.mubr.bf16.gmra.mxu0 %v4476_v14  ;;  %v1689_v7 = vcombine.low %v1672_v42, %v1686_v41  ;;  %v1690_v32 = vcombine.high %v1672_v42, %v1686_v41  ;;  %v1755_v56 = vrot.slane %v14578_v45, %v17062_v22  ;;  %v19107_v41 = vpop.f32.mrf.mxu1 }
 0x132   : > { %v4512_v52 = vcombine.high %v18775_v0, %v18782_v25  ;;  %v19097_v49 = vrot.slane %v4647_v34, %v17062_v22  ;;  %v1738_v12 = vcombine.low %v1730_v19, %v1737_v50  ;;  %v2258_v36 = vcombine.high %v1730_v19, %v1737_v50  ;;  %23691 = vst [vmem:[#allocation136_spill] sm:$0xff] %v19107_v41 }
 0x133   : > { %v4514_v30 = vcombine.high %v18785_v46, %v18801_v26  ;;  %v19102_v37 = vrot.slane %v1689_v7, %v17062_v22  ;;  %v19105_v14 = vrot.slane %v1690_v32, %v17062_v22  ;;  %v1777_v58 = vcombine.low %v1755_v56, %v1769_v9 }
 0x134   : > { %v1778_v42 = vcombine.high %v1755_v56, %v1769_v9  ;;  %v4678_v0 = vcombine.high %v19082_v2, %v19097_v49  ;;  %v19112_v25 = vrot.slane %v1738_v12, %v17062_v22  ;;  %v19115_v50 = vrot.slane %v2258_v36, %v17062_v22  ;;  %v15878_v9 = vpop.f32.mrf.mxu1 }
 0x135   : > { %23689 = vst [vmem:[#allocation134_spill] sm:$0xff] %v19102_v37  ;;  %23690 = vst [vmem:[#allocation135_spill] sm:$0xff] %v19105_v14  ;;  %v4528_v46 = vrot.slane %v4512_v52, %v17062_v22  ;;  %v19120_v26 = vcombine.high %v19102_v37, %v19102_v37  ;;  %v19124_v45 = vcombine.high %v19105_v14, %v19105_v14  ;;  %v3292_v7 = vshll.u32 %v19102_v37, 16 }
 0x136   : > { %23692 = vst [vmem:[#allocation137_spill] sm:$0xff] %v19112_v25  ;;  %23693 = vst [vmem:[#allocation138_spill] sm:$0xff] %v19115_v50  ;;  %v19127_v34 = vrot.slane %v1777_v58, %v17062_v22  ;;  %v19130_v19 = vrot.slane %v1778_v42, %v17062_v22  ;;  %15932 = vmatmul.mubr.bf16.gmra.mxu1 %v4678_v0  ;;  %v3295_v32 = vshrl.u32 %v19102_v37, 16  ;;  %v3300_v56 = vshll.u32 %v19105_v14, 16  ;;  %v19145_v0 = vpop.f32.mrf.mxu1 }
 0x137   : > { %23694 = vst [vmem:[#allocation139_spill] sm:$0xff] %v19120_v26  ;;  %23695 = vst [vmem:[#allocation140_spill] sm:$0xff] %v19124_v45  ;;  %v3303_v52 = vshrl.u32 %v19105_v14, 16  ;;  %15935 = vmatprep.mubr.msk.bf16.mxu1 %vm16892_vm0, %v23577_v54  ;;  %v3308_v36 = vshll.u32 %v19120_v26, 16  ;;  %v3311_v58 = vshrl.u32 %v19120_v26, 16  ;;  %v3316_v42 = vshll.u32 %v19124_v45, 16 }
 0x138   : > { %23696 = vst [vmem:[#allocation141_spill] sm:$0xff] %v19127_v34  ;;  %23697 = vst [vmem:[#allocation142_spill] sm:$0xff] %v19130_v19  ;;  %v19140_v12 = vcombine.high %v19127_v34, %v19127_v34  ;;  %v3294_v9 = vsel %vm17185_vm15, %v3287_v18, %v3292_v7  ;;  %v3302_v41 = vsel %vm17185_vm15, %v3295_v32, %v3300_v56  ;;  %v3319_v43 = vshrl.u32 %v19124_v45, 16  ;;  %v15881_v18 = vpop.f32.mrf.mxu1 }
 0x139   : > { %23699 = vst [vmem:[#allocation144_spill] sm:$0xff] %v19145_v0  ;;  %v3324_v14 = vshll.u32 %v19112_v25, 16  ;;  %v3310_v26 = vsel %vm17185_vm15, %v3303_v52, %v3308_v36  ;;  %v3318_v5 = vsel %vm17185_vm15, %v3311_v58, %v3316_v42  ;;  %v3327_v0 = vshrl.u32 %v19112_v25, 16  ;;  %v19174_v18 = vld [vmem:[%s17041_s28 + $0xd0] sm:$0xf] }
 0x13a   : > { %23698 = vst [vmem:[#allocation143_spill] sm:$0xff] %v19140_v12  ;;  %v3332_v37 = vshll.u32 %v19115_v50, 16  ;;  %v3336_v32 = vshrl.u32 %v19127_v34, 16  ;;  %v3341_v56 = vshll.u32 %v19130_v19, 16  ;;  %v3344_v45 = vshrl.u32 %v19130_v19, 16 }
 0x13b   : > { %v3326_v7 = vsel %vm17185_vm15, %v3319_v43, %v3324_v14  ;;  %v3349_v36 = vshll.u32 %v19140_v12, 16  ;;  %v4680_v58 = vcombine.low %v3294_v9, %v3302_v41  ;;  %v4681_v42 = vcombine.low %v3310_v26, %v3318_v5  ;;  %v19171_v50 = vld [vmem:[%s17041_s28 + $0xcc] sm:$0xf]  ;;  %v19176_v43 = vpop.f32.mrf.mxu1 }
 0x13c   : > { %v3334_v52 = vsel %vm17185_vm15, %v3327_v0, %v3332_v37  ;;  %23700 = vst [vmem:[#allocation145_spill] sm:$0xff] %v19176_v43  ;;  %v3343_v14 = vsel %vm17185_vm15, %v3336_v32, %v3341_v56  ;;  %v4542_v25 = vrot.slane %v4514_v30, %v17062_v22  ;;  %v4543_v40 = vcombine.low %v18826_v47, %v18839_v21 }
 0x13d   : > { %v4682_v34 = vcombine.low %v3326_v7, %v3334_v52  ;;  %v3351_v37 = vsel %vm17185_vm15, %v3344_v45, %v3349_v36  ;;  %v19186_v5 = vrot.slane %v4680_v58, %v17062_v22  ;;  %v19189_v41 = vrot.slane %v4681_v42, %v17062_v22  ;;  %v15882_v0 = vpop.f32.mrf.mxu1 }
 0x13e   : > { %v14515_v26 = vcombine.low %v19165_v1, %v19165_v1  ;;  %v4683_v9 = vcombine.low %v3343_v14, %v3351_v37  ;;  %v4545_v30 = vcombine.low %v4528_v46, %v4542_v25  ;;  %v14516_v47 = vcombine.low %v19171_v50, %v19174_v18 }
 0x13f   : > { %v19194_v7 = vrot.slane %v4682_v34, %v17062_v22  ;;  %v4712_v21 = vcombine.low %v19186_v5, %v19189_v41  ;;  %v14579_v45 = vcombine.low %v18770_v33, %v18919_v31  ;;  %v14580_v32 = vcombine.low %v19049_v35, %v19049_v35  ;;  %v19208_v52 = vpop.f32.mrf.mxu1 }
 0x140   : > { %v19206_v56 = vcombine.high %v19130_v19, %v19130_v19  ;;  %23702 = vst [vmem:[#allocation147_spill] sm:$0xff] %v19208_v52  ;;  %v19211_v25 = vrot.slane %v4683_v9, %v17062_v22  ;;  %5374 = vmatprep.mubr.bf16.mxu0 %v4545_v30  ;;  %v14581_v46 = vcombine.low %v18913_v24, %v19036_v13 }
 0x141   : > { %v1827_v34 = vrot.slane %v14515_v26, %v17062_v22  ;;  %v14582_v33 = vcombine.low %v18916_v28, %v19046_v57  ;;  %v19219_v36 = vrot.slane %v4712_v21, %v17062_v22  ;;  %5375 = vmatmul.mubr.bf16.gmra.mxu0 %v4543_v40  ;;  %v1762_v58 = vrot.slane %v14579_v45, %v17062_v22  ;;  %v15885_v37 = vpop.f32.mrf.mxu1 }
 0x142   : > { %23701 = vst [vmem:[#allocation146_spill] sm:$0xff] %v19206_v56  ;;  %v1776_v42 = vrot.slane %v14580_v32, %v17062_v22  ;;  %v1859_v14 = vrot.slane %v14516_v47, %v17062_v22  ;;  %v4714_v0 = vcombine.low %v19194_v7, %v19211_v25  ;;  %v1820_v24 = vrot.slane %v14581_v46, %v17062_v22 }
 0x143   : > { %v1845_v26 = vrot.slane %v14582_v33, %v17062_v22  ;;  %v3352_v28 = vshrl.u32 %v19140_v12, 16  ;;  %v3357_v40 = vshll.u32 %v19206_v56, 16  ;;  %v3360_v21 = vshrl.u32 %v19206_v56, 16  ;;  %v19231_v45 = vpop.f32.mrf.mxu1 }
 0x144   : > { %v1779_v9 = vcombine.low %v1762_v58, %v1776_v42  ;;  %v1780_v30 = vcombine.high %v1762_v58, %v1776_v42  ;;  %23703 = vst [vmem:[#allocation148_spill] sm:$0xff] %v19231_v45  ;;  %v19234_v47 = vrot.slane %v4714_v0, %v17062_v22  ;;  %v1828_v32 = vcombine.low %v1820_v24, %v1827_v34 }
 0x145   : > { %v1867_v37 = vcombine.low %v1845_v26, %v1859_v14  ;;  %v1868_v52 = vcombine.high %v1845_v26, %v1859_v14  ;;  %v2266_v12 = vcombine.high %v1820_v24, %v1827_v34  ;;  %v3359_v58 = vsel %vm17185_vm15, %v3352_v28, %v3357_v40  ;;  %v15886_v42 = vpop.f32.mrf.mxu1 }
 0x146   : > { %v19237_v46 = vrot.slane %v1779_v9, %v17062_v22  ;;  %v19240_v33 = vrot.slane %v1780_v30, %v17062_v22  ;;  %v4745_v56 = vcombine.high %v19219_v36, %v19234_v47  ;;  %v19247_v0 = vrot.slane %v1828_v32, %v17062_v22 }
 0x147   : > { %v19250_v45 = vrot.slane %v1867_v37, %v17062_v22  ;;  %v19253_v14 = vrot.slane %v1868_v52, %v17062_v22  ;;  %v19264_v24 = vrot.slane %v2266_v12, %v17062_v22  ;;  %v19267_v9 = vpop.f32.mrf.mxu1 }
 0x148   : > { %23704 = vst [vmem:[#allocation149_spill] sm:$0xff] %v19237_v46  ;;  %23705 = vst [vmem:[#allocation150_spill] sm:$0xff] %v19240_v33  ;;  %v19257_v26 = vcombine.high %v19237_v46, %v19237_v46  ;;  %v19261_v34 = vcombine.high %v19240_v33, %v19240_v33  ;;  %v3365_v28 = vshll.u32 %v19237_v46, 16  ;;  %15936 = vmatmul.mubr.bf16.gmra.mxu1 %v4745_v56  ;;  %v3368_v30 = vshrl.u32 %v19237_v46, 16 }
 0x149   : > { %23706 = vst [vmem:[#allocation151_spill] sm:$0xff] %v19247_v0  ;;  %23707 = vst [vmem:[#allocation152_spill] sm:$0xff] %v19250_v45  ;;  %v3373_v52 = vshll.u32 %v19240_v33, 16  ;;  %v3376_v40 = vshrl.u32 %v19240_v33, 16  ;;  %v3397_v32 = vshll.u32 %v19247_v0, 16  ;;  %15939 = vmatprep.mubr.msk.bf16.mxu1 %vm16892_vm0, %v23577_v54  ;;  %v3400_v33 = vshrl.u32 %v19247_v0, 16 }
 0x14a   : > { %23708 = vst [vmem:[#allocation153_spill] sm:$0xff] %v19253_v14  ;;  %23709 = vst [vmem:[#allocation154_spill] sm:$0xff] %v19257_v26  ;;  %v3367_v12 = vsel %vm17185_vm15, %v3360_v21, %v3365_v28  ;;  %v3381_v37 = vshll.u32 %v19257_v26, 16  ;;  %v3384_v42 = vshrl.u32 %v19257_v26, 16  ;;  %v3389_v56 = vshll.u32 %v19261_v34, 16 }
 0x14b   : > { %23710 = vst [vmem:[#allocation155_spill] sm:$0xff] %v19261_v34  ;;  %23711 = vst [vmem:[#allocation156_spill] sm:$0xff] %v19264_v24  ;;  %v3375_v43 = vsel %vm17185_vm15, %v3368_v30, %v3373_v52  ;;  %v3392_v46 = vshrl.u32 %v19261_v34, 16  ;;  %v3405_v19 = vshll.u32 %v19264_v24, 16  ;;  %v3409_v26 = vshrl.u32 %v19250_v45, 16 }
 0x14c   : > { %23712 = vst [vmem:[#allocation157_spill] sm:$0xff] %v19267_v9  ;;  %v15889_v9 = vpop.f32.mrf.mxu1  ;;  %v3383_v21 = vsel %vm17185_vm15, %v3376_v40, %v3381_v37  ;;  %v3391_v28 = vsel %vm17185_vm15, %v3384_v42, %v3389_v56  ;;  %v3414_v10 = vshll.u32 %v19253_v14, 16  ;;  %v4747_v34 = vcombine.low %v3359_v58, %v3367_v12  ;;  %v19298_v0 = vld [vmem:[%s17041_s28 + $0xd4] sm:$0x3]  ;;  %v19300_v40 = vpop.f32.mrf.mxu0 }
 0x14d   : > { %v3399_v30 = vsel %vm17185_vm15, %v3392_v46, %v3397_v32  ;;  %v3407_v52 = vsel %vm17185_vm15, %v3400_v33, %v3405_v19  ;;  %v4748_v24 = vcombine.low %v3375_v43, %v3383_v21  ;;  %23714 = vst [vmem:[#allocation159_spill] sm:$0xff] %v19300_v40  ;;  %v4579_v56 = vcombine.high %v18924_v63, %v18930_v39 }
 0x14e   : > { %v19291_v9 = vpop.f32.mrf.mxu1  ;;  %v3416_v37 = vsel %vm17185_vm15, %v3409_v26, %v3414_v10  ;;  %v4749_v42 = vcombine.low %v3391_v28, %v3399_v30  ;;  %v19309_v19 = vrot.slane %v4747_v34, %v17062_v22  ;;  %v4610_v33 = vcombine.low %v18962_v17, %v18973_v55  ;;  %v5282_v58 = vpop.f32.mrf.mxu0 }
 0x14f   : > { %23713 = vst [vmem:[#allocation158_spill] sm:$0xff] %v19291_v9  ;;  %v4581_v9 = vcombine.high %v18936_v51, %v18944_v53  ;;  %v4750_v32 = vcombine.low %v3407_v52, %v3416_v37  ;;  %v19312_v43 = vrot.slane %v4748_v24, %v17062_v22  ;;  %v4595_v63 = vrot.slane %v4579_v56, %v17062_v22 }
 0x150   : > { %v15890_v46 = vpop.f32.mrf.mxu1  ;;  %v19317_v10 = vrot.slane %v4749_v42, %v17062_v22  ;;  %v14517_v51 = vcombine.low %v19298_v0, %v19298_v0  ;;  %v14583_v17 = vcombine.low %v18919_v31, %v19049_v35  ;;  %v14584_v55 = vcombine.low %v19174_v18, %v19174_v18 }
 0x151   : > { %v4609_v39 = vrot.slane %v4581_v9, %v17062_v22  ;;  %v19326_v26 = vrot.slane %v4750_v32, %v17062_v22  ;;  %v4779_v34 = vcombine.low %v19309_v19, %v19312_v43  ;;  %v19336_v12 = vcombine.high %v19250_v45, %v19250_v45  ;;  %v19355_v32 = vpop.f32.mrf.mxu0 }
 0x152   : > { %v19323_v53 = vpop.f32.mrf.mxu1  ;;  %v19340_v21 = vcombine.high %v19253_v14, %v19253_v14  ;;  %v14585_v28 = vcombine.low %v19036_v13, %v19165_v1  ;;  %v1852_v52 = vrot.slane %v14583_v17, %v17062_v22  ;;  %v1866_v37 = vrot.slane %v14584_v55, %v17062_v22  ;;  %23718 = vst [vmem:[#allocation163_spill] sm:$0xff] %v19355_v32 }
 0x153   : > { %23715 = vst [vmem:[#allocation160_spill] sm:$0xff] %v19323_v53  ;;  %v4612_v24 = vcombine.low %v4595_v63, %v4609_v39  ;;  %23716 = vst [vmem:[#allocation161_spill] sm:$0xff] %v19336_v12  ;;  %v4781_v30 = vcombine.low %v19317_v10, %v19326_v26  ;;  %v19347_v31 = vrot.slane %v4779_v34, %v17062_v22  ;;  %v3417_v46 = vshrl.u32 %v19253_v14, 16  ;;  %v19421_v14 = vld [vmem:[%s17041_s28 + $0xd8] sm:$0xf] }
 0x154   : > { %23717 = vst [vmem:[#allocation162_spill] sm:$0xff] %v19340_v21  ;;  %v15893_v9 = vpop.f32.mrf.mxu1  ;;  %v1910_v42 = vrot.slane %v14585_v28, %v17062_v22  ;;  %v1917_v56 = vrot.slane %v14517_v51, %v17062_v22  ;;  %v3422_v13 = vshll.u32 %v19336_v12, 16  ;;  %v1869_v39 = vcombine.low %v1852_v52, %v1866_v37 }
 0x155   : > { %5382 = vmatprep.mubr.bf16.mxu0 %v4612_v24  ;;  %v19360_v63 = vrot.slane %v4781_v30, %v17062_v22  ;;  %v1870_v34 = vcombine.high %v1852_v52, %v1866_v37  ;;  %v3425_v17 = vshrl.u32 %v19336_v12, 16  ;;  %v3430_v28 = vshll.u32 %v19340_v21, 16  ;;  %v5285_v9 = vpop.f32.mrf.mxu0 }
 0x156   : > { %v19357_v58 = vpop.f32.mrf.mxu1  ;;  %5383 = vmatmul.mubr.bf16.gmra.mxu0 %v4610_v33  ;;  %v1918_v55 = vcombine.low %v1910_v42, %v1917_v56  ;;  %v2274_v24 = vcombine.high %v1910_v42, %v1917_v56  ;;  %v3424_v51 = vsel %vm17185_vm15, %v3417_v46, %v3422_v13  ;;  %v19369_v30 = vrot.slane %v1869_v39, %v17062_v22 }
 0x157   : > { %23719 = vst [vmem:[#allocation164_spill] sm:$0xff] %v19357_v58  ;;  %v4812_v58 = vcombine.high %v19347_v31, %v19360_v63  ;;  %v19372_v33 = vrot.slane %v1870_v34, %v17062_v22  ;;  %v3433_v52 = vshrl.u32 %v19340_v21, 16  ;;  %v4646_v56 = vcombine.high %v19041_v59, %v19054_v29  ;;  %v19385_v46 = vpop.f32.mrf.mxu0 }
 0x158   : > { %v15894_v53 = vpop.f32.mrf.mxu1  ;;  %23720 = vst [vmem:[#allocation165_spill] sm:$0xff] %v19369_v30  ;;  %v19376_v37 = vrot.slane %v1918_v55, %v17062_v22  ;;  %v19379_v42 = vrot.slane %v2274_v24, %v17062_v22  ;;  %23724 = vst [vmem:[#allocation169_spill] sm:$0xff] %v19385_v46  ;;  %v19389_v13 = vcombine.high %v19369_v30, %v19369_v30  ;;  %v3438_v34 = vshll.u32 %v19369_v30, 16 }
 0x159   : > { %23721 = vst [vmem:[#allocation166_spill] sm:$0xff] %v19372_v33  ;;  %v3432_v53 = vsel %vm17185_vm15, %v3425_v17, %v3430_v28  ;;  %15940 = vmatmul.mubr.bf16.gmra.mxu1 %v4812_v58  ;;  %v19393_v39 = vcombine.high %v19372_v33, %v19372_v33  ;;  %v3441_v55 = vshrl.u32 %v19369_v30, 16  ;;  %v3446_v59 = vshll.u32 %v19372_v33, 16  ;;  %v5290_v24 = vpop.f32.mrf.mxu0 }
 0x15a   : > { %23722 = vst [vmem:[#allocation167_spill] sm:$0xff] %v19376_v37  ;;  %23723 = vst [vmem:[#allocation168_spill] sm:$0xff] %v19379_v42  ;;  %15943 = vmatprep.mubr.msk.bf16.mxu1 %vm16892_vm0, %v23577_v54  ;;  %v3449_v29 = vshrl.u32 %v19372_v33, 16  ;;  %v3470_v58 = vshll.u32 %v19376_v37, 16  ;;  %v3473_v17 = vshrl.u32 %v19376_v37, 16  ;;  %v3440_v28 = vsel %vm17185_vm15, %v3433_v52, %v3438_v34 }
 0x15b   : > { %23725 = vst [vmem:[#allocation170_spill] sm:$0xff] %v19389_v13  ;;  %23726 = vst [vmem:[#allocation171_spill] sm:$0xff] %v19393_v39  ;;  %v3454_v9 = vshll.u32 %v19389_v13, 16  ;;  %v3457_v46 = vshrl.u32 %v19389_v13, 16  ;;  %v3462_v32 = vshll.u32 %v19393_v39, 16  ;;  %v3448_v40 = vsel %vm17185_vm15, %v3441_v55, %v3446_v59  ;;  %v19412_v30 = vpop.f32.mrf.mxu0 }
 0x15c   : > { %v3465_v33 = vshrl.u32 %v19393_v39, 16  ;;  %v3478_v21 = vshll.u32 %v19379_v42, 16  ;;  %v4814_v37 = vcombine.low %v3424_v51, %v3432_v53  ;;  %23727 = vst [vmem:[#allocation172_spill] sm:$0xff] %v19412_v30  ;;  %v4815_v34 = vcombine.low %v3440_v28, %v3448_v40  ;;  %v321_v55 = vld [vmem:[%s17041_s28 + $0xdc] sm:$0xf] }
 0x15d   : > { %v3456_v24 = vsel %vm17185_vm15, %v3449_v29, %v3454_v9  ;;  %v3464_v52 = vsel %vm17185_vm15, %v3457_v46, %v3462_v32  ;;  %v4648_v13 = vcombine.high %v19060_v27, %v19076_v20  ;;  %v19425_v59 = vld [vmem:[%s17041_s28 + $0xe0] sm:$0x3]  ;;  %v19434_v32 = vpop.f32.mrf.mxu1  ;;  %v5293_v40 = vpop.f32.mrf.mxu0  ;;  %v4662_v20 = vrot.slane %v4646_v56, %v17062_v22 }
 0x15e   : > { %v3472_v51 = vsel %vm17185_vm15, %v3465_v33, %v3470_v58  ;;  %v3480_v53 = vsel %vm17185_vm15, %v3473_v17, %v3478_v21  ;;  %v4816_v42 = vcombine.low %v3456_v24, %v3464_v52  ;;  %v19432_v29 = vrot.slane %v4814_v37, %v17062_v22  ;;  %23728 = vst [vmem:[#allocation173_spill] sm:$0xff] %v19434_v32 }
 0x15f   : > { %v4817_v46 = vcombine.low %v3472_v51, %v3480_v53  ;;  %v19437_v27 = vrot.slane %v4815_v34, %v17062_v22  ;;  %v4676_v28 = vrot.slane %v4648_v13, %v17062_v22  ;;  %v4677_v21 = vcombine.low %v19082_v2, %v19097_v49  ;;  %v15897_v17 = vpop.f32.mrf.mxu1  ;;  %v19449_v9 = vpop.f32.mrf.mxu0 }
 0x160   : > { %v19442_v33 = vrot.slane %v4816_v42, %v17062_v22  ;;  %v14518_v37 = vcombine.low %v19421_v14, %v321_v55  ;;  %v14519_v58 = vcombine.low %v19425_v59, %v19425_v59  ;;  %23729 = vst [vmem:[#allocation174_spill] sm:$0xff] %v19449_v9  ;;  %v14586_v42 = vcombine.low %v19046_v57, %v19171_v50 }
 0x161   : > { %v19452_v24 = vrot.slane %v4817_v46, %v17062_v22  ;;  %v4846_v56 = vcombine.low %v19432_v29, %v19437_v27  ;;  %v4679_v13 = vcombine.low %v4662_v20, %v4676_v28  ;;  %v14587_v2 = vcombine.low %v19049_v35, %v19174_v18  ;;  %v19463_v51 = vpop.f32.mrf.mxu1  ;;  %v5298_v53 = vpop.f32.mrf.mxu0 }
 0x162   : > { %v14588_v49 = vcombine.low %v321_v55, %v321_v55  ;;  %v1949_v52 = vrot.slane %v14518_v37, %v17062_v22  ;;  %v14589_v34 = vcombine.low %v19165_v1, %v19298_v0  ;;  %23730 = vst [vmem:[#allocation175_spill] sm:$0xff] %v19463_v51  ;;  %v1935_v57 = vrot.slane %v14586_v42, %v17062_v22 }
 0x163   : > { %v4848_v40 = vcombine.low %v19442_v33, %v19452_v24  ;;  %v19468_v46 = vrot.slane %v4846_v56, %v17062_v22  ;;  %5390 = vmatprep.mubr.bf16.mxu0 %v4679_v13  ;;  %v19472_v35 = vrot.slane %v14519_v58, %v17062_v22  ;;  %v1942_v20 = vrot.slane %v14587_v2, %v17062_v22  ;;  %v15898_v17 = vpop.f32.mrf.mxu1  ;;  %v19480_v53 = vpop.f32.mrf.mxu0 }
 0x164   : > { %5391 = vmatmul.mubr.bf16.gmra.mxu0 %v4677_v21  ;;  %v1956_v1 = vrot.slane %v14588_v49, %v17062_v22  ;;  %v19477_v28 = vrot.slane %v14589_v34, %v17062_v22  ;;  %v14591_v37 = vcombine.low %v19174_v18, %v321_v55  ;;  %23731 = vst [vmem:[#allocation176_spill] sm:$0xff] %v19480_v53 }
 0x165   : > { %v19483_v56 = vrot.slane %v4848_v40, %v17062_v22  ;;  %v1957_v13 = vcombine.low %v1935_v57, %v1949_v52  ;;  %v1958_v42 = vcombine.high %v1935_v57, %v1949_v52  ;;  %v4713_v21 = vcombine.high %v19186_v5, %v19189_v41  ;;  %v5301_v18 = vpop.f32.mrf.mxu0 }
 0x166   : > { %v1959_v58 = vcombine.low %v1942_v20, %v1956_v1  ;;  %v1960_v2 = vcombine.high %v1942_v20, %v1956_v1  ;;  %v2008_v49 = vcombine.low %v19477_v28, %v19472_v35  ;;  %v19490_v34 = vrot.slane %v14591_v37, %v17062_v22 }
 0x167   : > { %v4879_v55 = vcombine.high %v19468_v46, %v19483_v56  ;;  %v19495_v40 = vrot.slane %v1957_v13, %v17062_v22  ;;  %v19498_v52 = vrot.slane %v1958_v42, %v17062_v22  ;;  %v4715_v5 = vcombine.high %v19194_v7, %v19211_v25 }
 0x168   : > { %v19503_v41 = vrot.slane %v1959_v58, %v17062_v22  ;;  %v19506_v57 = vrot.slane %v1960_v2, %v17062_v22  ;;  %v19509_v20 = vrot.slane %v2008_v49, %v17062_v22  ;;  %v4729_v1 = vrot.slane %v4713_v21, %v17062_v22  ;;  %v19522_v13 = vpop.f32.mrf.mxu0 }
 0x169   : > { %23732 = vst [vmem:[#allocation177_spill] sm:$0xff] %v19495_v40  ;;  %23733 = vst [vmem:[#allocation178_spill] sm:$0xff] %v19498_v52  ;;  %15944 = vmatmul.mubr.bf16.gmra.mxu1 %v4879_v55  ;;  %v19514_v37 = vcombine.high %v19495_v40, %v19495_v40  ;;  %v19518_v17 = vcombine.high %v19498_v52, %v19498_v52  ;;  %v3482_v7 = vshrl.u32 %v19495_v40, 16  ;;  %v3487_v25 = vshll.u32 %v19498_v52, 16 }
 0x16a   : > { %23734 = vst [vmem:[#allocation179_spill] sm:$0xff] %v19503_v41  ;;  %23735 = vst [vmem:[#allocation180_spill] sm:$0xff] %v19506_v57  ;;  %15947 = vmatprep.mubr.msk.bf16.mxu1 %vm16892_vm0, %v23577_v54  ;;  %v19528_v42 = vcombine.high %v19503_v41, %v19503_v41  ;;  %v19532_v21 = vcombine.high %v19506_v57, %v19506_v57  ;;  %v3490_v58 = vshrl.u32 %v19498_v52, 16  ;;  %v3511_v2 = vshll.u32 %v19503_v41, 16  ;;  %v5306_v32 = vpop.f32.mrf.mxu0 }
 0x16b   : > { %23736 = vst [vmem:[#allocation181_spill] sm:$0xff] %v19514_v37  ;;  %23737 = vst [vmem:[#allocation182_spill] sm:$0xff] %v19518_v17  ;;  %v3489_v49 = vsel %vm17185_vm15, %v3482_v7, %v3487_v25  ;;  %v3495_v18 = vshll.u32 %v19514_v37, 16  ;;  %v3498_v55 = vshrl.u32 %v19514_v37, 16  ;;  %v3503_v51 = vshll.u32 %v19518_v17, 16 }
 0x16c   : > { %23738 = vst [vmem:[#allocation183_spill] sm:$0xff] %v19522_v13  ;;  %23739 = vst [vmem:[#allocation184_spill] sm:$0xff] %v19528_v42  ;;  %v3506_v13 = vshrl.u32 %v19518_v17, 16  ;;  %v3514_v53 = vshrl.u32 %v19503_v41, 16  ;;  %v3519_v9 = vshll.u32 %v19506_v57, 16  ;;  %v3522_v30 = vshrl.u32 %v19506_v57, 16  ;;  %v19551_v52 = vpop.f32.mrf.mxu0 }
 0x16d   : > { %23740 = vst [vmem:[#allocation185_spill] sm:$0xff] %v19532_v21  ;;  %v3497_v7 = vsel %vm17185_vm15, %v3490_v58, %v3495_v18  ;;  %v3505_v25 = vsel %vm17185_vm15, %v3498_v55, %v3503_v51  ;;  %v3527_v37 = vshll.u32 %v19528_v42, 16  ;;  %v3530_v40 = vshrl.u32 %v19528_v42, 16  ;;  %23741 = vst [vmem:[#allocation186_spill] sm:$0xff] %v19551_v52  ;;  %v323_v58 = vld [vmem:[%s17041_s28 + $0xe4] sm:$0xf] }
 0x16e   : > { %v3513_v32 = vsel %vm17185_vm15, %v3506_v13, %v3511_v2  ;;  %v3521_v17 = vsel %vm17185_vm15, %v3514_v53, %v3519_v9  ;;  %v3535_v41 = vshll.u32 %v19532_v21, 16  ;;  %v3538_v57 = vshrl.u32 %v19532_v21, 16  ;;  %v324_v18 = vld [vmem:[%s17041_s28 + $0xe8] sm:$0xf]  ;;  %v5309_v52 = vpop.f32.mrf.mxu0 }
 0x16f   : > { %v3529_v51 = vsel %vm17185_vm15, %v3522_v30, %v3527_v37  ;;  %v3543_v55 = vshll.u32 %v19509_v20, 16  ;;  %v4881_v42 = vcombine.low %v3489_v49, %v3497_v7  ;;  %v4882_v39 = vcombine.low %v3505_v25, %v3513_v32  ;;  %v19569_v21 = vpop.f32.mrf.mxu1 }
 0x170   : > { %v3537_v13 = vsel %vm17185_vm15, %v3530_v40, %v3535_v41  ;;  %v4883_v2 = vcombine.low %v3521_v17, %v3529_v51  ;;  %v4743_v9 = vrot.slane %v4715_v5, %v17062_v22  ;;  %v4744_v53 = vcombine.low %v19219_v36, %v19234_v47  ;;  %23742 = vst [vmem:[#allocation187_spill] sm:$0xff] %v19569_v21 }
 0x171   : > { %v3545_v12 = vsel %vm17185_vm15, %v3538_v57, %v3543_v55  ;;  %v19574_v30 = vrot.slane %v4881_v42, %v17062_v22  ;;  %v19577_v37 = vrot.slane %v4882_v39, %v17062_v22  ;;  %v14520_v52 = vcombine.low %v323_v58, %v324_v18  ;;  %v15901_v47 = vpop.f32.mrf.mxu1 }
 0x172   : > { %v4884_v49 = vcombine.low %v3537_v13, %v3545_v12  ;;  %v19580_v40 = vrot.slane %v4883_v2, %v17062_v22  ;;  %v4746_v5 = vcombine.low %v4729_v1, %v4743_v9  ;;  %v14590_v36 = vcombine.low %v19171_v50, %v19421_v14 }
 0x173   : > { %v4913_v41 = vcombine.low %v19574_v30, %v19577_v37  ;;  %v14592_v57 = vcombine.low %v324_v18, %v324_v18  ;;  %v2039_v17 = vrot.slane %v14520_v52, %v17062_v22  ;;  %v2282_v39 = vcombine.high %v19477_v28, %v19472_v35  ;;  %v19596_v14 = vpop.f32.mrf.mxu1 }
 0x174   : > { %v19590_v42 = vrot.slane %v4884_v49, %v17062_v22  ;;  %5398 = vmatprep.mubr.bf16.mxu0 %v4746_v5  ;;  %v2025_v12 = vrot.slane %v14590_v36, %v17062_v22  ;;  %v3546_v1 = vshrl.u32 %v19509_v20, 16  ;;  %v4780_v50 = vcombine.high %v19309_v19, %v19312_v43  ;;  %23743 = vst [vmem:[#allocation188_spill] sm:$0xff] %v19596_v14 }
 0x175   : > { %v19599_v7 = vrot.slane %v4913_v41, %v17062_v22  ;;  %5399 = vmatmul.mubr.bf16.gmra.mxu0 %v4744_v53  ;;  %v2046_v25 = vrot.slane %v14592_v57, %v17062_v22  ;;  %v19603_v35 = vrot.slane %v2282_v39, %v17062_v22  ;;  %v4782_v28 = vcombine.high %v19317_v10, %v19326_v26  ;;  %v15902_v43 = vpop.f32.mrf.mxu1 }
 0x176   : > { %v4915_v32 = vcombine.low %v19580_v40, %v19590_v42  ;;  %v2047_v58 = vcombine.low %v2025_v12, %v2039_v17  ;;  %v2048_v18 = vcombine.high %v2025_v12, %v2039_v17  ;;  %v4796_v19 = vrot.slane %v4780_v50, %v17062_v22  ;;  %v16578_v43 = vld [vmem:[%s17041_s28 + $0xec] ss:$0 sps:$4 sm:$0x33]  }
 0x177   : > { %23744 = vst [vmem:[#allocation189_spill] sm:$0xff] %v19603_v35  ;;  %v2049_v51 = vcombine.low %v19490_v34, %v2046_v25  ;;  %v2050_v55 = vcombine.high %v19490_v34, %v2046_v25  ;;  %v3551_v13 = vshll.u32 %v19603_v35, 16  ;;  %v4810_v2 = vrot.slane %v4782_v28, %v17062_v22 }
 0x178   : > { %v19615_v9 = vrot.slane %v4915_v32, %v17062_v22  ;;  %v19618_v10 = vrot.slane %v2047_v58, %v17062_v22  ;;  %v19621_v26 = vrot.slane %v2048_v18, %v17062_v22  ;;  %v4811_v53 = vcombine.low %v19347_v31, %v19360_v63 }
 0x179   : > { %v19626_v52 = vrot.slane %v2049_v51, %v17062_v22  ;;  %v19629_v34 = vrot.slane %v2050_v55, %v17062_v22  ;;  %v3553_v49 = vsel %vm17185_vm15, %v3546_v1, %v3551_v13  ;;  %v4813_v5 = vcombine.low %v4796_v19, %v4810_v2 }
 0x17a   : > { %v4946_v36 = vcombine.high %v19599_v7, %v19615_v9  ;;  %v19637_v47 = vcombine.high %v19618_v10, %v19618_v10  ;;  %v19641_v31 = vcombine.high %v19621_v26, %v19621_v26  ;;  %v3555_v63 = vshrl.u32 %v19618_v10, 16 }
 0x17b   : > { %v19646_v41 = vcombine.high %v19626_v52, %v19626_v52  ;;  %v19650_v57 = vcombine.high %v19629_v34, %v19629_v34  ;;  %v3560_v17 = vshll.u32 %v19621_v26, 16  ;;  %v3563_v39 = vshrl.u32 %v19621_v26, 16  ;;  %5406 = vmatprep.mubr.bf16.mxu0 %v4813_v5  ;;  %v19658_v28 = vpop.f32.mrf.mxu0 }
 0x17c   : > { %15948 = vmatmul.mubr.bf16.gmra.mxu1 %v4946_v36  ;;  %v3568_v12 = vshll.u32 %v19637_v47, 16  ;;  %v3571_v1 = vshrl.u32 %v19637_v47, 16  ;;  %v3576_v50 = vshll.u32 %v19641_v31, 16  ;;  %v3579_v25 = vshrl.u32 %v19641_v31, 16  ;;  %23745 = vst [vmem:[#allocation190_spill] sm:$0xff] %v19658_v28 }
 0x17d   : > { %15951 = vmatprep.mubr.msk.bf16.mxu1 %vm16892_vm0, %v23577_v54  ;;  %v3562_v32 = vsel %vm17185_vm15, %v3555_v63, %v3560_v17  ;;  %v3584_v58 = vshll.u32 %v19626_v52, 16  ;;  %v3587_v18 = vshrl.u32 %v19626_v52, 16  ;;  %v3592_v19 = vshll.u32 %v19629_v34, 16  ;;  %5407 = vmatmul.mubr.bf16.gmra.mxu0 %v4811_v53  ;;  %v5314_v5 = vpop.f32.mrf.mxu0 }
 0x17e   : > { %v3570_v51 = vsel %vm17185_vm15, %v3563_v39, %v3568_v12  ;;  %v3578_v55 = vsel %vm17185_vm15, %v3571_v1, %v3576_v50  ;;  %v3595_v13 = vshrl.u32 %v19629_v34, 16  ;;  %v3600_v2 = vshll.u32 %v19646_v41, 16 }
 0x17f   : > { %v3586_v36 = vsel %vm17185_vm15, %v3579_v25, %v3584_v58  ;;  %v3594_v63 = vsel %vm17185_vm15, %v3587_v18, %v3592_v19  ;;  %v3603_v53 = vshrl.u32 %v19646_v41, 16  ;;  %v3608_v17 = vshll.u32 %v19650_v57, 16  ;;  %v19682_v35 = vpop.f32.mrf.mxu0 }
 0x180   : > { %v3602_v39 = vsel %vm17185_vm15, %v3595_v13, %v3600_v2  ;;  %v4948_v12 = vcombine.low %v3553_v49, %v3562_v32  ;;  %v4949_v1 = vcombine.low %v3570_v51, %v3578_v55  ;;  %v4950_v50 = vcombine.low %v3586_v36, %v3594_v63  ;;  %23746 = vst [vmem:[#allocation191_spill] sm:$0xff] %v19682_v35  ;;  %v19690_v19 = vpop.f32.mrf.mxu1 }
 0x181   : > { %v3610_v5 = vsel %vm17185_vm15, %v3603_v53, %v3608_v17  ;;  %v14593_v25 = vcombine.low %v19298_v0, %v19425_v59  ;;  %v2097_v58 = vrot.slane %v16578_v43, %v17062_v22  ;;  %v3611_v18 = vshrl.u32 %v19650_v57, 16  ;;  %23747 = vst [vmem:[#allocation192_spill] sm:$0xff] %v19690_v19  ;;  %v5317_v51 = vpop.f32.mrf.mxu0 }
 0x182   : > { %v4951_v14 = vcombine.low %v3602_v39, %v3610_v5  ;;  %v19693_v13 = vrot.slane %v4948_v12, %v17062_v22  ;;  %v19696_v49 = vrot.slane %v4949_v1, %v17062_v22  ;;  %v19699_v32 = vrot.slane %v4950_v50, %v17062_v22  ;;  %v15905_v2 = vpop.f32.mrf.mxu1 }
 0x183   : > { %v2090_v55 = vrot.slane %v14593_v25, %v17062_v22  ;;  %v4847_v0 = vcombine.high %v19432_v29, %v19437_v27  ;;  %v4849_v59 = vcombine.high %v19442_v33, %v19452_v24  ;;  %v5646_v43 = vcombine.low %v17144_v60, %v17150_v62 }
 0x184   : > { %v19709_v36 = vrot.slane %v4951_v14, %v17062_v22  ;;  %v4980_v63 = vcombine.low %v19693_v13, %v19696_v49  ;;  %v14780_v53 = vcombine.high %v17144_v60, %v17150_v62  ;;  %v5648_v17 = vcombine.low %v17147_v61, %v17159_v3  ;;  %v19719_v39 = vpop.f32.mrf.mxu1 }
 0x185   : > { %v2098_v29 = vcombine.low %v2090_v55, %v2097_v58  ;;  %v2290_v27 = vcombine.high %v2090_v55, %v2097_v58  ;;  %v4863_v33 = vrot.slane %v4847_v0, %v17062_v22  ;;  %v4877_v24 = vrot.slane %v4849_v59, %v17062_v22  ;;  %23748 = vst [vmem:[#allocation193_spill] sm:$0xff] %v19719_v39 }
 0x186   : > { %v4982_v14 = vcombine.low %v19699_v32, %v19709_v36  ;;  %v19724_v12 = vrot.slane %v4980_v63, %v17062_v22  ;;  %v14781_v60 = vcombine.high %v17147_v61, %v17159_v3  ;;  %v5656_v1 = vrot.slane %v5646_v43, %v17062_v22  ;;  %v15906_v51 = vpop.f32.mrf.mxu1 }
 0x187   : > { %v19730_v50 = vrot.slane %v2098_v29, %v17062_v22  ;;  %v19733_v5 = vrot.slane %v2290_v27, %v17062_v22  ;;  %v4880_v25 = vcombine.low %v4863_v33, %v4877_v24  ;;  %v5663_v58 = vrot.slane %v14780_v53, %v17062_v22 }
 0x188   : > { %v19737_v55 = vrot.slane %v4982_v14, %v17062_v22  ;;  %v5670_v0 = vrot.slane %v5648_v17, %v17062_v22  ;;  %v5677_v59 = vrot.slane %v14781_v60, %v17062_v22  ;;  %v4878_v43 = vcombine.low %v19468_v46, %v19483_v56 }
 0x189   : > { %23749 = vst [vmem:[#allocation194_spill] sm:$0xff] %v19733_v5  ;;  %v3616_v2 = vshll.u32 %v19730_v50, 16  ;;  %v3619_v63 = vshrl.u32 %v19730_v50, 16  ;;  %v3624_v29 = vshll.u32 %v19733_v5, 16  ;;  %5414 = vmatprep.mubr.bf16.mxu0 %v4880_v25  ;;  %v5678_v27 = vcombine.low %v5656_v1, %v5663_v58 }
 0x18a   : > { %v5013_v53 = vcombine.high %v19724_v12, %v19737_v55  ;;  %v5679_v33 = vcombine.high %v5656_v1, %v5663_v58  ;;  %v5680_v24 = vcombine.low %v5670_v0, %v5677_v59  ;;  %v5681_v14 = vcombine.high %v5670_v0, %v5677_v59  ;;  %5415 = vmatmul.mubr.bf16.gmra.mxu0 %v4878_v43  ;;  %v19754_v60 = vpop.f32.mrf.mxu0 }
 0x18b   : > { %v3618_v17 = vsel %vm17185_vm15, %v3611_v18, %v3616_v2  ;;  %v3626_v46 = vsel %vm17185_vm15, %v3619_v63, %v3624_v29  ;;  %v4914_v56 = vcombine.high %v19574_v30, %v19577_v37  ;;  %23750 = vst [vmem:[#allocation195_spill] sm:$0xff] %v19754_v60  ;;  %v4916_v18 = vcombine.high %v19580_v40, %v19590_v42  ;;  %v23751_v2 = vld [vmem:[#allocation14_spill] sm:$0xff] }
 0x18c   : > { %15952 = vmatmul.mubr.bf16.gmra.mxu1 %v5013_v53  ;;  %v5015_v25 = vcombine.low %v3618_v17, %v3626_v46  ;;  %v5695_v51 = vrot.slane %v5679_v33, %v17062_v22  ;;  %v5709_v1 = vrot.slane %v5681_v14, %v17062_v22  ;;  %v5713_v58 = vcombine.low %v17162_v4, %v17249_v48  ;;  %v5322_v37 = vpop.f32.mrf.mxu0 }
 0x18d   : > { %15955 = vmatprep.mubr.msk.bf16.mxu1 %vm16892_vm0, %v23577_v54  ;;  %v4930_v11 = vrot.slane %v4914_v56, %v17062_v22  ;;  %v5714_v30 = vcombine.low %v17257_v16, %v17269_v6  ;;  %v19769_v59 = vrot.slane %v5678_v27, %v17062_v22  ;;  %v19772_v43 = vrot.slane %v5680_v24, %v17062_v22 }
 0x18e   : > { %v5022_v0 = vrot.slane %v5015_v25, %v17062_v22  ;;  %v5715_v40 = vcombine.low %v17285_v44, %v17254_v15  ;;  %v4944_v42 = vrot.slane %v4916_v18, %v17062_v22  ;;  %v5716_v63 = vcombine.low %v23751_v2, %v17281_v38  ;;  %v19781_v53 = vpop.f32.mrf.mxu0 }
 0x18f   : > { %v5723_v29 = vrot.slane %v5713_v58, %v17062_v22  ;;  %v5730_v6 = vrot.slane %v5714_v30, %v17062_v22  ;;  %23752 = vst [vmem:[#allocation14_spill] sm:$0xff] %v19781_v53  ;;  %v4945_v24 = vcombine.low %v19599_v7, %v19615_v9  ;;  %v4981_v44 = vcombine.high %v19693_v13, %v19696_v49  ;;  %v23754_v7 = vld [vmem:[#allocation17_spill] sm:$0xff]  ;;  %v23755_v9 = vld [vmem:[#allocation16_spill] sm:$0xff] }
 0x190   : > { %v19784_v27 = vrot.slane %v5022_v0, %v17062_v22  ;;  %v5737_v33 = vrot.slane %v5715_v40, %v17062_v22  ;;  %v5712_v14 = vcombine.low %v5695_v51, %v5709_v1  ;;  %v4947_v17 = vcombine.low %v4930_v11, %v4944_v42  ;;  %v19792_v56 = vpop.f32.mrf.mxu1  ;;  %v5325_v25 = vpop.f32.mrf.mxu0  ;;  %v23756_v11 = vld [vmem:[#allocation19_spill] sm:$0xff]  ;;  %v23757_v40 = vld [vmem:[#allocation18_spill] sm:$0xff] }
 0x191   : > { %v5744_v38 = vrot.slane %v5716_v63, %v17062_v22  ;;  %v5746_v46 = vcombine.high %v5723_v29, %v5730_v6  ;;  %23753 = vst [vmem:[#allocation196_spill] sm:$0xff] %v19792_v56  ;;  %v4983_v58 = vcombine.high %v19699_v32, %v19709_v36  ;;  %v4997_v30 = vrot.slane %v4981_v44, %v17062_v22  ;;  %v23758_v63 = vld [vmem:[#allocation22_spill] sm:$0xff]  ;;  %v23759_v44 = vld [vmem:[#allocation21_spill] sm:$0xff] }
 0x192   : > { %v5038_v18 = vcombine.high %v19784_v27, %v19784_v27  ;;  %v5780_v37 = vcombine.low %v23755_v9, %v23754_v7  ;;  %5422 = vmatprep.mubr.bf16.mxu0 %v4947_v17  ;;  %v15909_v51 = vpop.f32.mrf.mxu1  ;;  %v5781_v42 = vcombine.low %v23757_v40, %v23756_v11  ;;  %v14782_v32 = vcombine.high %v23757_v40, %v23756_v11  ;;  %v23819_v11 = vld [vmem:[#allocation99_spill] sm:$0xff] }
 0x193   : > { %v5748_v13 = vcombine.high %v5737_v33, %v5744_v38  ;;  %v5762_v49 = vrot.slane %v5746_v46, %v17062_v22  ;;  %5423 = vmatmul.mubr.bf16.gmra.mxu0 %v4945_v24  ;;  %v5011_v1 = vrot.slane %v4983_v58, %v17062_v22  ;;  %v5783_v17 = vcombine.low %v23759_v44, %v23758_v63 }
 0x194   : > { %15956 = vmatmul.mubr.bf16.gmra.mxu1 %v5038_v18  ;;  %v5790_v25 = vrot.slane %v5780_v37, %v17062_v22  ;;  %v19811_v46 = vpop.f32.mrf.mxu1  ;;  %v5710_v24 = vcombine.low %v19769_v59, %v19772_v43  ;;  %v5797_v58 = vrot.slane %v5781_v42, %v17062_v22  ;;  %v5804_v9 = vrot.slane %v14782_v32, %v17062_v22  ;;  %v23761_v42 = vld [vmem:[#allocation29_spill] sm:$0xff]  ;;  %v23762_v32 = vld [vmem:[#allocation27_spill] sm:$0xff] }
 0x195   : > { %7249 = vmatprep.mubr.bf16.mxu1 %v5712_v14  ;;  %v5776_v36 = vrot.slane %v5748_v13, %v17062_v22  ;;  %23760 = vst [vmem:[#allocation16_spill] sm:$0xff] %v19811_v46  ;;  %v5014_v18 = vcombine.low %v4997_v30, %v5011_v1  ;;  %v5745_v51 = vcombine.low %v5723_v29, %v5730_v6  ;;  %v23763_v6 = vld [vmem:[#allocation33_spill] sm:$0xff] }
 0x196   : > { %v5747_v40 = vcombine.low %v5737_v33, %v5744_v38  ;;  %v5811_v14 = vrot.slane %v5783_v17, %v17062_v22  ;;  %v5023_v13 = vcombine.high %v5022_v0, %v5022_v0  ;;  %v15910_v5 = vpop.f32.mrf.mxu1  ;;  %v5813_v39 = vcombine.high %v5790_v25, %v5797_v58  ;;  %v23764_v33 = vld [vmem:[#allocation30_spill] sm:$0xff]  ;;  %v23765_v0 = vld [vmem:[#allocation31_spill] sm:$0xff] }
 0x197   : > { %v5779_v56 = vcombine.low %v5762_v49, %v5776_v36  ;;  %5430 = vmatprep.mubr.bf16.mxu0 %v5014_v18  ;;  %v5012_v37 = vcombine.low %v19724_v12, %v19737_v55  ;;  %v14783_v46 = vcombine.high %v23759_v44, %v23758_v63  ;;  %v5848_v29 = vcombine.low %v23762_v32, %v23761_v42  ;;  %v23766_v5 = vld [vmem:[#allocation34_spill] sm:$0xff]  ;;  %v16583_v36 = vld [vmem:[%s23285_s1 + $0x1b8] sm:$0xff]   ;;  %v23815_v63 = vld [vmem:[#allocation95_spill] sm:$0xff] }
 0x198   : > { %v5815_v30 = vcombine.high %v5804_v9, %v5811_v14  ;;  %v5037_v1 = vrot.slane %v5023_v13, %v17062_v22  ;;  %v5849_v38 = vcombine.low %v23764_v33, %v23763_v6  ;;  %v5850_v49 = vcombine.low %v23766_v5, %v23765_v0  ;;  %v23802_v32 = vld [vmem:[#allocation77_spill] sm:$0xff]  ;;  %v23816_v44 = vld [vmem:[#allocation92_spill] sm:$0xff] }
 0x199   : > { %v19832_v12 = vpop.f32.mrf.mxu0  ;;  %v19835_v55 = vrot.slane %v5745_v51, %v17062_v22  ;;  %v19838_v17 = vrot.slane %v5747_v40, %v17062_v22  ;;  %v5829_v18 = vrot.slane %v5813_v39, %v17062_v22  ;;  %v5857_v6 = vrot.slane %v14783_v46, %v17062_v22  ;;  %v23770_v46 = vld [vmem:[#allocation32_spill] sm:$0xff] }
 0x19a   : > { %23767 = vst [vmem:[#allocation18_spill] sm:$0xff] %v19832_v12  ;;  %v5843_v13 = vrot.slane %v5815_v30, %v17062_v22  ;;  %v5864_v19 = vrot.slane %v5848_v29, %v17062_v22  ;;  %v5871_v21 = vrot.slane %v5849_v38, %v17062_v22  ;;  %v5878_v51 = vrot.slane %v5850_v49, %v17062_v22  ;;  %v23769_v30 = vld [vmem:[#allocation35_spill] sm:$0xff]  ;;  %v23772_v29 = vld [vmem:[#allocation36_spill] sm:$0xff] }
 0x19b   : > { %5431 = vmatmul.mubr.bf16.gmra.mxu0 %v5012_v37  ;;  %v5330_v5 = vpop.f32.mrf.mxu0  ;;  %v5812_v40 = vcombine.low %v5790_v25, %v5797_v58  ;;  %v5814_v37 = vcombine.low %v5804_v9, %v5811_v14  ;;  %v23773_v49 = vld [vmem:[#allocation39_spill] sm:$0xff] }
 0x19c   : > { %7250 = vmatmul.mubr.bf16.vlgmr.msra.gmra.mxu1 %v5710_v24  ;;  %5438 = vmatprep.mubr.bf16.mxu0 %v5037_v1  ;;  %v16585_v24 = vld [vmem:[%s23285_s1 + $0x1b0] sm:$0xff]   ;;  %v5914_v5 = vcombine.low %v23770_v46, %v23769_v30  ;;  %v23771_v1 = vld [vmem:[#allocation37_spill] sm:$0xff]  ;;  %v5846_v25 = vcombine.low %v5829_v18, %v5843_v13  ;;  %v5880_v58 = vcombine.high %v5857_v6, %v5864_v19  ;;  %v16586_v14 = vld [vmem:[%s23285_s1 + $0x1a8] sm:$0xff]  }
 0x19d   : > { %7257 = vmatprep.mubr.bf16.mxu1 %v5779_v56  ;;  %9237 = vmatpush1.bf16.msra.mxu1 %v16583_v36  ;;  %v19849_v39 = vpop.f32.mrf.mxu0  ;;  %v5777_v56 = vcombine.low %v19835_v55, %v19838_v17  ;;  %v5915_v38 = vcombine.low %v23772_v29, %v23771_v1  ;;  %v23774_v36 = vld [vmem:[#allocation38_spill] sm:$0xff]  ;;  %v5882_v9 = vcombine.high %v5871_v21, %v5878_v51 }
 0x19e   : > { %23768 = vst [vmem:[#allocation33_spill] sm:$0xff] %v19849_v39  ;;  %9238 = vmatprep.subr.bf16.mxu1 %v23578_v23  ;;  %v5916_v12 = vcombine.low %v23774_v36, %v23773_v49  ;;  %v14784_v35 = vcombine.high %v23774_v36, %v23773_v49  ;;  %v19866_v30 = vrot.slane %v5812_v40, %v17062_v22  ;;  %v23779_v49 = vld [vmem:[#allocation51_spill] sm:$0xff]  ;;  %v23780_v1 = vld [vmem:[#allocation50_spill] sm:$0xff] }
 0x19f   : > { %v5333_v39 = vpop.f32.mrf.mxu0  ;;  %v19869_v29 = vrot.slane %v5814_v37, %v17062_v22  ;;  %v19872_v53 = vrot.slane %v5914_v5, %v17062_v22  ;;  %v19879_v18 = vrot.slane %v5915_v38, %v17062_v22  ;;  %v5896_v40 = vrot.slane %v5880_v58, %v17062_v22 }
 0x1a0   : > { %v19882_v13 = vrot.slane %v5916_v12, %v17062_v22  ;;  %v5910_v37 = vrot.slane %v5882_v9, %v17062_v22  ;;  %v5711_v58 = vcombine.high %v19769_v59, %v19772_v43  ;;  %v23775_v9 = vld [vmem:[#allocation45_spill] sm:$0xff]  ;;  %v5984_v0 = vcombine.low %v23780_v1, %v23779_v49 }
 0x1a1   : > { %9239 = vmatpush1.bf16.msra.mxu1 %v16585_v24  ;;  %v19885_v24 = vrot.slane %v14784_v35, %v17062_v22  ;;  %v5844_v12 = vcombine.low %v19866_v30, %v19869_v29  ;;  %v5881_v35 = vcombine.low %v5871_v21, %v5878_v51  ;;  %v5947_v36 = vcombine.high %v19872_v53, %v19879_v18  ;;  %v16584_v21 = vld [vmem:[%s23285_s1 + $0x238] sm:$0xff]   ;;  %v23778_v51 = vld [vmem:[#allocation47_spill] sm:$0xff] }
 0x1a2   : > { %9240 = vmatprep.subr.bf16.mxu1 %v23578_v23  ;;  %v19875_v39 = vpop.f32.mrf.mxu1  ;;  %v5913_v28 = vcombine.low %v5896_v40, %v5910_v37  ;;  %v16589_v37 = vld [vmem:[%s23285_s1 + $0x198] sm:$0xff]  }
 0x1a3   : > { %5439 = vmatmul.mubr.bf16.gmra.mxu0 %v19784_v27  ;;  %v16588_v27 = vld [vmem:[%s23285_s1 + $0x1a0] sm:$0xff]   ;;  %v19922_v40 = vrot.slane %v5881_v35, %v17062_v22 }
 0x1a4   : > { %7258 = vmatmul.mubr.bf16.gmra.mxu1 %v5777_v56  ;;  %15975 = vmatprep.mubr.msk.bf16.mxu0 %vm16892_vm0, %v23577_v54  ;;  %v15913_v5 = vpop.f32.mrf.mxu1  ;;  %v5879_v56 = vcombine.low %v5857_v6, %v5864_v19  ;;  %v23777_v6 = vld [vmem:[#allocation49_spill] sm:$0xff] }
 0x1a5   : > { %7265 = vmatprep.mubr.bf16.mxu1 %v5846_v25  ;;  %9241 = vmatpush1.bf16.msra.mxu1 %v16586_v14  ;;  %v5949_v25 = vcombine.high %v19882_v13, %v19885_v24  ;;  %v23776_v14 = vld [vmem:[#allocation41_spill] sm:$0xff]  ;;  %v5983_v60 = vcombine.low %v23778_v51, %v23777_v6  ;;  %v5963_v6 = vrot.slane %v5947_v36, %v17062_v22  ;;  %v23787_v51 = vld [vmem:[#allocation55_spill] sm:$0xff] }
 0x1a6   : > { %9242 = vmatprep.subr.bf16.mxu1 %v23578_v23  ;;  %v19897_v38 = vpop.f32.mrf.mxu1  ;;  %v5981_v5 = vcombine.low %v23776_v14, %v23775_v9  ;;  %v14785_v19 = vcombine.high %v23776_v14, %v23775_v9  ;;  %v19919_v43 = vrot.slane %v5879_v56, %v17062_v22  ;;  %v23788_v9 = vld [vmem:[#allocation58_spill] sm:$0xff]  ;;  %v23790_v14 = vld [vmem:[#allocation59_spill] sm:$0xff] }
 0x1a7   : > { %v6005_v35 = vrot.slane %v5983_v60, %v17062_v22  ;;  %v5948_v60 = vcombine.low %v19882_v13, %v19885_v24 }
 0x1a8   : > { %v15914_v46 = vpop.f32.mrf.mxu1  ;;  %v19931_v49 = vrot.slane %v5981_v5, %v17062_v22  ;;  %v5998_v56 = vrot.slane %v14785_v19, %v17062_v22  ;;  %v5778_v19 = vcombine.high %v19835_v55, %v19838_v17  ;;  %v16590_v55 = vld [vmem:[%s23285_s1 + $0x228] sm:$0xff]  }
 0x1a9   : > { %9243 = vmatpush1.bf16.msra.mxu1 %v16588_v27  ;;  %v19916_v59 = vpop.f32.mrf.mxu0  ;;  %v5977_v46 = vrot.slane %v5949_v25, %v17062_v22  ;;  %v5946_v25 = vcombine.low %v19872_v53, %v19879_v18  ;;  %v6050_v53 = vcombine.low %v23788_v9, %v23787_v51  ;;  %v23789_v18 = vld [vmem:[#allocation60_spill] sm:$0xff]  ;;  %v19973_v9 = vrot.slane %v5948_v60, %v17062_v22  ;;  %v23793_v51 = vld [vmem:[#allocation69_spill] sm:$0xff] }
 0x1aa   : > { %23781 = vst [vmem:[#allocation34_spill] sm:$0xff] %v19916_v59  ;;  %9244 = vmatprep.subr.bf16.mxu1 %v23578_v23  ;;  %v6012_v59 = vrot.slane %v5984_v0, %v17062_v22  ;;  %v23783_v0 = vld [vmem:[#allocation53_spill] sm:$0xff]  ;;  %v6051_v13 = vcombine.low %v23790_v14, %v23789_v18 }
 0x1ab   : > { %15976 = vmatmul.mubr.bf16.vlgmr.msra.gmra.mxu0 %v5711_v58  ;;  %v5338_v27 = vpop.f32.mrf.mxu0  ;;  %v23784_v58 = vld [vmem:[#allocation52_spill] sm:$0xff]  ;;  %v19970_v17 = vrot.slane %v5946_v25, %v17062_v22 }
 0x1ac   : > { %7266 = vmatmul.mubr.bf16.gmra.mxu1 %v5844_v12  ;;  %16060 = vmatpush3.bf16.msra.mxu0 %v16584_v21  ;;  %v16587_v12 = vld [vmem:[%s23285_s1 + $0x230] sm:$0xff]   ;;  %v6048_v5 = vcombine.low %v23784_v58, %v23783_v0  ;;  %v23785_v27 = vld [vmem:[#allocation57_spill] sm:$0xff]  ;;  %v6014_v58 = vcombine.high %v19931_v49, %v5998_v56  ;;  %v6016_v0 = vcombine.high %v6005_v35, %v6012_v59 }
 0x1ad   : > { %7273 = vmatprep.mubr.bf16.mxu1 %v5913_v28  ;;  %15979 = vmatprep.mubr.msk.bf16.mxu0 %vm16892_vm0, %v23577_v54  ;;  %v19942_v36 = vpop.f32.mrf.mxu0  ;;  %v5911_v28 = vcombine.low %v19919_v43, %v19922_v40  ;;  %v16591_v21 = vld [vmem:[%s23285_s1 + $0x190] sm:$0xff]   ;;  %v19987_v25 = vrot.slane %v6051_v13, %v17062_v22  ;;  %v6015_v13 = vcombine.low %v6005_v35, %v6012_v59 }
 0x1ae   : > { %16061 = vmatprep.subr.bf16.mxu0 %v23577_v54  ;;  %23782 = vst [vmem:[#allocation35_spill] sm:$0xff] %v19942_v36  ;;  %9245 = vmatpush1.bf16.msra.mxu1 %v16589_v37  ;;  %v23786_v36 = vld [vmem:[#allocation54_spill] sm:$0xff]  ;;  %v5980_v37 = vcombine.low %v5963_v6, %v5977_v46  ;;  %v6030_v60 = vrot.slane %v6014_v58, %v17062_v22  ;;  %v23791_v59 = vld [vmem:[#allocation64_spill] sm:$0xff] }
 0x1af   : > { %v6049_v1 = vcombine.low %v23786_v36, %v23785_v27  ;;  %9246 = vmatprep.subr.bf16.mxu1 %v23578_v23  ;;  %v5341_v24 = vpop.f32.mrf.mxu0  ;;  %v19976_v27 = vrot.slane %v6048_v5, %v17062_v22  ;;  %v6044_v5 = vrot.slane %v6016_v0, %v17062_v22  ;;  %v5845_v58 = vcombine.high %v19866_v30, %v19869_v29  ;;  %v23794_v36 = vld [vmem:[#allocation65_spill] sm:$0xff]  ;;  %v16594_v30 = vld [vmem:[%s23285_s1 + $0x180] sm:$0xff]  }
 0x1b0   : > { %16062 = vmatpush3.bf16.msra.mxu0 %v16587_v12  ;;  %v19984_v12 = vrot.slane %v6050_v53, %v17062_v22  ;;  %v6013_v53 = vcombine.low %v19931_v49, %v5998_v56  ;;  %v23792_v56 = vld [vmem:[#allocation63_spill] sm:$0xff]  ;;  %v6118_v42 = vcombine.low %v23794_v36, %v23793_v51  ;;  %v23799_v51 = vld [vmem:[#allocation72_spill] sm:$0xff] }
 0x1b1   : > { %16063 = vmatprep.subr.bf16.mxu0 %v23577_v54  ;;  %v19981_v46 = vrot.slane %v6049_v1, %v17062_v22  ;;  %v6047_v49 = vcombine.low %v6030_v60, %v6044_v5  ;;  %v6116_v35 = vcombine.low %v23792_v56, %v23791_v59 }
 0x1b2   : > { %9247 = vmatpush1.bf16.msra.mxu1 %v16591_v21  ;;  %v19978_v6 = vpop.f32.mrf.mxu1  ;;  %v16593_v21 = vld [vmem:[%s23285_s1 + $0x220] sm:$0xff]   ;;  %v20024_v29 = vrot.slane %v6013_v53, %v17062_v22  ;;  %v20042_v53 = vrot.slane %v6118_v42, %v17062_v22 }
 0x1b3   : > { %15980 = vmatmul.mubr.bf16.gmra.mxu0 %v5778_v19  ;;  %v5978_v19 = vcombine.low %v19970_v17, %v19973_v9  ;;  %9248 = vmatprep.subr.bf16.mxu1 %v23578_v23  ;;  %v6081_v24 = vcombine.high %v19976_v27, %v19981_v46  ;;  %v6080_v42 = vcombine.low %v19976_v27, %v19981_v46  ;;  %v23803_v27 = vld [vmem:[#allocation76_spill] sm:$0xff] }
 0x1b4   : > { %7274 = vmatmul.mubr.bf16.gmra.mxu1 %v5911_v28  ;;  %15983 = vmatprep.mubr.msk.bf16.mxu0 %vm16892_vm0, %v23577_v54  ;;  %v16592_v28 = vld [vmem:[%s23285_s1 + $0x188] sm:$0xff]   ;;  %v15917_v1 = vpop.f32.mrf.mxu1  ;;  %v6185_v46 = vcombine.low %v23803_v27, %v23802_v32 }
 0x1b5   : > { %7281 = vmatprep.mubr.bf16.mxu1 %v5980_v37  ;;  %16064 = vmatpush3.bf16.msra.mxu0 %v16590_v55  ;;  %v6083_v37 = vcombine.high %v19984_v12, %v19987_v25  ;;  %v14786_v55 = vcombine.high %v23790_v14, %v23789_v18  ;;  %v14787_v1 = vcombine.high %v23792_v56, %v23791_v59  ;;  %v23800_v59 = vld [vmem:[#allocation75_spill] sm:$0xff]  ;;  %v23801_v56 = vld [vmem:[#allocation74_spill] sm:$0xff] }
 0x1b6   : > { %v20003_v0 = vpop.f32.mrf.mxu1  ;;  %16065 = vmatprep.subr.bf16.mxu0 %v23577_v54  ;;  %9249 = vmatpush1.bf16.msra.mxu1 %v16592_v28  ;;  %v20027_v14 = vrot.slane %v6015_v13, %v17062_v22  ;;  %v6097_v60 = vrot.slane %v6081_v24, %v17062_v22  ;;  %v20036_v28 = vrot.slane %v6116_v35, %v17062_v22  ;;  %v16595_v24 = vld [vmem:[%s23285_s1 + $0x1f8] sm:$0xff]  }
 0x1b7   : > { %9250 = vmatprep.subr.bf16.mxu1 %v23578_v23  ;;  %v6111_v5 = vrot.slane %v6083_v37, %v17062_v22  ;;  %v6184_v18 = vcombine.low %v23801_v56, %v23800_v59 }
 0x1b8   : > { %v15918_v33 = vpop.f32.mrf.mxu1  ;;  %v6045_v37 = vcombine.low %v20024_v29, %v20027_v14 }
 0x1b9   : > { %16066 = vmatpush3.bf16.msra.mxu0 %v16593_v21  ;;  %v20033_v33 = vrot.slane %v14786_v55, %v17062_v22  ;;  %v20039_v21 = vrot.slane %v14787_v1, %v17062_v22  ;;  %v23796_v55 = vld [vmem:[#allocation71_spill] sm:$0xff] }
 0x1ba   : > { %9251 = vmatpush1.bf16.msra.mxu1 %v16594_v30  ;;  %v5912_v30 = vcombine.high %v19919_v43, %v19922_v40  ;;  %16067 = vmatprep.subr.bf16.mxu0 %v23577_v54  ;;  %v20082_v40 = vrot.slane %v6080_v42, %v17062_v22  ;;  %v20098_v42 = vrot.slane %v6185_v46, %v17062_v22 }
 0x1bb   : > { %15984 = vmatmul.mubr.bf16.gmra.mxu0 %v5845_v58  ;;  %v6082_v58 = vcombine.low %v19984_v12, %v19987_v25  ;;  %9252 = vmatprep.subr.bf16.mxu1 %v23578_v23  ;;  %v6114_v12 = vcombine.low %v6097_v60, %v6111_v5  ;;  %v6148_v25 = vcombine.high %v20033_v33, %v20036_v28 }
 0x1bc   : > { %7282 = vmatmul.mubr.bf16.gmra.mxu1 %v5978_v19  ;;  %15987 = vmatprep.mubr.msk.bf16.mxu0 %vm16892_vm0, %v23577_v54  ;;  %v16596_v19 = vld [vmem:[%s23285_s1 + $0x218] sm:$0xff]   ;;  %v20049_v13 = vpop.f32.mrf.mxu0  ;;  %v6147_v27 = vcombine.low %v20033_v33, %v20036_v28  ;;  %v6149_v46 = vcombine.low %v20039_v21, %v20042_v53 }
 0x1bd   : > { %7289 = vmatprep.mubr.bf16.mxu1 %v6047_v49  ;;  %23795 = vst [vmem:[#allocation36_spill] sm:$0xff] %v20049_v13  ;;  %v23797_v49 = vld [vmem:[#allocation70_spill] sm:$0xff]  ;;  %v23798_v13 = vld [vmem:[#allocation73_spill] sm:$0xff]  ;;  %16068 = vmatpush3.bf16.msra.mxu0 %v16596_v19  ;;  %v20085_v59 = vrot.slane %v6082_v58, %v17062_v22  ;;  %v6164_v58 = vrot.slane %v6148_v25, %v17062_v22 }
 0x1be   : > { %v6182_v35 = vcombine.low %v23797_v49, %v23796_v55  ;;  %v5346_v1 = vpop.f32.mrf.mxu0  ;;  %v6183_v36 = vcombine.low %v23799_v51, %v23798_v13  ;;  %v6150_v55 = vcombine.high %v20039_v21, %v20042_v53  ;;  %9253 = vmatpush2.bf16.msra.mxu1 %v16595_v24  ;;  %v16597_v51 = vld [vmem:[%s23285_s1 + $0x1f0] sm:$0xff]   ;;  %v20095_v24 = vrot.slane %v6184_v18, %v17062_v22  ;;  %v16598_v18 = vld [vmem:[%s23285_s1 + $0x1e8] sm:$0xff]   ;;  %v23807_v21 = vld [vmem:[#allocation82_spill] sm:$0xff] }
 0x1bf   : > { %9254 = vmatprep.subr.bf16.mxu1 %v23578_v23  ;;  %16069 = vmatprep.subr.bf16.mxu0 %v23577_v54  ;;  %v23808_v53 = vld [vmem:[#allocation81_spill] sm:$0xff] }
 0x1c0   : > { %v20076_v43 = vpop.f32.mrf.mxu0  ;;  %v20088_v60 = vrot.slane %v6182_v35, %v17062_v22  ;;  %v20092_v19 = vrot.slane %v6183_v36, %v17062_v22  ;;  %v6178_v35 = vrot.slane %v6150_v55, %v17062_v22  ;;  %v16599_v36 = vld [vmem:[%s23285_s1 + $0x210] sm:$0xff]   ;;  %v6217_v25 = vcombine.high %v20095_v24, %v20098_v42 }
 0x1c1   : > { %23804 = vst [vmem:[#allocation38_spill] sm:$0xff] %v20076_v43  ;;  %v5979_v55 = vcombine.high %v19970_v17, %v19973_v9  ;;  %v6251_v32 = vcombine.low %v23808_v53, %v23807_v21  ;;  %v14789_v13 = vcombine.high %v23808_v53, %v23807_v21  ;;  %16070 = vmatpush3.bf16.msra.mxu0 %v16599_v36  ;;  %v16600_v17 = vld [vmem:[%s23285_s1 + $0x1e0] sm:$0xff]   ;;  %v23813_v53 = vld [vmem:[#allocation91_spill] sm:$0xff] }
 0x1c2   : > { %v5349_v5 = vpop.f32.mrf.mxu0  ;;  %9255 = vmatpush2.bf16.msra.mxu1 %v16597_v51  ;;  %v23805_v51 = vld [vmem:[#allocation80_spill] sm:$0xff]  ;;  %v6181_v33 = vcombine.low %v6164_v58, %v6178_v35  ;;  %v20140_v9 = vrot.slane %v6147_v27, %v17062_v22  ;;  %v20143_v58 = vrot.slane %v6149_v46, %v17062_v22  ;;  %v16601_v46 = vld [vmem:[%s23285_s1 + $0x1d8] sm:$0xff]   ;;  %16071 = vmatprep.subr.bf16.mxu0 %v23577_v54 }
 0x1c3   : > { %15988 = vmatmul.mubr.bf16.gmra.mxu0 %v5912_v30  ;;  %v20100_v1 = vpop.f32.mrf.mxu1  ;;  %v6112_v30 = vcombine.low %v20082_v40, %v20085_v59  ;;  %9256 = vmatprep.subr.bf16.mxu1 %v23578_v23  ;;  %v23806_v5 = vld [vmem:[#allocation79_spill] sm:$0xff]  ;;  %v6280_v27 = vrot.slane %v14789_v13, %v17062_v22  ;;  %v6216_v13 = vcombine.low %v20095_v24, %v20098_v42 }
 0x1c4   : > { %7290 = vmatmul.mubr.bf16.gmra.mxu1 %v6045_v37  ;;  %15991 = vmatprep.mubr.msk.bf16.mxu0 %vm16892_vm0, %v23577_v54  ;;  %v14788_v28 = vcombine.high %v23806_v5, %v23805_v51 }
 0x1c5   : > { %7297 = vmatprep.mubr.bf16.mxu1 %v6114_v12  ;;  %v15921_v37 = vpop.f32.mrf.mxu1  ;;  %v6215_v12 = vcombine.high %v20088_v60, %v20092_v19 }
 0x1c6   : > { %v6249_v37 = vcombine.low %v23806_v5, %v23805_v51  ;;  %9257 = vmatpush2.bf16.msra.mxu1 %v16598_v18  ;;  %v6245_v5 = vrot.slane %v6217_v25, %v17062_v22  ;;  %v20152_v36 = vrot.slane %v14788_v28, %v17062_v22  ;;  %v20155_v18 = vrot.slane %v6251_v32, %v17062_v22  ;;  %v23809_v25 = vld [vmem:[#allocation89_spill] sm:$0xff]  ;;  %v23814_v51 = vld [vmem:[#allocation94_spill] sm:$0xff] }
 0x1c7   : > { %v20127_v43 = vpop.f32.mrf.mxu1  ;;  %9258 = vmatprep.subr.bf16.mxu1 %v23578_v23  ;;  %v6231_v35 = vrot.slane %v6215_v12, %v17062_v22  ;;  %v6179_v12 = vcombine.low %v20140_v9, %v20143_v58  ;;  %v6214_v32 = vcombine.low %v20088_v60, %v20092_v19  ;;  %v23811_v28 = vld [vmem:[#allocation93_spill] sm:$0xff]  ;;  %v6318_v49 = vcombine.low %v23814_v51, %v23813_v53 }
 0x1c8   : > { %v6319_v60 = vcombine.low %v23816_v44, %v23815_v63  ;;  %v6284_v42 = vcombine.high %v20155_v18, %v6280_v27  ;;  %v20196_v63 = vrot.slane %v6216_v13, %v17062_v22  ;;  %v23817_v53 = vld [vmem:[#allocation97_spill] sm:$0xff]  ;;  %v23818_v44 = vld [vmem:[#allocation96_spill] sm:$0xff] }
 0x1c9   : > { %v15922_v56 = vpop.f32.mrf.mxu1  ;;  %v6248_v19 = vcombine.low %v6231_v35, %v6245_v5 }
 0x1ca   : > { %v20149_v56 = vrot.slane %v6249_v37, %v17062_v22  ;;  %9259 = vmatpush2.bf16.msra.mxu1 %v16600_v17  ;;  %v23812_v17 = vld [vmem:[#allocation90_spill] sm:$0xff]  ;;  %v6312_v13 = vrot.slane %v6284_v42, %v17062_v22 }
 0x1cb   : > { %15992 = vmatmul.mubr.bf16.gmra.mxu0 %v5979_v55  ;;  %v23810_v55 = vld [vmem:[#allocation85_spill] sm:$0xff]  ;;  %9260 = vmatprep.subr.bf16.mxu1 %v23578_v23  ;;  %v6317_v21 = vcombine.low %v23812_v17, %v23811_v28  ;;  %v6383_v17 = vcombine.low %v23818_v44, %v23817_v53  ;;  %v16606_v44 = vld [vmem:[%s23285_s1 + $0x1c0] sm:$0xff]  }
 0x1cc   : > { %7298 = vmatmul.mubr.bf16.gmra.mxu1 %v6112_v30  ;;  %15995 = vmatprep.mubr.msk.bf16.mxu0 %vm16892_vm0, %v23577_v54  ;;  %v16602_v30 = vld [vmem:[%s23285_s1 + $0x208] sm:$0xff]   ;;  %v6316_v37 = vcombine.low %v23810_v55, %v23809_v25  ;;  %v6282_v24 = vcombine.high %v20149_v56, %v20152_v36  ;;  %v23828_v53 = vld [vmem:[#allocation114_spill] sm:$0xff] }
 0x1cd   : > { %7305 = vmatprep.mubr.bf16.mxu1 %v6181_v33  ;;  %v6046_v33 = vcombine.high %v20024_v29, %v20027_v14  ;;  %16072 = vmatpush3.bf16.msra.mxu0 %v16602_v30  ;;  %v16603_v29 = vld [vmem:[%s23285_s1 + $0x1d0] sm:$0xff]   ;;  %v20193_v14 = vrot.slane %v6214_v32, %v17062_v22  ;;  %v6333_v5 = vrot.slane %v6317_v21, %v17062_v22  ;;  %v16605_v21 = vld [vmem:[%s23285_s1 + $0x200] sm:$0xff]  }
 0x1ce   : > { %9261 = vmatpush2.bf16.msra.mxu1 %v16601_v46  ;;  %v20199_v51 = vrot.slane %v6316_v37, %v17062_v22  ;;  %v6340_v30 = vrot.slane %v6318_v49, %v17062_v22  ;;  %v6347_v46 = vrot.slane %v6319_v60, %v17062_v22  ;;  %v6298_v32 = vrot.slane %v6282_v24, %v17062_v22  ;;  %v16604_v49 = vld [vmem:[%s23285_s1 + $0x1c8] sm:$0xff]  }
 0x1cf   : > { %9262 = vmatprep.subr.bf16.mxu1 %v23578_v23  ;;  %v6283_v60 = vcombine.low %v20155_v18, %v6280_v27  ;;  %16073 = vmatprep.subr.bf16.mxu0 %v23577_v54  ;;  %v23821_v27 = vld [vmem:[#allocation102_spill] sm:$0xff] }
 0x1d0   : > { %v20187_v25 = vpop.f32.mrf.mxu0  ;;  %v6349_v42 = vcombine.high %v20199_v51, %v6333_v5  ;;  %v6315_v55 = vcombine.low %v6298_v32, %v6312_v13 }
 0x1d1   : > { %16074 = vmatpush3.bf16.msra.mxu0 %v16605_v21  ;;  %v6393_v21 = vrot.slane %v6383_v17, %v17062_v22 }
 0x1d2   : > { %v5354_v35 = vpop.f32.mrf.mxu0  ;;  %9263 = vmatpush2.bf16.msra.mxu1 %v16603_v29  ;;  %v6113_v29 = vcombine.high %v20082_v40, %v20085_v59  ;;  %v20246_v59 = vrot.slane %v6283_v60, %v17062_v22  ;;  %v6365_v13 = vrot.slane %v6349_v42, %v17062_v22  ;;  %v6348_v60 = vcombine.low %v20199_v51, %v6333_v5 }
 0x1d3   : > { %15996 = vmatmul.mubr.bf16.gmra.mxu0 %v6046_v33  ;;  %v6281_v33 = vcombine.low %v20149_v56, %v20152_v36  ;;  %9264 = vmatprep.subr.bf16.mxu1 %v23578_v23  ;;  %v6351_v35 = vcombine.high %v6340_v30, %v6347_v46  ;;  %v23820_v56 = vld [vmem:[#allocation98_spill] sm:$0xff] }
 0x1d4   : > { %7306 = vmatmul.mubr.bf16.gmra.mxu1 %v6179_v12  ;;  %15999 = vmatprep.mubr.msk.bf16.mxu0 %vm16892_vm0, %v23577_v54  ;;  %v20209_v37 = vpop.f32.mrf.mxu1  ;;  %v20211_v28 = vpop.f32.mrf.mxu0  ;;  %v6246_v12 = vcombine.low %v20193_v14, %v20196_v63  ;;  %v6384_v36 = vcombine.low %v23820_v56, %v23819_v11  ;;  %v14790_v18 = vcombine.high %v23820_v56, %v23819_v11 }
 0x1d5   : > { %7313 = vmatprep.mubr.bf16.mxu1 %v6248_v19  ;;  %v20243_v40 = vrot.slane %v6281_v33, %v17062_v22  ;;  %v6379_v56 = vrot.slane %v6351_v35, %v17062_v22  ;;  %v23823_v35 = vld [vmem:[#allocation109_spill] sm:$0xff] }
 0x1d6   : > { %v15925_v19 = vpop.f32.mrf.mxu1  ;;  %v5357_v24 = vpop.f32.mrf.mxu0  ;;  %9265 = vmatpush2.bf16.msra.mxu1 %v16604_v49  ;;  %v6400_v49 = vrot.slane %v6384_v36, %v17062_v22  ;;  %v6407_v33 = vrot.slane %v14790_v18, %v17062_v22  ;;  %v6180_v36 = vcombine.high %v20140_v9, %v20143_v58  ;;  %v23825_v18 = vld [vmem:[#allocation113_spill] sm:$0xff]  ;;  %v20280_v58 = vadd.f32 %v19875_v39, %v20187_v25 }
 0x1d7   : > { %v23822_v19 = vld [vmem:[#allocation101_spill] sm:$0xff]  ;;  %9266 = vmatprep.subr.bf16.mxu1 %v23578_v23  ;;  %v23827_v23 = vld [vmem:[#allocation111_spill] sm:$0xff]  ;;  %v6382_v5 = vcombine.low %v6365_v13, %v6379_v56  ;;  %v20294_v25 = vadd.f32 %v19897_v38, %v20211_v28 }
 0x1d8   : > { %v6386_v24 = vcombine.low %v23822_v19, %v23821_v27  ;;  %v20237_v7 = vpop.f32.mrf.mxu1  ;;  %v14791_v42 = vcombine.high %v23822_v19, %v23821_v27  ;;  %v6453_v51 = vcombine.low %v23828_v53, %v23827_v23  ;;  %23829 = vst [vmem:[#allocation51_spill] sm:$0xff] %v20280_v58  ;;  %v23834_v58 = vld [vmem:[#allocation117_spill] sm:$0xff]  ;;  %v23835_v23 = vld [vmem:[#allocation116_spill] sm:$0xff] }
 0x1d9   : > { %23830 = vst [vmem:[#allocation52_spill] sm:$0xff] %v20294_v25  ;;  %v23836_v25 = vld [vmem:[#allocation120_spill] sm:$0xff] }
 0x1da   : > { %v15926_v32 = vpop.f32.mrf.mxu1  ;;  %v6414_v11 = vrot.slane %v6386_v24, %v17062_v22  ;;  %9267 = vmatpush2.bf16.msra.mxu1 %v16606_v44  ;;  %v23826_v24 = vld [vmem:[#allocation110_spill] sm:$0xff]  ;;  %v20271_v44 = vrot.slane %v6348_v60, %v17062_v22  ;;  %v6460_v27 = vrot.slane %v14791_v42, %v17062_v22  ;;  %v6481_v13 = vrot.slane %v6453_v51, %v17062_v22 }
 0x1db   : > { %16000 = vmatmul.mubr.bf16.gmra.mxu0 %v6113_v29  ;;  %v23824_v29 = vld [vmem:[#allocation107_spill] sm:$0xff]  ;;  %v6452_v32 = vcombine.low %v23826_v24, %v23825_v18  ;;  %v6518_v24 = vcombine.low %v23835_v23, %v23834_v58 }
 0x1dc   : > { %7314 = vmatmul.mubr.bf16.gmra.mxu1 %v6246_v12  ;;  %16003 = vmatprep.mubr.msk.bf16.mxu0 %vm16892_vm0, %v23577_v54  ;;  %v6350_v12 = vcombine.low %v6340_v30, %v6347_v46  ;;  %v6451_v17 = vcombine.low %v23824_v29, %v23823_v35  ;;  %v6416_v30 = vcombine.high %v6393_v21, %v6400_v49 }
 0x1dd   : > { %7321 = vmatprep.mubr.bf16.mxu1 %v6315_v55  ;;  %v6313_v55 = vcombine.low %v20243_v40, %v20246_v59  ;;  %v6418_v46 = vcombine.high %v6407_v33, %v6414_v11  ;;  %v6474_v53 = vrot.slane %v6452_v32, %v17062_v22 }
 0x1de   : > { %v20274_v35 = vrot.slane %v6350_v12, %v17062_v22  ;;  %v6467_v9 = vrot.slane %v6451_v17, %v17062_v22  ;;  %v6432_v60 = vrot.slane %v6416_v30, %v17062_v22  ;;  %v23832_v30 = vld [vmem:[#allocation115_spill] sm:$0xff] }
 0x1df   : > { %v6446_v12 = vrot.slane %v6418_v46, %v17062_v22  ;;  %v6485_v51 = vcombine.high %v6474_v53, %v6481_v13  ;;  %v23833_v46 = vld [vmem:[#allocation112_spill] sm:$0xff] }
 0x1e0   : > { %v6380_v42 = vcombine.low %v20271_v44, %v20274_v35  ;;  %v6483_v18 = vcombine.high %v6460_v27, %v6467_v9 }
 0x1e1   : > { %v5360_v29 = vpop.f32.mrf.mxu0  ;;  %v6449_v28 = vcombine.low %v6432_v60, %v6446_v12 }
 0x1e2   : > { %v20297_v32 = vadd.f32 %v19978_v6, %v5360_v29  ;;  %v6499_v23 = vrot.slane %v6483_v18, %v17062_v22  ;;  %v6534_v29 = vrot.slane %v6518_v24, %v17062_v22  ;;  %v6314_v24 = vcombine.high %v20243_v40, %v20246_v59 }
 0x1e3   : > { %16004 = vmatmul.mubr.bf16.gmra.mxu0 %v6180_v36  ;;  %v5362_v56 = vpop.f32.mrf.mxu0  ;;  %v6417_v36 = vcombine.low %v6407_v33, %v6414_v11 }
 0x1e4   : > { %7322 = vmatmul.mubr.bf16.gmra.mxu1 %v6313_v55  ;;  %16007 = vmatprep.mubr.msk.bf16.mxu0 %vm16892_vm0, %v23577_v54  ;;  %v6415_v55 = vcombine.low %v6393_v21, %v6400_v49  ;;  %23831 = vst [vmem:[#allocation57_spill] sm:$0xff] %v20297_v32  ;;  %v6517_v56 = vcombine.low %v23833_v46, %v23832_v30  ;;  %v23837_v21 = vld [vmem:[#allocation119_spill] sm:$0xff] }
 0x1e5   : > { %7329 = vmatprep.mubr.bf16.mxu1 %v6382_v5  ;;  %v20290_v39 = vpop.f32.mrf.mxu1  ;;  %v5363_v17 = vpop.f32.mrf.mxu0  ;;  %v6247_v5 = vcombine.high %v20193_v14, %v20196_v63  ;;  %v6519_v11 = vcombine.low %v23837_v21, %v23836_v25  ;;  %v14792_v6 = vcombine.high %v23837_v21, %v23836_v25  ;;  %v20318_v63 = vrot.slane %v6417_v36, %v17062_v22  ;;  %v23841_v21 = vld [vmem:[#allocation127_spill] sm:$0xff] }
 0x1e6   : > { %v20310_v49 = vadd.f32 %v20003_v0, %v5363_v17  ;;  %v20315_v14 = vrot.slane %v6415_v55, %v17062_v22  ;;  %v6513_v0 = vrot.slane %v6485_v51, %v17062_v22  ;;  %v6482_v55 = vcombine.low %v6460_v27, %v6467_v9 }
 0x1e7   : > { %v15929_v19 = vpop.f32.mrf.mxu1  ;;  %v5365_v38 = vpop.f32.mrf.mxu0  ;;  %v6541_v12 = vrot.slane %v6519_v11, %v17062_v22  ;;  %v6548_v17 = vrot.slane %v14792_v6, %v17062_v22  ;;  %v6484_v36 = vcombine.low %v6474_v53, %v6481_v13  ;;  %v23842_v6 = vld [vmem:[#allocation131_spill] sm:$0xff] }
 0x1e8   : > { %23838 = vst [vmem:[#allocation58_spill] sm:$0xff] %v20310_v49  ;;  %v6527_v19 = vrot.slane %v6517_v56, %v17062_v22  ;;  %v6516_v56 = vcombine.low %v6499_v23, %v6513_v0  ;;  %v20341_v9 = vrot.slane %v6482_v55, %v17062_v22 }
 0x1e9   : > { %v20312_v33 = vpop.f32.mrf.mxu1  ;;  %v6552_v38 = vcombine.high %v6541_v12, %v6548_v17  ;;  %v20344_v40 = vrot.slane %v6484_v36, %v17062_v22 }
 0x1ea   : > { %v6550_v18 = vcombine.high %v6527_v19, %v6534_v29 }
 0x1eb   : > { %16008 = vmatmul.mubr.bf16.gmra.mxu0 %v6247_v5  ;;  %v15930_v60 = vpop.f32.mrf.mxu1  ;;  %v23839_v5 = vld [vmem:[#allocation121_spill] sm:$0xff] }
 0x1ec   : > { %7330 = vmatmul.mubr.bf16.gmra.mxu1 %v6380_v42  ;;  %16011 = vmatprep.mubr.msk.bf16.mxu0 %vm16892_vm0, %v23577_v54  ;;  %v6447_v42 = vcombine.low %v20315_v14, %v20318_v63  ;;  %v6584_v30 = vcombine.low %v23839_v5, %v18965_v8  ;;  %v14793_v51 = vcombine.high %v23839_v5, %v18965_v8  ;;  %v23843_v60 = vld [vmem:[#allocation129_spill] sm:$0xff] }
 0x1ed   : > { %7337 = vmatprep.mubr.bf16.mxu1 %v6449_v28  ;;  %v23840_v28 = vld [vmem:[#allocation128_spill] sm:$0xff]  ;;  %v6587_v49 = vcombine.low %v23843_v60, %v23842_v6  ;;  %v6566_v53 = vrot.slane %v6550_v18, %v17062_v22  ;;  %v6580_v6 = vrot.slane %v6552_v38, %v17062_v22  ;;  %v6549_v18 = vcombine.low %v6527_v19, %v6534_v29  ;;  %v23850_v19 = vld [vmem:[#allocation137_spill] sm:$0xff] }
 0x1ee   : > { %v6586_v11 = vcombine.low %v23841_v21, %v23840_v28  ;;  %v6594_v13 = vrot.slane %v6584_v30, %v17062_v22  ;;  %v6601_v23 = vrot.slane %v14793_v51, %v17062_v22  ;;  %v6381_v38 = vcombine.high %v20271_v44, %v20274_v35  ;;  %v23851_v29 = vld [vmem:[#allocation140_spill] sm:$0xff]  ;;  %v23853_v8 = vld [vmem:[#allocation141_spill] sm:$0xff] }
 0x1ef   : > { %v6615_v36 = vrot.slane %v6587_v49, %v17062_v22  ;;  %v23847_v49 = vld [vmem:[#allocation132_spill] sm:$0xff]  ;;  %v6583_v60 = vcombine.low %v6566_v53, %v6580_v6 }
 0x1f0   : > { %v6608_v55 = vrot.slane %v6586_v11, %v17062_v22  ;;  %v23846_v11 = vld [vmem:[#allocation134_spill] sm:$0xff] }
 0x1f1   : > { %v5368_v27 = vpop.f32.mrf.mxu0 }
 0x1f2   : > { %v20347_v59 = vadd.f32 %v20100_v1, %v5368_v27  ;;  %v6651_v27 = vcombine.low %v23847_v49, %v23846_v11  ;;  %v6619_v21 = vcombine.high %v6608_v55, %v6615_v36 }
 0x1f3   : > { %16012 = vmatmul.mubr.bf16.gmra.mxu0 %v6314_v24  ;;  %v5370_v0 = vpop.f32.mrf.mxu0  ;;  %v6551_v24 = vcombine.low %v6541_v12, %v6548_v17  ;;  %v6653_v12 = vcombine.low %v23851_v29, %v23850_v19  ;;  %v23852_v17 = vld [vmem:[#allocation142_spill] sm:$0xff]  ;;  %v6616_v29 = vcombine.low %v6594_v13, %v6601_v23  ;;  %v23866_v19 = vld [vmem:[#allocation171_spill] sm:$0xff] }
 0x1f4   : > { %23844 = vst [vmem:[#allocation59_spill] sm:$0xff] %v20347_v59  ;;  %7338 = vmatmul.mubr.bf16.gmra.mxu1 %v6447_v42  ;;  %16015 = vmatprep.mubr.msk.bf16.mxu0 %vm16892_vm0, %v23577_v54  ;;  %v6514_v42 = vcombine.low %v20341_v9, %v20344_v40  ;;  %v23848_v0 = vld [vmem:[#allocation139_spill] sm:$0xff]  ;;  %v6661_v53 = vrot.slane %v6651_v27, %v17062_v22  ;;  %v23855_v27 = vld [vmem:[#allocation149_spill] sm:$0xff] }
 0x1f5   : > { %7345 = vmatprep.mubr.bf16.mxu1 %v6516_v56  ;;  %v5371_v1 = vpop.f32.mrf.mxu0  ;;  %v6617_v56 = vcombine.high %v6594_v13, %v6601_v23  ;;  %v23849_v59 = vld [vmem:[#allocation135_spill] sm:$0xff]  ;;  %v20378_v35 = vrot.slane %v6551_v24, %v17062_v22  ;;  %v6647_v49 = vrot.slane %v6619_v21, %v17062_v22  ;;  %v14794_v21 = vcombine.high %v23853_v8, %v23852_v17 }
 0x1f6   : > { %v20359_v30 = vpop.f32.mrf.mxu1  ;;  %v20362_v51 = vadd.f32 %v20127_v43, %v5371_v1  ;;  %v6652_v32 = vcombine.low %v23849_v59, %v23848_v0  ;;  %v6654_v43 = vcombine.low %v23853_v8, %v23852_v17  ;;  %v6675_v0 = vrot.slane %v6653_v12, %v17062_v22  ;;  %v23856_v13 = vld [vmem:[#allocation151_spill] sm:$0xff] }
 0x1f7   : > { %v5373_v28 = vpop.f32.mrf.mxu0  ;;  %v6721_v23 = vcombine.low %v23856_v13, %v19250_v45  ;;  %v23864_v13 = vld [vmem:[#allocation166_spill] sm:$0xff]  ;;  %v23865_v17 = vld [vmem:[#allocation167_spill] sm:$0xff] }
 0x1f8   : > { %23845 = vst [vmem:[#allocation71_spill] sm:$0xff] %v20362_v51  ;;  %v15933_v1 = vpop.f32.mrf.mxu1  ;;  %v20375_v51 = vrot.slane %v6549_v18, %v17062_v22  ;;  %v6633_v28 = vrot.slane %v6617_v56, %v17062_v22  ;;  %v6668_v6 = vrot.slane %v6652_v32, %v17062_v22  ;;  %v6682_v18 = vrot.slane %v6654_v43, %v17062_v22 }
 0x1f9   : > { %v6448_v32 = vcombine.high %v20315_v14, %v20318_v63  ;;  %v6788_v11 = vcombine.low %v23866_v19, %v23865_v17  ;;  %v23870_v17 = vld [vmem:[#allocation179_spill] sm:$0xff] }
 0x1fa   : > { %v20380_v44 = vpop.f32.mrf.mxu1  ;;  %v6581_v56 = vcombine.low %v20375_v51, %v20378_v35  ;;  %v6650_v43 = vcombine.low %v6633_v28, %v6647_v49  ;;  %v6686_v1 = vcombine.high %v6675_v0, %v6682_v18  ;;  %v6728_v28 = vrot.slane %v14794_v21, %v17062_v22  ;;  %v23858_v21 = vld [vmem:[#allocation161_spill] sm:$0xff] }
 0x1fb   : > { %16016 = vmatmul.mubr.bf16.gmra.mxu0 %v6381_v38  ;;  %v6684_v38 = vcombine.high %v6661_v53, %v6668_v6 }
 0x1fc   : > { %7346 = vmatmul.mubr.bf16.gmra.mxu1 %v6514_v42  ;;  %16019 = vmatprep.mubr.msk.bf16.mxu0 %vm16892_vm0, %v23577_v54  ;;  %v15934_v24 = vpop.f32.mrf.mxu1  ;;  %v6618_v42 = vcombine.low %v6608_v55, %v6615_v36  ;;  %v20403_v55 = vrot.slane %v6616_v29, %v17062_v22  ;;  %v6714_v29 = vrot.slane %v6686_v1, %v17062_v22  ;;  %v23861_v1 = vld [vmem:[#allocation165_spill] sm:$0xff] }
 0x1fd   : > { %7353 = vmatprep.mubr.bf16.mxu1 %v6583_v60  ;;  %v23854_v60 = vld [vmem:[#allocation150_spill] sm:$0xff]  ;;  %v6700_v63 = vrot.slane %v6684_v38, %v17062_v22  ;;  %v6683_v38 = vcombine.low %v6661_v53, %v6668_v6 }
 0x1fe   : > { %v6719_v12 = vcombine.low %v23855_v27, %v23854_v60  ;;  %v14795_v24 = vcombine.high %v23855_v27, %v23854_v60  ;;  %v20406_v36 = vrot.slane %v6618_v42, %v17062_v22  ;;  %v6749_v42 = vrot.slane %v6721_v23, %v17062_v22 }
 0x1ff   : > { %v6717_v6 = vcombine.low %v6700_v63, %v6714_v29  ;;  %v6816_v63 = vrot.slane %v6788_v11, %v17062_v22  ;;  %v6582_v11 = vcombine.high %v20375_v51, %v20378_v35 }
 0x200   : > { %v6735_v49 = vrot.slane %v6719_v12, %v17062_v22  ;;  %v6742_v45 = vrot.slane %v14795_v24, %v17062_v22  ;;  %v23862_v24 = vld [vmem:[#allocation162_spill] sm:$0xff] }
 0x201   : > { %v5376_v14 = vpop.f32.mrf.mxu0  ;;  %v6786_v23 = vcombine.low %v23862_v24, %v23861_v1 }
 0x202   : > { %v20409_v8 = vadd.f32 %v20209_v37, %v5376_v14  ;;  %v6648_v37 = vcombine.low %v20403_v55, %v20406_v36  ;;  %v23859_v14 = vld [vmem:[#allocation153_spill] sm:$0xff] }
 0x203   : > { %16020 = vmatmul.mubr.bf16.gmra.mxu0 %v6448_v32  ;;  %v5378_v60 = vpop.f32.mrf.mxu0  ;;  %v6685_v32 = vcombine.low %v6675_v0, %v6682_v18  ;;  %v6785_v12 = vcombine.low %v23859_v14, %v23858_v21  ;;  %v6751_v0 = vcombine.high %v6728_v28, %v6735_v49  ;;  %v6753_v18 = vcombine.high %v6742_v45, %v6749_v42 }
 0x204   : > { %23857 = vst [vmem:[#allocation72_spill] sm:$0xff] %v20409_v8  ;;  %7354 = vmatmul.mubr.bf16.gmra.mxu1 %v6581_v56  ;;  %16023 = vmatprep.mubr.msk.bf16.mxu0 %vm16892_vm0, %v23577_v54  ;;  %v23863_v8 = vld [vmem:[#allocation170_spill] sm:$0xff] }
 0x205   : > { %7361 = vmatprep.mubr.bf16.mxu1 %v6650_v43  ;;  %v5379_v56 = vpop.f32.mrf.mxu0  ;;  %v6515_v43 = vcombine.high %v20341_v9, %v20344_v40  ;;  %v6787_v27 = vcombine.low %v23864_v13, %v23863_v8  ;;  %v20440_v9 = vrot.slane %v6685_v32, %v17062_v22  ;;  %v6795_v40 = vrot.slane %v6785_v12, %v17062_v22 }
 0x206   : > { %v20424_v60 = vadd.f32 %v20237_v7, %v5379_v56  ;;  %v20437_v7 = vrot.slane %v6683_v38, %v17062_v22  ;;  %v6802_v8 = vrot.slane %v6786_v23, %v17062_v22  ;;  %v6767_v29 = vrot.slane %v6751_v0, %v17062_v22 }
 0x207   : > { %v5381_v53 = vpop.f32.mrf.mxu0  ;;  %v6809_v19 = vrot.slane %v6787_v27, %v17062_v22  ;;  %v6781_v38 = vrot.slane %v6753_v18, %v17062_v22  ;;  %v6750_v12 = vcombine.low %v6728_v28, %v6735_v49 }
 0x208   : > { %23860 = vst [vmem:[#allocation75_spill] sm:$0xff] %v20424_v60  ;;  %v20434_v21 = vpop.f32.mrf.mxu1  ;;  %v6818_v23 = vcombine.high %v6795_v40, %v6802_v8  ;;  %v23867_v53 = vld [vmem:[#allocation178_spill] sm:$0xff]  ;;  %v23869_v60 = vld [vmem:[#allocation180_spill] sm:$0xff] }
 0x209   : > { %v6820_v27 = vcombine.high %v6809_v19, %v6816_v63  ;;  %v6784_v18 = vcombine.low %v6767_v29, %v6781_v38  ;;  %v6854_v1 = vcombine.low %v23870_v17, %v23869_v60  ;;  %v14797_v28 = vcombine.high %v23870_v17, %v23869_v60 }
 0x20a   : > { %v15937_v56 = vpop.f32.mrf.mxu1  ;;  %v6834_v51 = vrot.slane %v6818_v23, %v17062_v22  ;;  %v6817_v23 = vcombine.low %v6795_v40, %v6802_v8 }
 0x20b   : > { %16024 = vmatmul.mubr.bf16.gmra.mxu0 %v6515_v43  ;;  %v6752_v43 = vcombine.low %v6742_v45, %v6749_v42  ;;  %v20465_v45 = vrot.slane %v6750_v12, %v17062_v22  ;;  %v6848_v35 = vrot.slane %v6820_v27, %v17062_v22  ;;  %v6876_v38 = vrot.slane %v6854_v1, %v17062_v22 }
 0x20c   : > { %7362 = vmatmul.mubr.bf16.gmra.mxu1 %v6648_v37  ;;  %16027 = vmatprep.mubr.msk.bf16.mxu0 %vm16892_vm0, %v23577_v54  ;;  %v20450_v32 = vpop.f32.mrf.mxu1  ;;  %v6715_v37 = vcombine.low %v20437_v7, %v20440_v9  ;;  %v6819_v27 = vcombine.low %v6809_v19, %v6816_v63  ;;  %v6649_v1 = vcombine.high %v20403_v55, %v20406_v36 }
 0x20d   : > { %7369 = vmatprep.mubr.bf16.mxu1 %v6717_v6  ;;  %v23868_v6 = vld [vmem:[#allocation177_spill] sm:$0xff]  ;;  %v20468_v49 = vrot.slane %v6752_v43, %v17062_v22  ;;  %v20499_v55 = vrot.slane %v6817_v23, %v17062_v22 }
 0x20e   : > { %v15938_v24 = vpop.f32.mrf.mxu1  ;;  %v6852_v0 = vcombine.low %v23868_v6, %v23867_v53  ;;  %v14796_v56 = vcombine.high %v23868_v6, %v23867_v53 }
 0x20f   : > { %v6883_v24 = vrot.slane %v14797_v28, %v17062_v22  ;;  %v6782_v43 = vcombine.low %v20465_v45, %v20468_v49 }
 0x210   : > { %v6862_v42 = vrot.slane %v6852_v0, %v17062_v22  ;;  %v6869_v29 = vrot.slane %v14796_v56, %v17062_v22  ;;  %v6920_v0 = vcombine.low %v19621_v26, %v19637_v47  ;;  %v6851_v56 = vcombine.low %v6834_v51, %v6848_v35 }
 0x211   : > { %v6887_v40 = vcombine.high %v6876_v38, %v6883_v24  ;;  %v20502_v47 = vrot.slane %v6819_v27, %v17062_v22 }
 0x212   : > { %v6885_v28 = vcombine.high %v6862_v42, %v6869_v29 }
 0x213   : > { %16028 = vmatmul.mubr.bf16.gmra.mxu0 %v6582_v11  ;;  %v6919_v11 = vcombine.low %v19509_v20, %v19618_v10  ;;  %v6915_v23 = vrot.slane %v6887_v40, %v17062_v22 }
 0x214   : > { %7370 = vmatmul.mubr.bf16.gmra.mxu1 %v6715_v37  ;;  %16031 = vmatprep.mubr.msk.bf16.mxu0 %vm16892_vm0, %v23577_v54 }
 0x215   : > { %7377 = vmatprep.mubr.bf16.mxu1 %v6784_v18  ;;  %v6921_v18 = vcombine.low %v19641_v31, %v19626_v52  ;;  %v6929_v31 = vrot.slane %v6919_v11, %v17062_v22  ;;  %v6884_v11 = vcombine.low %v6862_v42, %v6869_v29 }
 0x216   : > { %v5384_v12 = vpop.f32.mrf.mxu0 }
 0x217   : > { %v20479_v37 = vadd.f32 %v20290_v39, %v5384_v12  ;;  %v6922_v39 = vcombine.low %v19629_v34, %v19646_v41  ;;  %v6936_v41 = vrot.slane %v6920_v0, %v17062_v22  ;;  %v6943_v51 = vrot.slane %v6921_v18, %v17062_v22 }
 0x218   : > { %v5386_v6 = vpop.f32.mrf.mxu0 }
 0x219   : > { %v20493_v8 = vpop.f32.mrf.mxu1  ;;  %v6950_v35 = vrot.slane %v6922_v39, %v17062_v22  ;;  %v6886_v6 = vcombine.low %v6876_v38, %v6883_v24  ;;  %v6952_v0 = vcombine.high %v6929_v31, %v6936_v41  ;;  %v6716_v39 = vcombine.high %v20437_v7, %v20440_v9 }
 0x21a   : > { %v5387_v19 = vpop.f32.mrf.mxu0  ;;  %v6986_v38 = vcombine.low %v19650_v57, %v19730_v50  ;;  %v6783_v57 = vcombine.high %v20465_v45, %v20468_v49 }
 0x21b   : > { %v20496_v63 = vadd.f32 %v20312_v33, %v5387_v19  ;;  %v15941_v36 = vpop.f32.mrf.mxu1  ;;  %16032 = vmatmul.mubr.bf16.gmra.mxu0 %v6649_v1  ;;  %v6901_v33 = vrot.slane %v6885_v28, %v17062_v22  ;;  %v6849_v1 = vcombine.low %v20499_v55, %v20502_v47  ;;  %v6954_v18 = vcombine.high %v6943_v51, %v6950_v35 }
 0x21c   : > { %v5389_v12 = vpop.f32.mrf.mxu0  ;;  %7378 = vmatmul.mubr.bf16.gmra.mxu1 %v6782_v43  ;;  %16035 = vmatprep.mubr.msk.bf16.mxu0 %vm16892_vm0, %v23577_v54  ;;  %v20519_v28 = vrot.slane %v6884_v11, %v17062_v22  ;;  %v20522_v40 = vrot.slane %v6886_v6, %v17062_v22  ;;  %v6968_v42 = vrot.slane %v6952_v0, %v17062_v22  ;;  %v23871_v6 = vld [vmem:[#allocation10_spill] sm:$0xff]  ;;  %v23873_v0 = vld [vmem:[#allocation12_spill] sm:$0xff] }
 0x21d   : > { %7385 = vmatprep.mubr.bf16.mxu1 %v6851_v56  ;;  %v20512_v27 = vpop.f32.mrf.mxu1  ;;  %v6918_v56 = vcombine.low %v6901_v33, %v6915_v23  ;;  %v6982_v29 = vrot.slane %v6954_v18, %v17062_v22  ;;  %v6951_v36 = vcombine.low %v6929_v31, %v6936_v41  ;;  %v6953_v12 = vcombine.low %v6943_v51, %v6950_v35  ;;  %v23874_v31 = vld [vmem:[#allocation11_spill] sm:$0xff]  ;;  %v23875_v51 = vld [vmem:[#allocation13_spill] sm:$0xff] }
 0x21e   : > { %v6916_v19 = vcombine.low %v20519_v28, %v20522_v40  ;;  %v6993_v23 = vrot.slane %v6986_v38, %v17062_v22  ;;  %v7666_v18 = vcombine.low %v23873_v0, %v17147_v61  ;;  %v7667_v41 = vcombine.low %v17159_v3, %v23874_v31 }
 0x21f   : > { %v15942_v43 = vpop.f32.mrf.mxu1  ;;  %v6985_v33 = vcombine.low %v6968_v42, %v6982_v29  ;;  %v7668_v35 = vcombine.low %v23875_v51, %v17162_v4  ;;  %v20552_v45 = vrot.slane %v6951_v36, %v17062_v22  ;;  %v6850_v38 = vcombine.high %v20499_v55, %v20502_v47 }
 0x220   : > { %v7665_v43 = vcombine.low %v17150_v62, %v23871_v6  ;;  %v20555_v62 = vrot.slane %v6953_v12, %v17062_v22  ;;  %v7682_v3 = vrot.slane %v7666_v18, %v17062_v22  ;;  %v7689_v4 = vrot.slane %v7667_v41, %v17062_v22 }
 0x221   : > { %v7696_v42 = vrot.slane %v7668_v35, %v17062_v22  ;;  %v14822_v36 = vcombine.high %v17249_v48, %v17257_v16  ;;  %v7734_v12 = vcombine.low %v17254_v15, %v23751_v2  ;;  %v20590_v18 = vrot.slane %v6993_v23, %v17062_v22 }
 0x222   : > { %v6917_v35 = vcombine.high %v20519_v28, %v20522_v40 }
 0x223   : > { %16036 = vmatmul.mubr.bf16.gmra.mxu0 %v6716_v39  ;;  %v7700_v6 = vcombine.high %v7689_v4, %v7696_v42  ;;  %v7749_v47 = vrot.slane %v14822_v36, %v17062_v22  ;;  %v7699_v51 = vcombine.low %v7689_v4, %v7696_v42  ;;  %v23881_v36 = vld [vmem:[#allocation19_spill] sm:$0xff] }
 0x224   : > { %7386 = vmatmul.mubr.bf16.gmra.mxu1 %v6849_v1  ;;  %v5392_v24 = vpop.f32.mrf.mxu0  ;;  %16039 = vmatprep.mubr.msk.bf16.mxu0 %vm16892_vm0, %v23577_v54 }
 0x225   : > { %7393 = vmatprep.mubr.bf16.mxu1 %v6918_v56  ;;  %v20531_v7 = vadd.f32 %v20359_v30, %v5392_v24  ;;  %v7675_v56 = vrot.slane %v7665_v43, %v17062_v22  ;;  %v23876_v24 = vld [vmem:[#allocation15_spill] sm:$0xff]  ;;  %v7756_v43 = vrot.slane %v7734_v12, %v17062_v22  ;;  %v23882_v12 = vld [vmem:[#allocation21_spill] sm:$0xff]  ;;  %v20609_v4 = vrot.slane %v7699_v51, %v17062_v22 }
 0x226   : > { %v5394_v9 = vpop.f32.mrf.mxu0 }
 0x227   : > { %v7732_v9 = vcombine.low %v23876_v24, %v17257_v16  ;;  %v7697_v41 = vcombine.low %v7675_v56, %v7682_v3 }
 0x228   : > { %v5395_v11 = vpop.f32.mrf.mxu0 }
 0x229   : > { %v20540_v1 = vpop.f32.mrf.mxu1  ;;  %v20543_v30 = vadd.f32 %v20380_v44, %v5395_v11  ;;  %v6994_v44 = vcombine.high %v6993_v23, %v6993_v23  ;;  %v7698_v11 = vcombine.high %v7675_v56, %v7682_v3  ;;  %v7742_v55 = vrot.slane %v7732_v9, %v17062_v22 }
 0x22a   : > { %v5397_v39 = vpop.f32.mrf.mxu0  ;;  %v20606_v40 = vrot.slane %v7697_v41, %v17062_v22 }
 0x22b   : > { %23872 = vst [vmem:[#allocation76_spill] sm:$0xff] %v20543_v30  ;;  %v15945_v49 = vpop.f32.mrf.mxu1  ;;  %16040 = vmatmul.mubr.bf16.gmra.mxu0 %v6783_v57  ;;  %v7008_v57 = vrot.slane %v6994_v44, %v17062_v22  ;;  %v7765_v39 = vcombine.high %v7742_v55, %v7749_v47  ;;  %v23878_v44 = vld [vmem:[#allocation20_spill] sm:$0xff] }
 0x22c   : > { %7394 = vmatmul.mubr.bf16.gmra.mxu1 %v6916_v19  ;;  %16043 = vmatprep.mubr.msk.bf16.mxu0 %vm16892_vm0, %v23577_v54  ;;  %v6983_v19 = vcombine.low %v20552_v45, %v20555_v62 }
 0x22d   : > { %7401 = vmatprep.mubr.bf16.mxu1 %v6985_v33  ;;  %v20558_v61 = vpop.f32.mrf.mxu1  ;;  %v14823_v33 = vcombine.high %v17254_v15, %v23751_v2  ;;  %v7714_v15 = vrot.slane %v7698_v11, %v17062_v22  ;;  %v7728_v2 = vrot.slane %v7700_v6, %v17062_v22  ;;  %v23885_v11 = vld [vmem:[#allocation22_spill] sm:$0xff]  ;;  %v7781_v6 = vrot.slane %v7765_v39, %v17062_v22 }
 0x22e   : > { %v6984_v39 = vcombine.high %v20552_v45, %v20555_v62 }
 0x22f   : > { %v15946_v29 = vpop.f32.mrf.mxu1  ;;  %v7763_v48 = vrot.slane %v14823_v33, %v17062_v22  ;;  %v7731_v9 = vcombine.low %v7714_v15, %v7728_v2  ;;  %v23883_v33 = vld [vmem:[#allocation24_spill] sm:$0xff] }
 0x230   : > { %v23879_v29 = vld [vmem:[#allocation17_spill] sm:$0xff]  ;;  %v7801_v23 = vcombine.low %v23883_v33, %v23882_v12  ;;  %v23891_v12 = vld [vmem:[#allocation28_spill] sm:$0xff] }
 0x231   : > { %v7767_v49 = vcombine.high %v7756_v43, %v7763_v48 }
 0x233   : > { %16044 = vmatmul.mubr.bf16.gmra.mxu0 %v6850_v38  ;;  %v7799_v38 = vcombine.low %v23879_v29, %v23878_v44  ;;  %v7764_v44 = vcombine.low %v7742_v55, %v7749_v47  ;;  %v7766_v29 = vcombine.low %v7756_v43, %v7763_v48 }
 0x234   : > { %7402 = vmatmul.mubr.bf16.gmra.mxu1 %v6983_v19  ;;  %16047 = vmatprep.mubr.msk.bf16.mxu0 %vm16892_vm0, %v23577_v54  ;;  %v23880_v19 = vld [vmem:[#allocation23_spill] sm:$0xff] }
 0x235   : > { %7409 = vmatprep.mubr.bf16.mxu1 %v7008_v57  ;;  %v5400_v16 = vpop.f32.mrf.mxu0  ;;  %v23884_v57 = vld [vmem:[#allocation25_spill] sm:$0xff]  ;;  %v7809_v15 = vrot.slane %v7799_v38, %v17062_v22  ;;  %v23888_v38 = vld [vmem:[#allocation27_spill] sm:$0xff] }
 0x236   : > { %v20587_v0 = vadd.f32 %v20434_v21, %v5400_v16  ;;  %v7800_v21 = vcombine.low %v23881_v36, %v23880_v19  ;;  %v7802_v56 = vcombine.low %v23885_v11, %v23884_v57  ;;  %v7795_v16 = vrot.slane %v7767_v49, %v17062_v22  ;;  %v23893_v57 = vld [vmem:[#allocation32_spill] sm:$0xff]  ;;  %v23894_v11 = vld [vmem:[#allocation31_spill] sm:$0xff] }
 0x237   : > { %v5402_v31 = vpop.f32.mrf.mxu0  ;;  %v7729_v36 = vcombine.low %v20606_v40, %v20609_v4  ;;  %v7869_v45 = vcombine.low %v23894_v11, %v23893_v57 }
 0x238   : > { %23877 = vst [vmem:[#allocation79_spill] sm:$0xff] %v20587_v0  ;;  %v7816_v2 = vrot.slane %v7800_v21, %v17062_v22  ;;  %v7823_v31 = vrot.slane %v7801_v23, %v17062_v22  ;;  %v7830_v41 = vrot.slane %v7802_v56, %v17062_v22  ;;  %v23890_v21 = vld [vmem:[#allocation30_spill] sm:$0xff]  ;;  %v7798_v55 = vcombine.low %v7781_v6, %v7795_v16 }
 0x239   : > { %v5403_v24 = vpop.f32.mrf.mxu0  ;;  %v7867_v33 = vcombine.low %v23891_v12, %v23890_v21  ;;  %v7897_v16 = vrot.slane %v7869_v45, %v17062_v22  ;;  %v14825_v12 = vcombine.high %v23894_v11, %v23893_v57 }
 0x23a   : > { %v20603_v3 = vadd.f32 %v20450_v32, %v5403_v24  ;;  %v23889_v24 = vld [vmem:[#allocation26_spill] sm:$0xff]  ;;  %v7832_v47 = vcombine.high %v7809_v15, %v7816_v2  ;;  %v7834_v43 = vcombine.high %v7823_v31, %v7830_v41 }
 0x23b   : > { %v5405_v28 = vpop.f32.mrf.mxu0  ;;  %16048 = vmatmul.mubr.bf16.gmra.mxu0 %v6917_v35  ;;  %v7866_v19 = vcombine.low %v23889_v24, %v23888_v38  ;;  %v7883_v38 = vrot.slane %v7867_v33, %v17062_v22  ;;  %v7831_v24 = vcombine.low %v7809_v15, %v7816_v2 }
 0x23c   : > { %23886 = vst [vmem:[#allocation93_spill] sm:$0xff] %v20603_v3  ;;  %7410 = vmatmul.mubr.bf16.gmra.mxu1 %v20590_v18  ;;  %v20612_v42 = vpop.f32.mrf.mxu1  ;;  %16051 = vmatprep.mubr.msk.bf16.mxu0 %vm16892_vm0, %v23577_v54 }
 0x23d   : > { %v5408_v32 = vpop.f32.mrf.mxu0  ;;  %9268 = vmatprep.mubr.bf16.mxu1 %v7731_v9 }
 0x23e   : > { %v15949_v51 = vpop.f32.mrf.mxu1  ;;  %v20623_v35 = vadd.f32 %v20493_v8, %v5408_v32  ;;  %v23892_v8 = vld [vmem:[#allocation29_spill] sm:$0xff]  ;;  %v20643_v32 = vrot.slane %v7764_v44, %v17062_v22  ;;  %v7862_v44 = vrot.slane %v7834_v43, %v17062_v22 }
 0x23f   : > { %v5410_v49 = vpop.f32.mrf.mxu0  ;;  %v14824_v23 = vcombine.high %v23892_v8, %v23890_v21  ;;  %v20646_v51 = vrot.slane %v7766_v29, %v17062_v22  ;;  %v7009_v29 = vcombine.high %v20590_v18, %v20590_v18  ;;  %v23896_v8 = vld [vmem:[#allocation40_spill] sm:$0xff]  ;;  %v23900_v43 = vld [vmem:[#allocation41_spill] sm:$0xff] }
 0x240   : > { %23887 = vst [vmem:[#allocation94_spill] sm:$0xff] %v20623_v35  ;;  %v20629_v9 = vpop.f32.mrf.mxu1  ;;  %v7876_v49 = vrot.slane %v7866_v19, %v17062_v22 }
 0x241   : > { %v5411_v62 = vpop.f32.mrf.mxu0  ;;  %v7890_v6 = vrot.slane %v14824_v23, %v17062_v22  ;;  %v7796_v19 = vcombine.low %v20643_v32, %v20646_v51  ;;  %v23897_v23 = vld [vmem:[#allocation37_spill] sm:$0xff] }
 0x242   : > { %v15950_v48 = vpop.f32.mrf.mxu1  ;;  %v20640_v56 = vadd.f32 %v20512_v27, %v5411_v62  ;;  %v7848_v27 = vrot.slane %v7832_v47, %v17062_v22  ;;  %v7934_v45 = vcombine.low %v23897_v23, %v23896_v8  ;;  %v23898_v62 = vld [vmem:[#allocation42_spill] sm:$0xff]  ;;  %v23905_v23 = vld [vmem:[#allocation45_spill] sm:$0xff] }
 0x243   : > { %v5413_v28 = vpop.f32.mrf.mxu0  ;;  %16052 = vmatmul.mubr.bf16.gmra.mxu0 %v6984_v39  ;;  %v7833_v39 = vcombine.low %v7823_v31, %v7830_v41  ;;  %v7901_v21 = vcombine.high %v7890_v6, %v7897_v16  ;;  %v23901_v48 = vld [vmem:[#allocation43_spill] sm:$0xff]  ;;  %v20672_v31 = vrot.slane %v7831_v24, %v17062_v22 }
 0x244   : > { %23895 = vst [vmem:[#allocation95_spill] sm:$0xff] %v20640_v56  ;;  %9269 = vmatmul.mubr.bf16.vlgmr.msra.gmra.mxu1 %v7729_v36  ;;  %16055 = vmatprep.mubr.msk.bf16.mxu0 %vm16892_vm0, %v23577_v54  ;;  %v7899_v36 = vcombine.high %v7876_v49, %v7883_v38  ;;  %v7865_v33 = vcombine.low %v7848_v27, %v7862_v44  ;;  %v16608_v56 = vld [vmem:[#allocation3 + $0xf8] sm:$0xff]  }
 0x245   : > { %9276 = vmatprep.mubr.bf16.mxu1 %v7798_v55  ;;  %v23899_v55 = vld [vmem:[#allocation39_spill] sm:$0xff]  ;;  %v7936_v18 = vcombine.low %v23901_v48, %v23900_v43  ;;  %v20675_v41 = vrot.slane %v7833_v39, %v17062_v22  ;;  %v7929_v27 = vrot.slane %v7901_v21, %v17062_v22  ;;  %v7943_v44 = vrot.slane %v14825_v12, %v17062_v22  ;;  %v23904_v12 = vld [vmem:[#allocation44_spill] sm:$0xff] }
 0x246   : > { %v7935_v47 = vcombine.low %v23899_v55, %v23898_v62  ;;  %v7915_v28 = vrot.slane %v7899_v36, %v17062_v22  ;;  %v7898_v21 = vcombine.low %v7876_v49, %v7883_v38  ;;  %v8000_v62 = vcombine.low %v23905_v23, %v23904_v12  ;;  %v23906_v55 = vld [vmem:[#allocation47_spill] sm:$0xff] }
 0x247   : > { %v7964_v39 = vrot.slane %v7936_v18, %v17062_v22  ;;  %v7863_v48 = vcombine.low %v20672_v31, %v20675_v41  ;;  %v7900_v18 = vcombine.low %v7890_v6, %v7897_v16 }
 0x248   : > { %v7957_v24 = vrot.slane %v7935_v47, %v17062_v22  ;;  %v7932_v49 = vcombine.low %v7915_v28, %v7929_v27  ;;  %v20705_v12 = vrot.slane %v7898_v21, %v17062_v22  ;;  %v20708_v23 = vrot.slane %v8000_v62, %v17062_v22 }
 0x24a   : > { %v5416_v15 = vpop.f32.mrf.mxu0 }
 0x24b   : > { %v20669_v2 = vadd.f32 %v20540_v1, %v5416_v15  ;;  %16056 = vmatmul.mubr.bf16.gmra.mxu0 %v7009_v29  ;;  %v7950_v1 = vrot.slane %v7934_v45, %v17062_v22  ;;  %v7730_v29 = vcombine.high %v20606_v40, %v20609_v4  ;;  %v23908_v15 = vld [vmem:[#allocation50_spill] sm:$0xff]  ;;  %v23909_v40 = vld [vmem:[#allocation48_spill] sm:$0xff] }
 0x24c   : > { %v20677_v57 = vpop.f32.mrf.mxu1  ;;  %v5418_v11 = vpop.f32.mrf.mxu0  ;;  %9277 = vmatmul.mubr.bf16.gmra.mxu1 %v7796_v19  ;;  %16075 = vmatprep.mubr.msk.bf16.mxu0 %vm16892_vm0, %v23577_v54  ;;  %v8002_v4 = vcombine.low %v23909_v40, %v23908_v15 }
 0x24d   : > { %23902 = vst [vmem:[#allocation96_spill] sm:$0xff] %v20669_v2  ;;  %9284 = vmatprep.mubr.bf16.mxu1 %v7865_v33  ;;  %v23907_v33 = vld [vmem:[#allocation46_spill] sm:$0xff]  ;;  %v7966_v38 = vcombine.high %v7943_v44, %v7950_v1 }
 0x24e   : > { %v15953_v8 = vpop.f32.mrf.mxu1  ;;  %v5419_v19 = vpop.f32.mrf.mxu0  ;;  %v8001_v43 = vcombine.low %v23907_v33, %v23906_v55  ;;  %v20716_v33 = vrot.slane %v7900_v18, %v17062_v22  ;;  %v8024_v28 = vrot.slane %v8002_v4, %v17062_v22  ;;  %v7965_v18 = vcombine.low %v7943_v44, %v7950_v1  ;;  %v23916_v44 = vld [vmem:[#allocation55_spill] sm:$0xff] }
 0x24f   : > { %v20690_v36 = vadd.f32 %v20558_v61, %v5419_v19  ;;  %v23910_v61 = vld [vmem:[#allocation49_spill] sm:$0xff]  ;;  %v7968_v8 = vcombine.high %v7957_v24, %v7964_v39  ;;  %v7982_v62 = vrot.slane %v7966_v38, %v17062_v22 }
 0x250   : > { %v20696_v45 = vpop.f32.mrf.mxu1  ;;  %v5421_v47 = vpop.f32.mrf.mxu0  ;;  %v14826_v11 = vcombine.high %v23910_v61, %v23908_v15  ;;  %v20711_v55 = vrot.slane %v8001_v43, %v17062_v22  ;;  %v7967_v15 = vcombine.low %v7957_v24, %v7964_v39  ;;  %v7930_v61 = vcombine.low %v20705_v12, %v20716_v33  ;;  %v23913_v38 = vld [vmem:[#allocation53_spill] sm:$0xff]  ;;  %v23918_v39 = vld [vmem:[#allocation60_spill] sm:$0xff] }
 0x251   : > { %23903 = vst [vmem:[#allocation98_spill] sm:$0xff] %v20690_v36  ;;  %v7996_v43 = vrot.slane %v7968_v8, %v17062_v22  ;;  %v23917_v24 = vld [vmem:[#allocation61_spill] sm:$0xff] }
 0x252   : > { %v15954_v19 = vpop.f32.mrf.mxu1  ;;  %v8031_v27 = vrot.slane %v14826_v11, %v17062_v22  ;;  %v8033_v40 = vcombine.high %v20708_v23, %v20711_v55  ;;  %v20748_v36 = vrot.slane %v7967_v15, %v17062_v22 }
 0x253   : > { %v5424_v16 = vpop.f32.mrf.mxu0  ;;  %16076 = vmatmul.mubr.bf16.vlgmr.msra.gmra.mxu0 %v7730_v29 }
 0x254   : > { %v20713_v6 = vpop.f32.mrf.mxu1  ;;  %9285 = vmatmul.mubr.bf16.gmra.mxu1 %v7863_v48  ;;  %v20721_v21 = vadd.f32 %v20612_v42, %v5424_v16  ;;  %16079 = vmatprep.mubr.msk.bf16.mxu0 %vm16892_vm0, %v23577_v54  ;;  %v7797_v48 = vcombine.high %v20643_v32, %v20646_v51  ;;  %v8035_v11 = vcombine.high %v8024_v28, %v8031_v27  ;;  %v23915_v51 = vld [vmem:[#allocation56_spill] sm:$0xff] }
 0x255   : > { %9292 = vmatprep.mubr.bf16.mxu1 %v7932_v49  ;;  %v5426_v47 = vpop.f32.mrf.mxu0  ;;  %v23912_v49 = vld [vmem:[#allocation54_spill] sm:$0xff]  ;;  %v7999_v32 = vcombine.low %v7982_v62, %v7996_v43  ;;  %v8069_v1 = vcombine.low %v23916_v44, %v23915_v51 }
 0x256   : > { %23911 = vst [vmem:[#allocation113_spill] sm:$0xff] %v20721_v21  ;;  %v15957_v29 = vpop.f32.mrf.mxu1  ;;  %v8067_v19 = vcombine.low %v23913_v38, %v23912_v49  ;;  %v14827_v8 = vcombine.high %v23913_v38, %v23912_v49  ;;  %v20745_v21 = vrot.slane %v7965_v18, %v17062_v22  ;;  %v8049_v49 = vrot.slane %v8033_v40, %v17062_v22  ;;  %v23921_v51 = vld [vmem:[#allocation62_spill] sm:$0xff] }
 0x257   : > { %v5427_v4 = vpop.f32.mrf.mxu0  ;;  %v8070_v29 = vcombine.low %v23918_v39, %v23917_v24  ;;  %v8063_v62 = vrot.slane %v8035_v11, %v17062_v22  ;;  %v20764_v15 = vrot.slane %v8069_v1, %v17062_v22  ;;  %v7864_v11 = vcombine.high %v20672_v31, %v20675_v41  ;;  %v23922_v39 = vld [vmem:[#allocation67_spill] sm:$0xff]  ;;  %v23926_v31 = vld [vmem:[#allocation70_spill] sm:$0xff] }
 0x258   : > { %v5643_v42 = vpop.f32.mrf.mxu1  ;;  %v20738_v16 = vadd.f32 %v20629_v9, %v5427_v4  ;;  %v20755_v43 = vrot.slane %v8067_v19, %v17062_v22  ;;  %v8084_v4 = vrot.slane %v14827_v8, %v17062_v22  ;;  %v8032_v19 = vcombine.low %v20708_v23, %v20711_v55  ;;  %v23920_v8 = vld [vmem:[#allocation63_spill] sm:$0xff]  ;;  %v23927_v41 = vld [vmem:[#allocation66_spill] sm:$0xff] }
 0x259   : > { %v5429_v42 = vpop.f32.mrf.mxu0  ;;  %v8134_v44 = vcombine.low %v23921_v51, %v23920_v8  ;;  %v7997_v1 = vcombine.low %v20745_v21, %v20748_v36  ;;  %v8066_v55 = vcombine.low %v8049_v49, %v8063_v62 }
 0x25a   : > { %23914 = vst [vmem:[#allocation114_spill] sm:$0xff] %v20738_v16  ;;  %v15958_v47 = vpop.f32.mrf.mxu1  ;;  %v23924_v42 = vld [vmem:[#allocation65_spill] sm:$0xff]  ;;  %v23938_v16 = vld [vmem:[#allocation136_spill] sm:$0xff] }
 0x25b   : > { %v5432_v9 = vpop.f32.mrf.mxu0  ;;  %16080 = vmatmul.mubr.bf16.gmra.mxu0 %v7797_v48  ;;  %v20767_v48 = vrot.slane %v8070_v29, %v17062_v22  ;;  %v23923_v29 = vld [vmem:[#allocation64_spill] sm:$0xff] }
 0x25c   : > { %v20751_v38 = vpop.f32.mrf.mxu1  ;;  %9293 = vmatmul.mubr.bf16.gmra.mxu1 %v7930_v61  ;;  %v20759_v18 = vadd.f32 %v20677_v57, %v5432_v9  ;;  %16083 = vmatprep.mubr.msk.bf16.mxu0 %vm16892_vm0, %v23577_v54  ;;  %v8034_v57 = vcombine.low %v8024_v28, %v8031_v27  ;;  %v8135_v47 = vcombine.low %v23923_v29, %v23922_v39  ;;  %v23925_v9 = vld [vmem:[#allocation68_spill] sm:$0xff] }
 0x25d   : > { %9300 = vmatprep.mubr.bf16.mxu1 %v7999_v32  ;;  %v5434_v61 = vpop.f32.mrf.mxu0  ;;  %v8100_v28 = vcombine.high %v20755_v43, %v8084_v4  ;;  %v8102_v27 = vcombine.high %v20764_v15, %v20767_v48  ;;  %v20798_v29 = vrot.slane %v8134_v44, %v17062_v22 }
 0x25e   : > { %23919 = vst [vmem:[#allocation115_spill] sm:$0xff] %v20759_v18  ;;  %v7253_v40 = vpop.f32.mrf.mxu1  ;;  %v8137_v61 = vcombine.low %v23927_v41, %v23926_v31  ;;  %v20792_v18 = vrot.slane %v8032_v19, %v17062_v22  ;;  %v20795_v39 = vrot.slane %v8034_v57, %v17062_v22  ;;  %v20803_v49 = vrot.slane %v8135_v47, %v17062_v22 }
 0x25f   : > { %v5435_v32 = vpop.f32.mrf.mxu0  ;;  %v8136_v40 = vcombine.low %v23925_v9, %v23924_v42  ;;  %v8116_v44 = vrot.slane %v8100_v28, %v17062_v22  ;;  %v7931_v47 = vcombine.high %v20705_v12, %v20716_v33  ;;  %v8099_v9 = vcombine.low %v20755_v43, %v8084_v4  ;;  %v23933_v43 = vld [vmem:[#allocation159_spill] sm:$0xff]  ;;  %v23934_v4 = vld [vmem:[#allocation133_spill] sm:$0xff] }
 0x260   : > { %v20775_v24 = vpop.f32.mrf.mxu1  ;;  %v20786_v23 = vadd.f32 %v20696_v45, %v5435_v32  ;;  %v20809_v19 = vrot.slane %v8137_v61, %v17062_v22  ;;  %v23932_v61 = vld [vmem:[#allocation73_spill] sm:$0xff]  ;;  %v8064_v28 = vcombine.low %v20792_v18, %v20795_v39  ;;  %v8167_v12 = vcombine.high %v20798_v29, %v20803_v49 }
 0x261   : > { %v5437_v51 = vpop.f32.mrf.mxu0  ;;  %v20806_v62 = vrot.slane %v8136_v40, %v17062_v22  ;;  %v23930_v40 = vld [vmem:[#allocation69_spill] sm:$0xff]  ;;  %v20845_v3 = vrot.slane %v8099_v9, %v17062_v22 }
 0x262   : > { %23928 = vst [vmem:[#allocation112_spill] sm:$0xff] %v20786_v23  ;;  %v7256_v8 = vpop.f32.mrf.mxu1  ;;  %v14828_v41 = vcombine.high %v23930_v40, %v23926_v31  ;;  %v5481_v31 = vadd.f32 %v23934_v4, %v23933_v43  ;;  %v23936_v40 = vld [vmem:[#allocation77_spill] sm:$0xff]  ;;  %v23937_v23 = vld [vmem:[#allocation163_spill] sm:$0xff] }
 0x263   : > { %v5440_v45 = vpop.f32.mrf.mxu0  ;;  %16084 = vmatmul.mubr.bf16.gmra.mxu0 %v7864_v11  ;;  %v8130_v11 = vrot.slane %v8102_v27, %v17062_v22  ;;  %v8101_v27 = vcombine.low %v20764_v15, %v20767_v48  ;;  %v8169_v33 = vcombine.high %v20806_v62, %v20809_v19  ;;  %v5484_v15 = vadd.f32 %v23938_v16, %v23937_v23 }
 0x264   : > { %v20800_v42 = vpop.f32.mrf.mxu1  ;;  %9301 = vmatmul.mubr.bf16.gmra.mxu1 %v7997_v1  ;;  %v20812_v57 = vadd.f32 %v20713_v6, %v5440_v45  ;;  %16087 = vmatprep.mubr.msk.bf16.mxu0 %vm16892_vm0, %v23577_v54  ;;  %v23931_v6 = vld [vmem:[#allocation74_spill] sm:$0xff]  ;;  %v7252_v35 = vadd.f32 %v20751_v38, %v5481_v31  ;;  %v8183_v16 = vrot.slane %v8167_v12, %v17062_v22 }
 0x265   : > { %9308 = vmatprep.mubr.bf16.mxu1 %v8066_v55  ;;  %v5442_v1 = vpop.f32.mrf.mxu0  ;;  %v8202_v8 = vcombine.low %v23932_v61, %v23931_v6  ;;  %v8133_v45 = vcombine.low %v8116_v44, %v8130_v11  ;;  %v20848_v44 = vrot.slane %v14828_v41, %v17062_v22  ;;  %v8197_v38 = vrot.slane %v8169_v33, %v17062_v22  ;;  %v23940_v41 = vld [vmem:[#allocation169_spill] sm:$0xff] }
 0x266   : > { %23929 = vst [vmem:[#allocation117_spill] sm:$0xff] %v20812_v57  ;;  %v7261_v32 = vpop.f32.mrf.mxu1  ;;  %v23935_v1 = vld [vmem:[#allocation78_spill] sm:$0xff]  ;;  %v16607_v57 = vld [vmem:[#allocation3 + $0x138] sm:$0xff]   ;;  %v7998_v12 = vcombine.high %v20745_v21, %v20748_v36  ;;  %v8166_v33 = vcombine.low %v20798_v29, %v20803_v49  ;;  %v8168_v43 = vcombine.low %v20806_v62, %v20809_v19  ;;  %v23944_v21 = vld [vmem:[#allocation81_spill] sm:$0xff] }
 0x267   : > { %v5443_v55 = vpop.f32.mrf.mxu0  ;;  %v14829_v32 = vcombine.high %v23932_v61, %v23931_v6  ;;  %v20851_v11 = vrot.slane %v8202_v8, %v17062_v22  ;;  %15427 = vmatprep.subr.bf16.mxu1 %v16607_v57  ;;  %v23943_v36 = vld [vmem:[#allocation80_spill] sm:$0xff]  ;;  %v23947_v29 = vld [vmem:[#allocation82_spill] sm:$0xff]  ;;  %v8200_v62 = vcombine.low %v8183_v16, %v8197_v38 }
 0x268   : > { %v20825_v51 = vpop.f32.mrf.mxu1  ;;  %v8204_v55 = vcombine.low %v23936_v40, %v23935_v1  ;;  %15428 = vmatpush3.bf16.msra.mxu1 %v16608_v56  ;;  %v23942_v1 = vld [vmem:[#allocation83_spill] sm:$0xff] }
 0x269   : > { %v5444_v2 = vpop.f32.mrf.mxu0  ;;  %v8225_v57 = vrot.slane %v14829_v32, %v17062_v22  ;;  %v8234_v4 = vcombine.high %v20848_v44, %v20851_v11  ;;  %v8268_v56 = vcombine.low %v23943_v36, %v23942_v1  ;;  %v20895_v36 = vrot.slane %v8166_v33, %v17062_v22 }
 0x26a   : > { %v7264_v48 = vpop.f32.mrf.mxu1  ;;  %v20856_v2 = vrot.slane %v8101_v27, %v17062_v22  ;;  %v8232_v9 = vrot.slane %v8204_v55, %v17062_v22  ;;  %v23946_v55 = vld [vmem:[#allocation86_spill] sm:$0xff] }
 0x26b   : > { %v7451_v61 = vpop.f32.mrf.mxu0  ;;  %16088 = vmatmul.mubr.bf16.gmra.mxu0 %v7931_v47  ;;  %v23941_v47 = vld [vmem:[#allocation144_spill] sm:$0xff]  ;;  %v8270_v49 = vcombine.low %v23947_v29, %v23946_v55  ;;  %v23949_v48 = vld [vmem:[#allocation85_spill] sm:$0xff]  ;;  %v23956_v29 = vld [vmem:[#allocation90_spill] sm:$0xff] }
 0x26c   : > { %v20853_v6 = vpop.f32.mrf.mxu1  ;;  %9309 = vmatmul.mubr.bf16.gmra.mxu1 %v8064_v28  ;;  %v20860_v23 = vadd.f32 %v7451_v61, %v7252_v35  ;;  %16091 = vmatprep.mubr.msk.bf16.mxu0 %vm16892_vm0, %v23577_v54  ;;  %v5489_v8 = vadd.f32 %v23941_v47, %v23940_v41  ;;  %v7255_v35 = vadd.f32 %v20775_v24, %v5484_v15  ;;  %v23945_v24 = vld [vmem:[#allocation84_spill] sm:$0xff]  ;;  %v23950_v61 = vld [vmem:[#allocation87_spill] sm:$0xff] }
 0x26d   : > { %9316 = vmatprep.mubr.bf16.mxu1 %v8133_v45  ;;  %v15977_v27 = vpop.f32.mrf.mxu0  ;;  %v8131_v32 = vcombine.low %v20845_v3, %v20856_v2  ;;  %v8269_v40 = vcombine.low %v23945_v24, %v23944_v21  ;;  %v8236_v19 = vcombine.high %v8225_v57, %v8232_v9  ;;  %v8271_v41 = vcombine.low %v23950_v61, %v23949_v48  ;;  %v23951_v47 = vld [vmem:[#allocation172_spill] sm:$0xff]  ;;  %v23955_v24 = vld [vmem:[#allocation147_spill] sm:$0xff] }
 0x26e   : > { %23939 = vst [vmem:[#allocation116_spill] sm:$0xff] %v20860_v23  ;;  %v7269_v28 = vpop.f32.mrf.mxu1  ;;  %v7260_v1 = vadd.f32 %v20800_v42, %v5489_v8  ;;  %v20898_v21 = vrot.slane %v8168_v43, %v17062_v22  ;;  %v20910_v42 = vrot.slane %v8270_v49, %v17062_v22  ;;  %v23957_v49 = vld [vmem:[#allocation88_spill] sm:$0xff] }
 0x26f   : > { %v7454_v45 = vpop.f32.mrf.mxu0  ;;  %v23952_v28 = vld [vmem:[#allocation145_spill] sm:$0xff]  ;;  %v8264_v8 = vrot.slane %v8236_v19, %v17062_v22  ;;  %v8335_v48 = vcombine.low %v23957_v49, %v23956_v29 }
 0x270   : > { %v20877_v31 = vpop.f32.mrf.mxu1  ;;  %v20887_v15 = vadd.f32 %v7454_v45, %v7255_v35  ;;  %v5492_v27 = vadd.f32 %v23952_v28, %v23951_v47  ;;  %v8250_v35 = vrot.slane %v8234_v4, %v17062_v22  ;;  %v20904_v45 = vrot.slane %v8268_v56, %v17062_v22  ;;  %v23954_v56 = vld [vmem:[#allocation174_spill] sm:$0xff] }
 0x271   : > { %v15978_v0 = vpop.f32.mrf.mxu0  ;;  %v8233_v4 = vcombine.low %v20848_v44, %v20851_v11  ;;  %v8065_v47 = vcombine.high %v20792_v18, %v20795_v39  ;;  %v8198_v44 = vcombine.low %v20895_v36, %v20898_v21 }
 0x272   : > { %23948 = vst [vmem:[#allocation120_spill] sm:$0xff] %v20887_v15  ;;  %v7272_v23 = vpop.f32.mrf.mxu1  ;;  %v20907_v0 = vrot.slane %v8269_v40, %v17062_v22  ;;  %v5497_v40 = vadd.f32 %v23955_v24, %v23954_v56  ;;  %v7263_v55 = vadd.f32 %v20825_v51, %v5492_v27  ;;  %v23960_v51 = vld [vmem:[#allocation91_spill] sm:$0xff]  ;;  %v8267_v27 = vcombine.low %v8250_v35, %v8264_v8  ;;  %v23962_v8 = vld [vmem:[#allocation176_spill] sm:$0xff]  ;;  %v23979_v15 = vld [vmem:[#allocation173_spill] sm:$0xff] }
 0x273   : > { %v7459_v38 = vpop.f32.mrf.mxu0  ;;  %16092 = vmatmul.mubr.bf16.gmra.mxu0 %v7998_v12  ;;  %v20918_v12 = vrot.slane %v8271_v41, %v17062_v22  ;;  %v20946_v39 = vrot.slane %v8233_v4, %v17062_v22  ;;  %v20953_v24 = vrot.slane %v8335_v48, %v17062_v22 }
 0x274   : > { %v20901_v16 = vpop.f32.mrf.mxu1  ;;  %9317 = vmatmul.mubr.bf16.gmra.mxu1 %v8131_v32  ;;  %v20912_v23 = vadd.f32 %v7459_v38, %v7260_v1  ;;  %16095 = vmatprep.mubr.msk.bf16.mxu0 %vm16892_vm0, %v23577_v54  ;;  %v8235_v32 = vcombine.low %v8225_v57, %v8232_v9  ;;  %v8301_v11 = vcombine.high %v20904_v45, %v20907_v0  ;;  %v23959_v57 = vld [vmem:[#allocation92_spill] sm:$0xff] }
 0x275   : > { %9324 = vmatprep.mubr.bf16.mxu1 %v8200_v62  ;;  %v15981_v43 = vpop.f32.mrf.mxu0  ;;  %v23958_v62 = vld [vmem:[#allocation89_spill] sm:$0xff]  ;;  %v8337_v9 = vcombine.low %v23960_v51, %v23959_v57  ;;  %v8303_v1 = vcombine.high %v20910_v42, %v20918_v12  ;;  %v14831_v38 = vcombine.high %v23960_v51, %v23959_v57  ;;  %v7268_v56 = vadd.f32 %v20853_v6, %v5497_v40 }
 0x276   : > { %23953 = vst [vmem:[#allocation119_spill] sm:$0xff] %v20912_v23  ;;  %v7277_v33 = vpop.f32.mrf.mxu1  ;;  %v14830_v19 = vcombine.high %v23958_v62, %v23956_v29  ;;  %v20949_v43 = vrot.slane %v8235_v32, %v17062_v22  ;;  %v8317_v4 = vrot.slane %v8301_v11, %v17062_v22  ;;  %v8132_v11 = vcombine.high %v20845_v3, %v20856_v2  ;;  %v23977_v23 = vld [vmem:[#allocation158_spill] sm:$0xff] }
 0x277   : > { %v7462_v41 = vpop.f32.mrf.mxu0  ;;  %v20964_v32 = vrot.slane %v8337_v9, %v17062_v22  ;;  %v8331_v40 = vrot.slane %v8303_v1, %v17062_v22  ;;  %v20972_v48 = vrot.slane %v14831_v38, %v17062_v22  ;;  %v8300_v9 = vcombine.low %v20904_v45, %v20907_v0  ;;  %v23969_v45 = vld [vmem:[#allocation101_spill] sm:$0xff]  ;;  %v23970_v0 = vld [vmem:[#allocation104_spill] sm:$0xff] }
 0x278   : > { %v20929_v61 = vpop.f32.mrf.mxu1  ;;  %v20939_v28 = vadd.f32 %v7462_v41, %v7263_v55  ;;  %v20956_v35 = vrot.slane %v14830_v19, %v17062_v22  ;;  %v23963_v55 = vld [vmem:[#allocation148_spill] sm:$0xff]  ;;  %v16609_v19 = vld [vmem:[#allocation3 + $0x130] sm:$0xff]   ;;  %v8265_v51 = vcombine.low %v20946_v39, %v20949_v43 }
 0x279   : > { %v15982_v18 = vpop.f32.mrf.mxu0  ;;  %v5500_v29 = vadd.f32 %v23963_v55, %v23962_v8  ;;  %v16610_v41 = vld [vmem:[#allocation3 + $0xf0] sm:$0xff]   ;;  %15429 = vmatprep.subr.bf16.mxu1 %v16609_v19  ;;  %v8334_v19 = vcombine.low %v8317_v4, %v8331_v40 }
 0x27a   : > { %23961 = vst [vmem:[#allocation121_spill] sm:$0xff] %v20939_v28  ;;  %v7280_v33 = vpop.f32.mrf.mxu1  ;;  %v8368_v38 = vcombine.high %v20953_v24, %v20956_v35  ;;  %v23966_v18 = vld [vmem:[#allocation97_spill] sm:$0xff]  ;;  %v23967_v8 = vld [vmem:[#allocation103_spill] sm:$0xff]  ;;  %15430 = vmatpush3.bf16.msra.mxu1 %v16610_v41  ;;  %v23976_v28 = vld [vmem:[#allocation186_spill] sm:$0xff]  ;;  %v21006_v41 = vrot.slane %v8300_v9, %v17062_v22 }
 0x27b   : > { %v7467_v62 = vpop.f32.mrf.mxu0  ;;  %16096 = vmatmul.mubr.bf16.gmra.mxu0 %v8065_v47  ;;  %v16611_v47 = vld [vmem:[#allocation3 + $0x178] sm:$0xff]   ;;  %v7271_v1 = vadd.f32 %v20877_v31, %v5500_v29  ;;  %v23968_v55 = vld [vmem:[#allocation99_spill] sm:$0xff] }
 0x27c   : > { %v20960_v49 = vpop.f32.mrf.mxu1  ;;  %9325 = vmatmul.mubr.bf16.gmra.mxu1 %v8198_v44  ;;  %v20966_v6 = vadd.f32 %v7467_v62, %v7268_v56  ;;  %16099 = vmatprep.mubr.msk.bf16.mxu0 %vm16892_vm0, %v23577_v54  ;;  %v23965_v33 = vld [vmem:[#allocation100_spill] sm:$0xff]  ;;  %v8403_v62 = vcombine.low %v23968_v55, %v23967_v8  ;;  %v23973_v29 = vld [vmem:[#allocation183_spill] sm:$0xff]  ;;  %v5508_v8 = vadd.f32 %v23977_v23, %v23976_v28  ;;  %v16613_v23 = vld [vmem:[#allocation3 + $0xe8] sm:$0xff]  }
 0x27d   : > { %9332 = vmatprep.mubr.bf16.mxu1 %v8267_v27  ;;  %v15985_v57 = vpop.f32.mrf.mxu0  ;;  %v8302_v27 = vcombine.low %v20910_v42, %v20918_v12  ;;  %v8402_v56 = vcombine.low %v23966_v18, %v23965_v33  ;;  %16159 = vmatprep.subr.bf16.mxu0 %v16611_v47  ;;  %v23971_v42 = vld [vmem:[#allocation105_spill] sm:$0xff]  ;;  %v23972_v12 = vld [vmem:[#allocation102_spill] sm:$0xff]  ;;  %v8370_v18 = vcombine.high %v20964_v32, %v20972_v48  ;;  %v23978_v55 = vld [vmem:[#allocation195_spill] sm:$0xff] }
 0x27e   : > { %23964 = vst [vmem:[#allocation131_spill] sm:$0xff] %v20966_v6  ;;  %v7285_v44 = vpop.f32.mrf.mxu1  ;;  %v8405_v31 = vcombine.low %v23972_v12, %v23971_v42  ;;  %16160 = vmatpush3.bf16.msra.mxu0 %v16611_v47  ;;  %v23974_v57 = vld [vmem:[#allocation157_spill] sm:$0xff]  ;;  %v16612_v47 = vld [vmem:[#allocation3 + $0x128] sm:$0xff]   ;;  %v8384_v4 = vrot.slane %v8368_v38, %v17062_v22 }
 0x27f   : > { %v7470_v2 = vpop.f32.mrf.mxu0  ;;  %v8404_v44 = vcombine.low %v23970_v0, %v23969_v45  ;;  %v5505_v6 = vadd.f32 %v23974_v57, %v23973_v29  ;;  %v5521_v45 = vadd.f32 %v23979_v15, %v23978_v55  ;;  %v21014_v40 = vrot.slane %v8402_v56, %v17062_v22  ;;  %v23983_v56 = vld [vmem:[#allocation14_spill] sm:$0xff]  ;;  %15431 = vmatprep.subr.bf16.mxu1 %v16612_v47  ;;  %v23990_v47 = vld [vmem:[#allocation111_spill] sm:$0xff] }
 0x280   : > { %v20987_v3 = vpop.f32.mrf.mxu1  ;;  %v20997_v33 = vadd.f32 %v7470_v2, %v7271_v1  ;;  %v21010_v1 = vrot.slane %v8302_v27, %v17062_v22  ;;  %v23982_v27 = vld [vmem:[#allocation160_spill] sm:$0xff]  ;;  %v8367_v57 = vcombine.low %v20953_v24, %v20956_v35  ;;  %v7279_v55 = vadd.f32 %v20929_v61, %v5508_v8  ;;  %15432 = vmatpush3.bf16.msra.mxu1 %v16613_v23  ;;  %v23989_v24 = vld [vmem:[#allocation109_spill] sm:$0xff] }
 0x281   : > { %v15986_v30 = vpop.f32.mrf.mxu0  ;;  %v7276_v42 = vadd.f32 %v20901_v16, %v5505_v6  ;;  %v21020_v15 = vrot.slane %v8404_v44, %v17062_v22  ;;  %v21023_v16 = vrot.slane %v8405_v31, %v17062_v22  ;;  %v8199_v31 = vcombine.high %v20895_v36, %v20898_v21 }
 0x282   : > { %23975 = vst [vmem:[#allocation132_spill] sm:$0xff] %v20997_v33  ;;  %v7288_v0 = vpop.f32.mrf.mxu1  ;;  %v21017_v30 = vrot.slane %v8403_v62, %v17062_v22  ;;  %v23984_v62 = vld [vmem:[#allocation175_spill] sm:$0xff]  ;;  %v8332_v36 = vcombine.low %v21006_v41, %v21010_v1  ;;  %v8472_v23 = vcombine.low %v23990_v47, %v23833_v46  ;;  %v21066_v33 = vrot.slane %v8367_v57, %v17062_v22 }
 0x283   : > { %v7475_v2 = vpop.f32.mrf.mxu0  ;;  %16100 = vmatmul.mubr.bf16.gmra.mxu0 %v8132_v11  ;;  %v8398_v11 = vrot.slane %v8370_v18, %v17062_v22  ;;  %v5524_v44 = vadd.f32 %v23984_v62, %v23983_v56  ;;  %v23985_v18 = vld [vmem:[#allocation107_spill] sm:$0xff]  ;;  %v8437_v61 = vcombine.high %v21020_v15, %v21023_v16  ;;  %v23992_v62 = vld [vmem:[#allocation164_spill] sm:$0xff] }
 0x284   : > { %v7291_v28 = vpop.f32.mrf.mxu1  ;;  %9333 = vmatmul.mubr.bf16.gmra.mxu1 %v8265_v51  ;;  %v21027_v9 = vadd.f32 %v7475_v2, %v7276_v42  ;;  %16103 = vmatprep.mubr.msk.bf16.mxu0 %vm16892_vm0, %v23577_v54  ;;  %v23981_v51 = vld [vmem:[#allocation190_spill] sm:$0xff]  ;;  %v8435_v21 = vcombine.high %v21014_v40, %v21017_v30  ;;  %v23991_v56 = vld [vmem:[#allocation191_spill] sm:$0xff] }
 0x285   : > { %v21025_v6 = vadd.f32 %v7291_v28, %v5521_v45  ;;  %9340 = vmatprep.mubr.bf16.mxu1 %v8334_v19  ;;  %v5513_v38 = vadd.f32 %v23982_v27, %v23981_v51  ;;  %v15989_v29 = vpop.f32.mrf.mxu0  ;;  %v8369_v19 = vcombine.low %v20964_v32, %v20972_v48  ;;  %v23986_v45 = vld [vmem:[#allocation106_spill] sm:$0xff]  ;;  %v23988_v28 = vld [vmem:[#allocation108_spill] sm:$0xff]  ;;  %v8401_v8 = vcombine.low %v8384_v4, %v8398_v11 }
 0x286   : > { %23980 = vst [vmem:[#allocation139_spill] sm:$0xff] %v21027_v9  ;;  %v7293_v12 = vpop.f32.mrf.mxu1  ;;  %v8469_v0 = vcombine.low %v23986_v45, %v23985_v18  ;;  %v23987_v42 = vld [vmem:[#allocation110_spill] sm:$0xff]  ;;  %v23994_v18 = vld [vmem:[#allocation187_spill] sm:$0xff]  ;;  %v8465_v57 = vrot.slane %v8437_v61, %v17062_v22  ;;  %v8266_v61 = vcombine.high %v20946_v39, %v20949_v43 }
 0x287   : > { %v8470_v2 = vcombine.low %v23988_v28, %v23987_v42  ;;  %v7478_v27 = vpop.f32.mrf.mxu0  ;;  %v14832_v35 = vcombine.high %v23989_v24, %v23987_v42  ;;  %v5516_v12 = vadd.f32 %v23992_v62, %v23991_v56  ;;  %v23993_v29 = vld [vmem:[#allocation18_spill] sm:$0xff]  ;;  %v8434_v24 = vcombine.low %v21014_v40, %v21017_v30  ;;  %v23999_v30 = vld [vmem:[#allocation123_spill] sm:$0xff] }
 0x288   : > { %v7294_v51 = vpop.f32.mrf.mxu1  ;;  %v21057_v48 = vadd.f32 %v7478_v27, %v7279_v55  ;;  %v5529_v45 = vadd.f32 %v23994_v18, %v23993_v29  ;;  %v21070_v55 = vrot.slane %v8369_v19, %v17062_v22  ;;  %v21073_v4 = vrot.slane %v8469_v0, %v17062_v22  ;;  %v23996_v0 = vld [vmem:[#allocation188_spill] sm:$0xff]  ;;  %v23997_v39 = vld [vmem:[#allocation118_spill] sm:$0xff] }
 0x289   : > { %v21055_v32 = vadd.f32 %v7294_v51, %v5524_v44  ;;  %v15990_v9 = vpop.f32.mrf.mxu0  ;;  %v7284_v44 = vadd.f32 %v20960_v49, %v5513_v38  ;;  %v21076_v11 = vrot.slane %v8470_v2, %v17062_v22  ;;  %v21081_v27 = vrot.slane %v14832_v35, %v17062_v22  ;;  %v23998_v40 = vld [vmem:[#allocation122_spill] sm:$0xff] }
 0x28a   : > { %v7296_v28 = vpop.f32.mrf.mxu1  ;;  %v8451_v9 = vrot.slane %v8435_v21, %v17062_v22  ;;  %v21090_v19 = vrot.slane %v8472_v23, %v17062_v22  ;;  %v7287_v35 = vadd.f32 %v20987_v3, %v5516_v12  ;;  %v8436_v56 = vcombine.low %v21020_v15, %v21023_v16  ;;  %v16614_v16 = vld [vmem:[#allocation3 + $0x170] sm:$0xff]  }
 0x28b   : > { %v7483_v51 = vpop.f32.mrf.mxu0  ;;  %16104 = vmatmul.mubr.bf16.gmra.mxu0 %v8199_v31  ;;  %v23995_v31 = vld [vmem:[#allocation33_spill] sm:$0xff]  ;;  %v14833_v23 = vcombine.high %v23990_v47, %v23833_v46  ;;  %v8399_v18 = vcombine.low %v21066_v33, %v21070_v55  ;;  %v8537_v43 = vcombine.low %v23834_v58, %v23997_v39  ;;  %v8538_v3 = vcombine.low %v23836_v25, %v23998_v40  ;;  %v24000_v28 = vld [vmem:[#allocation34_spill] sm:$0xff] }
 0x28c   : > { %v7299_v42 = vpop.f32.mrf.mxu1  ;;  %9341 = vmatmul.mubr.bf16.gmra.mxu1 %v8332_v36  ;;  %v21085_v38 = vadd.f32 %v7483_v51, %v7284_v44  ;;  %16107 = vmatprep.mubr.msk.bf16.mxu0 %vm16892_vm0, %v23577_v54  ;;  %v5532_v2 = vadd.f32 %v23996_v0, %v23995_v31  ;;  %v8539_v15 = vcombine.low %v23999_v30, %v23839_v5  ;;  %v24001_v44 = vld [vmem:[#allocation192_spill] sm:$0xff]  ;;  %v24005_v40 = vld [vmem:[#allocation125_spill] sm:$0xff]  ;;  %v24006_v30 = vld [vmem:[#allocation127_spill] sm:$0xff] }
 0x28d   : > { %v21083_v49 = vadd.f32 %v7299_v42, %v5529_v45  ;;  %9348 = vmatprep.mubr.bf16.mxu1 %v8401_v8  ;;  %v15993_v21 = vpop.f32.mrf.mxu0  ;;  %v8502_v8 = vcombine.high %v21073_v4, %v21076_v11  ;;  %v8468_v46 = vcombine.low %v8451_v9, %v8465_v57  ;;  %v8504_v47 = vcombine.high %v21081_v27, %v21090_v19 }
 0x28e   : > { %v7301_v36 = vpop.f32.mrf.mxu1  ;;  %v5537_v42 = vadd.f32 %v24001_v44, %v24000_v28  ;;  %16161 = vmatprep.subr.bf16.mxu0 %v16614_v16  ;;  %v21122_v25 = vrot.slane %v8434_v24, %v17062_v22  ;;  %v21125_v5 = vrot.slane %v8436_v56, %v17062_v22  ;;  %v21129_v0 = vrot.slane %v14833_v23, %v17062_v22  ;;  %v24002_v56 = vld [vmem:[#allocation35_spill] sm:$0xff] }
 0x28f   : > { %v7486_v29 = vpop.f32.mrf.mxu0  ;;  %v8518_v31 = vrot.slane %v8502_v8, %v17062_v22  ;;  %16162 = vmatpush3.bf16.msra.mxu0 %v16614_v16  ;;  %v21135_v36 = vrot.slane %v8538_v3, %v17062_v22  ;;  %v21138_v21 = vrot.slane %v8539_v15, %v17062_v22  ;;  %v24003_v8 = vld [vmem:[#allocation193_spill] sm:$0xff]  ;;  %v8501_v39 = vcombine.low %v21073_v4, %v21076_v11  ;;  %v24007_v15 = vld [vmem:[#allocation126_spill] sm:$0xff] }
 0x290   : > { %v7302_v62 = vpop.f32.mrf.mxu1  ;;  %v21115_v45 = vadd.f32 %v7486_v29, %v7287_v35  ;;  %v5540_v23 = vadd.f32 %v24003_v8, %v24002_v56  ;;  %v8604_v16 = vcombine.low %v24007_v15, %v24006_v30  ;;  %v8466_v28 = vcombine.low %v21122_v25, %v21125_v5  ;;  %v24008_v4 = vld [vmem:[#allocation129_spill] sm:$0xff]  ;;  %v24009_v11 = vld [vmem:[#allocation130_spill] sm:$0xff] }
 0x291   : > { %v21113_v12 = vadd.f32 %v7302_v62, %v5532_v2  ;;  %v15994_v58 = vpop.f32.mrf.mxu0  ;;  %v21132_v2 = vrot.slane %v8537_v43, %v17062_v22  ;;  %v24004_v43 = vld [vmem:[#allocation124_spill] sm:$0xff] }
 0x292   : > { %v7304_v51 = vpop.f32.mrf.mxu1  ;;  %v8603_v3 = vcombine.low %v24005_v40, %v24004_v43 }
 0x293   : > { %v7491_v57 = vpop.f32.mrf.mxu0  ;;  %16108 = vmatmul.mubr.bf16.gmra.mxu0 %v8266_v61  ;;  %v8532_v61 = vrot.slane %v8504_v47, %v17062_v22  ;;  %v24010_v51 = vld [vmem:[#allocation128_spill] sm:$0xff] }
 0x294   : > { %v7307_v9 = vpop.f32.mrf.mxu1  ;;  %9349 = vmatmul.mubr.bf16.gmra.mxu1 %v8399_v18  ;;  %v21143_v35 = vadd.f32 %v7491_v57, %v21025_v6  ;;  %16111 = vmatprep.mubr.msk.bf16.mxu0 %vm16892_vm0, %v23577_v54  ;;  %v8333_v18 = vcombine.high %v21006_v41, %v21010_v1  ;;  %v8503_v6 = vcombine.low %v21081_v27, %v21090_v19  ;;  %v24012_v57 = vld [vmem:[#allocation196_spill] sm:$0xff] }
 0x295   : > { %v21140_v24 = vadd.f32 %v7307_v9, %v5537_v42  ;;  %9356 = vmatprep.mubr.bf16.mxu1 %v8468_v46  ;;  %v15997_v29 = vpop.f32.mrf.mxu0  ;;  %v8569_v41 = vcombine.high %v21129_v0, %v21132_v2  ;;  %v8571_v1 = vcombine.high %v21135_v36, %v21138_v21  ;;  %v8605_v27 = vcombine.low %v24009_v11, %v24008_v4  ;;  %v24011_v9 = vld [vmem:[#allocation36_spill] sm:$0xff]  ;;  %v24015_v11 = vld [vmem:[#allocation134_spill] sm:$0xff] }
 0x296   : > { %v7309_v62 = vpop.f32.mrf.mxu1  ;;  %v8535_v42 = vcombine.low %v8518_v31, %v8532_v61  ;;  %v14834_v58 = vcombine.high %v24010_v51, %v24008_v4  ;;  %v5545_v56 = vadd.f32 %v24012_v57, %v24011_v9  ;;  %v21178_v29 = vrot.slane %v8501_v39, %v17062_v22  ;;  %v24017_v9 = vld [vmem:[#allocation137_spill] sm:$0xff]  ;;  %v24019_v57 = vld [vmem:[#allocation142_spill] sm:$0xff] }
 0x297   : > { %v7494_v47 = vpop.f32.mrf.mxu0  ;;  %v21181_v43 = vrot.slane %v8503_v6, %v17062_v22  ;;  %v8585_v40 = vrot.slane %v8569_v41, %v17062_v22  ;;  %v8599_v30 = vrot.slane %v8571_v1, %v17062_v22  ;;  %v21192_v39 = vrot.slane %v8605_v27, %v17062_v22 }
 0x298   : > { %v7310_v46 = vpop.f32.mrf.mxu1  ;;  %v21171_v44 = vadd.f32 %v7494_v47, %v21055_v32  ;;  %v21187_v32 = vrot.slane %v8604_v16, %v17062_v22  ;;  %v24014_v16 = vld [vmem:[#allocation16_spill] sm:$0xff]  ;;  %v8400_v41 = vcombine.high %v21066_v33, %v21070_v55  ;;  %v8568_v1 = vcombine.low %v21129_v0, %v21132_v2  ;;  %v24016_v55 = vld [vmem:[#allocation138_spill] sm:$0xff]  ;;  %v24018_v2 = vld [vmem:[#allocation143_spill] sm:$0xff] }
 0x299   : > { %v21168_v19 = vadd.f32 %v7310_v46, %v5540_v23  ;;  %v15998_v62 = vpop.f32.mrf.mxu0  ;;  %v21184_v23 = vrot.slane %v8603_v3, %v17062_v22  ;;  %v8634_v3 = vrot.slane %v14834_v58, %v17062_v22  ;;  %v8670_v27 = vcombine.low %v24015_v11, %v23849_v59 }
 0x29a   : > { %v7312_v8 = vpop.f32.mrf.mxu1  ;;  %v8533_v58 = vcombine.low %v21178_v29, %v21181_v43  ;;  %v14835_v33 = vcombine.high %v24015_v11, %v23849_v59  ;;  %v8672_v0 = vcombine.low %v24017_v9, %v24016_v55  ;;  %v16615_v11 = vld [vmem:[#allocation3 + $0x120] sm:$0xff]  }
 0x29b   : > { %v7499_v61 = vpop.f32.mrf.mxu0  ;;  %16112 = vmatmul.mubr.bf16.gmra.mxu0 %v8333_v18  ;;  %v24013_v18 = vld [vmem:[#allocation38_spill] sm:$0xff]  ;;  %v8636_v4 = vcombine.high %v21184_v23, %v21187_v32  ;;  %v8602_v8 = vcombine.low %v8585_v40, %v8599_v30  ;;  %v8638_v62 = vcombine.high %v21192_v39, %v8634_v3  ;;  %v24021_v55 = vld [vmem:[#allocation149_spill] sm:$0xff]  ;;  %15433 = vmatprep.subr.bf16.mxu1 %v16615_v11 }
 0x29c   : > { %v7315_v31 = vpop.f32.mrf.mxu1  ;;  %9357 = vmatmul.mubr.bf16.gmra.mxu1 %v8466_v28  ;;  %v21197_v6 = vadd.f32 %v7499_v61, %v21083_v49  ;;  %16115 = vmatprep.mubr.msk.bf16.mxu0 %vm16892_vm0, %v23577_v54  ;;  %v5548_v46 = vadd.f32 %v24014_v16, %v24013_v18  ;;  %v8570_v49 = vcombine.low %v21135_v36, %v21138_v21 }
 0x29d   : > { %v21194_v15 = vadd.f32 %v7315_v31, %v5545_v56  ;;  %9364 = vmatprep.mubr.bf16.mxu1 %v8535_v42  ;;  %v16001_v28 = vpop.f32.mrf.mxu0  ;;  %v8673_v36 = vcombine.low %v24019_v57, %v24018_v2  ;;  %v21229_v18 = vrot.slane %v8568_v1, %v17062_v22  ;;  %v8652_v16 = vrot.slane %v8636_v4, %v17062_v22  ;;  %v24020_v1 = vld [vmem:[#allocation51_spill] sm:$0xff]  ;;  %v24024_v2 = vld [vmem:[#allocation150_spill] sm:$0xff] }
 0x29e   : > { %v7317_v47 = vpop.f32.mrf.mxu1  ;;  %v21232_v59 = vrot.slane %v8570_v49, %v17062_v22  ;;  %v21242_v40 = vrot.slane %v8672_v0, %v17062_v22  ;;  %v24023_v0 = vld [vmem:[#allocation154_spill] sm:$0xff] }
 0x29f   : > { %v7502_v51 = vpop.f32.mrf.mxu0  ;;  %v21236_v47 = vrot.slane %v8670_v27, %v17062_v22  ;;  %v21245_v30 = vrot.slane %v8673_v36, %v17062_v22  ;;  %v8738_v57 = vcombine.low %v24024_v2, %v24023_v0 }
 0x2a0   : > { %v7318_v42 = vpop.f32.mrf.mxu1  ;;  %v21225_v56 = vadd.f32 %v7502_v51, %v21113_v12  ;;  %v21239_v12 = vrot.slane %v14835_v33, %v17062_v22  ;;  %v8467_v51 = vcombine.high %v21122_v25, %v21125_v5  ;;  %v8637_v33 = vcombine.low %v21192_v39, %v8634_v3  ;;  %v24027_v3 = vld [vmem:[#allocation52_spill] sm:$0xff] }
 0x2a1   : > { %v21222_v21 = vadd.f32 %v7318_v42, %v5548_v46  ;;  %v16002_v61 = vpop.f32.mrf.mxu0  ;;  %v8705_v5 = vcombine.high %v21242_v40, %v21245_v30  ;;  %v21291_v0 = vrot.slane %v8738_v57, %v17062_v22 }
 0x2a2   : > { %v7320_v31 = vpop.f32.mrf.mxu1  ;;  %v8703_v25 = vcombine.high %v21236_v47, %v21239_v12 }
 0x2a3   : > { %v7507_v28 = vpop.f32.mrf.mxu0  ;;  %16116 = vmatmul.mubr.bf16.gmra.mxu0 %v8400_v41  ;;  %v8666_v41 = vrot.slane %v8638_v62, %v17062_v22  ;;  %v8600_v62 = vcombine.low %v21229_v18, %v21232_v59 }
 0x2a4   : > { %v7323_v46 = vpop.f32.mrf.mxu1  ;;  %9365 = vmatmul.mubr.bf16.gmra.mxu1 %v8533_v58  ;;  %v21251_v4 = vadd.f32 %v7507_v28, %v21140_v24  ;;  %16119 = vmatprep.mubr.msk.bf16.mxu0 %vm16892_vm0, %v23577_v54  ;;  %v8635_v58 = vcombine.low %v21184_v23, %v21187_v32  ;;  %v24022_v24 = vld [vmem:[#allocation146_spill] sm:$0xff]  ;;  %v24025_v23 = vld [vmem:[#allocation151_spill] sm:$0xff]  ;;  %v24028_v28 = vld [vmem:[#allocation156_spill] sm:$0xff] }
 0x2a5   : > { %v21248_v49 = vadd.f32 %v7323_v46, %v24020_v1  ;;  %9372 = vmatprep.mubr.bf16.mxu1 %v8602_v8  ;;  %v16005_v42 = vpop.f32.mrf.mxu0  ;;  %v8737_v9 = vcombine.low %v24022_v24, %v24021_v55  ;;  %v24026_v32 = vld [vmem:[#allocation155_spill] sm:$0xff]  ;;  %v8669_v46 = vcombine.low %v8652_v16, %v8666_v41  ;;  %v8740_v1 = vcombine.low %v24028_v28, %v23859_v14  ;;  %v24031_v28 = vld [vmem:[#allocation165_spill] sm:$0xff] }
 0x2a6   : > { %v7325_v27 = vpop.f32.mrf.mxu1  ;;  %v8739_v39 = vcombine.low %v24026_v32, %v24025_v23  ;;  %v21282_v42 = vrot.slane %v8635_v58, %v17062_v22  ;;  %v21285_v55 = vrot.slane %v8637_v33, %v17062_v22  ;;  %v8719_v16 = vrot.slane %v8703_v25, %v17062_v22  ;;  %v24030_v23 = vld [vmem:[#allocation152_spill] sm:$0xff] }
 0x2a7   : > { %v7510_v8 = vpop.f32.mrf.mxu0  ;;  %v21288_v24 = vrot.slane %v8737_v9, %v17062_v22  ;;  %v8733_v41 = vrot.slane %v8705_v5, %v17062_v22  ;;  %v8702_v25 = vcombine.low %v21236_v47, %v21239_v12  ;;  %v8704_v5 = vcombine.low %v21242_v40, %v21245_v30  ;;  %v24032_v47 = vld [vmem:[#allocation168_spill] sm:$0xff]  ;;  %v24033_v12 = vld [vmem:[#allocation167_spill] sm:$0xff]  ;;  %v24034_v30 = vld [vmem:[#allocation58_spill] sm:$0xff] }
 0x2a8   : > { %v7326_v36 = vpop.f32.mrf.mxu1  ;;  %v21277_v61 = vadd.f32 %v7510_v8, %v21168_v19  ;;  %v21296_v58 = vrot.slane %v8739_v39, %v17062_v22  ;;  %v14836_v32 = vcombine.high %v24030_v23, %v23859_v14  ;;  %v8807_v40 = vcombine.low %v24033_v12, %v24032_v47  ;;  %v24037_v47 = vld [vmem:[#allocation182_spill] sm:$0xff] }
 0x2a9   : > { %v21274_v31 = vadd.f32 %v7326_v36, %v24027_v3  ;;  %v16006_v27 = vpop.f32.mrf.mxu0  ;;  %v24029_v36 = vld [vmem:[#allocation57_spill] sm:$0xff]  ;;  %v8736_v14 = vcombine.low %v8719_v16, %v8733_v41  ;;  %v8872_v12 = vcombine.low %v24037_v47, %v23870_v17  ;;  %v16617_v47 = vld [vmem:[#allocation3 + $0x168] sm:$0xff]  }
 0x2aa   : > { %v7328_v11 = vpop.f32.mrf.mxu1  ;;  %v21349_v41 = vrot.slane %v8807_v40, %v17062_v22  ;;  %v16616_v40 = vld [vmem:[#allocation3 + $0xe0] sm:$0xff]   ;;  %16163 = vmatprep.subr.bf16.mxu0 %v16617_v47 }
 0x2ab   : > { %v7515_v2 = vpop.f32.mrf.mxu0  ;;  %16120 = vmatmul.mubr.bf16.gmra.mxu0 %v8467_v51  ;;  %v8768_v51 = vrot.slane %v8740_v1, %v17062_v22  ;;  %15434 = vmatpush3.bf16.msra.mxu1 %v16616_v40 }
 0x2ac   : > { %v7331_v19 = vpop.f32.mrf.mxu1  ;;  %9373 = vmatmul.mubr.bf16.gmra.mxu1 %v8600_v62  ;;  %v21302_v9 = vadd.f32 %v7515_v2, %v21194_v15  ;;  %16123 = vmatprep.mubr.msk.bf16.mxu0 %vm16892_vm0, %v23577_v54  ;;  %v8534_v62 = vcombine.high %v21178_v29, %v21181_v43  ;;  %v8770_v15 = vcombine.high %v21288_v24, %v21291_v0 }
 0x2ad   : > { %v21299_v33 = vadd.f32 %v7331_v19, %v24029_v36  ;;  %9380 = vmatprep.mubr.bf16.mxu1 %v8669_v46  ;;  %v16009_v8 = vpop.f32.mrf.mxu0  ;;  %v8667_v46 = vcombine.low %v21282_v42, %v21285_v55  ;;  %v8805_v29 = vcombine.low %v24031_v28, %v23864_v13  ;;  %v14837_v43 = vcombine.high %v24031_v28, %v23864_v13 }
 0x2ae   : > { %v7333_v57 = vpop.f32.mrf.mxu1  ;;  %v8772_v27 = vcombine.high %v21296_v58, %v8768_v51  ;;  %v21333_v36 = vrot.slane %v8702_v25, %v17062_v22  ;;  %v8786_v13 = vrot.slane %v8770_v15, %v17062_v22  ;;  %v21340_v8 = vrot.slane %v14836_v32, %v17062_v22  ;;  %v24035_v25 = vld [vmem:[#allocation59_spill] sm:$0xff]  ;;  %16164 = vmatpush3.bf16.msra.mxu0 %v16617_v47 }
 0x2af   : > { %v7518_v3 = vpop.f32.mrf.mxu0  ;;  %v21336_v57 = vrot.slane %v8704_v5, %v17062_v22  ;;  %v21346_v16 = vrot.slane %v14837_v43, %v17062_v22  ;;  %v8769_v28 = vcombine.low %v21288_v24, %v21291_v0  ;;  %v24036_v43 = vld [vmem:[#allocation181_spill] sm:$0xff]  ;;  %v24038_v24 = vld [vmem:[#allocation184_spill] sm:$0xff] }
 0x2b0   : > { %v7334_v39 = vpop.f32.mrf.mxu1  ;;  %v21329_v11 = vadd.f32 %v7518_v3, %v21222_v21  ;;  %v21343_v21 = vrot.slane %v8805_v29, %v17062_v22  ;;  %v8771_v29 = vcombine.low %v21296_v58, %v8768_v51  ;;  %v8873_v0 = vcombine.low %v23869_v60, %v24038_v24  ;;  %v24039_v58 = vld [vmem:[#allocation71_spill] sm:$0xff] }
 0x2b1   : > { %v21326_v1 = vadd.f32 %v7334_v39, %v24034_v30  ;;  %v16010_v2 = vpop.f32.mrf.mxu0 }
 0x2b2   : > { %v7336_v19 = vpop.f32.mrf.mxu1 }
 0x2b3   : > { %v7523_v39 = vpop.f32.mrf.mxu0  ;;  %16124 = vmatmul.mubr.bf16.gmra.mxu0 %v8534_v62  ;;  %v8800_v62 = vrot.slane %v8772_v27, %v17062_v22  ;;  %v8734_v27 = vcombine.low %v21333_v36, %v21336_v57  ;;  %v24040_v19 = vld [vmem:[#allocation185_spill] sm:$0xff] }
 0x2b4   : > { %v7339_v23 = vpop.f32.mrf.mxu1  ;;  %9381 = vmatmul.mubr.bf16.gmra.mxu1 %v8667_v46  ;;  %v21355_v15 = vadd.f32 %v7523_v39, %v21248_v49  ;;  %16127 = vmatprep.mubr.msk.bf16.mxu0 %vm16892_vm0, %v23577_v54  ;;  %v8601_v46 = vcombine.high %v21229_v18, %v21232_v59  ;;  %v8871_v49 = vcombine.low %v23867_v53, %v24036_v43  ;;  %v24041_v43 = vld [vmem:[#allocation72_spill] sm:$0xff] }
 0x2b5   : > { %v21352_v5 = vadd.f32 %v7339_v23, %v24035_v25  ;;  %9388 = vmatprep.mubr.bf16.mxu1 %v8736_v14  ;;  %v16013_v3 = vpop.f32.mrf.mxu0  ;;  %v8837_v18 = vcombine.high %v21340_v8, %v21343_v21  ;;  %v8839_v59 = vcombine.high %v21346_v16, %v21349_v41  ;;  %v8803_v51 = vcombine.low %v8786_v13, %v8800_v62 }
 0x2b6   : > { %v7341_v32 = vpop.f32.mrf.mxu1  ;;  %v8874_v2 = vcombine.low %v24040_v19, %v19509_v20  ;;  %v21386_v25 = vrot.slane %v8769_v28, %v17062_v22  ;;  %v21392_v60 = vrot.slane %v8871_v49, %v17062_v22  ;;  %v21395_v3 = vrot.slane %v8872_v12, %v17062_v22 }
 0x2b7   : > { %v7526_v14 = vpop.f32.mrf.mxu0  ;;  %v21389_v32 = vrot.slane %v8771_v29, %v17062_v22  ;;  %v8853_v20 = vrot.slane %v8837_v18, %v17062_v22  ;;  %v8867_v62 = vrot.slane %v8839_v59, %v17062_v22  ;;  %v21400_v28 = vrot.slane %v8873_v0, %v17062_v22  ;;  %v24042_v18 = vld [vmem:[#allocation189_spill] sm:$0xff] }
 0x2b8   : > { %v7342_v30 = vpop.f32.mrf.mxu1  ;;  %v21381_v17 = vadd.f32 %v7526_v14, %v21274_v31  ;;  %v8836_v14 = vcombine.low %v21340_v8, %v21343_v21  ;;  %v8938_v59 = vcombine.low %v24042_v18, %v19621_v26  ;;  %v14839_v8 = vcombine.high %v19626_v52, %v19629_v34  ;;  %v24043_v21 = vld [vmem:[#allocation75_spill] sm:$0xff] }
 0x2b9   : > { %v21378_v53 = vadd.f32 %v7342_v30, %v24039_v58  ;;  %v16014_v39 = vpop.f32.mrf.mxu0  ;;  %v8668_v30 = vcombine.high %v21282_v42, %v21285_v55  ;;  %v8801_v58 = vcombine.low %v21386_v25, %v21389_v32  ;;  %v14838_v42 = vcombine.high %v19618_v10, %v19621_v26 }
 0x2ba   : > { %v7344_v23 = vpop.f32.mrf.mxu1  ;;  %v8940_v55 = vcombine.low %v19626_v52, %v19629_v34  ;;  %v21440_v10 = vrot.slane %v8836_v14, %v17062_v22  ;;  %v21447_v34 = vrot.slane %v8938_v59, %v17062_v22  ;;  %v8903_v14 = vcombine.low %v21392_v60, %v21395_v3 }
 0x2bb   : > { %v7531_v13 = vpop.f32.mrf.mxu0  ;;  %16128 = vmatmul.mubr.bf16.gmra.mxu0 %v8601_v46  ;;  %v21411_v46 = vrot.slane %v8874_v2, %v17062_v22 }
 0x2bc   : > { %v7347_v31 = vpop.f32.mrf.mxu1  ;;  %9389 = vmatmul.mubr.bf16.gmra.mxu1 %v8734_v27  ;;  %v21406_v49 = vadd.f32 %v7531_v13, %v21299_v33  ;;  %16131 = vmatprep.mubr.msk.bf16.mxu0 %vm16892_vm0, %v23577_v54  ;;  %v8838_v33 = vcombine.low %v21346_v16, %v21349_v41  ;;  %v8904_v27 = vcombine.high %v21392_v60, %v21395_v3 }
 0x2bd   : > { %v21403_v29 = vadd.f32 %v7347_v31, %v24041_v43  ;;  %9396 = vmatprep.mubr.bf16.mxu1 %v8803_v51  ;;  %v16017_v40 = vpop.f32.mrf.mxu0  ;;  %v8870_v51 = vcombine.low %v8853_v20, %v8867_v62  ;;  %v8906_v19 = vcombine.high %v21400_v28, %v21411_v46  ;;  %v21450_v31 = vrot.slane %v14838_v42, %v17062_v22 }
 0x2be   : > { %v7349_v12 = vpop.f32.mrf.mxu1  ;;  %v21443_v26 = vrot.slane %v8838_v33, %v17062_v22  ;;  %v8920_v52 = vrot.slane %v8904_v27, %v17062_v22  ;;  %v21453_v13 = vrot.slane %v8940_v55, %v17062_v22  ;;  %v8969_v20 = vrot.slane %v14839_v8, %v17062_v22 }
 0x2bf   : > { %v7534_v0 = vpop.f32.mrf.mxu0  ;;  %v8934_v47 = vrot.slane %v8906_v19, %v17062_v22  ;;  %v8905_v27 = vcombine.low %v21400_v28, %v21411_v46  ;;  %v8971_v18 = vcombine.high %v21447_v34, %v21450_v31  ;;  %v21481_v42 = vrot.slane %v8903_v14, %v17062_v22 }
 0x2c0   : > { %v7350_v24 = vpop.f32.mrf.mxu1  ;;  %v21435_v41 = vadd.f32 %v7534_v0, %v21326_v1  ;;  %v8973_v59 = vcombine.high %v21453_v13, %v8969_v20  ;;  %v16619_v0 = vld [vmem:[#allocation3 + $0xd8] sm:$0xff]  }
 0x2c1   : > { %v21432_v16 = vadd.f32 %v7350_v24, %v24043_v21  ;;  %v16018_v23 = vpop.f32.mrf.mxu0  ;;  %v16618_v24 = vld [vmem:[#allocation3 + $0x118] sm:$0xff]   ;;  %v8937_v60 = vcombine.low %v8920_v52, %v8934_v47  ;;  %v21484_v55 = vrot.slane %v8905_v27, %v17062_v22  ;;  %v16620_v52 = vld [vmem:[#allocation3 + $0x160] sm:$0xff]   ;;  %v8802_v47 = vcombine.high %v21386_v25, %v21389_v32  ;;  %v16621_v32 = vld [vmem:[#allocation3 + $0x110] sm:$0xff]  }
 0x2c2   : > { %v7352_v2 = vpop.f32.mrf.mxu1  ;;  %15435 = vmatprep.subr.bf16.mxu1 %v16618_v24  ;;  %16165 = vmatprep.subr.bf16.mxu0 %v16620_v52 }
 0x2c3   : > { %v7539_v1 = vpop.f32.mrf.mxu0  ;;  %16132 = vmatmul.mubr.bf16.gmra.mxu0 %v8668_v30  ;;  %v8735_v30 = vcombine.high %v21333_v36, %v21336_v57  ;;  %15436 = vmatpush3.bf16.msra.mxu1 %v16619_v0 }
 0x2c4   : > { %v7355_v39 = vpop.f32.mrf.mxu1  ;;  %9397 = vmatmul.mubr.bf16.gmra.mxu1 %v8801_v58  ;;  %v21460_v43 = vadd.f32 %v7539_v1, %v21352_v5  ;;  %16135 = vmatprep.mubr.msk.bf16.mxu0 %vm16892_vm0, %v23577_v54  ;;  %v8868_v5 = vcombine.low %v21440_v10, %v21443_v26 }
 0x2c5   : > { %v21457_v62 = vadd.f32 %v7355_v39, %v20479_v37  ;;  %9404 = vmatprep.mubr.bf16.mxu1 %v8870_v51  ;;  %v16021_v40 = vpop.f32.mrf.mxu0  ;;  %v24044_v51 = vld [vmem:[#allocation194_spill] sm:$0xff]  ;;  %16166 = vmatpush3.bf16.msra.mxu0 %v16620_v52  ;;  %v16627_v52 = vld [vmem:[#allocation3 + $0x158] sm:$0xff]  }
 0x2c6   : > { %v7357_v12 = vpop.f32.mrf.mxu1  ;;  %v9005_v19 = vcombine.low %v19730_v50, %v24044_v51  ;;  %v24045_v40 = vld [vmem:[#allocation76_spill] sm:$0xff]  ;;  %15437 = vmatprep.subr.bf16.mxu1 %v16621_v32  ;;  %16167 = vmatprep.subr.bf16.mxu0 %v16627_v52 }
 0x2c7   : > { %v7542_v37 = vpop.f32.mrf.mxu0  ;;  %v8972_v12 = vcombine.low %v21453_v13, %v8969_v20  ;;  %v16622_v13 = vld [vmem:[#allocation3 + $0xd0] sm:$0xff]  }
 0x2c8   : > { %v7358_v33 = vpop.f32.mrf.mxu1  ;;  %v21478_v57 = vadd.f32 %v7542_v37, %v21378_v53  ;;  %v9001_v53 = vrot.slane %v8973_v59, %v17062_v22  ;;  %15438 = vmatpush3.bf16.msra.mxu1 %v16622_v13 }
 0x2c9   : > { %v7359_v36 = vadd.f32 %v7358_v33, %v20496_v63  ;;  %v16022_v58 = vpop.f32.mrf.mxu0  ;;  %v8987_v63 = vrot.slane %v8971_v18, %v17062_v22  ;;  %v9012_v33 = vrot.slane %v9005_v19, %v17062_v22  ;;  %16168 = vmatpush3.bf16.msra.mxu0 %v16627_v52  ;;  %v24052_v52 = vld [vmem:[#allocation113_spill] sm:$0xff] }
 0x2ca   : > { %v7360_v3 = vpop.f32.mrf.mxu1 }
 0x2cb   : > { %v7547_v46 = vpop.f32.mrf.mxu0  ;;  %16136 = vmatmul.mubr.bf16.gmra.mxu0 %v8735_v30  ;;  %v9004_v14 = vcombine.low %v8987_v63, %v9001_v53  ;;  %v9013_v59 = vcombine.high %v9012_v33, %v9012_v33  ;;  %v24047_v63 = vld [vmem:[#allocation93_spill] sm:$0xff]  ;;  %v9020_v32 = vrot.slane %v9012_v33, %v17062_v22 }
 0x2cc   : > { %v7363_v28 = vpop.f32.mrf.mxu1  ;;  %9405 = vmatmul.mubr.bf16.gmra.mxu1 %v8868_v5  ;;  %v21490_v21 = vadd.f32 %v7547_v46, %v21403_v29  ;;  %16139 = vmatprep.mubr.msk.bf16.mxu0 %vm16892_vm0, %v23577_v54  ;;  %v8970_v29 = vcombine.low %v21447_v34, %v21450_v31  ;;  %v21512_v31 = vrot.slane %v8972_v12, %v17062_v22 }
 0x2cd   : > { %v7364_v8 = vadd.f32 %v7363_v28, %v20531_v7  ;;  %9412 = vmatprep.mubr.bf16.mxu1 %v8937_v60  ;;  %v16025_v23 = vpop.f32.mrf.mxu0  ;;  %v8935_v7 = vcombine.low %v21481_v42, %v21484_v55  ;;  %v16623_v60 = vld [vmem:[#allocation3 + $0x108] sm:$0xff]   ;;  %v8869_v28 = vcombine.high %v21440_v10, %v21443_v26  ;;  %v9027_v19 = vrot.slane %v9013_v59, %v17062_v22  ;;  %v16629_v10 = vld [vmem:[#allocation3 + $0xc0] sm:$0xff]  }
 0x2ce   : > { %v7365_v2 = vpop.f32.mrf.mxu1  ;;  %v21509_v34 = vrot.slane %v8970_v29, %v17062_v22  ;;  %15439 = vmatprep.subr.bf16.mxu1 %v16623_v60  ;;  %v24048_v26 = vld [vmem:[#allocation94_spill] sm:$0xff]  ;;  %v24050_v60 = vld [vmem:[#allocation96_spill] sm:$0xff] }
 0x2cf   : > { %v7550_v1 = vpop.f32.mrf.mxu0  ;;  %v16633_v59 = vld [vmem:[#allocation3 + $0x148] sm:$0xff]  }
 0x2d0   : > { %v7366_v39 = vpop.f32.mrf.mxu1  ;;  %v21505_v50 = vadd.f32 %v7550_v1, %v21432_v16  ;;  %v24046_v16 = vld [vmem:[#allocation79_spill] sm:$0xff]  ;;  %v9002_v46 = vcombine.low %v21509_v34, %v21512_v31  ;;  %v9003_v33 = vcombine.high %v21509_v34, %v21512_v31 }
 0x2d1   : > { %v7367_v30 = vadd.f32 %v7366_v39, %v24045_v40  ;;  %v16026_v25 = vpop.f32.mrf.mxu0  ;;  %v16628_v39 = vld [vmem:[#allocation3 + $0x100] sm:$0xff]   ;;  %v16630_v40 = vld [vmem:[#allocation3 + $0x150] sm:$0xff]  }
 0x2d2   : > { %v7368_v37 = vpop.f32.mrf.mxu1  ;;  %v8936_v25 = vcombine.high %v21481_v42, %v21484_v55  ;;  %16169 = vmatprep.subr.bf16.mxu0 %v16630_v40 }
 0x2d3   : > { %v7555_v27 = vpop.f32.mrf.mxu0  ;;  %16140 = vmatmul.mubr.bf16.gmra.mxu0 %v8802_v47 }
 0x2d4   : > { %v7371_v5 = vpop.f32.mrf.mxu1  ;;  %9413 = vmatmul.mubr.bf16.gmra.mxu1 %v8935_v7  ;;  %v21516_v18 = vadd.f32 %v7555_v27, %v21457_v62  ;;  %16143 = vmatprep.mubr.msk.bf16.mxu0 %vm16892_vm0, %v23577_v54  ;;  %v16624_v62 = vld [vmem:[#allocation3 + $0xc8] sm:$0xff]  }
 0x2d5   : > { %v7372_v20 = vadd.f32 %v7371_v5, %v24046_v16  ;;  %9420 = vmatprep.mubr.bf16.mxu1 %v9004_v14  ;;  %v16029_v0 = vpop.f32.mrf.mxu0  ;;  %15440 = vmatpush3.bf16.msra.mxu1 %v16624_v62 }
 0x2d6   : > { %v7373_v24 = vpop.f32.mrf.mxu1  ;;  %15441 = vmatprep.subr.bf16.mxu1 %v16628_v39  ;;  %16170 = vmatpush3.bf16.msra.mxu0 %v16630_v40 }
 0x2d7   : > { %v7558_v58 = vpop.f32.mrf.mxu0  ;;  %16171 = vmatprep.subr.bf16.mxu0 %v16633_v59 }
 0x2d8   : > { %v7374_v3 = vpop.f32.mrf.mxu1  ;;  %v21525_v51 = vadd.f32 %v7558_v58, %v7359_v36 }
 0x2d9   : > { %v7375_v53 = vadd.f32 %v7374_v3, %v24047_v63  ;;  %v16030_v23 = vpop.f32.mrf.mxu0  ;;  %15442 = vmatpush3.bf16.msra.mxu1 %v16629_v10  ;;  %v16636_v63 = vld [vmem:[#allocation3 + $0x140] sm:$0xff]   ;;  %v9028_v10 = vcombine.high %v9020_v32, %v9020_v32 }
 0x2da   : > { %v7376_v2 = vpop.f32.mrf.mxu1  ;;  %16172 = vmatpush3.bf16.msra.mxu0 %v16633_v59 }
 0x2db   : > { %v7563_v47 = vpop.f32.mrf.mxu0  ;;  %16144 = vmatmul.mubr.bf16.gmra.mxu0 %v8869_v28  ;;  %v24051_v28 = vld [vmem:[#allocation98_spill] sm:$0xff]  ;;  %16173 = vmatprep.subr.bf16.mxu0 %v16636_v63 }
 0x2dc   : > { %v7379_v1 = vpop.f32.mrf.mxu1  ;;  %9421 = vmatmul.mubr.bf16.gmra.mxu1 %v9002_v46  ;;  %v21529_v29 = vadd.f32 %v7563_v47, %v7364_v8  ;;  %16147 = vmatprep.mubr.msk.bf16.mxu0 %vm16892_vm0, %v23577_v54  ;;  %v24049_v8 = vld [vmem:[#allocation95_spill] sm:$0xff] }
 0x2dd   : > { %v7380_v7 = vadd.f32 %v7379_v1, %v24048_v26  ;;  %9428 = vmatprep.mubr.bf16.mxu1 %v9027_v19  ;;  %v16033_v12 = vpop.f32.mrf.mxu0  ;;  %v24053_v26 = vld [vmem:[#allocation114_spill] sm:$0xff] }
 0x2de   : > { %v7381_v36 = vpop.f32.mrf.mxu1  ;;  %16174 = vmatpush3.bf16.msra.mxu0 %v16636_v63 }
 0x2df   : > { %v7566_v37 = vpop.f32.mrf.mxu0 }
 0x2e0   : > { %v7382_v14 = vpop.f32.mrf.mxu1  ;;  %v21537_v27 = vadd.f32 %v7566_v37, %v7367_v30 }
 0x2e1   : > { %v7383_v5 = vadd.f32 %v7382_v14, %v24049_v8  ;;  %v16034_v16 = vpop.f32.mrf.mxu0 }
 0x2e2   : > { %v7384_v13 = vpop.f32.mrf.mxu1 }
 0x2e3   : > { %v7571_v0 = vpop.f32.mrf.mxu0  ;;  %16148 = vmatmul.mubr.bf16.gmra.mxu0 %v8936_v25 }
 0x2e4   : > { %v7387_v24 = vpop.f32.mrf.mxu1  ;;  %9429 = vmatmul.mubr.bf16.gmra.mxu1 %v9020_v32  ;;  %v21540_v58 = vadd.f32 %v7571_v0, %v7372_v20  ;;  %16151 = vmatprep.mubr.msk.bf16.mxu0 %vm16892_vm0, %v23577_v54  ;;  %v24055_v0 = vld [vmem:[#allocation112_spill] sm:$0xff] }
 0x2e5   : > { %v7388_v3 = vadd.f32 %v7387_v24, %v24050_v60  ;;  %v16037_v42 = vpop.f32.mrf.mxu0 }
 0x2e6   : > { %v7389_v22 = vpop.f32.mrf.mxu1 }
 0x2e7   : > { %v7574_v30 = vpop.f32.mrf.mxu0 }
 0x2e8   : > { %v7390_v55 = vpop.f32.mrf.mxu1  ;;  %v21547_v62 = vadd.f32 %v7574_v30, %v7375_v53  ;;  %v24057_v30 = vld [vmem:[#allocation117_spill] sm:$0xff] }
 0x2e9   : > { %v7391_v46 = vadd.f32 %v7390_v55, %v24051_v28  ;;  %v16038_v20 = vpop.f32.mrf.mxu0 }
 0x2ea   : > { %v7392_v19 = vpop.f32.mrf.mxu1 }
 0x2eb   : > { %v7579_v23 = vpop.f32.mrf.mxu0  ;;  %16152 = vmatmul.mubr.bf16.gmra.mxu0 %v9003_v33 }
 0x2ec   : > { %v7395_v2 = vpop.f32.mrf.mxu1  ;;  %v21550_v1 = vadd.f32 %v7579_v23, %v7380_v7  ;;  %16155 = vmatprep.mubr.msk.bf16.mxu0 %vm16892_vm0, %v23577_v54  ;;  %v24054_v7 = vld [vmem:[#allocation115_spill] sm:$0xff]  ;;  %vm11541_vm0 = vcmask 1040384  }
 0x2ed   : > { %v7396_v39 = vadd.f32 %v7395_v2, %v24052_v52  ;;  %v16041_v31 = vpop.f32.mrf.mxu0  ;;  %vm21639_vm3 = vmand %vm11541_vm0, %vm11597_vm2 }
 0x2ee   : > { %v7397_v34 = vpop.f32.mrf.mxu1  ;;  %vm21652_vm4 = vmand %vm11541_vm0, %vm2298_vm1  ;;  %vm11917_vm1 = vsmask.f32 7424 }
 0x2ef   : > { %v7582_v53 = vpop.f32.mrf.mxu0 }
 0x2f0   : > { %v7398_v47 = vpop.f32.mrf.mxu1  ;;  %v21555_v12 = vadd.f32 %v7582_v53, %v7383_v5 }
 0x2f1   : > { %v7399_v36 = vadd.f32 %v7398_v47, %v24053_v26  ;;  %v16042_v14 = vpop.f32.mrf.mxu0 }
 0x2f2   : > { %v7400_v40 = vpop.f32.mrf.mxu1 }
 0x2f3   : > { %v7587_v25 = vpop.f32.mrf.mxu0  ;;  %16156 = vmatmul.mubr.bf16.gmra.mxu0 %v9028_v10 }
 0x2f4   : > { %v7403_v37 = vpop.f32.mrf.mxu1  ;;  %v21558_v13 = vadd.f32 %v7587_v25, %v7388_v3 }
 0x2f5   : > { %v7404_v8 = vadd.f32 %v7403_v37, %v24054_v7  ;;  %v16045_v16 = vpop.f32.mrf.mxu0 }
 0x2f6   : > { %v7405_v54 = vpop.f32.mrf.mxu1  ;;  %v16894_v16 = vmov 1983009808  }
 0x2f7   : > { %v7590_v24 = vpop.f32.mrf.mxu0 }
 0x2f8   : > { %v7406_v59 = vpop.f32.mrf.mxu1  ;;  %v21561_v32 = vadd.f32 %v7590_v24, %v7391_v46 }
 0x2f9   : > { %v7407_v60 = vadd.f32 %v7406_v59, %v24055_v0  ;;  %v16046_v5 = vpop.f32.mrf.mxu0  ;;  %v9768_v59 = vunpack.c.l.s4 %v16894_v16 }
 0x2fa   : > { %24056 = vst [vmem:[#allocation135_spill] sm:$0xff] %v21561_v32  ;;  %v7408_v22 = vpop.f32.mrf.mxu1 }
 0x2fb   : > { %v7595_v55 = vpop.f32.mrf.mxu0  ;;  %v9769_v5 = vunpack.c.0.s8 %v9768_v59 }
 0x2fc   : > { %v7411_v42 = vpop.f32.mrf.mxu1  ;;  %v21564_v28 = vadd.f32 %v7595_v55, %v7396_v39 }
 0x2fd   : > { %v7412_v33 = vadd.f32 %v7411_v42, %v24057_v30  ;;  %v16049_v63 = vpop.f32.mrf.mxu0 }
 0x2fe   : > { %24058 = vst [vmem:[#allocation140_spill] sm:$0xff] %v21564_v28  ;;  %v7413_v19 = vpop.f32.mrf.mxu1 }
 0x2ff   : > { %v7598_v3 = vpop.f32.mrf.mxu0  ;;  %v24063_v19 = vld [vmem:[#allocation116_spill] sm:$0xff] }
 0x300   : > { %v7414_v20 = vpop.f32.mrf.mxu1  ;;  %v21566_v2 = vadd.f32 %v7598_v3, %v7399_v36 }
 0x301   : > { %v16050_v23 = vpop.f32.mrf.mxu0  ;;  %v24064_v20 = vld [vmem:[#allocation9_spill] sm:$0xff] }
 0x302   : > { %24059 = vst [vmem:[#allocation141_spill] sm:$0xff] %v21566_v2  ;;  %v7415_v52 = vpop.f32.mrf.mxu1  ;;  %v21581_v23 = vsub.s32 %v9769_v5, %v24064_v20  ;;  %v21590_v5 = vld [vmem:[#allocation3 + $0xb8] sm:$0xff]  }
 0x303   : > { %v7603_v34 = vpop.f32.mrf.mxu0  ;;  %16207 = vmatprep.subr.bf16.mxu1 %v21590_v5 }
 0x304   : > { %v9270_v31 = vpop.f32.mrf.mxu1  ;;  %v21568_v46 = vadd.f32 %v7603_v34, %v7404_v8 }
 0x305   : > { %v16053_v47 = vpop.f32.mrf.mxu0 }
 0x306   : > { %24060 = vst [vmem:[#allocation161_spill] sm:$0xff] %v21568_v46  ;;  %v9272_v53 = vpop.f32.mrf.mxu1 }
 0x307   : > { %v7606_v10 = vpop.f32.mrf.mxu0 }
 0x308   : > { %v9273_v26 = vpop.f32.mrf.mxu1  ;;  %v21570_v40 = vadd.f32 %v7606_v10, %v7407_v60  ;;  %v21577_v60 = vld [vmem:[%s23286_s2] ss:$0 sm:$0xff] }
 0x309   : > { %v16054_v39 = vpop.f32.mrf.mxu0 }
 0x30a   : > { %24061 = vst [vmem:[#allocation153_spill] sm:$0xff] %v21570_v40  ;;  %v9275_v14 = vpop.f32.mrf.mxu1 }
 0x30b   : > { %v7611_v37 = vpop.f32.mrf.mxu0 }
 0x30c   : > { %v9278_v25 = vpop.f32.mrf.mxu1  ;;  %v21572_v7 = vadd.f32 %v7611_v37, %v7412_v33  ;;  %v24065_v37 = vld [vmem:[#allocation120_spill] sm:$0xff] }
 0x30d   : > { %v16057_v36 = vpop.f32.mrf.mxu0 }
 0x30e   : > { %24062 = vst [vmem:[#allocation162_spill] sm:$0xff] %v21572_v7  ;;  %v9280_v54 = vpop.f32.mrf.mxu1 }
 0x30f   : > { %v7614_v24 = vpop.f32.mrf.mxu0 }
 0x310   : > { %v9281_v0 = vpop.f32.mrf.mxu1 }
 0x311   : > { %v16058_v8 = vpop.f32.mrf.mxu0 }
 0x312   : > { %v9283_v22 = vpop.f32.mrf.mxu1 }
 0x313   : > { %v9470_v42 = vpop.f32.mrf.mxu0 }
 0x314   : > { %v9286_v55 = vpop.f32.mrf.mxu1  ;;  %v9471_v30 = vadd.f32 %v9470_v42, %v9270_v31 }
 0x315   : > { %v16077_v63 = vpop.f32.mrf.mxu0 }
 0x316   : > { %v9288_v33 = vpop.f32.mrf.mxu1  ;;  %v9636_v3 = vadd.f32 %v9471_v30, %v24063_v19  ;;  %v24066_v19 = vld [vmem:[#allocation119_spill] sm:$0xff] }
 0x317   : > { %v9473_v52 = vpop.f32.mrf.mxu0 }
 0x318   : > { %v9289_v34 = vpop.f32.mrf.mxu1  ;;  %v9684_v47 = vadd.f32 %v21577_v60, %v9636_v3  ;;  %v9474_v53 = vadd.f32 %v9473_v52, %v9273_v26 }
 0x319   : > { %v16078_v10 = vpop.f32.mrf.mxu0 }
 0x31a   : > { %v9291_v39 = vpop.f32.mrf.mxu1  ;;  %v9766_v31 = vcombine.high %v9684_v47, %v9684_v47  ;;  %v9773_v14 = vrot.slane %v9684_v47, %v21581_v23  ;;  %v9637_v36 = vadd.f32 %v9474_v53, %v24065_v37 }
 0x31b   : > { %v9478_v54 = vpop.f32.mrf.mxu0 }
 0x31c   : > { %v21586_v16 = vpop.f32.mrf.mxu1  ;;  %v9780_v59 = vrot.slane %v9766_v31, %v21581_v23  ;;  %v9781_v24 = vcombine.high %v9773_v14, %v9773_v14  ;;  %v9685_v8 = vadd.f32 %v21577_v60, %v9637_v36  ;;  %v9479_v22 = vadd.f32 %v9478_v54, %v9278_v25 }
 0x31d   : > { %v16081_v42 = vpop.f32.mrf.mxu0 }
 0x31e   : > { %v9296_v26 = vpop.f32.mrf.mxu1  ;;  %v9782_v30 = vcombine.high %v9780_v59, %v9780_v59  ;;  %v9783_v63 = vcombine.high %v9685_v8, %v9685_v8  ;;  %v9790_v33 = vrot.slane %v9685_v8, %v21581_v23  ;;  %v9638_v3 = vadd.f32 %v9479_v22, %v24066_v19  ;;  %v24067_v19 = vld [vmem:[#allocation121_spill] sm:$0xff] }
 0x31f   : > { %v9481_v20 = vpop.f32.mrf.mxu0  ;;  %v10454_v47 = vcombine.low %v9773_v14, %v9781_v24 }
 0x320   : > { %v21595_v52 = vpop.f32.mrf.mxu1  ;;  %v10455_v53 = vcombine.low %v9780_v59, %v9782_v30  ;;  %v9797_v10 = vrot.slane %v9783_v63, %v21581_v23  ;;  %v9798_v25 = vcombine.high %v9790_v33, %v9790_v33  ;;  %v9686_v39 = vadd.f32 %v21577_v60, %v9638_v3 }
 0x321   : > { %v9482_v31 = vadd.f32 %v9481_v20, %v9281_v0  ;;  %v16082_v37 = vpop.f32.mrf.mxu0  ;;  %v10462_v59 = vrot.slane %v10454_v47, %v21581_v23 }
 0x322   : > { %v9299_v36 = vpop.f32.mrf.mxu1  ;;  %v10469_v54 = vrot.slane %v10455_v53, %v21581_v23  ;;  %v9799_v8 = vcombine.high %v9797_v10, %v9797_v10  ;;  %v10471_v42 = vcombine.low %v9790_v33, %v9798_v25  ;;  %v9800_v26 = vcombine.high %v9686_v39, %v9686_v39  ;;  %v24068_v37 = vld [vmem:[#allocation131_spill] sm:$0xff] }
 0x323   : > { %v9807_v22 = vrot.slane %v9686_v39, %v21581_v23  ;;  %v9639_v7 = vadd.f32 %v9482_v31, %v24067_v19  ;;  %v9486_v40 = vpop.f32.mrf.mxu0 }
 0x324   : > { %v21602_v14 = vpop.f32.mrf.mxu1  ;;  %v10472_v24 = vcombine.low %v9797_v10, %v9799_v8  ;;  %v9487_v30 = vadd.f32 %v9486_v40, %v9286_v55  ;;  %v9814_v0 = vrot.slane %v9800_v26, %v21581_v23  ;;  %v10470_v25 = vcombine.low %v10462_v59, %v10469_v54 }
 0x325   : > { %v9815_v63 = vcombine.high %v9807_v22, %v9807_v22  ;;  %v10494_v3 = vrot.slane %v9807_v22, %v21581_v23  ;;  %v9687_v20 = vadd.f32 %v21577_v60, %v9639_v7  ;;  %v16085_v33 = vpop.f32.mrf.mxu0  ;;  %v10479_v39 = vrot.slane %v10471_v42, %v21581_v23 }
 0x326   : > { %v9304_v53 = vpop.f32.mrf.mxu1  ;;  %v10486_v31 = vrot.slane %v10472_v24, %v21581_v23  ;;  %v9640_v36 = vadd.f32 %v9487_v30, %v24068_v37  ;;  %v9816_v10 = vcombine.high %v9814_v0, %v9814_v0  ;;  %v24069_v30 = vmov 0  }
 0x327   : > { %v10495_v19 = vcombine.low %v9815_v63, %v9814_v0  ;;  %v15107_v47 = vpack.c.bf16 %v10494_v3, %v10494_v3  ;;  %v9817_v40 = vcombine.high %v9687_v20, %v9687_v20  ;;  %v9489_v55 = vpop.f32.mrf.mxu0  ;;  %v9824_v22 = vrot.slane %v9687_v20, %v21581_v23 }
 0x328   : > { %v21611_v8 = vpop.f32.mrf.mxu1  ;;  %v10487_v26 = vcombine.low %v10479_v39, %v10486_v31  ;;  %v9688_v7 = vadd.f32 %v21577_v60, %v9640_v36  ;;  %v9490_v33 = vadd.f32 %v9489_v55, %v9289_v34  ;;  %v24070_v31 = vld [vmem:[#allocation132_spill] sm:$0xff] }
 0x329   : > { %11482 = vst [vmem:[#allocation2 + $0x8] sm:$0x1] %v15107_v47  ;;  %v9831_v54 = vrot.slane %v9817_v40, %v21581_v23  ;;  %v16086_v42 = vpop.f32.mrf.mxu0  ;;  %v9832_v0 = vcombine.high %v9824_v22, %v9824_v22  ;;  %v10496_v63 = vcombine.low %v9816_v10, %v9824_v22  ;;  %v10503_v53 = vrot.slane %v10495_v19, %v21581_v23 }
 0x32a   : > { %v9307_v59 = vpop.f32.mrf.mxu1  ;;  %v15195_v24 = vpack.c.bf16 %v10487_v26, %v10470_v25  ;;  %11536 = vst [vmem:[#allocation2 + $0x8] sm:$0x1] %v24069_v30  ;;  %v9834_v3 = vcombine.high %v9688_v7, %v9688_v7  ;;  %v9841_v20 = vrot.slane %v9688_v7, %v21581_v23  ;;  %v9641_v37 = vadd.f32 %v9490_v33, %v24070_v31 }
 0x32b   : > { %v9833_v39 = vcombine.high %v9831_v54, %v9831_v54  ;;  %v9494_v34 = vpop.f32.mrf.mxu0  ;;  %v10510_v47 = vrot.slane %v10496_v63, %v21581_v23  ;;  %v10512_v40 = vcombine.low %v9832_v0, %v9831_v54  ;;  %v24071_v54 = vld [vmem:[#allocation139_spill] sm:$0xff] }
 0x32c   : > { %v21620_v36 = vpop.f32.mrf.mxu1  ;;  %15196 = vst [vmem:[#allocation2] sm:$0xff] %v15195_v24   ;;  %v9848_v25 = vrot.slane %v9834_v3, %v21581_v23  ;;  %v9495_v55 = vadd.f32 %v9494_v34, %v21586_v16  ;;  %v9849_v19 = vcombine.high %v9841_v20, %v9841_v20  ;;  %v9689_v26 = vadd.f32 %v21577_v60, %v9641_v37 }
 0x32d   : > { %11534 = vst [vmem:[#allocation2] sm:$0xf] %v24069_v30  ;;  %11535 = vst [vmem:[#allocation2 + $0x4] sm:$0xf] %v24069_v30  ;;  %v10513_v10 = vcombine.low %v9833_v39, %v9841_v20  ;;  %v16089_v22 = vpop.f32.mrf.mxu0  ;;  %v10511_v33 = vcombine.low %v10503_v53, %v10510_v47  ;;  %v10520_v42 = vrot.slane %v10512_v40, %v21581_v23 }
 0x32e   : > { %v9312_v7 = vpop.f32.mrf.mxu1  ;;  %v9850_v59 = vcombine.high %v9848_v25, %v9848_v25  ;;  %v9642_v24 = vadd.f32 %v9495_v55, %v24071_v54  ;;  %v10535_v16 = vrot.slane %v9849_v19, %v21581_v23  ;;  %v9851_v63 = vcombine.high %v9689_v26, %v9689_v26 }
 0x32f   : > { %v10527_v0 = vrot.slane %v10513_v10, %v21581_v23  ;;  %v9858_v3 = vrot.slane %v9689_v26, %v21581_v23  ;;  %v9497_v31 = vpop.f32.mrf.mxu0  ;;  %v15108_v39 = vpack.c.bf16 %v10511_v33, %v10511_v33 }
 0x330   : > { %v21633_v34 = vpop.f32.mrf.mxu1  ;;  %v10536_v20 = vcombine.low %v9848_v25, %v9850_v59  ;;  %v9690_v37 = vadd.f32 %v21577_v60, %v9642_v24  ;;  %v9498_v53 = vadd.f32 %v9497_v31, %v21595_v52  ;;  %v15110_v19 = vpack.c.bf16 %v10535_v16, %v10535_v16 }
 0x331   : > { %v11599_v40 = vld [vmem:[#allocation2 + $0x8] sm:$0x1]  ;;  %v10528_v55 = vcombine.low %v10520_v42, %v10527_v0  ;;  %v9865_v10 = vrot.slane %v9851_v63, %v21581_v23  ;;  %v9866_v26 = vcombine.high %v9858_v3, %v9858_v3  ;;  %v16090_v22 = vpop.f32.mrf.mxu0  ;;  %11483 = vst [vmem:[#allocation2 + $0xc] sm:$0xf] %v15108_v39 }
 0x332   : > { %v9315_v7 = vpop.f32.mrf.mxu1  ;;  %v11600_v25 = vsel %vm21639_vm3, 0, %v11599_v40  ;;  %v9868_v33 = vcombine.high %v9690_v37, %v9690_v37  ;;  %v9875_v52 = vrot.slane %v9690_v37, %v21581_v23  ;;  %11485 = vst [vmem:[#allocation2 + $0x14] sm:$0x1] %v15110_v19  ;;  %v9643_v42 = vadd.f32 %v9498_v53, %v21057_v48 }
 0x333   : > { %11601 = vst [vmem:[#allocation2 + $0x8] sm:$0x1] %v11600_v25  ;;  %v15109_v59 = vpack.c.bf16 %v10528_v55, %v10528_v55  ;;  %v9867_v54 = vcombine.high %v9865_v10, %v9865_v10  ;;  %v10537_v24 = vcombine.low %v9858_v3, %v9866_v26  ;;  %v9502_v0 = vpop.f32.mrf.mxu0  ;;  %v10544_v39 = vrot.slane %v10536_v20, %v21581_v23 }
 0x334   : > { %v21648_v16 = vpop.f32.mrf.mxu1  ;;  %v11543_v31 = vld [vmem:[#allocation2] sm:$0x1]  ;;  %v9882_v37 = vrot.slane %v9868_v33, %v21581_v23  ;;  %v9883_v40 = vcombine.high %v9875_v52, %v9875_v52  ;;  %v9503_v55 = vadd.f32 %v9502_v0, %v21602_v14  ;;  %v9691_v19 = vadd.f32 %v21577_v60, %v9643_v42 }
 0x335   : > { %v11544_v48 = vsel %vm21652_vm4, 0, %v11543_v31  ;;  %11484 = vst [vmem:[#allocation2 + $0x10] sm:$0xf] %v15109_v59  ;;  %v10551_v3 = vrot.slane %v10537_v24, %v21581_v23  ;;  %v10553_v53 = vcombine.low %v9865_v10, %v9867_v54  ;;  %v16093_v26 = vpop.f32.mrf.mxu0 }
 0x336   : > { %v9320_v22 = vpop.f32.mrf.mxu1  ;;  %11545 = vst [vmem:[#allocation2] sm:$0x1] %v11544_v48  ;;  %v10554_v7 = vcombine.low %v9875_v52, %v9883_v40  ;;  %v10576_v20 = vrot.slane %v9882_v37, %v21581_v23  ;;  %v9884_v25 = vcombine.high %v9882_v37, %v9882_v37  ;;  %v9644_v33 = vadd.f32 %v9503_v55, %v21085_v38 }
 0x337   : > { %v10552_v30 = vcombine.low %v10544_v39, %v10551_v3  ;;  %v10561_v14 = vrot.slane %v10553_v53, %v21581_v23  ;;  %v9885_v0 = vcombine.high %v9691_v19, %v9691_v19  ;;  %v9892_v59 = vrot.slane %v9691_v19, %v21581_v23  ;;  %v9505_v31 = vpop.f32.mrf.mxu0 }
 0x338   : > { %v21667_v24 = vpop.f32.mrf.mxu1  ;;  %v10568_v10 = vrot.slane %v10554_v7, %v21581_v23  ;;  %v15113_v54 = vpack.c.bf16 %v10576_v20, %v10576_v20  ;;  %v9692_v42 = vadd.f32 %v21577_v60, %v9644_v33  ;;  %v9506_v52 = vadd.f32 %v9505_v31, %v21611_v8  ;;  %v11546_v40 = vld [vmem:[#allocation2 + $0xc] sm:$0x1] }
 0x339   : > { %v9899_v37 = vrot.slane %v9885_v0, %v21581_v23  ;;  %v9900_v38 = vcombine.high %v9892_v59, %v9892_v59  ;;  %v10577_v39 = vcombine.low %v9884_v25, %v9892_v59  ;;  %v16094_v55 = vpop.f32.mrf.mxu0  ;;  %v11547_v3 = vsel %vm21652_vm4, 0, %v11546_v40  ;;  %v11602_v53 = vld [vmem:[#allocation2 + $0x14] sm:$0x1] }
 0x33a   : > { %v9323_v48 = vpop.f32.mrf.mxu1  ;;  %v10569_v19 = vcombine.low %v10561_v14, %v10568_v10  ;;  %11488 = vst [vmem:[#allocation2 + $0x20] sm:$0x1] %v15113_v54  ;;  %v9902_v26 = vcombine.high %v9692_v42, %v9692_v42  ;;  %v9909_v22 = vrot.slane %v9692_v42, %v21581_v23  ;;  %11548 = vst [vmem:[#allocation2 + $0xc] sm:$0x1] %v11547_v3  ;;  %v11603_v8 = vsel %vm21639_vm3, 0, %v11602_v53 }
 0x33b   : > { %v10578_v7 = vcombine.low %v9900_v38, %v9899_v37  ;;  %v9901_v20 = vcombine.high %v9899_v37, %v9899_v37  ;;  %v9510_v33 = vpop.f32.mrf.mxu0  ;;  %v21680_v25 = vld [vmem:[#allocation2 + $0x8] ss:$0 sps:$4 sm:$0x11]   ;;  %11604 = vst [vmem:[#allocation2 + $0x14] sm:$0x1] %v11603_v8  ;;  %v9645_v10 = vadd.f32 %v9506_v52, %v21115_v45  ;;  %v10585_v54 = vrot.slane %v10577_v39, %v21581_v23 }
 0x33c   : > { %v21678_v0 = vpop.f32.mrf.mxu1  ;;  %v15200_v59 = vpack.c.bf16 %v10569_v19, %v10552_v30  ;;  %v9916_v31 = vrot.slane %v9902_v26, %v21581_v23  ;;  %v9917_v14 = vcombine.high %v9909_v22, %v9909_v22  ;;  %v9511_v38 = vadd.f32 %v9510_v33, %v21620_v36 }
 0x33d   : > { %v10592_v42 = vrot.slane %v10578_v7, %v21581_v23  ;;  %v10594_v40 = vcombine.low %v9901_v20, %v9909_v22  ;;  %v16097_v37 = vpop.f32.mrf.mxu0  ;;  %v21687_v48 = vld [vmem:[#allocation2] sm:$0xff]   ;;  %v9693_v30 = vadd.f32 %v21577_v60, %v9645_v10 }
 0x33e   : > { %v9328_v55 = vpop.f32.mrf.mxu1  ;;  %15317 = vst [vmem:[#allocation2 + $0x18] sm:$0xff] %v15200_v59   ;;  %v9918_v3 = vcombine.high %v9916_v31, %v9916_v31  ;;  %v10595_v53 = vcombine.low %v9917_v14, %v9916_v31  ;;  %v9646_v52 = vadd.f32 %v9511_v38, %v21143_v35 }
 0x33f   : > { %v10593_v26 = vcombine.low %v10585_v54, %v10592_v42  ;;  %v10602_v45 = vrot.slane %v10594_v40, %v21581_v23  ;;  %v9513_v39 = vpop.f32.mrf.mxu0  ;;  %v9919_v20 = vcombine.high %v9693_v30, %v9693_v30  ;;  %v9926_v33 = vrot.slane %v9693_v30, %v21581_v23 }
 0x340   : > { %v21693_v22 = vpop.f32.mrf.mxu1  ;;  %v10609_v8 = vrot.slane %v10595_v53, %v21581_v23  ;;  %v10617_v7 = vrot.slane %v9918_v3, %v21581_v23  ;;  %v9694_v14 = vadd.f32 %v21577_v60, %v9646_v52  ;;  %v9514_v10 = vadd.f32 %v9513_v39, %v21633_v34 }
 0x341   : > { %v11605_v59 = vld [vmem:[#allocation2 + $0x20] sm:$0x1]  ;;  %v15114_v31 = vpack.c.bf16 %v10593_v26, %v10593_v26  ;;  %v16098_v54 = vpop.f32.mrf.mxu0  ;;  %v9933_v55 = vrot.slane %v9919_v20, %v21581_v23  ;;  %v21705_v3 = vld [vmem:[#allocation2 + $0xc] sm:$0xff]   ;;  %v9934_v53 = vcombine.high %v9926_v33, %v9926_v33 }
 0x342   : > { %v9331_v35 = vpop.f32.mrf.mxu1  ;;  %v11606_v40 = vsel %vm21639_vm3, 0, %v11605_v59  ;;  %v10610_v38 = vcombine.low %v10602_v45, %v10609_v8  ;;  %v15116_v37 = vpack.c.bf16 %v10617_v7, %v10617_v7  ;;  %v9936_v30 = vcombine.high %v9694_v14, %v9694_v14 }
 0x343   : > { %11607 = vst [vmem:[#allocation2 + $0x20] sm:$0x1] %v11606_v40  ;;  %11489 = vst [vmem:[#allocation2 + $0x24] sm:$0xf] %v15114_v31  ;;  %v9943_v26 = vrot.slane %v9694_v14, %v21581_v23  ;;  %v9647_v34 = vadd.f32 %v9514_v10, %v21171_v44  ;;  %v9518_v52 = vpop.f32.mrf.mxu0  ;;  %v9935_v59 = vcombine.high %v9933_v55, %v9933_v55  ;;  %v11931_v8 = vshrl.u32 %v21705_v3, 16 }
 0x344   : > { %v21709_v39 = vpop.f32.mrf.mxu1  ;;  %v15115_v54 = vpack.c.bf16 %v10610_v38, %v10610_v38  ;;  %11491 = vst [vmem:[#allocation2 + $0x2c] sm:$0x1] %v15116_v37  ;;  %v9519_v45 = vadd.f32 %v9518_v52, %v21648_v16  ;;  %v10618_v20 = vcombine.low %v9926_v33, %v9934_v53  ;;  %v9950_v31 = vrot.slane %v9936_v30, %v21581_v23  ;;  %v16656_v37 = vld [vmem:[#allocation3 + $0x78] sm:$0xff]  }
 0x345   : > { %v11549_v7 = vld [vmem:[#allocation2 + $0x18] sm:$0x1]  ;;  %v9951_v35 = vcombine.high %v9943_v26, %v9943_v26  ;;  %v9695_v40 = vadd.f32 %v21577_v60, %v9647_v34  ;;  %v16101_v14 = vpop.f32.mrf.mxu0  ;;  %v10619_v10 = vcombine.low %v9933_v55, %v9935_v59  ;;  %v11933_v16 = vshll.u32 %v21705_v3, 16  ;;  %15563 = vmatprep.subr.bf16.mxu0 %v16656_v37 }
 0x346   : > { %v9336_v19 = vpop.f32.mrf.mxu1  ;;  %v11550_v44 = vsel %vm21652_vm4, 0, %v11549_v7  ;;  %11490 = vst [vmem:[#allocation2 + $0x28] sm:$0xf] %v15115_v54  ;;  %v9648_v38 = vadd.f32 %v9519_v45, %v21197_v6  ;;  %v10626_v33 = vrot.slane %v10618_v20, %v21581_v23  ;;  %v9952_v53 = vcombine.high %v9950_v31, %v9950_v31  ;;  %v16626_v7 = vld [vmem:[#allocation2 + $0x14] ss:$0 sps:$4 sm:$0x11]  }
 0x347   : > { %11551 = vst [vmem:[#allocation2 + $0x18] sm:$0x1] %v11550_v44  ;;  %v10635_v30 = vcombine.low %v9943_v26, %v9951_v35  ;;  %v9953_v52 = vcombine.high %v9695_v40, %v9695_v40  ;;  %v9521_v36 = vpop.f32.mrf.mxu0  ;;  %v10633_v19 = vrot.slane %v10619_v10, %v21581_v23  ;;  %v9960_v54 = vrot.slane %v9695_v40, %v21581_v23 }
 0x348   : > { %v21720_v34 = vpop.f32.mrf.mxu1  ;;  %v9696_v55 = vadd.f32 %v21577_v60, %v9648_v38  ;;  %v9522_v6 = vadd.f32 %v9521_v36, %v21667_v24  ;;  %v10636_v3 = vcombine.low %v9950_v31, %v9952_v53  ;;  %v11935_v20 = vrot.slane %v11933_v16, 1 }
 0x349   : > { %v10643_v59 = vrot.slane %v10635_v30, %v21581_v23  ;;  %v9967_v45 = vrot.slane %v9953_v52, %v21581_v23  ;;  %v16102_v26 = vpop.f32.mrf.mxu0  ;;  %v10634_v44 = vcombine.low %v10626_v33, %v10633_v19  ;;  %v9968_v42 = vcombine.high %v9960_v54, %v9960_v54 }
 0x34a   : > { %v9339_v35 = vpop.f32.mrf.mxu1  ;;  %v11552_v14 = vld [vmem:[#allocation2 + $0x24] sm:$0x1]  ;;  %v10658_v10 = vrot.slane %v9960_v54, %v21581_v23  ;;  %v9970_v40 = vcombine.high %v9696_v55, %v9696_v55  ;;  %v10650_v36 = vrot.slane %v10636_v3, %v21581_v23  ;;  %v9977_v37 = vrot.slane %v9696_v55, %v21581_v23 }
 0x34b   : > { %v11553_v38 = vsel %vm21652_vm4, 0, %v11552_v14  ;;  %v11608_v24 = vld [vmem:[#allocation2 + $0x2c] sm:$0x1]  ;;  %v9969_v31 = vcombine.high %v9967_v45, %v9967_v45  ;;  %v9526_v53 = vpop.f32.mrf.mxu0  ;;  %v10659_v33 = vcombine.low %v9968_v42, %v9967_v45  ;;  %v9649_v3 = vadd.f32 %v9522_v6, %v21225_v56 }
 0x34c   : > { %v21733_v30 = vpop.f32.mrf.mxu1  ;;  %11554 = vst [vmem:[#allocation2 + $0x24] sm:$0x1] %v11553_v38  ;;  %v11609_v16 = vsel %vm21639_vm3, 0, %v11608_v24  ;;  %v15119_v52 = vpack.c.bf16 %v10658_v10, %v10658_v10  ;;  %v9984_v19 = vrot.slane %v9970_v40, %v21581_v23  ;;  %v10651_v54 = vcombine.low %v10643_v59, %v10650_v36 }
 0x34d   : > { %11610 = vst [vmem:[#allocation2 + $0x2c] sm:$0x1] %v11609_v16  ;;  %v9985_v26 = vcombine.high %v9977_v37, %v9977_v37  ;;  %v10660_v35 = vcombine.low %v9969_v31, %v9977_v37  ;;  %v16105_v14 = vpop.f32.mrf.mxu0  ;;  %v10667_v55 = vrot.slane %v10659_v33, %v21581_v23  ;;  %v11936_v38 = vor.u32 %v11935_v20, %v11931_v8 }
 0x34e   : > { %v9344_v46 = vpop.f32.mrf.mxu1  ;;  %11494 = vst [vmem:[#allocation2 + $0x38] sm:$0x1] %v15119_v52  ;;  %v9986_v2 = vcombine.high %v9984_v19, %v9984_v19  ;;  %v11938_v28 = vshll.u32 %v16626_v7, 16  ;;  %v15205_v32 = vpack.c.bf16 %v10651_v54, %v10634_v44  ;;  %v9697_v10 = vadd.f32 %v21577_v60, %v9649_v3  ;;  %v21750_v37 = vld [vmem:[#allocation2 + $0x18] sm:$0xff]  }
 0x34f   : > { %v10674_v42 = vrot.slane %v10660_v35, %v21581_v23  ;;  %v10676_v45 = vcombine.low %v9985_v26, %v9984_v19  ;;  %v9529_v40 = vpop.f32.mrf.mxu0  ;;  %v9527_v56 = vadd.f32 %v9526_v53, %v21678_v0  ;;  %v24076_v6 = vshll.u32 %v21687_v48, 16 }
 0x350   : > { %v21742_v59 = vpop.f32.mrf.mxu1  ;;  %v11940_v24 = vrot.slane %v11938_v28, 1  ;;  %v9530_v46 = vadd.f32 %v9529_v40, %v21693_v22  ;;  %15318 = vst [vmem:[#allocation2 + $0x30] sm:$0xff] %v15205_v32   ;;  %v9987_v20 = vcombine.high %v9697_v10, %v9697_v10  ;;  %v9994_v44 = vrot.slane %v9697_v10, %v21581_v23 }
 0x351   : > { %v11923_v36 = vrot.slane %v24076_v6, 1  ;;  %v10675_v8 = vcombine.low %v10667_v55, %v10674_v42  ;;  %v10684_v7 = vrot.slane %v10676_v45, %v21581_v23  ;;  %v16106_v31 = vpop.f32.mrf.mxu0  ;;  %v9650_v0 = vadd.f32 %v9527_v56, %v21251_v4 }
 0x352   : > { %v9347_v16 = vpop.f32.mrf.mxu1  ;;  %v21753_v28 = vsel %vm11917_vm1, %v11936_v38, %v11940_v24  ;;  %v9651_v22 = vadd.f32 %v9530_v46, %v21277_v61  ;;  %v24077_v53 = vshrl.u32 %v21687_v48, 16  ;;  %v10001_v52 = vrot.slane %v9987_v20, %v21581_v23  ;;  %v16650_v31 = vld [vmem:[#allocation3 + $0xb0] sm:$0xff]  }
 0x353   : > { %v15120_v33 = vpack.c.bf16 %v10675_v8, %v10675_v8  ;;  %v10002_v19 = vcombine.high %v9994_v44, %v9994_v44  ;;  %v10677_v54 = vcombine.low %v9986_v2, %v9994_v44  ;;  %12376 = vmatprep.mubr.bf16.mxu1 %v21753_v28  ;;  %v9534_v26 = vpop.f32.mrf.mxu0  ;;  %v9698_v3 = vadd.f32 %v21577_v60, %v9650_v0 }
 0x354   : > { %v11924_v32 = vor.u32 %v11923_v36, %v24077_v53  ;;  %v21761_v35 = vpop.f32.mrf.mxu1  ;;  %v9699_v14 = vadd.f32 %v21577_v60, %v9651_v22  ;;  %v24078_v4 = vshll.u32 %v21680_v25, 16  ;;  %v9535_v48 = vadd.f32 %v9534_v26, %v21709_v39 }
 0x355   : > { %v11611_v55 = vld [vmem:[#allocation2 + $0x38] sm:$0x1]  ;;  %11495 = vst [vmem:[#allocation2 + $0x3c] sm:$0xf] %v15120_v33  ;;  %v10003_v38 = vcombine.high %v10001_v52, %v10001_v52  ;;  %v10691_v42 = vrot.slane %v10677_v54, %v21581_v23  ;;  %v10699_v2 = vrot.slane %v10002_v19, %v21581_v23  ;;  %v16109_v45 = vpop.f32.mrf.mxu0  ;;  %v11943_v10 = vshrl.u32 %v21750_v37, 16 }
 0x356   : > { %v11928_v61 = vrot.slane %v24078_v4, 1  ;;  %v9352_v40 = vpop.f32.mrf.mxu1  ;;  %v11612_v24 = vsel %vm21639_vm3, 0, %v11611_v55  ;;  %v10004_v56 = vcombine.high %v9698_v3, %v9698_v3  ;;  %v10011_v25 = vrot.slane %v9698_v3, %v21581_v23 }
 0x357   : > { %v10021_v46 = vcombine.high %v9699_v14, %v9699_v14  ;;  %11613 = vst [vmem:[#allocation2 + $0x38] sm:$0x1] %v11612_v24  ;;  %v10692_v39 = vcombine.low %v10684_v7, %v10691_v42  ;;  %v10700_v6 = vcombine.low %v10001_v52, %v10003_v38  ;;  %v15122_v36 = vpack.c.bf16 %v10699_v2, %v10699_v2  ;;  %v9537_v20 = vpop.f32.mrf.mxu0  ;;  %v11555_v16 = vld [vmem:[#allocation2 + $0x30] sm:$0x1] }
 0x358   : > { %v10028_v8 = vrot.slane %v9699_v14, %v21581_v23  ;;  %v21775_v44 = vpop.f32.mrf.mxu1  ;;  %v10018_v0 = vrot.slane %v10004_v56, %v21581_v23  ;;  %v10019_v22 = vcombine.high %v10011_v25, %v10011_v25  ;;  %v11929_v33 = vsel %vm11917_vm1, %v11924_v32, %v11928_v61  ;;  %v16635_v2 = vld [vmem:[#allocation2 + $0x20] ss:$0 sps:$4 sm:$0x11]  }
 0x359   : > { %v10035_v53 = vrot.slane %v10021_v46, %v21581_v23  ;;  %v11556_v19 = vsel %vm21652_vm4, 0, %v11555_v16  ;;  %v10708_v7 = vrot.slane %v10700_v6, %v21581_v23  ;;  %v15121_v52 = vpack.c.bf16 %v10692_v39, %v10692_v39  ;;  %11497 = vst [vmem:[#allocation2 + $0x44] sm:$0x1] %v15122_v36  ;;  %12377 = vmatmul.mubr.bf16.vlgmr.msra.gmra.mxu1 %v11929_v33  ;;  %v16110_v26 = vpop.f32.mrf.mxu0  ;;  %v16653_v56 = vld [vmem:[#allocation3 + $0xa8] sm:$0xff]  }
 0x35a   : > { %v10036_v54 = vcombine.high %v10028_v8, %v10028_v8  ;;  %v9355_v3 = vpop.f32.mrf.mxu1  ;;  %11557 = vst [vmem:[#allocation2 + $0x30] sm:$0x1] %v11556_v19  ;;  %v10020_v14 = vcombine.high %v10018_v0, %v10018_v0  ;;  %v10701_v4 = vcombine.low %v10011_v25, %v10019_v22  ;;  %v9652_v38 = vadd.f32 %v9535_v48, %v21302_v9  ;;  %v16662_v26 = vld [vmem:[#allocation3 + $0xa0] sm:$0xff]  }
 0x35b   : > { %v10740_v55 = vrot.slane %v10035_v53, %v21581_v23  ;;  %16208 = vmatpush3.bf16.msra.mxu1 %v21590_v5  ;;  %11496 = vst [vmem:[#allocation2 + $0x40] sm:$0xf] %v15121_v52  ;;  %v10037_v61 = vcombine.high %v10035_v53, %v10035_v53  ;;  %v9538_v42 = vadd.f32 %v9537_v20, %v21720_v34  ;;  %v11945_v45 = vshll.u32 %v21750_v37, 16  ;;  %v9542_v40 = vpop.f32.mrf.mxu0 }
 0x35c   : > { %v10718_v32 = vcombine.low %v10028_v8, %v10036_v54  ;;  %v21788_v24 = vpop.f32.mrf.mxu1  ;;  %16209 = vmatprep.subr.bf16.mxu1 %v16650_v31  ;;  %v11558_v25 = vld [vmem:[#allocation2 + $0x3c] sm:$0x1]  ;;  %v10715_v46 = vrot.slane %v10701_v4, %v21581_v23  ;;  %v10717_v39 = vcombine.low %v10018_v0, %v10020_v14  ;;  %v9700_v5 = vadd.f32 %v21577_v60, %v9652_v38  ;;  %v16637_v38 = vld [vmem:[#allocation2 + $0x24] sm:$0xff]  }
 0x35d   : > { %v15125_v9 = vpack.c.bf16 %v10740_v55, %v10740_v55  ;;  %v11559_v48 = vsel %vm21652_vm4, 0, %v11558_v25  ;;  %v9653_v6 = vadd.f32 %v9538_v42, %v21329_v11  ;;  %v11947_v37 = vrot.slane %v11945_v45, 1  ;;  %v16113_v36 = vpop.f32.mrf.mxu0 }
 0x35e   : > { %v10732_v34 = vrot.slane %v10718_v32, %v21581_v23  ;;  %v9360_v8 = vpop.f32.mrf.mxu1  ;;  %11560 = vst [vmem:[#allocation2 + $0x3c] sm:$0x1] %v11559_v48  ;;  %v10716_v20 = vcombine.low %v10708_v7, %v10715_v46  ;;  %v10725_v16 = vrot.slane %v10717_v39, %v21581_v23  ;;  %v10038_v22 = vcombine.high %v9700_v5, %v9700_v5 }
 0x35f   : > { %11500 = vst [vmem:[#allocation2 + $0x50] sm:$0x1] %v15125_v9  ;;  %v10045_v0 = vrot.slane %v9700_v5, %v21581_v23  ;;  %16210 = vmatpush3.bf16.msra.mxu1 %v16650_v31  ;;  %v9701_v53 = vadd.f32 %v21577_v60, %v9653_v6  ;;  %v11948_v33 = vor.u32 %v11947_v37, %v11943_v10  ;;  %v11950_v19 = vshll.u32 %v16635_v2, 16  ;;  %v21800_v54 = vpop.f32.mrf.mxu0  ;;  %v16638_v31 = vld [vmem:[#allocation2 + $0x2c] ss:$0 sps:$4 sm:$0x11]  }
 0x360   : > { %v9543_v52 = vadd.f32 %v9542_v40, %v21733_v30  ;;  %v21802_v11 = vpop.f32.mrf.mxu1  ;;  %16211 = vmatprep.subr.bf16.mxu1 %v16653_v56  ;;  %v11614_v7 = vld [vmem:[#allocation2 + $0x44] sm:$0x1]  ;;  %v10733_v3 = vcombine.low %v10725_v16, %v10732_v34  ;;  %v10052_v14 = vrot.slane %v10038_v22, %v21581_v23  ;;  %v16671_v37 = vld [vmem:[#allocation3 + $0x98] sm:$0xff]  }
 0x361   : > { %v10053_v4 = vcombine.high %v10045_v0, %v10045_v0  ;;  %v10741_v55 = vcombine.low %v10037_v61, %v10045_v0  ;;  %v11615_v10 = vsel %vm21639_vm3, 0, %v11614_v7  ;;  %v10055_v32 = vcombine.high %v9701_v53, %v9701_v53  ;;  %v16114_v2 = vpop.f32.mrf.mxu0 }
 0x362   : > { %v10062_v30 = vrot.slane %v9701_v53, %v21581_v23  ;;  %v11952_v42 = vrot.slane %v11950_v19, 1  ;;  %v9363_v45 = vpop.f32.mrf.mxu1  ;;  %11616 = vst [vmem:[#allocation2 + $0x44] sm:$0x1] %v11615_v10  ;;  %v15210_v40 = vpack.c.bf16 %v10733_v3, %v10716_v20  ;;  %v10054_v39 = vcombine.high %v10052_v14, %v10052_v14 }
 0x363   : > { %v10742_v25 = vcombine.low %v10053_v4, %v10052_v14  ;;  %v10749_v46 = vrot.slane %v10741_v55, %v21581_v23  ;;  %16212 = vmatpush3.bf16.msra.mxu1 %v16653_v56  ;;  %v10069_v61 = vrot.slane %v10055_v32, %v21581_v23  ;;  %v9654_v48 = vadd.f32 %v9543_v52, %v21355_v15  ;;  %v9550_v34 = vpop.f32.mrf.mxu0  ;;  %v16659_v45 = vld [vmem:[#allocation3 + $0x38] sm:$0xff]  }
 0x364   : > { %v10070_v9 = vcombine.high %v10062_v30, %v10062_v30  ;;  %v21811_v5 = vsel %vm11917_vm1, %v11948_v33, %v11952_v42  ;;  %v21814_v6 = vpop.f32.mrf.mxu1  ;;  %16213 = vmatprep.subr.bf16.mxu1 %v16662_v26  ;;  %15319 = vst [vmem:[#allocation2 + $0x48] sm:$0xff] %v15210_v40   ;;  %v10758_v8 = vcombine.low %v10054_v39, %v10062_v30  ;;  %v11955_v56 = vshrl.u32 %v16637_v38, 16  ;;  %v16680_v40 = vld [vmem:[#allocation3 + $0x90] sm:$0xff]  }
 0x365   : > { %v10756_v36 = vrot.slane %v10742_v25, %v21581_v23  ;;  %12384 = vmatprep.mubr.bf16.mxu1 %v21811_v5  ;;  %16175 = vmatprep.mubr.bf16.mxu0 %v21811_v5  ;;  %v11957_v20 = vshll.u32 %v16637_v38, 16  ;;  %v10071_v22 = vcombine.high %v10069_v61, %v10069_v61  ;;  %v9702_v15 = vadd.f32 %v21577_v60, %v9654_v48  ;;  %v16117_v33 = vpop.f32.mrf.mxu0  ;;  %v16640_v48 = vld [vmem:[#allocation2 + $0x38] ss:$0 sps:$4 sm:$0x11]  }
 0x366   : > { %v11617_v16 = vld [vmem:[#allocation2 + $0x50] sm:$0x1]  ;;  %v10759_v0 = vcombine.low %v10070_v9, %v10069_v61  ;;  %12385 = vmatmul.mubr.bf16.gmra.mxu1 %v21753_v28  ;;  %v11962_v53 = vshll.u32 %v16638_v31, 16  ;;  %v9368_v19 = vpop.f32.mrf.mxu1  ;;  %v10766_v3 = vrot.slane %v10758_v8, %v21581_v23  ;;  %v16660_v8 = vld [vmem:[#allocation3 + $0x70] sm:$0xff]  }
 0x367   : > { %v11618_v52 = vsel %vm21639_vm3, 0, %v11617_v16  ;;  %v10757_v7 = vcombine.low %v10749_v46, %v10756_v36  ;;  %v11959_v14 = vrot.slane %v11957_v20, 1  ;;  %16214 = vmatpush3.bf16.msra.mxu1 %v16662_v26  ;;  %v10781_v55 = vrot.slane %v10071_v22, %v21581_v23  ;;  %v9553_v10 = vpop.f32.mrf.mxu0  ;;  %v21827_v31 = vld [vmem:[#allocation2 + $0x30] sm:$0xff]  }
 0x368   : > { %11619 = vst [vmem:[#allocation2 + $0x50] sm:$0x1] %v11618_v52  ;;  %v10773_v4 = vrot.slane %v10759_v0, %v21581_v23  ;;  %v10072_v38 = vcombine.high %v9702_v15, %v9702_v15  ;;  %v10079_v28 = vrot.slane %v9702_v15, %v21581_v23  ;;  %v21829_v32 = vpop.f32.mrf.mxu1  ;;  %16215 = vmatprep.subr.bf16.mxu1 %v16671_v37  ;;  %v11964_v2 = vrot.slane %v11962_v53, 1  ;;  %v16661_v52 = vld [vmem:[#allocation3 + $0x30] sm:$0xff]  }
 0x369   : > { %v15126_v30 = vpack.c.bf16 %v10757_v7, %v10757_v7  ;;  %v11960_v42 = vor.u32 %v11959_v14, %v11955_v56  ;;  %v9546_v26 = vadd.f32 %v21800_v54, %v21742_v59  ;;  %v15128_v46 = vpack.c.bf16 %v10781_v55, %v10781_v55  ;;  %v16118_v9 = vpop.f32.mrf.mxu0 }
 0x36a   : > { %v10774_v25 = vcombine.low %v10766_v3, %v10773_v4  ;;  %v10086_v39 = vrot.slane %v10072_v38, %v21581_v23  ;;  %v10087_v61 = vcombine.high %v10079_v28, %v10079_v28  ;;  %v9371_v36 = vpop.f32.mrf.mxu1  ;;  %v9551_v16 = vadd.f32 %v9550_v34, %v21761_v35 }
 0x36b   : > { %11501 = vst [vmem:[#allocation2 + $0x54] sm:$0xf] %v15126_v30  ;;  %v21835_v20 = vsel %vm11917_vm1, %v11960_v42, %v11964_v2  ;;  %v9655_v56 = vadd.f32 %v9546_v26, %v21381_v17  ;;  %v9554_v59 = vadd.f32 %v9553_v10, %v21775_v44  ;;  %16216 = vmatpush3.bf16.msra.mxu1 %v16671_v37  ;;  %v11561_v54 = vld [vmem:[#allocation2 + $0x48] sm:$0x1]  ;;  %11503 = vst [vmem:[#allocation2 + $0x5c] sm:$0x1] %v15128_v46  ;;  %v9558_v33 = vpop.f32.mrf.mxu0 }
 0x36c   : > { %v15127_v22 = vpack.c.bf16 %v10774_v25, %v10774_v25  ;;  %v10088_v0 = vcombine.high %v10086_v39, %v10086_v39  ;;  %v10782_v15 = vcombine.low %v10079_v28, %v10087_v61  ;;  %12392 = vmatprep.mubr.bf16.mxu1 %v21835_v20  ;;  %16176 = vmatmul.mubr.bf16.vlgmr.msra.gmra.mxu0 %v21835_v20  ;;  %v11967_v53 = vshrl.u32 %v21827_v31, 16  ;;  %v21843_v19 = vpop.f32.mrf.mxu1  ;;  %v16685_v17 = vld [vmem:[#allocation3 + $0x88] sm:$0xff]   ;;  %v21867_v25 = vld [vmem:[#allocation3 + $0x80] sm:$0xff]  }
 0x36d   : > { %v11562_v35 = vsel %vm21652_vm4, 0, %v11561_v54  ;;  %v9703_v44 = vadd.f32 %v21577_v60, %v9655_v56  ;;  %v9656_v34 = vadd.f32 %v9551_v16, %v21406_v49  ;;  %v9657_v37 = vadd.f32 %v9554_v59, %v21435_v41  ;;  %15564 = vmatpush3.bf16.msra.mxu0 %v16659_v45  ;;  %16217 = vmatprep.subr.bf16.mxu1 %v16680_v40  ;;  %v16121_v55 = vpop.f32.mrf.mxu0  ;;  %v16665_v60 = vld [vmem:[#allocation3 + $0x68] sm:$0xff]   ;;  %v16669_v54 = vld [vmem:[#allocation3 + $0x60] sm:$0xff]  }
 0x36e   : > { %11563 = vst [vmem:[#allocation2 + $0x48] sm:$0x1] %v11562_v35  ;;  %11502 = vst [vmem:[#allocation2 + $0x58] sm:$0xf] %v15127_v22  ;;  %v10783_v7 = vcombine.low %v10086_v39, %v10088_v0  ;;  %v10790_v3 = vrot.slane %v10782_v15, %v21581_v23  ;;  %12393 = vmatmul.mubr.bf16.gmra.mxu1 %v21811_v5  ;;  %v11969_v14 = vshll.u32 %v21827_v31, 16  ;;  %v11974_v4 = vshll.u32 %v16640_v48, 16  ;;  %v9376_v38 = vpop.f32.mrf.mxu1 }
 0x36f   : > { %15565 = vmatprep.subr.bf16.mxu0 %v16660_v8  ;;  %v10089_v49 = vcombine.high %v9703_v44, %v9703_v44  ;;  %v10096_v41 = vrot.slane %v9703_v44, %v21581_v23  ;;  %v21857_v28 = vld [vmem:[%s23286_s2] ss:$0 sm:$0xff]  ;;  %16218 = vmatpush3.bf16.msra.mxu1 %v16680_v40  ;;  %v9559_v2 = vadd.f32 %v9558_v33, %v21788_v24  ;;  %v21863_v26 = vpop.f32.mrf.mxu0 }
 0x370   : > { %v9704_v10 = vadd.f32 %v21857_v28, %v9656_v34  ;;  %v9705_v30 = vadd.f32 %v21857_v28, %v9657_v37  ;;  %v10797_v5 = vrot.slane %v10783_v7, %v21581_v23  ;;  %v11971_v31 = vrot.slane %v11969_v14, 1  ;;  %v21865_v45 = vpop.f32.mrf.mxu1  ;;  %16219 = vmatprep.subr.bf16.mxu1 %v16685_v17  ;;  %v16666_v40 = vld [vmem:[#allocation3 + $0x28] sm:$0xff]  }
 0x371   : > { %v11976_v42 = vrot.slane %v11974_v4, 1  ;;  %v10103_v46 = vrot.slane %v10089_v49, %v21581_v23  ;;  %v10104_v39 = vcombine.high %v10096_v41, %v10096_v41  ;;  %15566 = vmatpush3.bf16.msra.mxu0 %v16661_v52  ;;  %v16122_v16 = vpop.f32.mrf.mxu0  ;;  %v21877_v44 = vld [vmem:[#allocation2 + $0x3c] sm:$0xff]   ;;  %v16642_v7 = vld [vmem:[#allocation2 + $0x44] ss:$0 sps:$4 sm:$0x11]  }
 0x372   : > { %v10106_v61 = vcombine.high %v9704_v10, %v9704_v10  ;;  %v10113_v9 = vrot.slane %v9704_v10, %v21581_v23  ;;  %v11564_v48 = vld [vmem:[#allocation2 + $0x54] sm:$0x1]  ;;  %v21871_v36 = vcombine.low %v10790_v3, %v10797_v5  ;;  %v10123_v8 = vcombine.high %v9705_v30, %v9705_v30  ;;  %v9379_v59 = vpop.f32.mrf.mxu1  ;;  %15567 = vmatprep.subr.bf16.mxu0 %v16665_v60  ;;  %v11620_v0 = vld [vmem:[#allocation2 + $0x5c] sm:$0x1] }
 0x373   : > { %v10130_v24 = vrot.slane %v9705_v30, %v21581_v23  ;;  %v11972_v56 = vor.u32 %v11971_v31, %v11967_v53  ;;  %v11565_v22 = vsel %vm21652_vm4, 0, %v11564_v48  ;;  %v10105_v15 = vcombine.high %v10103_v46, %v10103_v46  ;;  %16220 = vmatpush3.bf16.msra.mxu1 %v16685_v17  ;;  %v9566_v3 = vpop.f32.mrf.mxu0  ;;  %v16670_v60 = vld [vmem:[#allocation3 + $0x20] sm:$0xff]  }
 0x374   : > { %v10799_v33 = vcombine.low %v10096_v41, %v10104_v39  ;;  %v10120_v35 = vrot.slane %v10106_v61, %v21581_v23  ;;  %11566 = vst [vmem:[#allocation2 + $0x54] sm:$0x1] %v11565_v22  ;;  %v11621_v34 = vsel %vm21639_vm3, 0, %v11620_v0  ;;  %v10121_v53 = vcombine.high %v10113_v9, %v10113_v9  ;;  %v21883_v14 = vpop.f32.mrf.mxu1  ;;  %16221 = vmatprep.subr.bf16.mxu1 %v21867_v25  ;;  %v16672_v39 = vld [vmem:[#allocation3 + $0x58] sm:$0xff]  }
 0x375   : > { %v10822_v37 = vrot.slane %v10113_v9, %v21581_v23  ;;  %v10137_v52 = vrot.slane %v10123_v8, %v21581_v23  ;;  %11622 = vst [vmem:[#allocation2 + $0x5c] sm:$0x1] %v11621_v34  ;;  %v10800_v4 = vcombine.low %v10103_v46, %v10105_v15  ;;  %v10138_v38 = vcombine.high %v10130_v24, %v10130_v24  ;;  %v16125_v5 = vpop.f32.mrf.mxu0  ;;  %v16675_v22 = vld [vmem:[#allocation3 + $0x18] sm:$0xff]   ;;  %v16678_v34 = vld [vmem:[#allocation3 + $0x50] sm:$0xff]  }
 0x376   : > { %v10807_v55 = vrot.slane %v10799_v33, %v21581_v23  ;;  %v10122_v17 = vcombine.high %v10120_v35, %v10120_v35  ;;  %15568 = vmatpush3.bf16.msra.mxu0 %v16666_v40  ;;  %v10823_v49 = vcombine.low %v10121_v53, %v10120_v35  ;;  %v21888_v10 = vsel %vm11917_vm1, %v11972_v56, %v11976_v42  ;;  %v9384_v31 = vpop.f32.mrf.mxu1 }
 0x377   : > { %v15131_v41 = vpack.c.bf16 %v10822_v37, %v10822_v37  ;;  %v9658_v30 = vadd.f32 %v9559_v2, %v21460_v43  ;;  %15569 = vmatprep.subr.bf16.mxu0 %v16669_v54  ;;  %v10814_v61 = vrot.slane %v10800_v4, %v21581_v23  ;;  %v21892_v9 = vcombine.low %v10138_v38, %v10137_v52  ;;  %v9569_v8 = vpop.f32.mrf.mxu0  ;;  %v21912_v4 = vld [vmem:[#allocation2 + $0x48] sm:$0xff]  }
 0x378   : > { %v10824_v46 = vcombine.low %v10122_v17, %v10130_v24  ;;  %12400 = vmatprep.mubr.bf16.mxu1 %v21888_v10  ;;  %16179 = vmatprep.mubr.bf16.mxu0 %v21888_v10  ;;  %v11979_v40 = vshrl.u32 %v21877_v44, 16  ;;  %v10831_v42 = vrot.slane %v10823_v49, %v21581_v23  ;;  %v10139_v2 = vcombine.high %v10137_v52, %v10137_v52  ;;  %v21901_v24 = vpop.f32.mrf.mxu1 }
 0x379   : > { %11506 = vst [vmem:[#allocation2 + $0x68] sm:$0x1] %v15131_v41  ;;  %v9706_v43 = vadd.f32 %v21857_v28, %v9658_v30  ;;  %12401 = vmatmul.mubr.bf16.gmra.mxu1 %v21835_v20  ;;  %v11981_v48 = vshll.u32 %v21877_v44, 16  ;;  %v10815_v56 = vcombine.low %v10807_v55, %v10814_v61  ;;  %v10848_v59 = vrot.slane %v21892_v9, %v21581_v23  ;;  %v16126_v35 = vpop.f32.mrf.mxu0 }
 0x37a   : > { %v10838_v16 = vrot.slane %v10824_v46, %v21581_v23  ;;  %v11986_v54 = vshll.u32 %v16642_v7, 16  ;;  %15570 = vmatpush3.bf16.msra.mxu0 %v16670_v60  ;;  %16222 = vmatpush3.bf16.msra.mxu1 %v21867_v25  ;;  %v9562_v33 = vadd.f32 %v21863_v26, %v21802_v11  ;;  %v9387_v44 = vpop.f32.mrf.mxu1  ;;  %v9567_v7 = vadd.f32 %v9566_v3, %v21814_v6  ;;  %v16679_v6 = vld [vmem:[#allocation3 + $0x10] sm:$0xff]   ;;  %v16681_v46 = vld [vmem:[#allocation3 + $0x48] sm:$0xff]  }
 0x37b   : > { %v10140_v0 = vcombine.high %v9706_v43, %v9706_v43  ;;  %v10147_v15 = vrot.slane %v9706_v43, %v21581_v23  ;;  %v11983_v20 = vrot.slane %v11981_v48, 1  ;;  %15571 = vmatprep.subr.bf16.mxu0 %v16672_v39  ;;  %v15215_v53 = vpack.c.bf16 %v10815_v56, %v21871_v36  ;;  %v9574_v60 = vpop.f32.mrf.mxu0  ;;  %v16688_v44 = vld [vmem:[#allocation3 + $0x40] sm:$0xff]  }
 0x37c   : > { %v10839_v37 = vcombine.low %v10831_v42, %v10838_v16  ;;  %v11988_v52 = vrot.slane %v11986_v54, 1  ;;  %v21915_v49 = vpop.f32.mrf.mxu1  ;;  %v9659_v26 = vadd.f32 %v9562_v33, %v21478_v57  ;;  %v9660_v36 = vadd.f32 %v9567_v7, %v21490_v21 }
 0x37d   : > { %v10154_v25 = vrot.slane %v10140_v0, %v21581_v23  ;;  %v10155_v55 = vcombine.high %v10147_v15, %v10147_v15  ;;  %v10841_v17 = vcombine.low %v10139_v2, %v10147_v15  ;;  %v11984_v38 = vor.u32 %v11983_v20, %v11979_v40  ;;  %15320 = vst [vmem:[#allocation2 + $0x60] sm:$0xff] %v15215_v53   ;;  %v16129_v39 = vpop.f32.mrf.mxu0  ;;  %v16682_v0 = vld [vmem:[#allocation3 + $0x8] sm:$0xff]  }
 0x37e   : > { %v15132_v11 = vpack.c.bf16 %v10839_v37, %v10839_v37  ;;  %v9570_v41 = vadd.f32 %v9569_v8, %v21829_v32  ;;  %15572 = vmatpush3.bf16.msra.mxu0 %v16675_v22  ;;  %v9392_v61 = vpop.f32.mrf.mxu1  ;;  %v9707_v57 = vadd.f32 %v21857_v28, %v9659_v26  ;;  %v9708_v21 = vadd.f32 %v21857_v28, %v9660_v36 }
 0x37f   : > { %v10156_v3 = vcombine.high %v10154_v25, %v10154_v25  ;;  %v10855_v30 = vrot.slane %v10841_v17, %v21581_v23  ;;  %v10863_v5 = vrot.slane %v10155_v55, %v21581_v23  ;;  %v21923_v31 = vsel %vm11917_vm1, %v11984_v38, %v11988_v52  ;;  %15573 = vmatprep.subr.bf16.mxu0 %v16678_v34  ;;  %v21936_v8 = vpop.f32.mrf.mxu0 }
 0x380   : > { %v11623_v9 = vld [vmem:[#allocation2 + $0x68] sm:$0x1]  ;;  %11507 = vst [vmem:[#allocation2 + $0x6c] sm:$0xf] %v15132_v11  ;;  %12408 = vmatprep.mubr.bf16.mxu1 %v21923_v31  ;;  %16180 = vmatmul.mubr.bf16.gmra.mxu0 %v21923_v31  ;;  %v9661_v32 = vadd.f32 %v9570_v41, %v21505_v50  ;;  %v11991_v40 = vshrl.u32 %v21912_v4, 16  ;;  %v21938_v56 = vpop.f32.mrf.mxu1  ;;  %v10157_v16 = vcombine.high %v9707_v57, %v9707_v57  ;;  %v11993_v38 = vshll.u32 %v21912_v4, 16 }
 0x381   : > { %v11624_v42 = vsel %vm21639_vm3, 0, %v11623_v9  ;;  %v10856_v43 = vcombine.low %v10848_v59, %v10855_v30  ;;  %v21933_v2 = vcombine.low %v10154_v25, %v10156_v3  ;;  %v15134_v48 = vpack.c.bf16 %v10863_v5, %v10863_v5  ;;  %12409 = vmatmul.mubr.bf16.gmra.mxu1 %v21888_v10  ;;  %v16130_v33 = vpop.f32.mrf.mxu0  ;;  %v16691_v9 = vld [vmem:[#allocation3 + $0x238] sm:$0xff]  }
 0x382   : > { %11625 = vst [vmem:[#allocation2 + $0x68] sm:$0x1] %v11624_v42  ;;  %v10164_v54 = vrot.slane %v9707_v57, %v21581_v23  ;;  %v10174_v50 = vcombine.high %v9708_v21, %v9708_v21  ;;  %v10181_v22 = vrot.slane %v9708_v21, %v21581_v23  ;;  %15574 = vmatpush3.bf16.msra.mxu0 %v16679_v6  ;;  %v9395_v35 = vpop.f32.mrf.mxu1  ;;  %v16690_v6 = vld [vmem:[#allocation3] sm:$0xff]  }
 0x383   : > { %v10872_v59 = vrot.slane %v21933_v2, %v21581_v23  ;;  %v15133_v15 = vpack.c.bf16 %v10856_v43, %v10856_v43  ;;  %11509 = vst [vmem:[#allocation2 + $0x74] sm:$0x1] %v15134_v48  ;;  %v9709_v10 = vadd.f32 %v21857_v28, %v9661_v32  ;;  %v9575_v20 = vadd.f32 %v9574_v60, %v21843_v19  ;;  %v21951_v19 = vpop.f32.mrf.mxu0  ;;  %v16644_v43 = vld [vmem:[#allocation2 + $0x50] ss:$0 sps:$4 sm:$0x11]  }
 0x384   : > { %15575 = vmatprep.subr.bf16.mxu0 %v16681_v46  ;;  %v10171_v34 = vrot.slane %v10157_v16, %v21581_v23  ;;  %v10172_v53 = vcombine.high %v10164_v54, %v10164_v54  ;;  %v10188_v37 = vrot.slane %v10174_v50, %v21581_v23  ;;  %v10189_v52 = vcombine.high %v10181_v22, %v10181_v22  ;;  %v11567_v7 = vld [vmem:[#allocation2 + $0x60] sm:$0x1]  ;;  %v21953_v60 = vpop.f32.mrf.mxu1  ;;  %v21964_v50 = vld [vmem:[#allocation2 + $0x54] sm:$0xff]  }
 0x385   : > { %11508 = vst [vmem:[#allocation2 + $0x70] sm:$0xf] %v15133_v15  ;;  %v10191_v25 = vcombine.high %v9709_v10, %v9709_v10  ;;  %v10198_v55 = vrot.slane %v9709_v10, %v21581_v23  ;;  %v9662_v17 = vadd.f32 %v9575_v20, %v21516_v18  ;;  %v11568_v11 = vsel %vm21652_vm4, 0, %v11567_v7  ;;  %v16133_v61 = vpop.f32.mrf.mxu0 }
 0x386   : > { %v10173_v26 = vcombine.high %v10171_v34, %v10171_v34  ;;  %v10865_v36 = vcombine.low %v10164_v54, %v10172_v53  ;;  %v10882_v41 = vcombine.low %v10181_v22, %v10189_v52  ;;  %15576 = vmatpush3.bf16.msra.mxu0 %v16682_v0  ;;  %11569 = vst [vmem:[#allocation2 + $0x60] sm:$0x1] %v11568_v11  ;;  %v9400_v46 = vpop.f32.mrf.mxu1  ;;  %v11995_v35 = vrot.slane %v11993_v38, 1  ;;  %v16647_v38 = vld [vmem:[#allocation2 + $0x5c] ss:$0 sps:$4 sm:$0x11]  }
 0x387   : > { %v11570_v3 = vld [vmem:[#allocation2 + $0x6c] sm:$0x1]  ;;  %v10904_v30 = vrot.slane %v10188_v37, %v21581_v23  ;;  %v10190_v5 = vcombine.high %v10188_v37, %v10188_v37  ;;  %v10205_v18 = vrot.slane %v10191_v25, %v21581_v23  ;;  %v10206_v39 = vcombine.high %v10198_v55, %v10198_v55  ;;  %15577 = vmatprep.subr.bf16.mxu0 %v16688_v44  ;;  %v9585_v22 = vpop.f32.mrf.mxu0 }
 0x388   : > { %v11571_v57 = vsel %vm21652_vm4, 0, %v11570_v3  ;;  %v10879_v21 = vrot.slane %v10865_v36, %v21581_v23  ;;  %v10881_v32 = vcombine.low %v10171_v34, %v10173_v26  ;;  %v10896_v42 = vrot.slane %v10882_v41, %v21581_v23  ;;  %v21966_v0 = vpop.f32.mrf.mxu1 }
 0x389   : > { %11572 = vst [vmem:[#allocation2 + $0x6c] sm:$0x1] %v11571_v57  ;;  %v15137_v2 = vpack.c.bf16 %v10904_v30, %v10904_v30  ;;  %v10905_v48 = vcombine.low %v10190_v5, %v10198_v55  ;;  %v10906_v16 = vcombine.low %v10206_v39, %v10205_v18  ;;  %v9710_v54 = vadd.f32 %v21857_v28, %v9662_v17  ;;  %v16134_v52 = vpop.f32.mrf.mxu0 }
 0x38a   : > { %v11626_v15 = vld [vmem:[#allocation2 + $0x74] sm:$0x1]  ;;  %v10880_v10 = vcombine.low %v10872_v59, %v10879_v21  ;;  %v10889_v20 = vrot.slane %v10881_v32, %v21581_v23  ;;  %v10207_v33 = vcombine.high %v10205_v18, %v10205_v18  ;;  %15578 = vmatpush3.bf16.msra.mxu0 %v16690_v6  ;;  %v9403_v7 = vpop.f32.mrf.mxu1  ;;  %v11996_v55 = vor.u32 %v11995_v35, %v11991_v40 }
 0x38b   : > { %v11627_v44 = vsel %vm21639_vm3, 0, %v11626_v15  ;;  %11512 = vst [vmem:[#allocation2 + $0x80] sm:$0x1] %v15137_v2  ;;  %v10913_v34 = vrot.slane %v10905_v48, %v21581_v23  ;;  %v10920_v53 = vrot.slane %v10906_v16, %v21581_v23  ;;  %v10208_v37 = vcombine.high %v9710_v54, %v9710_v54  ;;  %16255 = vmatprep.subr.bf16.mxu0 %v16691_v9  ;;  %v9590_v6 = vpop.f32.mrf.mxu0 }
 0x38c   : > { %11628 = vst [vmem:[#allocation2 + $0x74] sm:$0x1] %v11627_v44  ;;  %v10897_v25 = vcombine.low %v10889_v20, %v10896_v42  ;;  %v10215_v59 = vrot.slane %v9710_v54, %v21581_v23  ;;  %v11998_v17 = vshll.u32 %v16644_v43, 16  ;;  %v9578_v36 = vadd.f32 %v21936_v8, %v21865_v45  ;;  %v21980_v3 = vpop.f32.mrf.mxu1 }
 0x38d   : > { %v10921_v11 = vcombine.low %v10913_v34, %v10920_v53  ;;  %v10222_v26 = vrot.slane %v10208_v37, %v21581_v23  ;;  %v12003_v41 = vshrl.u32 %v21964_v50, 16  ;;  %v12005_v46 = vshll.u32 %v21964_v50, 16  ;;  %v16137_v9 = vpop.f32.mrf.mxu0  ;;  %v21994_v48 = vld [vmem:[#allocation2 + $0x60] sm:$0xff]  }
 0x38e   : > { %v15220_v30 = vpack.c.bf16 %v10897_v25, %v10880_v10  ;;  %v10223_v5 = vcombine.high %v10215_v59, %v10215_v59  ;;  %v10922_v18 = vcombine.low %v10207_v33, %v10215_v59  ;;  %v12000_v39 = vrot.slane %v11998_v17, 1  ;;  %v9408_v57 = vpop.f32.mrf.mxu1  ;;  %v16693_v25 = vld [vmem:[#allocation3 + $0x1f8] sm:$0xff]  }
 0x38f   : > { %v15138_v61 = vpack.c.bf16 %v10921_v11, %v10921_v11  ;;  %v10224_v4 = vcombine.high %v10222_v26, %v10222_v26  ;;  %v9663_v40 = vadd.f32 %v9578_v36, %v21525_v51  ;;  %v12010_v32 = vshll.u32 %v16647_v38, 16  ;;  %v21996_v16 = vpop.f32.mrf.mxu0  ;;  %15699 = vmatprep.subr.bf16.mxu1 %v16693_v25 }
 0x390   : > { %15321 = vst [vmem:[#allocation2 + $0x78] sm:$0xff] %v15220_v30   ;;  %v10923_v21 = vcombine.low %v10223_v5, %v10222_v26  ;;  %v10930_v45 = vrot.slane %v10922_v18, %v21581_v23  ;;  %v21986_v8 = vsel %vm11917_vm1, %v11996_v55, %v12000_v39  ;;  %v12007_v43 = vrot.slane %v12005_v46, 1  ;;  %v21998_v54 = vpop.f32.mrf.mxu1  ;;  %v22047_v25 = vld [vmem:[#allocation2 + $0x6c] sm:$0xff]  }
 0x391   : > { %11513 = vst [vmem:[#allocation2 + $0x84] sm:$0xf] %v15138_v61  ;;  %v10945_v42 = vrot.slane %v10224_v4, %v21581_v23  ;;  %12416 = vmatprep.mubr.bf16.mxu1 %v21986_v8  ;;  %16183 = vmatprep.mubr.bf16.mxu0 %v21986_v8  ;;  %v9711_v51 = vadd.f32 %v21857_v28, %v9663_v40  ;;  %v12012_v10 = vrot.slane %v12010_v32, 1  ;;  %v16138_v34 = vpop.f32.mrf.mxu0  ;;  %v12015_v59 = vshrl.u32 %v21994_v48, 16 }
 0x392   : > { %v9583_v2 = vadd.f32 %v21951_v19, %v21883_v14  ;;  %v11629_v50 = vld [vmem:[#allocation2 + $0x80] sm:$0x1]  ;;  %v10937_v15 = vrot.slane %v10923_v21, %v21581_v23  ;;  %12417 = vmatmul.mubr.bf16.gmra.mxu1 %v21923_v31  ;;  %v9586_v20 = vadd.f32 %v9585_v22, %v21901_v24  ;;  %v9591_v33 = vadd.f32 %v9590_v6, %v21915_v49  ;;  %v9411_v53 = vpop.f32.mrf.mxu1 }
 0x393   : > { %v11630_v35 = vsel %vm21639_vm3, 0, %v11629_v50  ;;  %v15140_v14 = vpack.c.bf16 %v10945_v42, %v10945_v42  ;;  %v10225_v19 = vcombine.high %v9711_v51, %v9711_v51  ;;  %v10232_v44 = vrot.slane %v9711_v51, %v21581_v23  ;;  %v22012_v55 = vpop.f32.mrf.mxu0 }
 0x394   : > { %11631 = vst [vmem:[#allocation2 + $0x80] sm:$0x1] %v11630_v35  ;;  %v10938_v37 = vcombine.low %v10930_v45, %v10937_v15  ;;  %v12008_v52 = vor.u32 %v12007_v43, %v12003_v41  ;;  %v9664_v7 = vadd.f32 %v9583_v2, %v21529_v29  ;;  %v9665_v31 = vadd.f32 %v9586_v20, %v21537_v27  ;;  %v22014_v17 = vpop.f32.mrf.mxu1 }
 0x395   : > { %11515 = vst [vmem:[#allocation2 + $0x8c] sm:$0x1] %v15140_v14  ;;  %v10239_v24 = vrot.slane %v10225_v19, %v21581_v23  ;;  %v10240_v49 = vcombine.high %v10232_v44, %v10232_v44  ;;  %v9666_v22 = vadd.f32 %v9591_v33, %v21540_v58  ;;  %v12017_v6 = vshll.u32 %v21994_v48, 16  ;;  %v16141_v30 = vpop.f32.mrf.mxu0  ;;  %v16649_v33 = vld [vmem:[#allocation2 + $0x68] ss:$0 sps:$4 sm:$0x11]  }
 0x396   : > { %v15139_v38 = vpack.c.bf16 %v10938_v37, %v10938_v37  ;;  %v22017_v11 = vsel %vm11917_vm1, %v12008_v52, %v12012_v10  ;;  %v9712_v29 = vadd.f32 %v21857_v28, %v9664_v7  ;;  %v9713_v27 = vadd.f32 %v21857_v28, %v9665_v31  ;;  %v9416_v5 = vpop.f32.mrf.mxu1 }
 0x397   : > { %v11573_v26 = vld [vmem:[#allocation2 + $0x78] sm:$0x1]  ;;  %v10241_v36 = vcombine.high %v10239_v24, %v10239_v24  ;;  %v10946_v41 = vcombine.low %v10232_v44, %v10240_v49  ;;  %12424 = vmatprep.mubr.bf16.mxu1 %v22017_v11  ;;  %16184 = vmatmul.mubr.bf16.gmra.mxu0 %v22017_v11  ;;  %v9714_v58 = vadd.f32 %v21857_v28, %v9666_v22  ;;  %v22032_v45 = vpop.f32.mrf.mxu0 }
 0x398   : > { %v11574_v18 = vsel %vm21652_vm4, 0, %v11573_v26  ;;  %v11576_v39 = vld [vmem:[#allocation2 + $0x84] sm:$0x1]  ;;  %11514 = vst [vmem:[#allocation2 + $0x88] sm:$0xf] %v15139_v38  ;;  %v10242_v61 = vcombine.high %v9712_v29, %v9712_v29  ;;  %v10249_v4 = vrot.slane %v9712_v29, %v21581_v23  ;;  %v10259_v40 = vcombine.high %v9713_v27, %v9713_v27  ;;  %v22034_v32 = vpop.f32.mrf.mxu1 }
 0x399   : > { %11575 = vst [vmem:[#allocation2 + $0x78] sm:$0x1] %v11574_v18  ;;  %v11577_v46 = vsel %vm21652_vm4, 0, %v11576_v39  ;;  %v10947_v9 = vcombine.low %v10239_v24, %v10241_v36  ;;  %v10954_v57 = vrot.slane %v10946_v41, %v21581_v23  ;;  %v10266_v21 = vrot.slane %v9713_v27, %v21581_v23  ;;  %v16142_v35 = vpop.f32.mrf.mxu0  ;;  %v16652_v26 = vld [vmem:[#allocation2 + $0x74] ss:$0 sps:$4 sm:$0x11]  }
 0x39a   : > { %11578 = vst [vmem:[#allocation2 + $0x84] sm:$0x1] %v11577_v46  ;;  %v10256_v42 = vrot.slane %v10242_v61, %v21581_v23  ;;  %v10257_v51 = vcombine.high %v10249_v4, %v10249_v4  ;;  %12425 = vmatmul.mubr.bf16.gmra.mxu1 %v21986_v8  ;;  %v10273_v43 = vrot.slane %v10259_v40, %v21581_v23  ;;  %v9419_v14 = vpop.f32.mrf.mxu1  ;;  %v12019_v41 = vrot.slane %v12017_v6, 1 }
 0x39b   : > { %v10276_v2 = vcombine.high %v9714_v58, %v9714_v58  ;;  %v10961_v50 = vrot.slane %v10947_v9, %v21581_v23  ;;  %v10274_v15 = vcombine.high %v10266_v21, %v10266_v21  ;;  %v10986_v10 = vrot.slane %v10266_v21, %v21581_v23  ;;  %v9606_v24 = vpop.f32.mrf.mxu0 }
 0x39c   : > { %v10283_v20 = vrot.slane %v9714_v58, %v21581_v23  ;;  %v11632_v19 = vld [vmem:[#allocation2 + $0x8c] sm:$0x1]  ;;  %v10258_v44 = vcombine.high %v10256_v42, %v10256_v42  ;;  %v10963_v34 = vcombine.low %v10249_v4, %v10257_v51  ;;  %v10275_v53 = vcombine.high %v10273_v43, %v10273_v43  ;;  %v22049_v49 = vpop.f32.mrf.mxu1 }
 0x39d   : > { %v22043_v37 = vrot.slane %v10276_v2, %v21581_v23  ;;  %v11633_v8 = vsel %vm21639_vm3, 0, %v11632_v19  ;;  %v10962_v52 = vcombine.low %v10954_v57, %v10961_v50  ;;  %v10987_v7 = vcombine.low %v10274_v15, %v10273_v43  ;;  %v16145_v5 = vpop.f32.mrf.mxu0 }
 0x39e   : > { %v15143_v31 = vpack.c.bf16 %v10986_v10, %v10986_v10  ;;  %11634 = vst [vmem:[#allocation2 + $0x8c] sm:$0x1] %v11633_v8  ;;  %v10964_v22 = vcombine.low %v10256_v42, %v10258_v44  ;;  %v10971_v38 = vrot.slane %v10963_v34, %v21581_v23  ;;  %v10291_v29 = vcombine.high %v10283_v20, %v10283_v20  ;;  %v9424_v18 = vpop.f32.mrf.mxu1 }
 0x39f   : > { %v10988_v27 = vcombine.low %v10275_v53, %v10283_v20  ;;  %v10995_v36 = vrot.slane %v10987_v7, %v21581_v23  ;;  %v12022_v58 = vshll.u32 %v16649_v33, 16  ;;  %v9594_v30 = vadd.f32 %v21996_v16, %v21938_v56  ;;  %v9609_v16 = vpop.f32.mrf.mxu0 }
 0x3a0   : > { %11518 = vst [vmem:[#allocation2 + $0x98] sm:$0x1] %v15143_v31  ;;  %v10978_v39 = vrot.slane %v10964_v22, %v21581_v23  ;;  %v22058_v4 = vcombine.low %v10291_v29, %v22043_v37  ;;  %v10292_v40 = vcombine.high %v22043_v37, %v22043_v37  ;;  %v12020_v46 = vor.u32 %v12019_v41, %v12015_v59  ;;  %v22066_v57 = vpop.f32.mrf.mxu1 }
 0x3a1   : > { %v11002_v61 = vrot.slane %v10988_v27, %v21581_v23  ;;  %v12024_v6 = vrot.slane %v12022_v58, 1  ;;  %v9667_v9 = vadd.f32 %v9594_v30, %v21547_v62  ;;  %v12027_v56 = vshrl.u32 %v22047_v25, 16  ;;  %v16146_v15 = vpop.f32.mrf.mxu0 }
 0x3a2   : > { %v10979_v21 = vcombine.low %v10971_v38, %v10978_v39  ;;  %v11012_v51 = vrot.slane %v22058_v4, %v21581_v23  ;;  %v12029_v43 = vshll.u32 %v22047_v25, 16  ;;  %v12034_v50 = vshll.u32 %v16652_v26, 16  ;;  %v9427_v10 = vpop.f32.mrf.mxu1 }
 0x3a3   : > { %v11003_v42 = vcombine.low %v10995_v36, %v11002_v61  ;;  %v22072_v2 = vsel %vm11917_vm1, %v12020_v46, %v12024_v6  ;;  %v9715_v59 = vadd.f32 %v21857_v28, %v9667_v9  ;;  %v9599_v62 = vadd.f32 %v22012_v55, %v21953_v60  ;;  %v22084_v55 = vld [vmem:[#allocation2 + $0x78] sm:$0xff]   ;;  %v22086_v53 = vpop.f32.mrf.mxu0 }
 0x3a4   : > { %v15225_v20 = vpack.c.bf16 %v10979_v21, %v10962_v52  ;;  %12432 = vmatprep.mubr.bf16.mxu1 %v22072_v2  ;;  %16187 = vmatprep.mubr.bf16.mxu0 %v22072_v2  ;;  %v12031_v35 = vrot.slane %v12029_v43, 1  ;;  %v9602_v14 = vadd.f32 %v22032_v45, %v21966_v0  ;;  %v12036_v34 = vrot.slane %v12034_v50, 1  ;;  %v22088_v37 = vpop.f32.mrf.mxu1 }
 0x3a5   : > { %v15144_v33 = vpack.c.bf16 %v11003_v42, %v11003_v42  ;;  %v10293_v19 = vcombine.high %v9715_v59, %v9715_v59  ;;  %v10300_v44 = vrot.slane %v9715_v59, %v21581_v23  ;;  %12433 = vmatmul.mubr.bf16.gmra.mxu1 %v22017_v11  ;;  %v9668_v60 = vadd.f32 %v9599_v62, %v21550_v1  ;;  %v16149_v38 = vpop.f32.mrf.mxu0 }
 0x3a6   : > { %15322 = vst [vmem:[#allocation2 + $0x90] sm:$0xff] %v15225_v20   ;;  %v12032_v52 = vor.u32 %v12031_v35, %v12027_v56  ;;  %v9669_v0 = vadd.f32 %v9602_v14, %v21555_v12  ;;  %v9607_v45 = vadd.f32 %v9606_v24, %v21980_v3  ;;  %v9610_v7 = vadd.f32 %v9609_v16, %v21998_v54  ;;  %v9432_v29 = vpop.f32.mrf.mxu1 }
 0x3a7   : > { %v11635_v8 = vld [vmem:[#allocation2 + $0x98] sm:$0x1]  ;;  %11519 = vst [vmem:[#allocation2 + $0x9c] sm:$0xf] %v15144_v33  ;;  %v10307_v1 = vrot.slane %v10293_v19, %v21581_v23  ;;  %v10308_v31 = vcombine.high %v10300_v44, %v10300_v44  ;;  %v11005_v22 = vcombine.low %v10292_v40, %v10300_v44  ;;  %v9716_v26 = vadd.f32 %v21857_v28, %v9668_v60  ;;  %v22107_v58 = vpop.f32.mrf.mxu0 }
 0x3a8   : > { %v11636_v11 = vsel %vm21639_vm3, 0, %v11635_v8  ;;  %v22097_v27 = vsel %vm11917_vm1, %v12032_v52, %v12036_v34  ;;  %v9717_v12 = vadd.f32 %v21857_v28, %v9669_v0  ;;  %v9670_v3 = vadd.f32 %v9607_v45, %v21558_v13  ;;  %v9433_v30 = vpop.f32.mrf.mxu1  ;;  %v22125_v60 = vld [vmem:[#allocation2 + $0x80] ss:$0 sps:$4 sm:$0x11]  }
 0x3a9   : > { %11637 = vst [vmem:[#allocation2 + $0x98] sm:$0x1] %v11636_v11  ;;  %v10309_v54 = vcombine.high %v10307_v1, %v10307_v1  ;;  %v11019_v24 = vrot.slane %v11005_v22, %v21581_v23  ;;  %v11027_v36 = vrot.slane %v10308_v31, %v21581_v23  ;;  %12440 = vmatprep.mubr.bf16.mxu1 %v22097_v27  ;;  %v12039_v41 = vshrl.u32 %v22084_v55, 16  ;;  %v16150_v6 = vpop.f32.mrf.mxu0  ;;  %v24079_v11 = vld [vmem:[#allocation135_spill] sm:$0xff] }
 0x3aa   : > { %16188 = vmatmul.mubr.bf16.gmra.mxu0 %v22097_v27  ;;  %v10310_v5 = vcombine.high %v9716_v26, %v9716_v26  ;;  %v10317_v18 = vrot.slane %v9716_v26, %v21581_v23  ;;  %v10327_v39 = vcombine.high %v9717_v12, %v9717_v12  ;;  %v10334_v13 = vrot.slane %v9717_v12, %v21581_v23  ;;  %v9434_v9 = vpop.f32.mrf.mxu1 }
 0x3ab   : > { %v11020_v61 = vcombine.low %v11012_v51, %v11019_v24  ;;  %v11028_v4 = vcombine.low %v10307_v1, %v10309_v54  ;;  %v15146_v40 = vpack.c.bf16 %v11027_v36, %v11027_v36  ;;  %v9718_v46 = vadd.f32 %v21857_v28, %v9670_v3  ;;  %v22117_v10 = vpop.f32.mrf.mxu0 }
 0x3ac   : > { %v10324_v56 = vrot.slane %v10310_v5, %v21581_v23  ;;  %v10325_v16 = vcombine.high %v10317_v18, %v10317_v18  ;;  %v10341_v21 = vrot.slane %v10327_v39, %v21581_v23  ;;  %v10342_v42 = vcombine.high %v10334_v13, %v10334_v13 }
 0x3ad   : > { %v11579_v43 = vld [vmem:[#allocation2 + $0x90] sm:$0x1]  ;;  %v11036_v50 = vrot.slane %v11028_v4, %v21581_v23  ;;  %v15145_v62 = vpack.c.bf16 %v11020_v61, %v11020_v61  ;;  %11521 = vst [vmem:[#allocation2 + $0xa4] sm:$0x1] %v15146_v40  ;;  %12441 = vmatmul.mubr.bf16.gmra.mxu1 %v22072_v2  ;;  %v10344_v51 = vcombine.high %v9718_v46, %v9718_v46  ;;  %v16153_v8 = vpop.f32.mrf.mxu0  ;;  %v12041_v30 = vshll.u32 %v22084_v55, 16 }
 0x3ae   : > { %v11582_v59 = vld [vmem:[#allocation2 + $0x9c] sm:$0x1]  ;;  %v10351_v15 = vrot.slane %v9718_v46, %v21581_v23  ;;  %v11580_v20 = vsel %vm21652_vm4, 0, %v11579_v43  ;;  %v10326_v35 = vcombine.high %v10324_v56, %v10324_v56  ;;  %v11029_v14 = vcombine.low %v10317_v18, %v10325_v16  ;;  %v22139_v18 = vld [vmem:[#allocation2 + $0x84] sm:$0xff]   ;;  %v24080_v16 = vld [vmem:[#allocation140_spill] sm:$0xff] }
 0x3af   : > { %v11583_v33 = vsel %vm21652_vm4, 0, %v11582_v59  ;;  %11581 = vst [vmem:[#allocation2 + $0x90] sm:$0x1] %v11580_v20  ;;  %11520 = vst [vmem:[#allocation2 + $0xa0] sm:$0xf] %v15145_v62  ;;  %v11046_v19 = vcombine.low %v10334_v13, %v10342_v42  ;;  %v11068_v44 = vrot.slane %v10341_v21, %v21581_v23  ;;  %v10343_v2 = vcombine.high %v10341_v21, %v10341_v21  ;;  %v22130_v26 = vpop.f32.mrf.mxu0 }
 0x3b0   : > { %11584 = vst [vmem:[#allocation2 + $0x9c] sm:$0x1] %v11583_v33  ;;  %v10358_v34 = vrot.slane %v10344_v51, %v21581_v23  ;;  %v11043_v52 = vrot.slane %v11029_v14, %v21581_v23  ;;  %v11045_v0 = vcombine.low %v10324_v56, %v10326_v35  ;;  %v10359_v45 = vcombine.high %v10351_v15, %v10351_v15  ;;  %v22146_v42 = vld [vmem:[#allocation2 + $0x8c] ss:$0 sps:$4 sm:$0x11]  }
 0x3b1   : > { %v9671_v1 = vadd.f32 %v9610_v7, %v24079_v11  ;;  %v11060_v31 = vrot.slane %v11046_v19, %v21581_v23  ;;  %v15149_v22 = vpack.c.bf16 %v11068_v44, %v11068_v44  ;;  %v11069_v38 = vcombine.low %v10343_v2, %v10351_v15  ;;  %v16154_v39 = vpop.f32.mrf.mxu0 }
 0x3b2   : > { %v10360_v29 = vcombine.high %v10358_v34, %v10358_v34  ;;  %v11044_v12 = vcombine.low %v11036_v50, %v11043_v52  ;;  %v11053_v3 = vrot.slane %v11045_v0, %v21581_v23  ;;  %v11070_v54 = vcombine.low %v10359_v45, %v10358_v34  ;;  %v24081_v39 = vld [vmem:[#allocation141_spill] sm:$0xff] }
 0x3b3   : > { %v9719_v24 = vadd.f32 %v21857_v28, %v9671_v1  ;;  %11524 = vst [vmem:[#allocation2 + $0xb0] sm:$0x1] %v15149_v22  ;;  %v11077_v36 = vrot.slane %v11069_v38, %v21581_v23  ;;  %v12046_v7 = vshll.u32 %v22125_v60, 16  ;;  %v9615_v5 = vadd.f32 %v22086_v53, %v22014_v17  ;;  %v22148_v17 = vpop.f32.mrf.mxu0 }
 0x3b4   : > { %v11638_v13 = vld [vmem:[#allocation2 + $0xa4] sm:$0x1]  ;;  %v11061_v61 = vcombine.low %v11053_v3, %v11060_v31  ;;  %v11084_v4 = vrot.slane %v11070_v54, %v21581_v23  ;;  %v12043_v9 = vrot.slane %v12041_v30, 1  ;;  %v12051_v20 = vshrl.u32 %v22139_v18, 16 }
 0x3b5   : > { %v10361_v40 = vcombine.high %v9719_v24, %v9719_v24  ;;  %v10368_v46 = vrot.slane %v9719_v24, %v21581_v23  ;;  %v11639_v6 = vsel %vm21639_vm3, 0, %v11638_v13  ;;  %v12048_v56 = vrot.slane %v12046_v7, 1  ;;  %v16157_v33 = vpop.f32.mrf.mxu0  ;;  %v22170_v7 = vld [vmem:[#allocation2 + $0x98] ss:$0 sps:$4 sm:$0x11]  }
 0x3b6   : > { %v9672_v21 = vadd.f32 %v9615_v5, %v24080_v16  ;;  %11640 = vst [vmem:[#allocation2 + $0xa4] sm:$0x1] %v11639_v6  ;;  %v15230_v53 = vpack.c.bf16 %v11061_v61, %v11044_v12  ;;  %v11085_v43 = vcombine.low %v11077_v36, %v11084_v4  ;;  %v12044_v51 = vor.u32 %v12043_v9, %v12039_v41  ;;  %v22168_v12 = vld [vmem:[#allocation2 + $0x90] sm:$0xff]   ;;  %v16724_v6 = vld [vmem:[%s23286_s2] ss:$0 sm:$0xff] }
 0x3b7   : > { %v10375_v59 = vrot.slane %v10361_v40, %v21581_v23  ;;  %v10376_v50 = vcombine.high %v10368_v46, %v10368_v46  ;;  %v11086_v62 = vcombine.low %v10360_v29, %v10368_v46  ;;  %v12053_v44 = vshll.u32 %v22139_v18, 16  ;;  %v9633_v0 = vpop.f32.mrf.mxu0 }
 0x3b8   : > { %v9720_v15 = vadd.f32 %v21857_v28, %v9672_v21  ;;  %15323 = vst [vmem:[#allocation2 + $0xa8] sm:$0xff] %v15230_v53   ;;  %v15150_v35 = vpack.c.bf16 %v11085_v43, %v11085_v43  ;;  %v12049_v34 = vsel %vm11917_vm1, %v12044_v51, %v12048_v56  ;;  %v12058_v1 = vshll.u32 %v22146_v42, 16  ;;  %v24082_v56 = vld [vmem:[#allocation161_spill] sm:$0xff] }
 0x3b9   : > { %v10377_v14 = vcombine.high %v10375_v59, %v10375_v59  ;;  %v11087_v19 = vcombine.low %v10376_v50, %v10375_v59  ;;  %v11094_v2 = vrot.slane %v11086_v62, %v21581_v23  ;;  %12448 = vmatprep.mubr.bf16.mxu1 %v12049_v34  ;;  %16191 = vmatprep.mubr.bf16.mxu0 %v12049_v34  ;;  %v12055_v11 = vrot.slane %v12053_v44, 1  ;;  %v16158_v3 = vpop.f32.mrf.mxu0 }
 0x3ba   : > { %v10378_v8 = vcombine.high %v9720_v15, %v9720_v15  ;;  %v10385_v52 = vrot.slane %v9720_v15, %v21581_v23  ;;  %v11641_v41 = vld [vmem:[#allocation2 + $0xb0] sm:$0x1]  ;;  %11525 = vst [vmem:[#allocation2 + $0xb4] sm:$0xf] %v15150_v35  ;;  %12449 = vmatmul.mubr.bf16.gmra.mxu1 %v22097_v27  ;;  %v9618_v29 = vadd.f32 %v22107_v58, %v22034_v32  ;;  %v12060_v30 = vrot.slane %v12058_v1, 1 }
 0x3bb   : > { %v11101_v28 = vrot.slane %v11087_v19, %v21581_v23  ;;  %v11109_v45 = vrot.slane %v10377_v14, %v21581_v23  ;;  %v11642_v31 = vsel %vm21639_vm3, 0, %v11641_v41  ;;  %v12056_v36 = vor.u32 %v12055_v11, %v12051_v20 }
 0x3bc   : > { %v10392_v22 = vrot.slane %v10378_v8, %v21581_v23  ;;  %v10393_v38 = vcombine.high %v10385_v52, %v10385_v52  ;;  %11643 = vst [vmem:[#allocation2 + $0xb0] sm:$0x1] %v11642_v31  ;;  %v9673_v13 = vadd.f32 %v9618_v29, %v24081_v39  ;;  %v9623_v27 = vadd.f32 %v22117_v10, %v22049_v49  ;;  %v22210_v29 = vld [vmem:[#allocation2 + $0x9c] sm:$0xff]  }
 0x3bd   : > { %v11102_v54 = vcombine.low %v11094_v2, %v11101_v28  ;;  %v15152_v24 = vpack.c.bf16 %v11109_v45, %v11109_v45  ;;  %v22176_v32 = vsel %vm11917_vm1, %v12056_v36, %v12060_v30  ;;  %v9626_v58 = vadd.f32 %v22130_v26, %v22066_v57  ;;  %v24083_v26 = vld [vmem:[#allocation153_spill] sm:$0xff]  ;;  %v24084_v39 = vld [vmem:[#allocation162_spill] sm:$0xff] }
 0x3be   : > { %v10394_v5 = vcombine.high %v10392_v22, %v10392_v22  ;;  %v11110_v40 = vcombine.low %v10385_v52, %v10393_v38  ;;  %12456 = vmatprep.mubr.bf16.mxu1 %v22176_v32  ;;  %16192 = vmatmul.mubr.bf16.gmra.mxu0 %v22176_v32  ;;  %v9721_v49 = vadd.f32 %v16724_v6, %v9673_v13  ;;  %v12065_v10 = vshll.u32 %v22168_v12, 16 }
 0x3bf   : > { %v15151_v61 = vpack.c.bf16 %v11102_v54, %v11102_v54  ;;  %11527 = vst [vmem:[#allocation2 + $0xbc] sm:$0x1] %v15152_v24  ;;  %v11585_v4 = vld [vmem:[#allocation2 + $0xa8] sm:$0x1]  ;;  %v9674_v57 = vadd.f32 %v9623_v27, %v24082_v56  ;;  %v9675_v16 = vadd.f32 %v9626_v58, %v24083_v26  ;;  %v12070_v21 = vshll.u32 %v22170_v7, 16 }
 0x3c0   : > { %v11111_v46 = vcombine.low %v10392_v22, %v10394_v5  ;;  %v11586_v9 = vsel %vm21652_vm4, 0, %v11585_v4  ;;  %v10395_v43 = vcombine.high %v9721_v49, %v9721_v49  ;;  %v10402_v59 = vrot.slane %v9721_v49, %v21581_v23  ;;  %v22214_v24 = vld [vmem:[#allocation2 + $0xa4] ss:$0 sps:$4 sm:$0x11]  }
 0x3c1   : > { %11526 = vst [vmem:[#allocation2 + $0xb8] sm:$0xf] %v15151_v61  ;;  %11587 = vst [vmem:[#allocation2 + $0xa8] sm:$0x1] %v11586_v9  ;;  %v11588_v53 = vld [vmem:[#allocation2 + $0xb4] sm:$0x1]  ;;  %v9722_v20 = vadd.f32 %v16724_v6, %v9674_v57  ;;  %v9723_v33 = vadd.f32 %v16724_v6, %v9675_v16  ;;  %v9631_v1 = vadd.f32 %v22148_v17, %v22088_v37 }
 0x3c2   : > { %v12063_v50 = vshrl.u32 %v22168_v12, 16  ;;  %v12067_v62 = vrot.slane %v12065_v10, 1  ;;  %v11589_v51 = vsel %vm21652_vm4, 0, %v11588_v53  ;;  %v11125_v15 = vrot.slane %v11111_v46, %v21581_v23  ;;  %12457 = vmatmul.mubr.bf16.gmra.mxu1 %v12049_v34 }
 0x3c3   : > { %11590 = vst [vmem:[#allocation2 + $0xb4] sm:$0x1] %v11589_v51  ;;  %v10409_v35 = vrot.slane %v10395_v43, %v21581_v23  ;;  %v10410_v14 = vcombine.high %v10402_v59, %v10402_v59  ;;  %v12072_v44 = vrot.slane %v12070_v21, 1  ;;  %v10412_v2 = vcombine.high %v9722_v20, %v9722_v20 }
 0x3c4   : > { %v12068_v19 = vor.u32 %v12067_v62, %v12063_v50  ;;  %v10419_v8 = vrot.slane %v9722_v20, %v21581_v23  ;;  %v10429_v52 = vcombine.high %v9723_v33, %v9723_v33  ;;  %v10436_v0 = vrot.slane %v9723_v33, %v21581_v23 }
 0x3c5   : > { %v10411_v28 = vcombine.high %v10409_v35, %v10409_v35  ;;  %v11127_v45 = vcombine.low %v10402_v59, %v10410_v14  ;;  %v10426_v31 = vrot.slane %v10412_v2, %v21581_v23  ;;  %v11118_v3 = vrot.slane %v11110_v40, %v21581_v23  ;;  %v22221_v40 = vld [vmem:[#allocation2 + $0xb0] ss:$0 sps:$4 sm:$0x11]  }
 0x3c6   : > { %v11644_v41 = vld [vmem:[#allocation2 + $0xbc] sm:$0x1]  ;;  %v22200_v11 = vsel %vm11917_vm1, %v12068_v19, %v12072_v44  ;;  %v10427_v22 = vcombine.high %v10419_v8, %v10419_v8  ;;  %v11150_v38 = vrot.slane %v10419_v8, %v21581_v23  ;;  %v10443_v37 = vrot.slane %v10429_v52, %v21581_v23 }
 0x3c7   : > { %v11645_v34 = vsel %vm21639_vm3, 0, %v11644_v41  ;;  %12464 = vmatprep.mubr.bf16.mxu1 %v22200_v11  ;;  %16195 = vmatprep.mubr.bf16.mxu0 %v22200_v11  ;;  %v11128_v54 = vcombine.low %v10409_v35, %v10411_v28  ;;  %v10444_v17 = vcombine.high %v10436_v0, %v10436_v0  ;;  %v10428_v5 = vcombine.high %v10426_v31, %v10426_v31 }
 0x3c8   : > { %11646 = vst [vmem:[#allocation2 + $0xbc] sm:$0x1] %v11645_v34  ;;  %v11151_v36 = vcombine.low %v10427_v22, %v10426_v31  ;;  %v15155_v30 = vpack.c.bf16 %v11150_v38, %v11150_v38  ;;  %v9676_v13 = vadd.f32 %v9631_v1, %v24084_v39  ;;  %v22217_v27 = vld [vmem:[#allocation2 + $0xa8] sm:$0xff]   ;;  %v11126_v61 = vcombine.low %v11118_v3, %v11125_v15 }
 0x3c9   : > { %v11135_v58 = vrot.slane %v11127_v45, %v21581_v23  ;;  %v11142_v4 = vrot.slane %v11128_v54, %v21581_v23  ;;  %v11168_v46 = vcombine.low %v10444_v17, %v10443_v37  ;;  %v11152_v49 = vcombine.low %v10428_v5, %v10436_v0 }
 0x3ca   : > { %11530 = vst [vmem:[#allocation2 + $0xc8] sm:$0x1] %v15155_v30  ;;  %v9724_v10 = vadd.f32 %v16724_v6, %v9676_v13  ;;  %v10445_v9 = vcombine.high %v10443_v37, %v10443_v37  ;;  %v12077_v56 = vshll.u32 %v22210_v29, 16  ;;  %v11159_v26 = vrot.slane %v11151_v36, %v21581_v23  ;;  %12465 = vmatmul.mubr.bf16.gmra.mxu1 %v22176_v32  ;;  %v22228_v53 = vld [vmem:[#allocation2 + $0xb4] sm:$0xff]  }
 0x3cb   : > { %v11143_v57 = vcombine.low %v11135_v58, %v11142_v4  ;;  %v12075_v16 = vshrl.u32 %v22210_v29, 16  ;;  %v12082_v21 = vshll.u32 %v22214_v24, 16  ;;  %v11166_v43 = vrot.slane %v11152_v49, %v21581_v23 }
 0x3cc   : > { %v10452_v59 = vrot.slane %v9724_v10, %v21581_v23  ;;  %v12079_v50 = vrot.slane %v12077_v56, 1  ;;  %v12089_v6 = vshll.u32 %v22217_v27, 16  ;;  %v11176_v51 = vrot.slane %v11168_v46, %v21581_v23 }
 0x3cd   : > { %v15235_v62 = vpack.c.bf16 %v11143_v57, %v11126_v61  ;;  %v12084_v15 = vrot.slane %v12082_v21, 1  ;;  %v12094_v20 = vshll.u32 %v22221_v40, 16  ;;  %v11167_v32 = vcombine.low %v11159_v26, %v11166_v43 }
 0x3ce   : > { %v10453_v33 = vcombine.high %v10452_v59, %v10452_v59  ;;  %v11169_v35 = vcombine.low %v10445_v9, %v10452_v59  ;;  %v12080_v14 = vor.u32 %v12079_v50, %v12075_v16  ;;  %v12087_v44 = vshrl.u32 %v22217_v27, 16 }
 0x3cf   : > { %v22235_v19 = vld [vmem:[#allocation2 + $0xbc] ss:$0 sps:$4 sm:$0x11]   ;;  %15324 = vst [vmem:[#allocation2 + $0xc0] sm:$0xff] %v15235_v62   ;;  %v12091_v2 = vrot.slane %v12089_v6, 1  ;;  %v12099_v8 = vshrl.u32 %v22228_v53, 16  ;;  %v15156_v0 = vpack.c.bf16 %v11167_v32, %v11167_v32 }
 0x3d0   : > { %v12101_v52 = vshll.u32 %v22228_v53, 16  ;;  %v11183_v41 = vrot.slane %v11169_v35, %v21581_v23  ;;  %v11191_v28 = vrot.slane %v10453_v33, %v21581_v23  ;;  %v12085_v45 = vsel %vm11917_vm1, %v12080_v14, %v12084_v15  ;;  %v22277_v33 = vld [vmem:[#allocation2 + $0xc] sm:$0xff]  }
 0x3d1   : > { %v11647_v1 = vld [vmem:[#allocation2 + $0xc8] sm:$0x1]  ;;  %12472 = vmatprep.mubr.bf16.mxu1 %v12085_v45  ;;  %16196 = vmatmul.mubr.bf16.gmra.mxu0 %v12085_v45  ;;  %v12092_v34 = vor.u32 %v12091_v2, %v12087_v44  ;;  %v12096_v31 = vrot.slane %v12094_v20, 1  ;;  %v12106_v38 = vshll.u32 %v22235_v19, 16  ;;  %11531 = vst [vmem:[#allocation2 + $0xcc] sm:$0xf] %v15156_v0 }
 0x3d2   : > { %v12103_v22 = vrot.slane %v12101_v52, 1  ;;  %v11648_v3 = vsel %vm21639_vm3, 0, %v11647_v1  ;;  %v11184_v54 = vcombine.low %v11176_v51, %v11183_v41  ;;  %v15158_v37 = vpack.c.bf16 %v11191_v28, %v11191_v28  ;;  %12473 = vmatmul.mubr.bf16.gmra.mxu1 %v22200_v11  ;;  %v22273_v20 = vld [vmem:[#allocation2 + $0x18] sm:$0xff]   ;;  %v16694_v35 = vld [vmem:[#allocation3 + $0x1b8] sm:$0xff]   ;;  %v16695_v14 = vld [vmem:[#allocation3 + $0x1f0] sm:$0xff]  }
 0x3d3   : > { %11649 = vst [vmem:[#allocation2 + $0xc8] sm:$0x1] %v11648_v3  ;;  %v24085_v17 = vmov 0   ;;  %v12097_v23 = vsel %vm11917_vm1, %v12092_v34, %v12096_v31  ;;  %v12108_v30 = vrot.slane %v12106_v38, 1  ;;  %v22280_v44 = vld [vmem:[#allocation2 + $0x24] sm:$0xff]   ;;  %v22292_v28 = vld [vmem:[#allocation3 + $0x238] sm:$0xff]  }
 0x3d4   : > { %11538 = vst [vmem:[#allocation2 + $0xcc] sm:$0xf] %v24085_v17  ;;  %v12104_v36 = vor.u32 %v12103_v22, %v12099_v8  ;;  %v15157_v5 = vpack.c.bf16 %v11184_v54, %v11184_v54  ;;  %11533 = vst [vmem:[#allocation2 + $0xd4] sm:$0x1] %v15158_v37  ;;  %12480 = vmatprep.mubr.bf16.mxu1 %v12097_v23  ;;  %16199 = vmatprep.mubr.bf16.mxu0 %v12097_v23  ;;  %v22283_v2 = vld [vmem:[#allocation3 + $0x230] sm:$0xff]   ;;  %v22285_v8 = vld [vmem:[#allocation2 + $0x30] sm:$0xff]  }
 0x3d5   : > { %11540 = vst [vmem:[#allocation2 + $0xd4] sm:$0x1] %v24085_v17  ;;  %v16697_v52 = vld [vmem:[#allocation3 + $0x1b0] sm:$0xff]   ;;  %v22288_v0 = vld [vmem:[#allocation2] sm:$0xff]   ;;  %v16700_v34 = vld [vmem:[#allocation3 + $0x1e0] sm:$0xff]  }
 0x3d6   : > { %v11591_v39 = vld [vmem:[#allocation2 + $0xc0] sm:$0x1]  ;;  %11532 = vst [vmem:[#allocation2 + $0xd0] sm:$0xf] %v15157_v5  ;;  %v12109_v13 = vsel %vm11917_vm1, %v12104_v36, %v12108_v30  ;;  %v22303_v22 = vld [vmem:[#allocation3 + $0x220] sm:$0xff]   ;;  %v22305_v38 = vld [vmem:[#allocation2 + $0x48] sm:$0xff]  }
 0x3d7   : > { %v11592_v61 = vsel %vm21652_vm4, 0, %v11591_v39  ;;  %11539 = vst [vmem:[#allocation2 + $0xd0] sm:$0xf] %v24085_v17  ;;  %v16698_v41 = vld [vmem:[#allocation3 + $0x1e8] sm:$0xff]   ;;  %v16701_v3 = vld [vmem:[#allocation3 + $0x1a0] sm:$0xff]   ;;  %v16702_v54 = vld [vmem:[#allocation3 + $0x1d8] sm:$0xff]  }
 0x3d8   : > { %11593 = vst [vmem:[#allocation2 + $0xc0] sm:$0x1] %v11592_v61  ;;  %v16699_v1 = vld [vmem:[#allocation3 + $0x1a8] sm:$0xff]   ;;  %v22312_v37 = vld [vmem:[#allocation3 + $0x218] sm:$0xff]   ;;  %v22319_v30 = vld [vmem:[#allocation3 + $0x210] sm:$0xff]  }
 0x3d9   : > { %16200 = vmatmul.mubr.bf16.gmra.mxu0 %v12109_v13  ;;  %v22299_v31 = vld [vmem:[#allocation2 + $0x3c] sm:$0xff]   ;;  %v16703_v17 = vld [vmem:[#allocation3 + $0x198] sm:$0xff]   ;;  %v16706_v5 = vld [vmem:[#allocation3 + $0x190] sm:$0xff]  }
 0x3da   : > { %12481 = vmatmul.mubr.bf16.gmra.mxu1 %v12085_v45  ;;  %v22258_v49 = vld [vmem:[#allocation2 + $0xc8] ss:$0 sps:$4 sm:$0x11]   ;;  %v22296_v45 = vld [vmem:[#allocation3 + $0x228] sm:$0xff]   ;;  %v22315_v36 = vld [vmem:[#allocation2 + $0x54] sm:$0xff]  }
 0x3db   : > { %v11594_v11 = vld [vmem:[#allocation2 + $0xcc] sm:$0x1]  ;;  %12488 = vmatprep.mubr.bf16.mxu1 %v12109_v13  ;;  %v12118_v56 = vshll.u32 %v22258_v49, 16  ;;  %v16707_v39 = vld [vmem:[#allocation3 + $0x1c8] sm:$0xff]  }
 0x3dc   : > { %v11595_v58 = vsel %vm21652_vm4, 0, %v11594_v11  ;;  %v11650_v4 = vld [vmem:[#allocation2 + $0xd4] sm:$0x1]  ;;  %v16708_v61 = vld [vmem:[#allocation3 + $0x188] sm:$0xff]   ;;  %v16709_v11 = vld [vmem:[#allocation3 + $0x1c0] sm:$0xff]  }
 0x3dd   : > { %11596 = vst [vmem:[#allocation2 + $0xcc] sm:$0x1] %v11595_v58  ;;  %v11651_v46 = vsel %vm21639_vm3, 0, %v11650_v4  ;;  %v12120_v21 = vrot.slane %v12118_v56, 1  ;;  %v16710_v58 = vld [vmem:[#allocation3 + $0x180] sm:$0xff]  }
 0x3de   : > { %11652 = vst [vmem:[#allocation2 + $0xd4] sm:$0x1] %v11651_v46  ;;  %v22341_v4 = vld [vmem:[%s23288_s4 + $0x38] sm:$0xff]  }
 0x3df   : > { %v22260_v10 = vld [vmem:[#allocation2 + $0xc0] sm:$0xff]  }
 0x3e0   : > { %v12113_v9 = vshll.u32 %v22260_v10, 16  ;;  %v12111_v63 = vshrl.u32 %v22260_v10, 16 }
 0x3e2   : > { %12489 = vmatmul.mubr.bf16.gmra.mxu1 %v12097_v23  ;;  %v12115_v57 = vrot.slane %v12113_v9, 1  ;;  %v16704_v23 = vld [vmem:[#allocation3 + $0x1d0] sm:$0xff]  }
 0x3e4   : > { %v22265_v26 = vld [vmem:[#allocation2 + $0xcc] sm:$0xff]   ;;  %v12116_v16 = vor.u32 %v12115_v57, %v12111_v63 }
 0x3e5   : > { %v22267_v43 = vld [vmem:[#allocation2 + $0xd4] ss:$0 sps:$4 sm:$0x11]   ;;  %v12123_v47 = vshrl.u32 %v22265_v26, 16  ;;  %v12125_v59 = vshll.u32 %v22265_v26, 16 }
 0x3e6   : > { %v12121_v50 = vsel %vm11917_vm1, %v12116_v16, %v12120_v21  ;;  %v12130_v6 = vshll.u32 %v22267_v43, 16  ;;  %v22359_v21 = vld [vmem:[#allocation2 + $0x60] sm:$0xff]  }
 0x3e7   : > { %12496 = vmatprep.mubr.bf16.mxu1 %v12121_v50  ;;  %16203 = vmatprep.mubr.bf16.mxu0 %v12121_v50  ;;  %v12127_v62 = vrot.slane %v12125_v59, 1 }
 0x3e8   : > { %v12132_v51 = vrot.slane %v12130_v6, 1  ;;  %v13136_v6 = vrot.slane %v22277_v33, 1 }
 0x3e9   : > { %v12128_v15 = vor.u32 %v12127_v62, %v12123_v47  ;;  %v16735_v47 = vld [vmem:[#allocation2 + $0x14] ss:$0 sps:$4 sm:$0x11]  }
 0x3ea   : > { %12497 = vmatmul.mubr.bf16.gmra.mxu1 %v12109_v13  ;;  %v22326_v13 = vld [vmem:[#allocation3 + $0x208] sm:$0xff]   ;;  %v13137_v59 = vrot.slane %v16735_v47, 1 }
 0x3eb   : > { %16223 = vmatprep.mubr.bf16.mxu1 %v22273_v20  ;;  %v12133_v32 = vsel %vm11917_vm1, %v12128_v15, %v12132_v51 }
 0x3ec   : > { %16204 = vmatmul.mubr.bf16.gmra.mxu0 %v12133_v32  ;;  %v13138_v15 = vsel %vm13132_vm5, %v13136_v6, %v13137_v59  ;;  %v13142_v59 = vrot.slane %v22280_v44, 1 }
 0x3ed   : > { %12842 = vmatprep.mubr.bf16.mxu0 %v22277_v33 }
 0x3f2   : > { %16224 = vmatmul.mubr.bf16.vlgmr.msra.gmra.mxu1 %v22280_v44 }
 0x3f3   : > { %16227 = vmatprep.mubr.bf16.mxu1 %v22285_v8  ;;  %15700 = vmatpush3.bf16.msra.mxu1 %v16694_v35  ;;  %v13133_v35 = vrot.slane %v22288_v0, 1 }
 0x3f4   : > { %12843 = vmatmul.mubr.bf16.vlgmr.msra.gmra.mxu0 %v22288_v0  ;;  %15701 = vmatprep.subr.bf16.mxu1 %v16695_v14  ;;  %v16736_v14 = vld [vmem:[#allocation2 + $0x8] ss:$0 sps:$4 sm:$0x11]  }
 0x3f5   : > { %12850 = vmatprep.mubr.bf16.mxu0 %v22273_v20  ;;  %16256 = vmatpush3.bf16.msra.mxu0 %v22292_v28 }
 0x3f6   : > { %16257 = vmatprep.subr.bf16.mxu0 %v22283_v2 }
 0x3f7   : > { %15702 = vmatpush3.bf16.msra.mxu1 %v16697_v52  ;;  %v13134_v52 = vrot.slane %v16736_v14, 1 }
 0x3f8   : > { %15703 = vmatprep.subr.bf16.mxu1 %v16698_v41 }
 0x3f9   : > { %16258 = vmatpush3.bf16.msra.mxu0 %v22283_v2 }
 0x3fa   : > { %16228 = vmatmul.mubr.bf16.gmra.mxu1 %v22299_v31  ;;  %16259 = vmatprep.subr.bf16.mxu0 %v22296_v45 }
 0x3fb   : > { %16231 = vmatprep.mubr.bf16.mxu1 %v22305_v38  ;;  %15704 = vmatpush3.bf16.msra.mxu1 %v16699_v1 }
 0x3fc   : > { %12851 = vmatmul.mubr.bf16.gmra.mxu0 %v22277_v33  ;;  %15705 = vmatprep.subr.bf16.mxu1 %v16700_v34 }
 0x3fd   : > { %12858 = vmatprep.mubr.bf16.mxu0 %v22280_v44  ;;  %16260 = vmatpush3.bf16.msra.mxu0 %v22296_v45 }
 0x3fe   : > { %16261 = vmatprep.subr.bf16.mxu0 %v22303_v22 }
 0x3ff   : > { %15706 = vmatpush3.bf16.msra.mxu1 %v16701_v3 }
 0x400   : > { %15707 = vmatprep.subr.bf16.mxu1 %v16702_v54  ;;  %v13139_v54 = vrot.slane %v22273_v20, 1 }
 0x401   : > { %16262 = vmatpush3.bf16.msra.mxu0 %v22303_v22 }
 0x402   : > { %16232 = vmatmul.mubr.bf16.gmra.mxu1 %v22315_v36  ;;  %16263 = vmatprep.subr.bf16.mxu0 %v22312_v37 }
 0x403   : > { %16235 = vmatprep.mubr.bf16.mxu1 %v21994_v48  ;;  %15708 = vmatpush3.bf16.msra.mxu1 %v16703_v17  ;;  %v22331_v48 = vld [vmem:[#allocation3 + $0x200] sm:$0xff]  }
 0x404   : > { %12859 = vmatmul.mubr.bf16.gmra.mxu0 %v22273_v20  ;;  %15709 = vmatprep.subr.bf16.mxu1 %v16704_v23 }
 0x405   : > { %12866 = vmatprep.mubr.bf16.mxu0 %v22285_v8  ;;  %16264 = vmatpush3.bf16.msra.mxu0 %v22312_v37 }
 0x406   : > { %16265 = vmatprep.subr.bf16.mxu0 %v22319_v30 }
 0x407   : > { %15710 = vmatpush3.bf16.msra.mxu1 %v16706_v5  ;;  %v13135_v5 = vsel %vm13132_vm5, %v13133_v35, %v13134_v52  ;;  %v16739_v52 = vld [vmem:[#allocation2 + $0x38] ss:$0 sps:$4 sm:$0x11]  }
 0x408   : > { %15711 = vmatprep.subr.bf16.mxu1 %v16707_v39  ;;  %v16737_v39 = vld [vmem:[#allocation2 + $0x20] ss:$0 sps:$4 sm:$0x11]  }
 0x409   : > { %16266 = vmatpush3.bf16.msra.mxu0 %v22319_v30 }
 0x40a   : > { %16236 = vmatmul.mubr.bf16.gmra.mxu1 %v22047_v25  ;;  %16267 = vmatprep.subr.bf16.mxu0 %v22326_v13 }
 0x40b   : > { %16239 = vmatprep.mubr.bf16.mxu1 %v22084_v55  ;;  %15712 = vmatpush3.bf16.msra.mxu1 %v16708_v61  ;;  %v13140_v61 = vrot.slane %v16737_v39, 1 }
 0x40c   : > { %12867 = vmatmul.mubr.bf16.gmra.mxu0 %v22280_v44  ;;  %15713 = vmatprep.subr.bf16.mxu1 %v16709_v11  ;;  %v13145_v44 = vrot.slane %v22285_v8, 1 }
 0x40d   : > { %12874 = vmatprep.mubr.bf16.mxu0 %v22299_v31  ;;  %16268 = vmatpush3.bf16.msra.mxu0 %v22326_v13 }
 0x40e   : > { %16269 = vmatprep.subr.bf16.mxu0 %v22331_v48 }
 0x40f   : > { %15714 = vmatpush3.bf16.msra.mxu1 %v16710_v58 }
 0x410   : > { %16351 = vmatprep.subr.bf16.mxu1 %v22292_v28 }
 0x411   : > { %16270 = vmatpush3.bf16.msra.mxu0 %v22331_v48 }
 0x412   : > { %16240 = vmatmul.mubr.bf16.gmra.mxu1 %v22139_v18  ;;  %16303 = vmatprep.subr.bf16.mxu0 %v22341_v4 }
 0x413   : > { %16243 = vmatprep.mubr.bf16.mxu1 %v22168_v12 }
 0x414   : > { %12875 = vmatmul.mubr.bf16.gmra.mxu0 %v22285_v8 }
 0x415   : > { %12882 = vmatprep.mubr.bf16.mxu0 %v22305_v38 }
 0x419   : > { %v15443_v46 = vpop.f32.mrf.mxu1 }
 0x41a   : > { %16244 = vmatmul.mubr.bf16.gmra.mxu1 %v22210_v29 }
 0x41b   : > { %16247 = vmatprep.mubr.bf16.mxu1 %v22217_v27  ;;  %v15444_v9 = vpop.f32.mrf.mxu1 }
 0x41c   : > { %12883 = vmatmul.mubr.bf16.gmra.mxu0 %v22299_v31  ;;  %v15445_v56 = vadd.f32 %v15444_v9, %v15443_v46  ;;  %v22377_v9 = vsel %vm13132_vm5, %v13139_v54, %v13140_v61 }
 0x41d   : > { %12890 = vmatprep.mubr.bf16.mxu0 %v22315_v36  ;;  %v15446_v63 = vpop.f32.mrf.mxu1 }
 0x41f   : > { %v15447_v57 = vpop.f32.mrf.mxu1 }
 0x420   : > { %v22354_v16 = vadd.f32 %v15447_v57, %v15446_v63  ;;  %v16738_v57 = vld [vmem:[#allocation2 + $0x2c] ss:$0 sps:$4 sm:$0x11]  }
 0x421   : > { %v13143_v47 = vrot.slane %v16738_v57, 1 }
 0x422   : > { %16248 = vmatmul.mubr.bf16.gmra.mxu1 %v22228_v53 }
 0x423   : > { %16251 = vmatprep.mubr.bf16.mxu1 %v22260_v10 }
 0x424   : > { %12891 = vmatmul.mubr.bf16.gmra.mxu0 %v22305_v38 }
 0x425   : > { %12898 = vmatprep.mubr.bf16.mxu0 %v22359_v21 }
 0x426   : > { %v15449_v50 = vpop.f32.mrf.mxu1 }
 0x428   : > { %v15450_v62 = vpop.f32.mrf.mxu1 }
 0x429   : > { %v15451_v51 = vadd.f32 %v15450_v62, %v15449_v50 }
 0x42a   : > { %16252 = vmatmul.mubr.bf16.gmra.mxu1 %v22265_v26  ;;  %v15452_v32 = vpop.f32.mrf.mxu1 }
 0x42b   : > { %13429 = vmatprep.mubr.bf16.mxu1 %v13138_v15 }
 0x42c   : > { %12899 = vmatmul.mubr.bf16.gmra.mxu0 %v22315_v36  ;;  %v16177_v41 = vpop.f32.mrf.mxu0  ;;  %v15453_v1 = vpop.f32.mrf.mxu1 }
 0x42d   : > { %v22367_v34 = vadd.f32 %v16177_v41, %v15451_v51  ;;  %12906 = vmatprep.mubr.bf16.mxu0 %v22047_v25  ;;  %v15454_v33 = vadd.f32 %v15453_v1, %v15452_v32 }
 0x42e   : > { %v12539_v3 = vpop.f32.mrf.mxu0  ;;  %v15455_v17 = vpop.f32.mrf.mxu1 }
 0x42f   : > { %v22371_v23 = vadd.f32 %v15445_v56, %v12539_v3 }
 0x430   : > { %v16178_v0 = vpop.f32.mrf.mxu0  ;;  %v15456_v11 = vpop.f32.mrf.mxu1 }
 0x431   : > { %v22374_v58 = vadd.f32 %v16178_v0, %v15454_v33  ;;  %v15457_v46 = vadd.f32 %v15456_v11, %v15455_v17  ;;  %v13148_v11 = vrot.slane %v22299_v31, 1  ;;  %v16741_v31 = vld [vmem:[#allocation2 + $0x50] ss:$0 sps:$4 sm:$0x11]  }
 0x432   : > { %13430 = vmatmul.mubr.bf16.vlgmr.msra.gmra.mxu1 %v13135_v5  ;;  %v15458_v63 = vpop.f32.mrf.mxu1  ;;  %v16740_v5 = vld [vmem:[#allocation2 + $0x44] ss:$0 sps:$4 sm:$0x11]  }
 0x433   : > { %13437 = vmatprep.mubr.bf16.mxu1 %v22377_v9  ;;  %16359 = vmatpush3.bf16.msra.mxu1 %v22292_v28  ;;  %v22390_v28 = vsel %vm13132_vm5, %v13142_v59, %v13143_v47  ;;  %v13149_v0 = vrot.slane %v16740_v5, 1 }
 0x434   : > { %12907 = vmatmul.mubr.bf16.gmra.mxu0 %v22359_v21  ;;  %v15459_v20 = vpop.f32.mrf.mxu1  ;;  %16352 = vmatprep.subr.bf16.mxu1 %v22283_v2 }
 0x435   : > { %12914 = vmatprep.mubr.bf16.mxu0 %v22084_v55  ;;  %v22384_v56 = vadd.f32 %v15459_v20, %v15458_v63 }
 0x437   : > { %16360 = vmatpush3.bf16.msra.mxu1 %v22283_v2  ;;  %v22396_v2 = vpop.f32.mrf.mxu0 }
 0x438   : > { %16353 = vmatprep.subr.bf16.mxu1 %v22296_v45 }
 0x439   : > { %v15461_v50 = vpop.f32.mrf.mxu1 }
 0x43a   : > { %13438 = vmatmul.mubr.bf16.gmra.mxu1 %v13138_v15 }
 0x43b   : > { %v15462_v6 = vpop.f32.mrf.mxu1  ;;  %13445 = vmatprep.mubr.bf16.mxu1 %v22390_v28  ;;  %16361 = vmatpush3.bf16.msra.mxu1 %v22296_v45  ;;  %v13146_v45 = vrot.slane %v16739_v52, 1 }
 0x43c   : > { %v15463_v62 = vadd.f32 %v15462_v6, %v15461_v50  ;;  %12915 = vmatmul.mubr.bf16.gmra.mxu0 %v22047_v25  ;;  %16354 = vmatprep.subr.bf16.mxu1 %v22303_v22 }
 0x43d   : > { %v15464_v51 = vpop.f32.mrf.mxu1  ;;  %12922 = vmatprep.mubr.bf16.mxu0 %v22139_v18  ;;  %v22408_v33 = vsel %vm13132_vm5, %v13145_v44, %v13146_v45  ;;  %v13154_v44 = vrot.slane %v22315_v36, 1  ;;  %v13157_v36 = vrot.slane %v22359_v21, 1  ;;  %v16744_v21 = vld [vmem:[#allocation2 + $0x74] ss:$0 sps:$4 sm:$0x11]  }
 0x43f   : > { %v15465_v15 = vpop.f32.mrf.mxu1  ;;  %16362 = vmatpush3.bf16.msra.mxu1 %v22303_v22 }
 0x440   : > { %v16181_v32 = vpop.f32.mrf.mxu0  ;;  %v15466_v35 = vadd.f32 %v15465_v15, %v15464_v51  ;;  %16355 = vmatprep.subr.bf16.mxu1 %v22312_v37 }
 0x441   : > { %v22401_v14 = vadd.f32 %v16181_v32, %v15463_v62  ;;  %v15467_v41 = vpop.f32.mrf.mxu1 }
 0x442   : > { %v12555_v25 = vpop.f32.mrf.mxu0  ;;  %13446 = vmatmul.mubr.bf16.gmra.mxu1 %v22377_v9 }
 0x443   : > { %v22405_v1 = vadd.f32 %v15457_v46, %v12555_v25  ;;  %v15468_v8 = vpop.f32.mrf.mxu1  ;;  %13453 = vmatprep.mubr.bf16.mxu1 %v22408_v33  ;;  %16363 = vmatpush3.bf16.msra.mxu1 %v22312_v37  ;;  %v13151_v37 = vrot.slane %v22305_v38, 1 }
 0x444   : > { %v16182_v3 = vpop.f32.mrf.mxu0  ;;  %v15469_v22 = vadd.f32 %v15468_v8, %v15467_v41  ;;  %12923 = vmatmul.mubr.bf16.gmra.mxu0 %v22084_v55  ;;  %16356 = vmatprep.subr.bf16.mxu1 %v22319_v30  ;;  %v22424_v55 = vsel %vm13132_vm5, %v13148_v11, %v13149_v0 }
 0x445   : > { %v22412_v54 = vadd.f32 %v16182_v3, %v15466_v35  ;;  %v15470_v17 = vpop.f32.mrf.mxu1  ;;  %12930 = vmatprep.mubr.bf16.mxu0 %v22168_v12 }
 0x447   : > { %v15471_v39 = vpop.f32.mrf.mxu1  ;;  %16364 = vmatpush3.bf16.msra.mxu1 %v22319_v30  ;;  %v13152_v30 = vrot.slane %v16741_v31, 1  ;;  %v13161_v31 = vrot.slane %v16744_v21, 1 }
 0x448   : > { %v22417_v61 = vadd.f32 %v15471_v39, %v15470_v17  ;;  %16357 = vmatprep.subr.bf16.mxu1 %v22326_v13  ;;  %v16743_v17 = vld [vmem:[#allocation2 + $0x68] ss:$0 sps:$4 sm:$0x11]  }
 0x449   : > { %v22435_v63 = vsel %vm13132_vm5, %v13151_v37, %v13152_v30  ;;  %v13158_v5 = vrot.slane %v16743_v17, 1 }
 0x44a   : > { %13454 = vmatmul.mubr.bf16.gmra.mxu1 %v22390_v28 }
 0x44b   : > { %13461 = vmatprep.mubr.bf16.mxu1 %v22424_v55  ;;  %16365 = vmatpush3.bf16.msra.mxu1 %v22326_v13  ;;  %v22438_v13 = vpop.f32.mrf.mxu0  ;;  %v22459_v0 = vsel %vm13132_vm5, %v13157_v36, %v13158_v5  ;;  %v16746_v36 = vld [vmem:[#allocation2 + $0x78] sm:$0xff]  }
 0x44c   : > { %12931 = vmatmul.mubr.bf16.gmra.mxu0 %v22139_v18  ;;  %16358 = vmatprep.subr.bf16.mxu1 %v22331_v48 }
 0x44d   : > { %12938 = vmatprep.mubr.bf16.mxu0 %v22210_v29 }
 0x44f   : > { %16366 = vmatpush3.bf16.msra.mxu1 %v22331_v48  ;;  %v16742_v48 = vld [vmem:[#allocation2 + $0x5c] ss:$0 sps:$4 sm:$0x11]  }
 0x450   : > { %v13155_v59 = vrot.slane %v16742_v48, 1 }
 0x452   : > { %v15473_v46 = vpop.f32.mrf.mxu1  ;;  %13462 = vmatmul.mubr.bf16.gmra.mxu1 %v22408_v33  ;;  %v22449_v52 = vsel %vm13132_vm5, %v13154_v44, %v13155_v59 }
 0x453   : > { %13469 = vmatprep.mubr.bf16.mxu1 %v22435_v63 }
 0x454   : > { %v15474_v20 = vpop.f32.mrf.mxu1  ;;  %12939 = vmatmul.mubr.bf16.gmra.mxu0 %v22168_v12 }
 0x455   : > { %v15475_v57 = vadd.f32 %v15474_v20, %v15473_v46  ;;  %12946 = vmatprep.mubr.bf16.mxu0 %v22217_v27 }
 0x456   : > { %v15476_v47 = vpop.f32.mrf.mxu1 }
 0x457   : > { %v16185_v38 = vpop.f32.mrf.mxu0 }
 0x458   : > { %v22442_v50 = vadd.f32 %v16185_v38, %v15475_v57  ;;  %v15477_v6 = vpop.f32.mrf.mxu1  ;;  %v16745_v57 = vld [vmem:[#allocation2 + $0x6c] sm:$0xff]  }
 0x459   : > { %v12571_v62 = vpop.f32.mrf.mxu0  ;;  %v15478_v51 = vadd.f32 %v15477_v6, %v15476_v47  ;;  %v13160_v47 = vrot.slane %v16745_v57, 1  ;;  %v13169_v57 = vrot.slane %v22168_v12, 1 }
 0x45a   : > { %v22445_v15 = vadd.f32 %v15469_v22, %v12571_v62  ;;  %v15479_v32 = vpop.f32.mrf.mxu1  ;;  %13470 = vmatmul.mubr.bf16.gmra.mxu1 %v22424_v55 }
 0x45b   : > { %v16186_v35 = vpop.f32.mrf.mxu0  ;;  %13477 = vmatprep.mubr.bf16.mxu1 %v22449_v52  ;;  %v22470_v6 = vsel %vm13132_vm5, %v13160_v47, %v13161_v31  ;;  %v16719_v47 = vld [vmem:[%s23288_s4 + $0x18] sm:$0xff]  }
 0x45c   : > { %v22451_v45 = vadd.f32 %v16186_v35, %v15478_v51  ;;  %v15480_v41 = vpop.f32.mrf.mxu1  ;;  %12947 = vmatmul.mubr.bf16.gmra.mxu0 %v22210_v29 }
 0x45d   : > { %v15481_v25 = vadd.f32 %v15480_v41, %v15479_v32  ;;  %12954 = vmatprep.mubr.bf16.mxu0 %v22228_v53  ;;  %v22464_v11 = vpop.f32.mrf.mxu0 }
 0x45e   : > { %v15482_v8 = vpop.f32.mrf.mxu1 }
 0x460   : > { %v15483_v3 = vpop.f32.mrf.mxu1 }
 0x461   : > { %v15484_v22 = vadd.f32 %v15483_v3, %v15482_v8  ;;  %v13163_v3 = vrot.slane %v16746_v36, 1 }
 0x462   : > { %13478 = vmatmul.mubr.bf16.gmra.mxu1 %v22435_v63 }
 0x463   : > { %13485 = vmatprep.mubr.bf16.mxu1 %v22459_v0 }
 0x464   : > { %12955 = vmatmul.mubr.bf16.gmra.mxu0 %v22217_v27 }
 0x465   : > { %v15485_v39 = vpop.f32.mrf.mxu1  ;;  %12962 = vmatprep.mubr.bf16.mxu0 %v22260_v10 }
 0x467   : > { %v15486_v37 = vpop.f32.mrf.mxu1 }
 0x468   : > { %v15487_v30 = vadd.f32 %v15486_v37, %v15485_v39  ;;  %v13164_v39 = vrot.slane %v22125_v60, 1  ;;  %v13167_v60 = vrot.slane %v22146_v42, 1 }
 0x469   : > { %v15488_v20 = vpop.f32.mrf.mxu1 }
 0x46a   : > { %v16189_v46 = vpop.f32.mrf.mxu0  ;;  %13486 = vmatmul.mubr.bf16.gmra.mxu1 %v22449_v52  ;;  %v22484_v21 = vsel %vm13132_vm5, %v13163_v3, %v13164_v39 }
 0x46b   : > { %v22466_v38 = vadd.f32 %v16189_v46, %v15487_v30  ;;  %v15489_v59 = vpop.f32.mrf.mxu1  ;;  %13493 = vmatprep.mubr.bf16.mxu1 %v22470_v6  ;;  %v13166_v30 = vrot.slane %v22139_v18, 1 }
 0x46c   : > { %v12587_v48 = vpop.f32.mrf.mxu0  ;;  %v15490_v51 = vadd.f32 %v15489_v59, %v15488_v20  ;;  %12963 = vmatmul.mubr.bf16.gmra.mxu0 %v22228_v53 }
 0x46d   : > { %v22472_v62 = vadd.f32 %v15481_v25, %v12587_v48  ;;  %v15491_v32 = vpop.f32.mrf.mxu1  ;;  %16271 = vmatprep.mubr.bf16.mxu0 %v22377_v9  ;;  %v16716_v9 = vld [vmem:[%s23288_s4 + $0x30] sm:$0xff]   ;;  %v22500_v20 = vsel %vm13132_vm5, %v13166_v30, %v13167_v60 }
 0x46e   : > { %v16190_v44 = vpop.f32.mrf.mxu0 }
 0x46f   : > { %v22476_v35 = vadd.f32 %v16190_v44, %v15490_v51  ;;  %v15492_v8 = vpop.f32.mrf.mxu1  ;;  %v13170_v44 = vrot.slane %v22170_v7, 1 }
 0x470   : > { %v12590_v41 = vpop.f32.mrf.mxu0  ;;  %v15493_v5 = vadd.f32 %v15492_v8, %v15491_v32  ;;  %v16720_v8 = vld [vmem:[%s23288_s4 + $0x10] sm:$0xff]  }
 0x471   : > { %v22479_v17 = vadd.f32 %v15484_v22, %v12590_v41  ;;  %v15494_v25 = vpop.f32.mrf.mxu1  ;;  %v16717_v22 = vld [vmem:[%s23288_s4 + $0x28] sm:$0xff]   ;;  %v13171_v12 = vsel %vm13132_vm5, %v13169_v57, %v13170_v44  ;;  %v13176_v57 = vrot.slane %v22221_v40, 1  ;;  %v12575_v40 = vadd.f32 %v22417_v61, %v22464_v11 }
 0x472   : > { %13494 = vmatmul.mubr.bf16.gmra.mxu1 %v22459_v0 }
 0x473   : > { %v15495_v37 = vpop.f32.mrf.mxu1  ;;  %13501 = vmatprep.mubr.bf16.mxu1 %v22484_v21 }
 0x474   : > { %v15496_v31 = vadd.f32 %v15495_v37, %v15494_v25  ;;  %16272 = vmatmul.mubr.bf16.vlgmr.msra.gmra.mxu0 %v22390_v28  ;;  %v13173_v37 = vrot.slane %v22214_v24, 1  ;;  %v16722_v24 = vld [vmem:[%s23288_s4] sm:$0xff]  }
 0x475   : > { %16275 = vmatprep.mubr.bf16.mxu0 %v22408_v33  ;;  %16304 = vmatpush3.bf16.msra.mxu0 %v22341_v4  ;;  %v16718_v4 = vld [vmem:[%s23288_s4 + $0x20] sm:$0xff]  }
 0x476   : > { %16305 = vmatprep.subr.bf16.mxu0 %v16716_v9 }
 0x479   : > { %16306 = vmatpush3.bf16.msra.mxu0 %v16716_v9  ;;  %v16721_v9 = vld [vmem:[%s23288_s4 + $0x8] sm:$0xff]  }
 0x47a   : > { %v15497_v46 = vpop.f32.mrf.mxu1  ;;  %13502 = vmatmul.mubr.bf16.gmra.mxu1 %v22470_v6  ;;  %16307 = vmatprep.subr.bf16.mxu0 %v16717_v22 }
 0x47b   : > { %13509 = vmatprep.mubr.bf16.mxu1 %v22500_v20 }
 0x47c   : > { %v15498_v42 = vpop.f32.mrf.mxu1  ;;  %16276 = vmatmul.mubr.bf16.gmra.mxu0 %v22424_v55 }
 0x47d   : > { %v15499_v28 = vadd.f32 %v15498_v42, %v15497_v46  ;;  %16279 = vmatprep.mubr.bf16.mxu0 %v22435_v63  ;;  %16308 = vmatpush3.bf16.msra.mxu0 %v16717_v22  ;;  %v13172_v22 = vrot.slane %v22210_v29, 1  ;;  %v16747_v42 = vld [vmem:[%s17041_s28 + $0x1c] sm:$0xf] }
 0x47e   : > { %v16193_v18 = vpop.f32.mrf.mxu0  ;;  %v15500_v33 = vpop.f32.mrf.mxu1  ;;  %16309 = vmatprep.subr.bf16.mxu0 %v16718_v4 }
 0x47f   : > { %v22512_v48 = vadd.f32 %v16193_v18, %v15499_v28  ;;  %v13756_v28 = vrot.slane %v16747_v42, 5  ;;  %v13178_v42 = vrot.slane %v22228_v53, 1 }
 0x480   : > { %v12603_v59 = vpop.f32.mrf.mxu0  ;;  %v15501_v51 = vpop.f32.mrf.mxu1 }
 0x481   : > { %v22515_v55 = vadd.f32 %v15493_v5, %v12603_v59  ;;  %v15502_v32 = vadd.f32 %v15501_v51, %v15500_v33  ;;  %16310 = vmatpush3.bf16.msra.mxu0 %v16718_v4  ;;  %v13175_v4 = vrot.slane %v22217_v27, 1  ;;  %v16748_v51 = vld [vmem:[%s17041_s28 + $0x18] sm:$0xf] }
 0x482   : > { %v16194_v63 = vpop.f32.mrf.mxu0  ;;  %v15503_v41 = vpop.f32.mrf.mxu1  ;;  %13510 = vmatmul.mubr.bf16.gmra.mxu1 %v22484_v21  ;;  %16311 = vmatprep.subr.bf16.mxu0 %v16719_v47  ;;  %v15027_v44 = vrot.slane %v16748_v51, 9 }
 0x483   : > { %v22522_v36 = vadd.f32 %v16194_v63, %v15502_v32  ;;  %13517 = vmatprep.mubr.bf16.mxu1 %v13171_v12  ;;  %v22549_v27 = vsel %vm13132_vm5, %v13175_v4, %v13176_v57  ;;  %v13758_v32 = vrot.slane %v13756_v28, 4  ;;  %v16749_v63 = vld [vmem:[%s17041_s28 + $0x20] sm:$0x3] }
 0x484   : > { %v12606_v3 = vpop.f32.mrf.mxu0  ;;  %v15504_v7 = vpop.f32.mrf.mxu1  ;;  %16280 = vmatmul.mubr.bf16.gmra.mxu0 %v22449_v52 }
 0x485   : > { %v22525_v5 = vadd.f32 %v15496_v31, %v12606_v3  ;;  %v15505_v25 = vadd.f32 %v15504_v7, %v15503_v41  ;;  %16283 = vmatprep.mubr.bf16.mxu0 %v22459_v0  ;;  %16312 = vmatpush3.bf16.msra.mxu0 %v16719_v47  ;;  %v22535_v0 = vsel %vm13132_vm5, %v13172_v22, %v13173_v37  ;;  %v13759_v41 = vrot.slane %v16749_v63, 5 }
 0x486   : > { %v15506_v39 = vpop.f32.mrf.mxu1  ;;  %16313 = vmatprep.subr.bf16.mxu0 %v16720_v8 }
 0x488   : > { %v15507_v60 = vpop.f32.mrf.mxu1 }
 0x489   : > { %v15508_v30 = vadd.f32 %v15507_v60, %v15506_v39  ;;  %16314 = vmatpush3.bf16.msra.mxu0 %v16720_v8 }
 0x48a   : > { %v15509_v52 = vpop.f32.mrf.mxu1  ;;  %13518 = vmatmul.mubr.bf16.gmra.mxu1 %v22500_v20  ;;  %16315 = vmatprep.subr.bf16.mxu0 %v16721_v9 }
 0x48b   : > { %13525 = vmatprep.mubr.bf16.mxu1 %v22535_v0 }
 0x48c   : > { %v15510_v31 = vpop.f32.mrf.mxu1  ;;  %16284 = vmatmul.mubr.bf16.gmra.mxu0 %v22470_v6 }
 0x48d   : > { %v15511_v29 = vadd.f32 %v15510_v31, %v15509_v52  ;;  %16287 = vmatprep.mubr.bf16.mxu0 %v22484_v21  ;;  %16316 = vmatpush3.bf16.msra.mxu0 %v16721_v9  ;;  %v13179_v52 = vrot.slane %v22235_v19, 1  ;;  %v13760_v31 = vsel %vm22558_vm8, %v13758_v32, %v13759_v41  ;;  %v16755_v41 = vld [vmem:[%s17041_s28 + $0x38] sm:$0x3] }
 0x48e   : > { %v15512_v46 = vpop.f32.mrf.mxu1  ;;  %16317 = vmatprep.subr.bf16.mxu0 %v16722_v24  ;;  %v13773_v53 = vrot.slane %v16755_v41, 5 }
 0x48f   : > { %v22579_v51 = vsel %vm13132_vm5, %v13178_v42, %v13179_v52 }
 0x490   : > { %v15513_v33 = vpop.f32.mrf.mxu1 }
 0x491   : > { %v16197_v18 = vpop.f32.mrf.mxu0  ;;  %v15514_v6 = vadd.f32 %v15513_v33, %v15512_v46  ;;  %16318 = vmatpush3.bf16.msra.mxu0 %v16722_v24  ;;  %v13757_v24 = vsel %vm22558_vm8, %v15027_v44, %v13756_v28  ;;  %v16754_v44 = vld [vmem:[%s17041_s28 + $0x30] sm:$0xf] }
 0x492   : > { %v22546_v47 = vadd.f32 %v16197_v18, %v15511_v29  ;;  %v15515_v59 = vpop.f32.mrf.mxu1  ;;  %13526 = vmatmul.mubr.bf16.gmra.mxu1 %v13171_v12  ;;  %v16751_v29 = vld [vmem:[%s17041_s28 + $0x34] sm:$0xf]  ;;  %v16752_v18 = vld [vmem:[%s17041_s28 + $0x24] sm:$0xf]  ;;  %v15043_v19 = vcombine.low %v13757_v24, %v13760_v31  ;;  %v15029_v32 = vrot.slane %v16754_v44, 9 }
 0x493   : > { %v12619_v21 = vpop.f32.mrf.mxu0  ;;  %13533 = vmatprep.mubr.bf16.mxu1 %v22549_v27  ;;  %v15028_v33 = vrot.slane %v16752_v18, 9  ;;  %v16756_v24 = vld [vmem:[%s17041_s28 + $0x40] sm:$0xf]  ;;  %v16757_v18 = vld [vmem:[%s17041_s28 + $0x4c] sm:$0xf] }
 0x494   : > { %v22553_v8 = vadd.f32 %v15505_v25, %v12619_v21  ;;  %v15516_v7 = vpop.f32.mrf.mxu1  ;;  %16288 = vmatmul.mubr.bf16.gmra.mxu0 %v22500_v20  ;;  %v16750_v25 = vld [vmem:[%s17041_s28 + $0x28] sm:$0xf]  ;;  %v13770_v20 = vrot.slane %v16751_v29, 5  ;;  %v16753_v21 = vld [vmem:[%s17041_s28 + $0x2c] sm:$0x3]  ;;  %v13777_v31 = vrot.slane %v16756_v24, 5 }
 0x495   : > { %v16198_v3 = vpop.f32.mrf.mxu0  ;;  %v15517_v37 = vadd.f32 %v15516_v7, %v15515_v59  ;;  %16291 = vmatprep.mubr.bf16.mxu0 %v13171_v12  ;;  %v13763_v9 = vrot.slane %v16750_v25, 5  ;;  %v13766_v28 = vrot.slane %v16753_v21, 5  ;;  %v13182_v21 = vrot.slane %v22258_v49, 1  ;;  %v16761_v49 = vld [vmem:[%s17041_s28 + $0x50] sm:$0x3] }
 0x496   : > { %v22563_v39 = vadd.f32 %v16198_v3, %v15514_v6  ;;  %v15518_v22 = vpop.f32.mrf.mxu1  ;;  %v13772_v63 = vrot.slane %v13770_v20, 4 }
 0x497   : > { %v12622_v60 = vpop.f32.mrf.mxu0  ;;  %v13765_v6 = vrot.slane %v13763_v9, 4 }
 0x498   : > { %v22572_v46 = vadd.f32 %v15508_v30, %v12622_v60  ;;  %v15519_v4 = vpop.f32.mrf.mxu1  ;;  %v13774_v42 = vsel %vm22558_vm8, %v13772_v63, %v13773_v53 }
 0x499   : > { %v16201_v12 = vpop.f32.mrf.mxu0  ;;  %v15520_v57 = vadd.f32 %v15519_v4, %v15518_v22  ;;  %v13764_v22 = vsel %vm22558_vm8, %v15028_v33, %v13763_v9  ;;  %v13767_v52 = vsel %vm22558_vm8, %v13765_v6, %v13766_v28 }
 0x49a   : > { %v15521_v59 = vpop.f32.mrf.mxu1  ;;  %13534 = vmatmul.mubr.bf16.gmra.mxu1 %v22535_v0  ;;  %v15044_v28 = vcombine.low %v13764_v22, %v13767_v52 }
 0x49b   : > { %v12635_v30 = vpop.f32.mrf.mxu0  ;;  %13541 = vmatprep.mubr.bf16.mxu1 %v22579_v51 }
 0x49c   : > { %v22584_v3 = vadd.f32 %v15517_v37, %v12635_v30  ;;  %v15522_v7 = vpop.f32.mrf.mxu1  ;;  %16292 = vmatmul.mubr.bf16.gmra.mxu0 %v22535_v0  ;;  %v13181_v37 = vrot.slane %v22260_v10, 1  ;;  %v13771_v0 = vsel %vm22558_vm8, %v15029_v32, %v13770_v20  ;;  %v13779_v20 = vrot.slane %v13777_v31, 4  ;;  %v16759_v32 = vld [vmem:[%s17041_s28 + $0x44] sm:$0x3] }
 0x49d   : > { %v16202_v25 = vpop.f32.mrf.mxu0  ;;  %v15523_v60 = vadd.f32 %v15522_v7, %v15521_v59  ;;  %16319 = vmatprep.mubr.bf16.mxu0 %v15043_v19  ;;  %v13784_v19 = vrot.slane %v16757_v18, 5  ;;  %v16758_v59 = vld [vmem:[%s17041_s28 + $0x3c] sm:$0xf]  ;;  %v15045_v44 = vcombine.low %v13771_v0, %v13774_v42  ;;  %v13780_v41 = vrot.slane %v16759_v32, 5 }
 0x49e   : > { %v15524_v29 = vpop.f32.mrf.mxu1  ;;  %v15030_v10 = vrot.slane %v16758_v59, 9  ;;  %v16765_v32 = vld [vmem:[%s17041_s28 + $0x5c] sm:$0x3] }
 0x49f   : > { %v12638_v4 = vpop.f32.mrf.mxu0  ;;  %v22598_v9 = vadd.f32 %v16201_v12, %v15523_v60  ;;  %v22607_v12 = vsel %vm13132_vm5, %v13181_v37, %v13182_v21  ;;  %v13786_v7 = vrot.slane %v13784_v19, 4  ;;  %v13787_v60 = vrot.slane %v16761_v49, 5  ;;  %v16762_v37 = vld [vmem:[%s17041_s28 + $0x58] sm:$0xf] }
 0x4a0   : > { %v22600_v33 = vadd.f32 %v15520_v57, %v12638_v4  ;;  %v15525_v6 = vpop.f32.mrf.mxu1  ;;  %v16760_v57 = vld [vmem:[%s17041_s28 + $0x48] sm:$0xf]  ;;  %v13781_v4 = vsel %vm22558_vm8, %v13779_v20, %v13780_v41  ;;  %v13791_v0 = vrot.slane %v16762_v37, 5  ;;  %v13794_v41 = vrot.slane %v16765_v32, 5 }
 0x4a1   : > { %v15526_v30 = vadd.f32 %v15525_v6, %v15524_v29  ;;  %v15031_v53 = vrot.slane %v16760_v57, 9  ;;  %v13778_v29 = vsel %vm22558_vm8, %v15030_v10, %v13777_v31  ;;  %v13788_v18 = vsel %vm22558_vm8, %v13786_v7, %v13787_v60  ;;  %v16763_v6 = vld [vmem:[%s17041_s28 + $0x64] sm:$0xf]  ;;  %v16764_v31 = vld [vmem:[%s17041_s28 + $0x54] sm:$0xf] }
 0x4a2   : > { %v15527_v63 = vpop.f32.mrf.mxu1  ;;  %13542 = vmatmul.mubr.bf16.gmra.mxu1 %v22549_v27  ;;  %v13798_v21 = vrot.slane %v16763_v6, 5  ;;  %v15046_v59 = vcombine.low %v13778_v29, %v13781_v4  ;;  %v15032_v10 = vrot.slane %v16764_v31, 9  ;;  %v13793_v20 = vrot.slane %v13791_v0, 4  ;;  %v16767_v7 = vld [vmem:[%s17041_s28 + $0x68] sm:$0x3] }
 0x4a3   : > { %v22611_v22 = vadd.f32 %v16202_v25, %v15526_v30  ;;  %13549 = vmatprep.mubr.bf16.mxu1 %v22607_v12  ;;  %v13785_v25 = vsel %vm22558_vm8, %v15031_v53, %v13784_v19  ;;  %v16766_v19 = vld [vmem:[%s17041_s28 + $0x60] sm:$0xf]  ;;  %v13801_v49 = vrot.slane %v16767_v7, 5 }
 0x4a4   : > { %v15528_v52 = vpop.f32.mrf.mxu1  ;;  %16320 = vmatmul.mubr.bf16.vlgmr.msra.gmra.mxu0 %v15044_v28  ;;  %v15033_v57 = vrot.slane %v16766_v19, 9  ;;  %v13800_v53 = vrot.slane %v13798_v21, 4  ;;  %v13792_v4 = vsel %vm22558_vm8, %v15032_v10, %v13791_v0  ;;  %v13795_v37 = vsel %vm22558_vm8, %v13793_v20, %v13794_v41  ;;  %v16770_v41 = vld [vmem:[%s17041_s28 + $0x6c] sm:$0xf] }
 0x4a5   : > { %v15529_v24 = vadd.f32 %v15528_v52, %v15527_v63  ;;  %16323 = vmatprep.mubr.bf16.mxu0 %v15045_v44  ;;  %v15047_v44 = vcombine.low %v13785_v25, %v13788_v18  ;;  %v15048_v32 = vcombine.low %v13792_v4, %v13795_v37  ;;  %v13184_v37 = vrot.slane %v22265_v26, 1 }
 0x4a6   : > { %v15530_v42 = vpop.f32.mrf.mxu1 }
 0x4a8   : > { %v15531_v28 = vpop.f32.mrf.mxu1 }
 0x4a9   : > { %v15532_v30 = vadd.f32 %v15531_v28, %v15530_v42  ;;  %v16768_v42 = vld [vmem:[%s17041_s28 + $0x70] sm:$0xf]  ;;  %v13802_v28 = vsel %vm22558_vm8, %v13800_v53, %v13801_v49  ;;  %v16772_v49 = vld [vmem:[%s17041_s28 + $0x78] sm:$0xf] }
 0x4aa   : > { %v15533_v63 = vpop.f32.mrf.mxu1  ;;  %13550 = vmatmul.mubr.bf16.gmra.mxu1 %v22579_v51  ;;  %v13805_v25 = vrot.slane %v16768_v42, 5 }
 0x4ab   : > { %16295 = vmatprep.mubr.bf16.mxu1 %v22549_v27  ;;  %v13799_v27 = vsel %vm22558_vm8, %v15033_v57, %v13798_v21  ;;  %v16771_v21 = vld [vmem:[%s17041_s28 + $0x74] sm:$0x3] }
 0x4ac   : > { %v15534_v60 = vpop.f32.mrf.mxu1  ;;  %v16205_v52 = vpop.f32.mrf.mxu0  ;;  %16324 = vmatmul.mubr.bf16.gmra.mxu0 %v15046_v59  ;;  %v16769_v59 = vld [vmem:[%s17041_s28 + $0x7c] sm:$0xf]  ;;  %v15049_v7 = vcombine.low %v13799_v27, %v13802_v28  ;;  %v13808_v57 = vrot.slane %v16771_v21, 5 }
 0x4ad   : > { %v15535_v29 = vadd.f32 %v15534_v60, %v15533_v63  ;;  %16327 = vmatprep.mubr.bf16.mxu0 %v15047_v44  ;;  %v13812_v31 = vrot.slane %v16769_v59, 5  ;;  %v15034_v63 = vrot.slane %v16770_v41, 9  ;;  %v13807_v60 = vrot.slane %v13805_v25, 4 }
 0x4ae   : > { %v15536_v18 = vpop.f32.mrf.mxu1  ;;  %v12651_v6 = vpop.f32.mrf.mxu0 }
 0x4af   : > { %v22640_v44 = vadd.f32 %v16205_v52, %v15535_v29  ;;  %v22642_v0 = vadd.f32 %v15529_v24, %v12651_v6  ;;  %v15035_v24 = vrot.slane %v16772_v49, 9  ;;  %v13814_v52 = vrot.slane %v13812_v31, 4  ;;  %v16773_v29 = vld [vmem:[%s17041_s28 + $0x80] sm:$0x3] }
 0x4b0   : > { %v15537_v10 = vpop.f32.mrf.mxu1  ;;  %v16206_v20 = vpop.f32.mrf.mxu0  ;;  %v13815_v6 = vrot.slane %v16773_v29, 5  ;;  %v13806_v28 = vsel %vm22558_vm8, %v15034_v63, %v13805_v25 }
 0x4b1   : > { %v15538_v19 = vadd.f32 %v15537_v10, %v15536_v18  ;;  %v13185_v18 = vrot.slane %v22267_v43, 1  ;;  %v13809_v10 = vsel %vm22558_vm8, %v13807_v60, %v13808_v57  ;;  %v13813_v26 = vsel %vm22558_vm8, %v15035_v24, %v13812_v31  ;;  %v16776_v57 = vld [vmem:[%s17041_s28 + $0x84] sm:$0xf]  ;;  %v16777_v31 = vld [vmem:[%s17041_s28 + $0x8c] sm:$0x3] }
 0x4b2   : > { %v22646_v42 = vpop.f32.mrf.mxu1  ;;  %16296 = vmatmul.mubr.bf16.vlgmr.msra.gmra.mxu1 %v22579_v51  ;;  %v12654_v53 = vpop.f32.mrf.mxu0  ;;  %v13816_v43 = vsel %vm22558_vm8, %v13814_v52, %v13815_v6  ;;  %v15050_v21 = vcombine.low %v13806_v28, %v13809_v10  ;;  %v13822_v24 = vrot.slane %v16777_v31, 5  ;;  %v16778_v6 = vld [vmem:[%s17041_s28 + $0x90] sm:$0xf]  ;;  %v12543_v28 = vadd.f32 %v22354_v16, %v22396_v2 }
 0x4b3   : > { %v22651_v59 = vadd.f32 %v16206_v20, %v15538_v19  ;;  %16299 = vmatprep.mubr.bf16.mxu1 %v22607_v12  ;;  %v22654_v4 = vadd.f32 %v15532_v30, %v12654_v53  ;;  %v16774_v20 = vld [vmem:[%s17041_s28 + $0x88] sm:$0xf]  ;;  %v13186_v25 = vsel %vm13132_vm5, %v13184_v37, %v13185_v18  ;;  %v15036_v53 = vrot.slane %v16776_v57, 9  ;;  %v16779_v18 = vld [vmem:[%s17041_s28 + $0x98] sm:$0x3] }
 0x4b4   : > { %v13005_v27 = vpop.f32.mrf.mxu1  ;;  %v15579_v51 = vpop.f32.mrf.mxu0  ;;  %16328 = vmatmul.mubr.bf16.gmra.mxu0 %v15048_v32  ;;  %v13819_v12 = vrot.slane %v16774_v20, 5  ;;  %v16775_v32 = vld [vmem:[%s17041_s28 + $0x94] sm:$0xf]  ;;  %v15051_v29 = vcombine.low %v13813_v26, %v13816_v43  ;;  %v16780_v57 = vld [vmem:[%s17041_s28 + $0xa0] sm:$0xf] }
 0x4b5   : > { %24088 = vst [vmem:[#allocation170_spill] sm:$0xff] %v22651_v59  ;;  %16331 = vmatprep.mubr.bf16.mxu0 %v15049_v7  ;;  %v13826_v19 = vrot.slane %v16775_v32, 5  ;;  %v13833_v31 = vrot.slane %v16780_v57, 5  ;;  %v16785_v57 = vld [vmem:[%s17041_s28 + $0xb0] sm:$0x3] }
 0x4b6   : > { %v22663_v41 = vpop.f32.mrf.mxu1  ;;  %v15580_v30 = vpop.f32.mrf.mxu0  ;;  %v13821_v20 = vrot.slane %v13819_v12, 4 }
 0x4b7   : > { %v15581_v7 = vadd.f32 %v15580_v30, %v15579_v51  ;;  %v15037_v51 = vrot.slane %v16778_v6, 9  ;;  %v13828_v37 = vrot.slane %v13826_v19, 4  ;;  %v13829_v30 = vrot.slane %v16779_v18, 5 }
 0x4b8   : > { %v13008_v63 = vpop.f32.mrf.mxu1  ;;  %v15582_v60 = vpop.f32.mrf.mxu0 }
 0x4b9   : > { %v12845_v49 = vadd.f32 %v15581_v7, %v22371_v23  ;;  %v13820_v7 = vsel %vm22558_vm8, %v15036_v53, %v13819_v12 }
 0x4ba   : > { %v22674_v59 = vpop.f32.mrf.mxu1  ;;  %16300 = vmatmul.mubr.bf16.gmra.mxu1 %v13186_v25  ;;  %v15583_v52 = vpop.f32.mrf.mxu0  ;;  %v13823_v25 = vsel %vm22558_vm8, %v13821_v20, %v13822_v24 }
 0x4bb   : > { %v15584_v10 = vadd.f32 %v15583_v52, %v15582_v60  ;;  %v22680_v23 = vadd.f32 %v13005_v27, %v12845_v49  ;;  %v13827_v27 = vsel %vm22558_vm8, %v15037_v51, %v13826_v19  ;;  %v13830_v60 = vsel %vm22558_vm8, %v13828_v37, %v13829_v30  ;;  %v16782_v52 = vld [vmem:[%s17041_s28 + $0x9c] sm:$0xf]  ;;  %v16783_v51 = vld [vmem:[%s17041_s28 + $0xa4] sm:$0x3] }
 0x4bc   : > { %v22682_v26 = vpop.f32.mrf.mxu1  ;;  %v15585_v43 = vpop.f32.mrf.mxu0  ;;  %16332 = vmatmul.mubr.bf16.gmra.mxu0 %v15050_v21  ;;  %v16781_v21 = vld [vmem:[%s17041_s28 + $0xac] sm:$0xf]  ;;  %v15052_v24 = vcombine.low %v13820_v7, %v13823_v25  ;;  %v15038_v6 = vrot.slane %v16782_v52, 9  ;;  %v13835_v19 = vrot.slane %v13833_v31, 4  ;;  %v16786_v52 = vld [vmem:[%s17041_s28 + $0xb8] sm:$0xf] }
 0x4bd   : > { %v12848_v32 = vadd.f32 %v15584_v10, %v12543_v28  ;;  %16335 = vmatprep.mubr.bf16.mxu0 %v15051_v29  ;;  %v13840_v49 = vrot.slane %v16781_v21, 5  ;;  %v15053_v28 = vcombine.low %v13827_v27, %v13830_v60  ;;  %v13836_v10 = vrot.slane %v16783_v51, 5 }
 0x4be   : > { %v22689_v16 = vpop.f32.mrf.mxu1  ;;  %v15586_v2 = vpop.f32.mrf.mxu0  ;;  %v13834_v60 = vsel %vm22558_vm8, %v15038_v6, %v13833_v31  ;;  %v13847_v51 = vrot.slane %v16786_v52, 5  ;;  %v16789_v52 = vld [vmem:[%s17041_s28 + $0xbc] sm:$0x3] }
 0x4bf   : > { %v15587_v29 = vadd.f32 %v15586_v2, %v15585_v43  ;;  %v22696_v12 = vadd.f32 %v13008_v63, %v12848_v32  ;;  %v16784_v43 = vld [vmem:[%s17041_s28 + $0xa8] sm:$0xf]  ;;  %v13842_v32 = vrot.slane %v13840_v49, 4  ;;  %v13843_v2 = vrot.slane %v16785_v57, 5 }
 0x4c0   : > { %v22698_v53 = vpop.f32.mrf.mxu1  ;;  %v15588_v20 = vpop.f32.mrf.mxu0  ;;  %v15039_v63 = vrot.slane %v16784_v43, 9  ;;  %v16788_v43 = vld [vmem:[%s17041_s28 + $0xb4] sm:$0xf] }
 0x4c1   : > { %24089 = vst [vmem:[#allocation166_spill] sm:$0xff] %v22696_v12  ;;  %v12853_v18 = vadd.f32 %v15587_v29, %v22367_v34  ;;  %v13837_v29 = vsel %vm22558_vm8, %v13835_v19, %v13836_v10  ;;  %v15040_v57 = vrot.slane %v16788_v43, 9 }
 0x4c2   : > { %v22703_v37 = vpop.f32.mrf.mxu1  ;;  %v15589_v30 = vpop.f32.mrf.mxu0  ;;  %v15054_v10 = vcombine.low %v13834_v60, %v13837_v29  ;;  %v12559_v60 = vadd.f32 %v22384_v56, %v22438_v13 }
 0x4c3   : > { %v15590_v21 = vadd.f32 %v15589_v30, %v15588_v20  ;;  %v22708_v7 = vadd.f32 %v22646_v42, %v12853_v18  ;;  %v13841_v18 = vsel %vm22558_vm8, %v15039_v63, %v13840_v49  ;;  %v13849_v63 = vrot.slane %v13847_v51, 4 }
 0x4c4   : > { %v22710_v25 = vpop.f32.mrf.mxu1  ;;  %v15591_v34 = vpop.f32.mrf.mxu0  ;;  %16336 = vmatmul.mubr.bf16.gmra.mxu0 %v15052_v24  ;;  %v16787_v24 = vld [vmem:[%s17041_s28 + $0xc4] sm:$0xf] }
 0x4c5   : > { %v12856_v27 = vadd.f32 %v15590_v21, %v22374_v58  ;;  %16339 = vmatprep.mubr.bf16.mxu0 %v15053_v28  ;;  %v13844_v58 = vsel %vm22558_vm8, %v13842_v32, %v13843_v2  ;;  %v13854_v28 = vrot.slane %v16787_v24, 5  ;;  %v13850_v32 = vrot.slane %v16789_v52, 5 }
 0x4c6   : > { %v22718_v20 = vpop.f32.mrf.mxu1  ;;  %v15592_v42 = vpop.f32.mrf.mxu0  ;;  %v15055_v49 = vcombine.low %v13841_v18, %v13844_v58 }
 0x4c7   : > { %v15593_v30 = vadd.f32 %v15592_v42, %v15591_v34  ;;  %v22726_v31 = vadd.f32 %v22663_v41, %v12856_v27  ;;  %v16790_v34 = vld [vmem:[%s17041_s28 + $0xc0] sm:$0xf]  ;;  %v13856_v27 = vrot.slane %v13854_v28, 4  ;;  %v16791_v42 = vld [vmem:[%s17041_s28 + $0xc8] sm:$0x3]  ;;  %v13851_v52 = vsel %vm22558_vm8, %v13849_v63, %v13850_v32 }
 0x4c8   : > { %v22728_v6 = vpop.f32.mrf.mxu1  ;;  %v15594_v19 = vpop.f32.mrf.mxu0  ;;  %v15041_v41 = vrot.slane %v16790_v34, 9  ;;  %v13857_v12 = vrot.slane %v16791_v42, 5  ;;  %v16792_v34 = vld [vmem:[%s17041_s28 + $0xd0] sm:$0xf]  ;;  %v16793_v32 = vld [vmem:[%s17041_s28 + $0xcc] sm:$0xf] }
 0x4c9   : > { %v12861_v21 = vadd.f32 %v15593_v30, %v22405_v1  ;;  %v13848_v30 = vsel %vm22558_vm8, %v15040_v57, %v13847_v51  ;;  %v13861_v56 = vrot.slane %v16792_v34, 5  ;;  %v16794_v34 = vld [vmem:[%s17041_s28 + $0xd4] sm:$0x3]  ;;  %s257_s28 = sand.u32 1, %s16877_s22  }
 0x4ca   : > { %v22733_v2 = vpop.f32.mrf.mxu1  ;;  %v15595_v24 = vpop.f32.mrf.mxu0  ;;  %v15056_v63 = vcombine.low %v13848_v30, %v13851_v52  ;;  %s14480_s20 = sshll.u32 %s257_s28, 7  ;;  %s23244_s25 = scalar_lea.sflag [#allocation5], %s257_s28 }
 0x4cb   : > { %v15596_v29 = vadd.f32 %v15595_v24, %v15594_v19  ;;  %v22740_v43 = vadd.f32 %v22682_v26, %v12861_v21  ;;  %v13855_v19 = vsel %vm22558_vm8, %v15041_v41, %v13854_v28  ;;  %v15042_v24 = vrot.slane %v16793_v32, 9  ;;  %s23092_s26 = scalar_lea.vmem [#allocation6], %s14480_s20 }
 0x4cc   : > { %v22742_v1 = vpop.f32.mrf.mxu1  ;;  %v15597_v18 = vpop.f32.mrf.mxu0  ;;  %16340 = vmatmul.mubr.bf16.gmra.mxu0 %v15054_v10  ;;  %v13858_v10 = vsel %vm22558_vm8, %v13856_v27, %v13857_v12  ;;  %s14400_s9 = sshll.u32 %s23092_s26, 4  ;;  %s23238_s9 = int_to_ptr.vmem [resolvable:$true] %s14400_s9 }
 0x4cd   : > { %24090 = vst [vmem:[#allocation171_spill] sm:$0xff] %v22740_v43  ;;  %v12864_v58 = vadd.f32 %v15596_v29, %v12559_v60  ;;  %16343 = vmatprep.mubr.bf16.mxu0 %v15055_v49  ;;  %v15057_v60 = vcombine.low %v13855_v19, %v13858_v10  ;;  %v13863_v29 = vrot.slane %v13861_v56, 4  ;;  %v13864_v43 = vrot.slane %v16794_v34, 5  ;;  %s16821_s13 = scalar_lea.vmem %s23238_s9, 2048  ;;  %p16828_p11 = scmp.lt.s32.totalorder %s23238_s9, %s16826_s15 }
 0x4ce   : > { %v22749_v13 = vpop.f32.mrf.mxu1  ;;  %v15598_v26 = vpop.f32.mrf.mxu0  ;;  %p16822_p8 = scmp.ne.s32.totalorder %s23238_s9, %s16821_s13  ;;  %p16829_p12 = scmp.lt.s32.totalorder %s16827_s16, %s16821_s13 }
 0x4cf   : > { %v15599_v21 = vadd.f32 %v15598_v26, %v15597_v18  ;;  %v22756_v49 = vadd.f32 %v22698_v53, %v12864_v58  ;;  %v13865_v30 = vsel %vm22558_vm8, %v13863_v29, %v13864_v43 }
 0x4d0   : > { %v22758_v51 = vpop.f32.mrf.mxu1  ;;  %v15600_v57 = vpop.f32.mrf.mxu0  ;;  %p16823_p9 = pnand %p16822_p8, %p16971_p5  ;;  %p16830_p13 = por %p16829_p12, %p16828_p11 }
 0x4d1   : > { %v12869_v42 = vadd.f32 %v15599_v21, %v22401_v14  ;;  %v13862_v14 = vsel %vm22558_vm8, %v15042_v24, %v13861_v56 }
 0x4d2   : > { %v22763_v28 = vpop.f32.mrf.mxu1  ;;  %v15601_v41 = vpop.f32.mrf.mxu0  ;;  %p16824_p10 = pneg %p16823_p9 }
 0x4d3   : > { %v15602_v12 = vadd.f32 %v15601_v41, %v15600_v57  ;;  %v22766_v27 = vadd.f32 %v22674_v59, %v12869_v42  ;;  %v15058_v57 = vcombine.low %v13862_v14, %v13865_v30 }
 0x4d4   : > { %v22768_v53 = vpop.f32.mrf.mxu1  ;;  %v15603_v18 = vpop.f32.mrf.mxu0  ;;  %16344 = vmatmul.mubr.bf16.gmra.mxu0 %v15056_v63  ;;  %p16831_p0 = pnand %p16830_p13, %p16824_p10 }
 0x4d5   : > { %v12872_v58 = vadd.f32 %v15602_v12, %v22412_v54  ;;  %16347 = vmatprep.mubr.bf16.mxu0 %v15057_v60 }
 0x4d6   : > { %v22775_v52 = vpop.f32.mrf.mxu1  ;;  %v15604_v26 = vpop.f32.mrf.mxu0 }
 0x4d7   : > { %v15605_v19 = vadd.f32 %v15604_v26, %v15603_v18  ;;  %v22778_v59 = vadd.f32 %v22689_v16, %v12872_v58 }
 0x4d8   : > { %v22780_v10 = vpop.f32.mrf.mxu1  ;;  %v15606_v21 = vpop.f32.mrf.mxu0 }
 0x4d9   : > { %v12877_v54 = vadd.f32 %v15605_v19, %v22445_v15 }
 0x4da   : > { %v22783_v63 = vpop.f32.mrf.mxu1  ;;  %v15607_v32 = vpop.f32.mrf.mxu0 }
 0x4db   : > { %v15608_v43 = vadd.f32 %v15607_v32, %v15606_v21  ;;  %v22788_v56 = vadd.f32 %v22710_v25, %v12877_v54 }
 0x4dc   : > { %v22790_v24 = vpop.f32.mrf.mxu1  ;;  %v15609_v16 = vpop.f32.mrf.mxu0  ;;  %16348 = vmatmul.mubr.bf16.gmra.mxu0 %v15058_v57 }
 0x4dd   : > { %v12880_v42 = vadd.f32 %v15608_v43, %v12575_v40 }
 0x4de   : > { %v22792_v60 = vpop.f32.mrf.mxu1  ;;  %v15610_v29 = vpop.f32.mrf.mxu0 }
 0x4df   : > { %v15611_v34 = vadd.f32 %v15610_v29, %v15609_v16  ;;  %v22795_v15 = vadd.f32 %v22728_v6, %v12880_v42 }
 0x4e0   : > { %v22797_v41 = vpop.f32.mrf.mxu1  ;;  %v15612_v12 = vpop.f32.mrf.mxu0 }
 0x4e1   : > { %v12885_v61 = vadd.f32 %v15611_v34, %v22442_v50 }
 0x4e2   : > { %v22800_v11 = vpop.f32.mrf.mxu1  ;;  %v15613_v25 = vpop.f32.mrf.mxu0 }
 0x4e3   : > { %v15614_v18 = vadd.f32 %v15613_v25, %v15612_v12  ;;  %v22803_v58 = vadd.f32 %v22703_v37, %v12885_v61 }
 0x4e4   : > { %v22805_v14 = vpop.f32.mrf.mxu1  ;;  %v15615_v30 = vpop.f32.mrf.mxu0 }
 0x4e5   : > { %v12888_v26 = vadd.f32 %v15614_v18, %v22451_v45 }
 0x4e6   : > { %v22808_v19 = vpop.f32.mrf.mxu1  ;;  %v15616_v6 = vpop.f32.mrf.mxu0 }
 0x4e7   : > { %v15617_v21 = vadd.f32 %v15616_v6, %v15615_v30  ;;  %v22811_v57 = vadd.f32 %v22718_v20, %v12888_v26 }
 0x4e8   : > { %v22813_v50 = vpop.f32.mrf.mxu1  ;;  %v15618_v54 = vpop.f32.mrf.mxu0 }
 0x4e9   : > { %v12893_v32 = vadd.f32 %v15617_v21, %v22472_v62 }
 0x4ea   : > { %v22816_v40 = vpop.f32.mrf.mxu1  ;;  %v15619_v37 = vpop.f32.mrf.mxu0 }
 0x4eb   : > { %24091 = vst [vmem:[#allocation178_spill] sm:$0xff] %v22816_v40  ;;  %v15620_v43 = vadd.f32 %v15619_v37, %v15618_v54  ;;  %v22819_v16 = vadd.f32 %v22742_v1, %v12893_v32 }
 0x4ec   : > { %v22821_v45 = vpop.f32.mrf.mxu1  ;;  %v15621_v42 = vpop.f32.mrf.mxu0 }
 0x4ed   : > { %v12896_v29 = vadd.f32 %v15620_v43, %v22479_v17 }
 0x4ee   : > { %v22824_v34 = vpop.f32.mrf.mxu1  ;;  %v15622_v20 = vpop.f32.mrf.mxu0 }
 0x4ef   : > { %24092 = vst [vmem:[#allocation177_spill] sm:$0xff] %v22824_v34  ;;  %v15623_v12 = vadd.f32 %v15622_v20, %v15621_v42  ;;  %v22827_v61 = vadd.f32 %v22758_v51, %v12896_v29 }
 0x4f0   : > { %v22829_v62 = vpop.f32.mrf.mxu1  ;;  %v15624_v25 = vpop.f32.mrf.mxu0 }
 0x4f1   : > { %v12901_v18 = vadd.f32 %v15623_v12, %v22466_v38 }
 0x4f2   : > { %v15715_v30 = vpop.f32.mrf.mxu1  ;;  %v15625_v1 = vpop.f32.mrf.mxu0 }
 0x4f3   : > { %v15626_v26 = vadd.f32 %v15625_v1, %v15624_v25  ;;  %v22833_v6 = vadd.f32 %v22733_v2, %v12901_v18 }
 0x4f4   : > { %v15716_v21 = vpop.f32.mrf.mxu1  ;;  %v15627_v17 = vpop.f32.mrf.mxu0 }
 0x4f5   : > { %v12904_v54 = vadd.f32 %v15626_v26, %v22476_v35  ;;  %v22836_v32 = vadd.f32 %v15716_v21, %v15715_v30 }
 0x4f6   : > { %v15718_v37 = vpop.f32.mrf.mxu1  ;;  %v15628_v51 = vpop.f32.mrf.mxu0 }
 0x4f7   : > { %v15629_v43 = vadd.f32 %v15628_v51, %v15627_v17  ;;  %v22839_v42 = vadd.f32 %v22749_v13, %v12904_v54 }
 0x4f8   : > { %v15719_v29 = vpop.f32.mrf.mxu1  ;;  %v15630_v38 = vpop.f32.mrf.mxu0 }
 0x4f9   : > { %v12909_v20 = vadd.f32 %v15629_v43, %v22515_v55  ;;  %v22842_v12 = vadd.f32 %v15719_v29, %v15718_v37 }
 0x4fa   : > { %v15721_v2 = vpop.f32.mrf.mxu1  ;;  %v15631_v25 = vpop.f32.mrf.mxu0 }
 0x4fb   : > { %v15632_v18 = vadd.f32 %v15631_v25, %v15630_v38  ;;  %v22845_v1 = vadd.f32 %v22768_v53, %v12909_v20 }
 0x4fc   : > { %v15722_v35 = vpop.f32.mrf.mxu1  ;;  %v15633_v30 = vpop.f32.mrf.mxu0 }
 0x4fd   : > { %24093 = vst [vmem:[#allocation180_spill] sm:$0xff] %v22845_v1  ;;  %v12912_v26 = vadd.f32 %v15632_v18, %v22525_v5  ;;  %v22848_v21 = vadd.f32 %v15722_v35, %v15721_v2 }
 0x4fe   : > { %v15724_v13 = vpop.f32.mrf.mxu1  ;;  %v15634_v17 = vpop.f32.mrf.mxu0 }
 0x4ff   : > { %v15635_v54 = vadd.f32 %v15634_v17, %v15633_v30  ;;  %v22851_v51 = vadd.f32 %v22780_v10, %v12912_v26 }
 0x500   : > { %v15725_v55 = vpop.f32.mrf.mxu1  ;;  %v15636_v37 = vpop.f32.mrf.mxu0 }
 0x501   : > { %24094 = vst [vmem:[#allocation179_spill] sm:$0xff] %v22851_v51  ;;  %v12917_v43 = vadd.f32 %v15635_v54, %v22512_v48  ;;  %v22854_v29 = vadd.f32 %v15725_v55, %v15724_v13 }
 0x502   : > { %v15727_v53 = vpop.f32.mrf.mxu1  ;;  %v15637_v38 = vpop.f32.mrf.mxu0 }
 0x503   : > { %v15638_v20 = vadd.f32 %v15637_v38, %v15636_v37  ;;  %v22857_v25 = vadd.f32 %v22763_v28, %v12917_v43 }
 0x504   : > { %v15728_v5 = vpop.f32.mrf.mxu1  ;;  %v15639_v2 = vpop.f32.mrf.mxu0 }
 0x505   : > { %v12920_v18 = vadd.f32 %v15638_v20, %v22522_v36  ;;  %v22860_v35 = vadd.f32 %v15728_v5, %v15727_v53 }
 0x506   : > { %v15730_v10 = vpop.f32.mrf.mxu1  ;;  %v15640_v30 = vpop.f32.mrf.mxu0 }
 0x507   : > { %v15641_v26 = vadd.f32 %v15640_v30, %v15639_v2  ;;  %v22863_v17 = vadd.f32 %v22775_v52, %v12920_v18 }
 0x508   : > { %v15731_v48 = vpop.f32.mrf.mxu1  ;;  %v15642_v13 = vpop.f32.mrf.mxu0 }
 0x509   : > { %24095 = vst [vmem:[#allocation10_spill] sm:$0xff] %v22863_v17  ;;  %v12925_v54 = vadd.f32 %v15641_v26, %v22553_v8  ;;  %v22866_v55 = vadd.f32 %v15731_v48, %v15730_v10 }
 0x50a   : > { %v15733_v28 = vpop.f32.mrf.mxu1  ;;  %v15643_v37 = vpop.f32.mrf.mxu0 }
 0x50b   : > { %v15644_v43 = vadd.f32 %v15643_v37, %v15642_v13  ;;  %v22869_v38 = vadd.f32 %v22790_v24, %v12925_v54 }
 0x50c   : > { %v15734_v36 = vpop.f32.mrf.mxu1  ;;  %v15645_v53 = vpop.f32.mrf.mxu0 }
 0x50d   : > { %24096 = vst [vmem:[#allocation12_spill] sm:$0xff] %v22869_v38  ;;  %v12928_v20 = vadd.f32 %v15644_v43, %v22572_v46  ;;  %v22872_v5 = vadd.f32 %v15734_v36, %v15733_v28 }
 0x50e   : > { %v22874_v52 = vpop.f32.mrf.mxu1  ;;  %v15646_v2 = vpop.f32.mrf.mxu0 }
 0x50f   : > { %v15647_v18 = vadd.f32 %v15646_v2, %v15645_v53  ;;  %v22877_v8 = vadd.f32 %v22797_v41, %v12928_v20 }
 0x510   : > { %v22879_v10 = vpop.f32.mrf.mxu1  ;;  %v15648_v30 = vpop.f32.mrf.mxu0 }
 0x511   : > { %24097 = vst [vmem:[#allocation11_spill] sm:$0xff] %v22877_v8  ;;  %v12933_v26 = vadd.f32 %v15647_v18, %v22546_v47 }
 0x512   : > { %v15739_v24 = vpop.f32.mrf.mxu1  ;;  %v15649_v48 = vpop.f32.mrf.mxu0 }
 0x513   : > { %v15650_v13 = vadd.f32 %v15649_v48, %v15648_v30  ;;  %v22883_v54 = vadd.f32 %v22783_v63, %v12933_v26 }
 0x514   : > { %v15740_v46 = vpop.f32.mrf.mxu1  ;;  %v15651_v28 = vpop.f32.mrf.mxu0 }
 0x515   : > { %24098 = vst [vmem:[#allocation13_spill] sm:$0xff] %v22883_v54  ;;  %v12936_v37 = vadd.f32 %v15650_v13, %v22563_v39  ;;  %v22886_v43 = vadd.f32 %v15740_v46, %v15739_v24 }
 0x516   : > { %v22888_v36 = vpop.f32.mrf.mxu1  ;;  %v15652_v41 = vpop.f32.mrf.mxu0 }
 0x517   : > { %v15653_v53 = vadd.f32 %v15652_v41, %v15651_v28  ;;  %v22891_v20 = vadd.f32 %v22792_v60, %v12936_v37 }
 0x518   : > { %v22893_v47 = vpop.f32.mrf.mxu1  ;;  %v15654_v2 = vpop.f32.mrf.mxu0 }
 0x519   : > { %24099 = vst [vmem:[#allocation15_spill] sm:$0xff] %v22891_v20  ;;  %v12941_v18 = vadd.f32 %v15653_v53, %v22584_v3 }
 0x51a   : > { %v22896_v63 = vpop.f32.mrf.mxu1  ;;  %v15655_v30 = vpop.f32.mrf.mxu0 }
 0x51b   : > { %v15656_v26 = vadd.f32 %v15655_v30, %v15654_v2  ;;  %v22899_v39 = vadd.f32 %v22805_v14, %v12941_v18 }
 0x51c   : > { %v22901_v24 = vpop.f32.mrf.mxu1  ;;  %v15657_v48 = vpop.f32.mrf.mxu0 }
 0x51d   : > { %24100 = vst [vmem:[#allocation20_spill] sm:$0xff] %v22899_v39  ;;  %v12944_v13 = vadd.f32 %v15656_v26, %v22600_v33 }
 0x51e   : > { %v22904_v46 = vpop.f32.mrf.mxu1  ;;  %v15658_v60 = vpop.f32.mrf.mxu0 }
 0x51f   : > { %v15659_v28 = vadd.f32 %v15658_v60, %v15657_v48  ;;  %v22907_v37 = vadd.f32 %v22813_v50, %v12944_v13 }
 0x520   : > { %v22909_v3 = vpop.f32.mrf.mxu1  ;;  %v15660_v41 = vpop.f32.mrf.mxu0 }
 0x521   : > { %24101 = vst [vmem:[#allocation17_spill] sm:$0xff] %v22907_v37  ;;  %v12949_v53 = vadd.f32 %v15659_v28, %v22598_v9 }
 0x522   : > { %v22912_v2 = vpop.f32.mrf.mxu1  ;;  %v15661_v14 = vpop.f32.mrf.mxu0 }
 0x523   : > { %v15662_v18 = vadd.f32 %v15661_v14, %v15660_v41  ;;  %v22915_v30 = vadd.f32 %v22800_v11, %v12949_v53 }
 0x524   : > { %v22917_v33 = vpop.f32.mrf.mxu1  ;;  %v15663_v26 = vpop.f32.mrf.mxu0 }
 0x525   : > { %24102 = vst [vmem:[#allocation23_spill] sm:$0xff] %v22915_v30  ;;  %v12952_v48 = vadd.f32 %v15662_v18, %v22611_v22 }
 0x526   : > { %v22920_v60 = vpop.f32.mrf.mxu1  ;;  %v15664_v50 = vpop.f32.mrf.mxu0 }
 0x527   : > { %v15665_v13 = vadd.f32 %v15664_v50, %v15663_v26  ;;  %v22923_v34 = vadd.f32 %v22808_v19, %v12952_v48 }
 0x528   : > { %v22925_v9 = vpop.f32.mrf.mxu1  ;;  %v15666_v28 = vpop.f32.mrf.mxu0 }
 0x529   : > { %24103 = vst [vmem:[#allocation19_spill] sm:$0xff] %v22923_v34  ;;  %v12957_v41 = vadd.f32 %v15665_v13, %v22642_v0 }
 0x52a   : > { %v22928_v14 = vpop.f32.mrf.mxu1  ;;  %v15667_v11 = vpop.f32.mrf.mxu0 }
 0x52b   : > { %v15668_v53 = vadd.f32 %v15667_v11, %v15666_v28  ;;  %v22931_v40 = vadd.f32 %v22821_v45, %v12957_v41 }
 0x52c   : > { %v22933_v22 = vpop.f32.mrf.mxu1  ;;  %v15669_v18 = vpop.f32.mrf.mxu0 }
 0x52d   : > { %24104 = vst [vmem:[#allocation21_spill] sm:$0xff] %v22931_v40  ;;  %v12960_v26 = vadd.f32 %v15668_v53, %v22654_v4  ;;  %v24107_v53 = vld [vmem:[#allocation170_spill] sm:$0xff] }
 0x52e   : > { %v22936_v50 = vpop.f32.mrf.mxu1  ;;  %v15670_v19 = vpop.f32.mrf.mxu0 }
 0x52f   : > { %v15671_v48 = vadd.f32 %v15670_v19, %v15669_v18  ;;  %v22939_v37 = vadd.f32 %v22829_v62, %v12960_v26 }
 0x530   : > { %v22941_v0 = vpop.f32.mrf.mxu1  ;;  %v15672_v13 = vpop.f32.mrf.mxu0 }
 0x531   : > { %24105 = vst [vmem:[#allocation24_spill] sm:$0xff] %v22939_v37  ;;  %v22944_v28 = vadd.f32 %v15671_v48, %v22640_v44 }
 0x532   : > { %v22946_v45 = vpop.f32.mrf.mxu1  ;;  %v15673_v41 = vpop.f32.mrf.mxu0 }
 0x533   : > { %24106 = vst [vmem:[#allocation25_spill] sm:$0xff] %v22944_v28  ;;  %v15674_v11 = vadd.f32 %v15673_v41, %v15672_v13 }
 0x534   : > { %v22948_v40 = vpop.f32.mrf.mxu1  ;;  %v16273_v4 = vpop.f32.mrf.mxu0 }
 0x535   : > { %v22951_v34 = vadd.f32 %v15674_v11, %v24107_v53  ;;  %v13601_v18 = vadd.f32 %v16273_v4, %v22848_v21 }
 0x536   : > { %v22954_v62 = vpop.f32.mrf.mxu1  ;;  %v13592_v26 = vpop.f32.mrf.mxu0 }
 0x537   : > { %24108 = vst [vmem:[#allocation22_spill] sm:$0xff] %v22951_v34  ;;  %v13593_v19 = vadd.f32 %v22836_v32, %v13592_v26  ;;  %v22958_v44 = vadd.f32 %v13601_v18, %v22708_v7  ;;  %v24109_v26 = vld [vmem:[#allocation166_spill] sm:$0xff] }
 0x538   : > { %v22960_v48 = vpop.f32.mrf.mxu1  ;;  %v16274_v37 = vpop.f32.mrf.mxu0 }
 0x539   : > { %v13604_v13 = vadd.f32 %v16274_v37, %v22854_v29  ;;  %v22964_v41 = vadd.f32 %v13593_v19, %v22680_v23 }
 0x53a   : > { %v22966_v11 = vpop.f32.mrf.mxu1  ;;  %v13595_v53 = vpop.f32.mrf.mxu0 }
 0x53b   : > { %v13596_v21 = vadd.f32 %v22842_v12, %v13595_v53  ;;  %v22970_v4 = vadd.f32 %v13604_v13, %v22726_v31  ;;  %v24110_v13 = vld [vmem:[#allocation171_spill] sm:$0xff] }
 0x53c   : > { %v22972_v32 = vpop.f32.mrf.mxu1  ;;  %v16277_v7 = vpop.f32.mrf.mxu0 }
 0x53d   : > { %v13617_v18 = vadd.f32 %v16277_v7, %v22872_v5  ;;  %v22976_v34 = vadd.f32 %v13596_v21, %v24109_v26 }
 0x53e   : > { %v22978_v29 = vpop.f32.mrf.mxu1  ;;  %v13608_v23 = vpop.f32.mrf.mxu0 }
 0x53f   : > { %v13609_v37 = vadd.f32 %v22860_v35, %v13608_v23  ;;  %v22982_v19 = vadd.f32 %v13617_v18, %v22766_v27 }
 0x540   : > { %v22984_v12 = vpop.f32.mrf.mxu1  ;;  %v16278_v31 = vpop.f32.mrf.mxu0 }
 0x541   : > { %v22987_v53 = vadd.f32 %v13609_v37, %v24110_v13  ;;  %v15744_v13 = vadd.f32 %v22893_v47, %v22888_v36 }
 0x542   : > { %v22989_v28 = vpop.f32.mrf.mxu1  ;;  %v13611_v5 = vpop.f32.mrf.mxu0 }
 0x543   : > { %24111 = vst [vmem:[#allocation27_spill] sm:$0xff] %v22989_v28  ;;  %v13612_v21 = vadd.f32 %v22866_v55, %v13611_v5 }
 0x544   : > { %v22992_v7 = vpop.f32.mrf.mxu1  ;;  %v22994_v26 = vpop.f32.mrf.mxu0 }
 0x545   : > { %24112 = vst [vmem:[#allocation26_spill] sm:$0xff] %v22992_v7  ;;  %v22997_v35 = vadd.f32 %v13612_v21, %v22756_v49 }
 0x546   : > { %v22999_v27 = vpop.f32.mrf.mxu1  ;;  %v13624_v18 = vpop.f32.mrf.mxu0 }
 0x547   : > { %24113 = vst [vmem:[#allocation30_spill] sm:$0xff] %v22999_v27  ;;  %v13625_v23 = vadd.f32 %v22886_v43, %v13624_v18 }
 0x548   : > { %v23002_v39 = vpop.f32.mrf.mxu1  ;;  %v23004_v37 = vpop.f32.mrf.mxu0 }
 0x549   : > { %24114 = vst [vmem:[#allocation28_spill] sm:$0xff] %v23002_v39  ;;  %v23009_v55 = vadd.f32 %v13625_v23, %v22788_v56 }
 0x54a   : > { %v23011_v5 = vpop.f32.mrf.mxu1  ;;  %v13627_v30 = vpop.f32.mrf.mxu0 }
 0x54b   : > { %24115 = vst [vmem:[#allocation29_spill] sm:$0xff] %v23011_v5  ;;  %v13628_v49 = vadd.f32 %v15744_v13, %v13627_v30 }
 0x54c   : > { %v23013_v21 = vpop.f32.mrf.mxu1  ;;  %v23015_v8 = vpop.f32.mrf.mxu0 }
 0x54d   : > { %24116 = vst [vmem:[#allocation32_spill] sm:$0xff] %v23013_v21  ;;  %v23018_v43 = vadd.f32 %v13628_v49, %v22795_v15 }
 0x54e   : > { %v23020_v18 = vpop.f32.mrf.mxu1  ;;  %v23022_v20 = vpop.f32.mrf.mxu0 }
 0x54f   : > { %24117 = vst [vmem:[#allocation31_spill] sm:$0xff] %v23020_v18 }
 0x550   : > { %v23024_v38 = vpop.f32.mrf.mxu1  ;;  %v23026_v36 = vpop.f32.mrf.mxu0 }
 0x551   : > { %24118 = vst [vmem:[#allocation40_spill] sm:$0xff] %v23024_v38 }
 0x552   : > { %v23028_v56 = vpop.f32.mrf.mxu1  ;;  %v23030_v47 = vpop.f32.mrf.mxu0 }
 0x553   : > { %24119 = vst [vmem:[#allocation37_spill] sm:$0xff] %v23028_v56 }
 0x554   : > { %v23032_v30 = vpop.f32.mrf.mxu1  ;;  %v23034_v23 = vpop.f32.mrf.mxu0 }
 0x555   : > { %24120 = vst [vmem:[#allocation42_spill] sm:$0xff] %v23032_v30 }
 0x556   : > { %v23036_v13 = vpop.f32.mrf.mxu1  ;;  %v23038_v15 = vpop.f32.mrf.mxu0 }
 0x557   : > { %24121 = vst [vmem:[#allocation39_spill] sm:$0xff] %v23036_v13 }
 0x558   : > { %v23040_v49 = vpop.f32.mrf.mxu1  ;;  %v23042_v54 = vpop.f32.mrf.mxu0 }
 0x559   : > { %24122 = vst [vmem:[#allocation41_spill] sm:$0xff] %v23040_v49 }
 0x55a   : > { %v23044_v39 = vpop.f32.mrf.mxu1  ;;  %v23046_v27 = vpop.f32.mrf.mxu0 }
 0x55b   : > { %24123 = vst [vmem:[#allocation43_spill] sm:$0xff] %v23044_v39 }
 0x55c   : > { %v23048_v56 = vpop.f32.mrf.mxu1  ;;  %v23050_v51 = vpop.f32.mrf.mxu0 }
 0x55d   : > { %24124 = vst [vmem:[#allocation44_spill] sm:$0xff] %v23048_v56  ;;  %24125 = vst [vmem:[#allocation45_spill] sm:$0xff] %v23050_v51 }
 0x55e   : > { %v23052_v30 = vpop.f32.mrf.mxu1  ;;  %v23054_v38 = vpop.f32.mrf.mxu0 }
 0x55f   : > { %24126 = vst [vmem:[#allocation47_spill] sm:$0xff] %v23052_v30  ;;  %24127 = vst [vmem:[#allocation46_spill] sm:$0xff] %v23054_v38  ;;  %v23073_v38 = vld [vmem:[%s23289_s5] ss:$0 sm:$0xff] }
 0x560   : > { %v23056_v13 = vpop.f32.mrf.mxu1  ;;  %v23058_v18 = vpop.f32.mrf.mxu0 }
 0x561   : > { %24128 = vst [vmem:[#allocation50_spill] sm:$0xff] %v23056_v13  ;;  %24129 = vst [vmem:[#allocation48_spill] sm:$0xff] %v23058_v18 }
 0x562   : > { %v23060_v49 = vpop.f32.mrf.mxu1  ;;  %v23062_v7 = vpop.f32.mrf.mxu0 }
 0x563   : > { %24130 = vst [vmem:[#allocation49_spill] sm:$0xff] %v23060_v49  ;;  %24131 = vst [vmem:[#allocation54_spill] sm:$0xff] %v23062_v7  ;;  %v15738_v49 = vadd.f32 %v22879_v10, %v22874_v52 }
 0x564   : > { %v23064_v39 = vpop.f32.mrf.mxu1  ;;  %v16321_v28 = vpop.f32.mrf.mxu0 }
 0x565   : > { %24132 = vst [vmem:[#allocation53_spill] sm:$0xff] %v23064_v39  ;;  %v14157_v30 = vadd.f32 %v16321_v28, %v22958_v44  ;;  %v13620_v51 = vadd.f32 %v16278_v31, %v15738_v49  ;;  %v15759_v49 = vadd.f32 %v22933_v22, %v22928_v14 }
 0x566   : > { %v23066_v17 = vpop.f32.mrf.mxu1  ;;  %v14028_v56 = vpop.f32.mrf.mxu0 }
 0x567   : > { %24133 = vst [vmem:[#allocation56_spill] sm:$0xff] %v23066_v17  ;;  %v14155_v7 = vadd.f32 %v14028_v56, %v22964_v41  ;;  %v14196_v28 = vadd.f32 %v23073_v38, %v14157_v30  ;;  %v13726_v31 = vadd.f32 %v13620_v51, %v22778_v59 }
 0x568   : > { %v16322_v13 = vpop.f32.mrf.mxu0  ;;  %v23081_v17 = vpop.f32.mrf.mxu1 }
 0x569   : > { %v14158_v39 = vadd.f32 %v16322_v13, %v22970_v4  ;;  %v14194_v5 = vadd.f32 %v23073_v38, %v14155_v7  ;;  %v15747_v4 = vadd.f32 %v22901_v24, %v22896_v63 }
 0x56a   : > { %v14031_v18 = vpop.f32.mrf.mxu0  ;;  %v23088_v41 = vpop.f32.mrf.mxu1 }
 0x56b   : > { %v14197_v44 = vadd.f32 %v23073_v38, %v14158_v39  ;;  %v14156_v1 = vadd.f32 %v14031_v18, %v22976_v34  ;;  %v13633_v18 = vadd.f32 %v22994_v26, %v15747_v4 }
 0x56c   : > { %v16325_v21 = vpop.f32.mrf.mxu0  ;;  %v23102_v24 = vpop.f32.mrf.mxu1 }
 0x56d   : > { %v15245_v52 = vpack.c.bf16 %v14197_v44, %v14196_v28  ;;  %v14195_v10 = vadd.f32 %v23073_v38, %v14156_v1  ;;  %v14161_v34 = vadd.f32 %v16325_v21, %v22982_v19  ;;  %v15750_v1 = vadd.f32 %v22909_v3, %v22904_v46 }
 0x56e   : > { %v14044_v56 = vpop.f32.mrf.mxu0  ;;  %v13729_v26 = vadd.f32 %v13633_v18, %v22803_v58  ;;  %v23113_v28 = vpop.f32.mrf.mxu1  ;;  %v15762_v58 = vadd.f32 %v22941_v0, %v22936_v50 }
 0x56f   : > { %15325 = vst [vmem:[%s23092_s26 + $0x8] sm:$0xff] %v15245_v52   ;;  %v15240_v39 = vpack.c.bf16 %v14195_v10, %v14194_v5  ;;  %v14159_v30 = vadd.f32 %v14044_v56, %v22987_v53  ;;  %v13636_v5 = vadd.f32 %v23004_v37, %v15750_v1  ;;  %v14200_v19 = vadd.f32 %v23073_v38, %v14161_v34 }
 0x570   : > { %v16326_v7 = vpop.f32.mrf.mxu0  ;;  %v15753_v10 = vadd.f32 %v22917_v33, %v22912_v2  ;;  %v13649_v56 = vadd.f32 %v23015_v8, %v15759_v49  ;;  %v13652_v2 = vadd.f32 %v23026_v36, %v15762_v58  ;;  %v15771_v36 = vadd.f32 %v22972_v32, %v22966_v11  ;;  %v24140_v58 = vld [vmem:[#allocation45_spill] sm:$0xff] }
 0x571   : > { %15241 = vst [vmem:[%s23092_s26] sm:$0xff] %v15240_v39   ;;  %v14162_v63 = vadd.f32 %v16326_v7, %v13726_v31  ;;  %v14198_v46 = vadd.f32 %v23073_v38, %v14159_v30  ;;  %v15756_v39 = vadd.f32 %v22925_v9, %v22920_v60 }
 0x572   : > { %v14047_v13 = vpop.f32.mrf.mxu0  ;;  %v13641_v34 = vadd.f32 %v15753_v10, %v23022_v20  ;;  %v13733_v0 = vadd.f32 %v13649_v56, %v22833_v6  ;;  %v24138_v56 = vld [vmem:[#allocation27_spill] sm:$0xff] }
 0x573   : > { %v14201_v59 = vadd.f32 %v23073_v38, %v14162_v63  ;;  %v14160_v51 = vadd.f32 %v14047_v13, %v22997_v35  ;;  %v13730_v35 = vadd.f32 %v13636_v5, %v22811_v57  ;;  %v23127_v57 = vpop.f32.mrf.mxu1  ;;  %v13644_v7 = vadd.f32 %v15756_v39, %v23030_v47  ;;  %v24141_v39 = vld [vmem:[#allocation31_spill] sm:$0xff] }
 0x574   : > { %v16329_v21 = vpop.f32.mrf.mxu0  ;;  %v13731_v6 = vadd.f32 %v13641_v34, %v22819_v16  ;;  %v13734_v63 = vadd.f32 %v13652_v2, %v22839_v42  ;;  %v15765_v47 = vadd.f32 %v22948_v40, %v22946_v45  ;;  %v13665_v13 = vadd.f32 %v23034_v23, %v15771_v36  ;;  %v24142_v34 = vld [vmem:[#allocation40_spill] sm:$0xff] }
 0x575   : > { %v15255_v3 = vpack.c.bf16 %v14201_v59, %v14200_v19  ;;  %v14199_v53 = vadd.f32 %v23073_v38, %v14160_v51  ;;  %v14165_v52 = vadd.f32 %v16329_v21, %v13729_v26  ;;  %v23139_v1 = vpop.f32.mrf.mxu1  ;;  %v15774_v19 = vadd.f32 %v22984_v12, %v22978_v29 }
 0x576   : > { %v14060_v37 = vpop.f32.mrf.mxu0  ;;  %v13732_v59 = vadd.f32 %v13644_v7, %v22827_v61  ;;  %v15768_v51 = vadd.f32 %v22960_v48, %v22954_v62  ;;  %v13657_v16 = vadd.f32 %v15765_v47, %v23038_v15  ;;  %v13737_v12 = vadd.f32 %v13665_v13, %v22857_v25  ;;  %v24137_v25 = vld [vmem:[#allocation10_spill] sm:$0xff]  ;;  %v24148_v47 = vld [vmem:[#allocation13_spill] sm:$0xff] }
 0x577   : > { %15327 = vst [vmem:[%s23092_s26 + $0x18] sm:$0xff] %v15255_v3   ;;  %v15250_v44 = vpack.c.bf16 %v14199_v53, %v14198_v46  ;;  %v14163_v14 = vadd.f32 %v14060_v37, %v23009_v55  ;;  %v14204_v8 = vadd.f32 %v23073_v38, %v14165_v52  ;;  %v13688_v42 = vpop.f32.mrf.mxu1  ;;  %v13668_v40 = vadd.f32 %v23042_v54, %v15774_v19  ;;  %v24134_v3 = vld [vmem:[#allocation29_spill] sm:$0xff]  ;;  %v24135_v53 = vld [vmem:[#allocation32_spill] sm:$0xff]  ;;  %v24149_v19 = vld [vmem:[#allocation54_spill] sm:$0xff] }
 0x578   : > { %v16330_v4 = vpop.f32.mrf.mxu0  ;;  %v13660_v61 = vadd.f32 %v15768_v51, %v23046_v27  ;;  %v15783_v26 = vadd.f32 %v24135_v53, %v24134_v3  ;;  %v24136_v52 = vld [vmem:[#allocation180_spill] sm:$0xff]  ;;  %v24139_v27 = vld [vmem:[#allocation26_spill] sm:$0xff] }
 0x579   : > { %15326 = vst [vmem:[%s23092_s26 + $0x10] sm:$0xff] %v15250_v44   ;;  %v14166_v22 = vadd.f32 %v16330_v4, %v13730_v35  ;;  %v14202_v20 = vadd.f32 %v23073_v38, %v14163_v14  ;;  %v16298_v54 = vpop.f32.mrf.mxu1  ;;  %v13735_v35 = vadd.f32 %v13657_v16, %v24136_v52  ;;  %v13738_v10 = vadd.f32 %v13668_v40, %v24137_v25  ;;  %v24150_v16 = vld [vmem:[#allocation43_spill] sm:$0xff]  ;;  %v24155_v3 = vld [vmem:[#allocation42_spill] sm:$0xff] }
 0x57a   : > { %v14063_v31 = vpop.f32.mrf.mxu0  ;;  %v15777_v4 = vadd.f32 %v24139_v27, %v24138_v56  ;;  %v13681_v14 = vadd.f32 %v24140_v58, %v15783_v26  ;;  %v24159_v27 = vld [vmem:[#allocation39_spill] sm:$0xff] }
 0x57b   : > { %v14205_v33 = vadd.f32 %v23073_v38, %v14166_v22  ;;  %v14164_v50 = vadd.f32 %v14063_v31, %v23018_v43  ;;  %v15786_v31 = vadd.f32 %v24142_v34, %v24141_v39 }
 0x57c   : > { %v16333_v55 = vpop.f32.mrf.mxu0  ;;  %v13741_v13 = vadd.f32 %v13681_v14, %v24148_v47  ;;  %v24164_v47 = vld [vmem:[#allocation49_spill] sm:$0xff] }
 0x57d   : > { %v15265_v60 = vpack.c.bf16 %v14205_v33, %v14204_v8  ;;  %v14203_v9 = vadd.f32 %v23073_v38, %v14164_v50  ;;  %v14169_v43 = vadd.f32 %v16333_v55, %v13733_v0  ;;  %v24143_v33 = vld [vmem:[#allocation179_spill] sm:$0xff]  ;;  %v24144_v0 = vld [vmem:[#allocation30_spill] sm:$0xff]  ;;  %v24145_v55 = vld [vmem:[#allocation28_spill] sm:$0xff] }
 0x57e   : > { %v14076_v18 = vpop.f32.mrf.mxu0  ;;  %v13736_v50 = vadd.f32 %v13660_v61, %v24143_v33  ;;  %v15780_v7 = vadd.f32 %v24145_v55, %v24144_v0 }
 0x57f   : > { %15329 = vst [vmem:[%s23092_s26 + $0x28] sm:$0xff] %v15265_v60   ;;  %v15260_v30 = vpack.c.bf16 %v14203_v9, %v14202_v20  ;;  %v14167_v11 = vadd.f32 %v14076_v18, %v13731_v6  ;;  %v14208_v45 = vadd.f32 %v23073_v38, %v14169_v43  ;;  %v24146_v20 = vld [vmem:[#allocation46_spill] sm:$0xff]  ;;  %v13691_v9 = vpop.f32.mrf.mxu1  ;;  %v24147_v18 = vld [vmem:[#allocation48_spill] sm:$0xff] }
 0x580   : > { %v16334_v5 = vpop.f32.mrf.mxu0  ;;  %v13673_v60 = vadd.f32 %v15777_v4, %v24146_v20  ;;  %v24160_v4 = vld [vmem:[#allocation41_spill] sm:$0xff] }
 0x581   : > { %15328 = vst [vmem:[%s23092_s26 + $0x20] sm:$0xff] %v15260_v30   ;;  %v14170_v32 = vadd.f32 %v16334_v5, %v13734_v63  ;;  %v14206_v62 = vadd.f32 %v23073_v38, %v14167_v11  ;;  %v13684_v30 = vadd.f32 %v24147_v18, %v15786_v31  ;;  %v13676_v11 = vadd.f32 %v15780_v7, %v24149_v19 }
 0x582   : > { %v14079_v21 = vpop.f32.mrf.mxu0  ;;  %v15792_v58 = vadd.f32 %v24160_v4, %v24159_v27 }
 0x583   : > { %v14209_v23 = vadd.f32 %v23073_v38, %v14170_v32  ;;  %v14168_v29 = vadd.f32 %v14079_v21, %v13732_v59  ;;  %v24151_v21 = vld [vmem:[#allocation44_spill] sm:$0xff] }
 0x584   : > { %v16337_v46 = vpop.f32.mrf.mxu0  ;;  %v15795_v40 = vadd.f32 %v24151_v21, %v24150_v16  ;;  %v13692_v0 = vadd.f32 %v15792_v58, %v13691_v9  ;;  %v24165_v9 = vld [vmem:[#allocation53_spill] sm:$0xff] }
 0x585   : > { %v15275_v48 = vpack.c.bf16 %v14209_v23, %v14208_v45  ;;  %v14207_v15 = vadd.f32 %v23073_v38, %v14168_v29  ;;  %v14173_v44 = vadd.f32 %v16337_v46, %v13737_v12  ;;  %v16301_v45 = vpop.f32.mrf.mxu1  ;;  %v24152_v46 = vld [vmem:[#allocation12_spill] sm:$0xff] }
 0x586   : > { %v14092_v49 = vpop.f32.mrf.mxu0  ;;  %v13739_v61 = vadd.f32 %v13673_v60, %v24152_v46  ;;  %v13697_v26 = vadd.f32 %v23139_v1, %v15795_v40 }
 0x587   : > { %15331 = vst [vmem:[%s23092_s26 + $0x38] sm:$0xff] %v15275_v48   ;;  %v15270_v37 = vpack.c.bf16 %v14207_v15, %v14206_v62  ;;  %v14171_v2 = vadd.f32 %v14092_v49, %v13735_v35  ;;  %v14212_v43 = vadd.f32 %v23073_v38, %v14173_v44  ;;  %v24153_v62 = vld [vmem:[#allocation15_spill] sm:$0xff]  ;;  %v24154_v15 = vld [vmem:[#allocation37_spill] sm:$0xff]  ;;  %v24157_v44 = vld [vmem:[#allocation50_spill] sm:$0xff] }
 0x588   : > { %v16338_v22 = vpop.f32.mrf.mxu0  ;;  %v13742_v48 = vadd.f32 %v13684_v30, %v24153_v62  ;;  %v15789_v53 = vadd.f32 %v24155_v3, %v24154_v15  ;;  %v24162_v30 = vld [vmem:[#allocation20_spill] sm:$0xff]  ;;  %v24170_v15 = vld [vmem:[#allocation22_spill] sm:$0xff]  ;;  %v24171_v3 = vld [vmem:[#allocation177_spill] sm:$0xff] }
 0x589   : > { %15330 = vst [vmem:[%s23092_s26 + $0x30] sm:$0xff] %v15270_v37   ;;  %v14174_v8 = vadd.f32 %v16338_v22, %v13738_v10  ;;  %v14210_v32 = vadd.f32 %v23073_v38, %v14171_v2  ;;  %v24156_v37 = vld [vmem:[#allocation47_spill] sm:$0xff]  ;;  %v13704_v22 = vpop.f32.mrf.mxu1 }
 0x58a   : > { %v14095_v36 = vpop.f32.mrf.mxu0  ;;  %v15798_v52 = vadd.f32 %v24157_v44, %v24156_v37  ;;  %v24158_v10 = vld [vmem:[#allocation11_spill] sm:$0xff]  ;;  %v13689_v14 = vadd.f32 %v15789_v53, %v13688_v42  ;;  %v15807_v42 = vadd.f32 %v23102_v24, %v23088_v41  ;;  %v24166_v24 = vld [vmem:[#allocation17_spill] sm:$0xff]  ;;  %v13129_v53 = vadd.f32 %v24171_v3, %v24170_v15 }
 0x58b   : > { %v14213_v6 = vadd.f32 %v23073_v38, %v14174_v8  ;;  %v14172_v63 = vadd.f32 %v14095_v36, %v13736_v50  ;;  %v13740_v56 = vadd.f32 %v13676_v11, %v24158_v10  ;;  %v24161_v8 = vld [vmem:[#allocation23_spill] sm:$0xff]  ;;  %v16302_v60 = vpop.f32.mrf.mxu1  ;;  %v15810_v11 = vadd.f32 %v23127_v57, %v23113_v28 }
 0x58c   : > { %v16341_v5 = vpop.f32.mrf.mxu0  ;;  %v13700_v34 = vadd.f32 %v16298_v54, %v15798_v52  ;;  %v13745_v33 = vadd.f32 %v13697_v26, %v24161_v8 }
 0x58d   : > { %v15285_v59 = vpack.c.bf16 %v14213_v6, %v14212_v43  ;;  %v14211_v51 = vadd.f32 %v23073_v38, %v14172_v63  ;;  %v14177_v12 = vadd.f32 %v16341_v5, %v13741_v13  ;;  %v13743_v43 = vadd.f32 %v13689_v14, %v24162_v30  ;;  %v24163_v6 = vld [vmem:[#allocation19_spill] sm:$0xff]  ;;  %v13707_v40 = vpop.f32.mrf.mxu1  ;;  %v24173_v14 = vld [vmem:[#allocation24_spill] sm:$0xff] }
 0x58e   : > { %v14108_v23 = vpop.f32.mrf.mxu0  ;;  %v13746_v63 = vadd.f32 %v13700_v34, %v24163_v6  ;;  %v15801_v13 = vadd.f32 %v24165_v9, %v24164_v47  ;;  %v13713_v5 = vadd.f32 %v16301_v45, %v15807_v42  ;;  %v13716_v45 = vadd.f32 %v16302_v60, %v15810_v11 }
 0x58f   : > { %15333 = vst [vmem:[%s23092_s26 + $0x48] sm:$0xff] %v15285_v59   ;;  %v15280_v29 = vpack.c.bf16 %v14211_v51, %v14210_v32  ;;  %v14175_v35 = vadd.f32 %v14108_v23, %v13739_v61  ;;  %v14216_v31 = vadd.f32 %v23073_v38, %v14177_v12  ;;  %v13744_v59 = vadd.f32 %v13692_v0, %v24166_v24  ;;  %v24167_v51 = vld [vmem:[#allocation56_spill] sm:$0xff]  ;;  %v24169_v12 = vld [vmem:[#allocation178_spill] sm:$0xff] }
 0x590   : > { %v16342_v49 = vpop.f32.mrf.mxu0  ;;  %v15804_v16 = vadd.f32 %v23081_v17, %v24167_v51  ;;  %v13705_v21 = vadd.f32 %v15801_v13, %v13704_v22 }
 0x591   : > { %15332 = vst [vmem:[%s23092_s26 + $0x40] sm:$0xff] %v15280_v29   ;;  %v14178_v25 = vadd.f32 %v16342_v49, %v13742_v48  ;;  %v14214_v55 = vadd.f32 %v23073_v38, %v14175_v35  ;;  %v24168_v29 = vld [vmem:[#allocation25_spill] sm:$0xff] }
 0x592   : > { %v14111_v39 = vpop.f32.mrf.mxu0  ;;  %v13126_v46 = vadd.f32 %v24169_v12, %v24168_v29  ;;  %v13708_v17 = vadd.f32 %v15804_v16, %v13707_v40 }
 0x593   : > { %v14217_v1 = vadd.f32 %v23073_v38, %v14178_v25  ;;  %v14176_v2 = vadd.f32 %v14111_v39, %v13740_v56  ;;  %v24172_v25 = vld [vmem:[#allocation21_spill] sm:$0xff]  ;;  %v13750_v56 = vadd.f32 %v13716_v45, %v13129_v53 }
 0x594   : > { %v16345_v50 = vpop.f32.mrf.mxu0  ;;  %v13749_v62 = vadd.f32 %v13713_v5, %v13126_v46  ;;  %v13747_v10 = vadd.f32 %v13705_v21, %v24172_v25  ;;  %v13748_v22 = vadd.f32 %v13708_v17, %v24173_v14 }
 0x595   : > { %v15295_v7 = vpack.c.bf16 %v14217_v1, %v14216_v31  ;;  %v14215_v20 = vadd.f32 %v23073_v38, %v14176_v2  ;;  %v14181_v18 = vadd.f32 %v16345_v50, %v13745_v33 }
 0x596   : > { %v14124_v54 = vpop.f32.mrf.mxu0 }
 0x597   : > { %15335 = vst [vmem:[%s23092_s26 + $0x58] sm:$0xff] %v15295_v7   ;;  %v15290_v36 = vpack.c.bf16 %v14215_v20, %v14214_v55  ;;  %v14179_v32 = vadd.f32 %v14124_v54, %v13743_v43  ;;  %v14220_v61 = vadd.f32 %v23073_v38, %v14181_v18 }
 0x598   : > { %v16346_v19 = vpop.f32.mrf.mxu0 }
 0x599   : > { %15334 = vst [vmem:[%s23092_s26 + $0x50] sm:$0xff] %v15290_v36   ;;  %v14182_v41 = vadd.f32 %v16346_v19, %v13746_v63  ;;  %v14218_v26 = vadd.f32 %v23073_v38, %v14179_v32 }
 0x59a   : > { %v14127_v23 = vpop.f32.mrf.mxu0 }
 0x59b   : > { %v14221_v28 = vadd.f32 %v23073_v38, %v14182_v41  ;;  %v14180_v57 = vadd.f32 %v14127_v23, %v13744_v59 }
 0x59c   : > { %v16349_v48 = vpop.f32.mrf.mxu0 }
 0x59d   : > { %v15305_v49 = vpack.c.bf16 %v14221_v28, %v14220_v61  ;;  %v14219_v37 = vadd.f32 %v23073_v38, %v14180_v57  ;;  %v14185_v35 = vadd.f32 %v16349_v48, %v13749_v62 }
 0x59e   : > { %v14140_v44 = vpop.f32.mrf.mxu0 }
 0x59f   : > { %15337 = vst [vmem:[%s23092_s26 + $0x68] sm:$0xff] %v15305_v49   ;;  %v15300_v52 = vpack.c.bf16 %v14219_v37, %v14218_v26  ;;  %v14183_v4 = vadd.f32 %v14140_v44, %v13747_v10  ;;  %v14224_v34 = vadd.f32 %v23073_v38, %v14185_v35 }
 0x5a0   : > { %v16350_v27 = vpop.f32.mrf.mxu0 }
 0x5a1   : > { %15336 = vst [vmem:[%s23092_s26 + $0x60] sm:$0xff] %v15300_v52   ;;  %v14186_v58 = vadd.f32 %v16350_v27, %v13750_v56  ;;  %v14222_v2 = vadd.f32 %v23073_v38, %v14183_v4 }
 0x5a2   : > { %v14143_v39 = vpop.f32.mrf.mxu0 }
 0x5a3   : > { %v14225_v31 = vadd.f32 %v23073_v38, %v14186_v58  ;;  %v14184_v1 = vadd.f32 %v14143_v39, %v13748_v22 }
 0x5a5   : > { %v15315_v8 = vpack.c.bf16 %v14225_v31, %v14224_v34  ;;  %v14223_v33 = vadd.f32 %v23073_v38, %v14184_v1 }
 0x5a7   : > { %15339 = vst [vmem:[%s23092_s26 + $0x78] sm:$0xff] %v15315_v8   ;;  %v15310_v50 = vpack.c.bf16 %v14223_v33, %v14222_v2 }
 0x5a9   : > { %15338 = vst [vmem:[%s23092_s26 + $0x70] sm:$0xff] %v15310_v50  }
 0x5aa   : > { %16834 = shalt.err (!%p16831_p0)
}
 0x5ab   : > { %s16835_s17 = scalar_lea.hbm %s23236_s12, 2048  ;;  %s16839_s19 = scalar_lea.hbm %s23290_s6, 4096 }
 0x5ac   : > { %p16836_p1 = scmp.ne.s32.totalorder %s23236_s12, %s16835_s17  ;;  %p16840_p4 = scmp.lt.s32.totalorder %s23236_s12, %s23290_s6 }
 0x5ad   : > { %p16841_p7 = scmp.lt.s32.totalorder %s16839_s19, %s16835_s17 }
 0x5ae   : > { %p16837_p2 = pnand %p16836_p1, %p16971_p5 }
 0x5af   : > { %p16842_p6 = por %p16841_p7, %p16840_p4 }
 0x5b0   : > { %p16838_p3 = pneg %p16837_p2 }
 0x5b2   : > { %p16843_p8 = pnand %p16842_p6, %p16838_p3 }
 0x5b4   : > { %16846 = shalt.err (!%p16843_p8)
}
 0x5b5   : > { %s16896_s29 = smov 64   ;;  %s16897_s10 = smov 4  }
 0x5b6   : > { %16372 = dma.vmem_to_hbm [thread:$0]  (%p16971_p5), %s23238_s9, 2048, %s23236_s12, %s23244_s25, %s16896_s29, %s16896_s29, %s16897_s10  }
 0x5b7 PF: > { %p16384_p9 = scmp.ge.s32.totalorder %s16885_s24, 2  ;;  %s14415_s11 = sand.u32 1, %s16873_s21  }
 0x5b8   : > { %p24174_p10 = scmp.ne.s32.totalorder %s23550_s8, 0  ;;  %s14416_s13 = scalar_lea.sflag [#allocation5], %s14415_s11 }
 0x5ba   : > { %p16379_p11 = pnand %p16384_p9, %p24174_p10 }
 0x5bc   : > { %p16380_p12 = pneg %p16379_p11 }
 0x5be   : > { %16868 = dma.done.wait (%p16380_p12), %s14416_s13, 2048  }
 0x5bf   : > { %16870 = vsyncadd (%p16380_p12), %s14416_s13, 4294965248  ;;  %p17_p13 = scmp.ge.s32.totalorder %s16958_s27, 4   ;;  %s24175_s21 = smov %s16877_s22 }
 0x5c0   : > { %s24176_s22 = smov %s16881_s23  ;;  %s24177_s23 = smov %s16969_s30 }
 0x5c1   : > { %s24178_s24 = smov %s16958_s27  ;;  %19 = sbr.rel (!%p17_p13) target bundleno = 4 (0x4), region = 85 }
 0x5c6   :  { %14421 = vsyncpa [#allocation4], 1 }
 0x5c7   :  { %14423 = vsyncpa [#allocation4 + $0x1], 1 }
 0x5c8   :  { %14424 = vsyncpa [#allocation5], 1 }
 0x5c9   :  { %14426 = vsyncpa [#allocation5 + $0x1], 1 }

</bundles_post_ra>
